<compile_context>
chip_gen: v7x
topology: tpu7x:2x2x1
jax: 0.10.0
libtpu: 0.0.40
codegen_flags: <defaults>
</compile_context>

<pallas_src>
import numpy as np
import jax
import jax.numpy as jnp
from jax.experimental import pallas as pl
from jax.experimental.pallas import tpu as pltpu

CH_IN = 1289
BN_EPS = 1e-5


def _round_up(x, m):
    return (x + m - 1) // m * m


def _sc_seg_kernel(
    x_ref,
    w1_ref, b1_ref,
    w2_ref, b2_ref,
    w3_ref, b3_ref,
    w4_ref, b4_ref,
    w5_ref, b5_ref,
    out_ref,
):
    """Fused forward for one (batch, point-tile) block.

    x_ref:   (1, CH_IN, TN)  input points in native NCW layout (points on lanes)
    out_ref: (1, 16, TN)     output channels for those points (lane-dense)
    Weights are (C_out, C_in) bf16; biases are (C_out, 1) f32 columns.
    """
    f32 = jnp.float32
    bf16 = jnp.bfloat16

    # Cast the tile to bf16 in-kernel (keeps the HBM copy f32, feeds MXU bf16).
    x = x_ref[0].astype(bf16)                                   # (CH_IN, TN)

    h = jnp.dot(w1_ref[...], x, preferred_element_type=f32) + b1_ref[...]
    h = jnp.maximum(h, 0.0).astype(bf16)                        # (1024, TN)

    h = jnp.dot(w2_ref[...], h, preferred_element_type=f32) + b2_ref[...]
    h = jnp.maximum(h, 0.0).astype(bf16)                        # (512, TN)

    h = jnp.dot(w3_ref[...], h, preferred_element_type=f32) + b3_ref[...]
    h = jnp.maximum(h, 0.0).astype(bf16)                        # (256, TN)

    h = jnp.dot(w4_ref[...], h, preferred_element_type=f32) + b4_ref[...]
    h = jnp.maximum(h, 0.0).astype(bf16)                        # (64, TN)

    y = jnp.dot(w5_ref[...], h, preferred_element_type=f32) + b5_ref[...]
    out_ref[0] = y.astype(out_ref.dtype)                        # (16, TN)


def sc_seg_pallas(feat_seg, params, *, tile_n=512):
    """feat_seg: (B, CH_IN, N) float32 (NCW, like the PyTorch module).

    Returns (B, 16, N) float32, matching the PyTorch module output layout.
    """
    B, C, N = feat_seg.shape
    assert C == CH_IN

    # Clamp the point tile for small N (keeping 128-lane alignment) and pad the
    # ragged tail instead of asserting divisibility.  Padded zero-columns flow
    # through the network independently and are sliced off afterwards.
    tile_n = min(tile_n, _round_up(N, 128))
    n_pad = _round_up(N, tile_n)
    if n_pad != N:
        feat_seg = jnp.pad(feat_seg, ((0, 0), (0, 0), (0, n_pad - N)))

    grid = (B, n_pad // tile_n)

    def const_spec(a):
        nd = a.ndim
        return pl.BlockSpec(a.shape, lambda b, j, _nd=nd: (0,) * _nd)

    in_specs = [pl.BlockSpec((1, C, tile_n), lambda b, j: (b, 0, j))]
    in_specs += [const_spec(p) for p in params]

    out = pl.pallas_call(
        _sc_seg_kernel,
        out_shape=jax.ShapeDtypeStruct((B, 16, n_pad), jnp.float32),
        grid=grid,
        in_specs=in_specs,
        out_specs=pl.BlockSpec((1, 16, tile_n), lambda b, j: (b, 0, j)),
        compiler_params=pltpu.CompilerParams(
            dimension_semantics=("parallel", "parallel"),
            vmem_limit_bytes=48 << 20,   # v7x-safe (64 MiB physical per TC)
        ),
    )(feat_seg, *params)

    return out[:, :, :N] if n_pad != N else out


# ---------------------------------------------------------------------------
# Parameter construction (deterministic, synthetic) + BN folding (plain JAX).
# ---------------------------------------------------------------------------
def _fold_bn(w, b, gamma, beta, mean, var, eps=BN_EPS):
    """Fold inference-mode BatchNorm1d into a preceding 1x1 conv.

    w: (C_out, C_in), b: (C_out,).  Returns folded (w, b).
    """
    scale = gamma / jnp.sqrt(var + eps)
    return w * scale[:, None], (b - mean) * scale + beta


def build_params(key):
    def conv(k, cin, cout):
        kw, kb = jax.random.split(k)
        w = jax.random.normal(kw, (cout, cin), jnp.float32) / np.sqrt(cin)
        b = 0.01 * jax.random.normal(kb, (cout,), jnp.float32)
        return w, b

    def bn(k, c):
        k1, k2, k3, k4 = jax.random.split(k, 4)
        gamma = 1.0 + 0.1 * jax.random.normal(k1, (c,), jnp.float32)
        beta = 0.1 * jax.random.normal(k2, (c,), jnp.float32)
        mean = 0.1 * jax.random.normal(k3, (c,), jnp.float32)
        var = jax.random.uniform(k4, (c,), jnp.float32, 0.5, 1.5)
        return gamma, beta, mean, var

    keys = jax.random.split(key, 9)
    w1, b1 = conv(keys[0], CH_IN, 1024)
    w2, b2 = conv(keys[1], 1024, 512)
    w3, b3 = conv(keys[2], 512, 256)
    w4, b4 = conv(keys[3], 256, 64)
    w5, b5 = conv(keys[4], 64, 16)      # conv5 has no BN

    w1, b1 = _fold_bn(w1, b1, *bn(keys[5], 1024))
    w2, b2 = _fold_bn(w2, b2, *bn(keys[6], 512))
    w3, b3 = _fold_bn(w3, b3, *bn(keys[7], 256))
    w4, b4 = _fold_bn(w4, b4, *bn(keys[8], 64))

    def wq(w):   # weights feed the MXU in bf16
        return w.astype(jnp.bfloat16)

    def col(b):  # biases as (C_out, 1) f32 columns (added to f32 accumulator)
        return b.reshape(-1, 1).astype(jnp.float32)

    return (wq(w1), col(b1), wq(w2), col(b2), wq(w3), col(b3),
            wq(w4), col(b4), wq(w5), col(b5))


def sc_seg_reference(feat_seg, params):
    """Pure-JAX reference with precision-matched math (for validation)."""
    (w1, b1, w2, b2, w3, b3, w4, b4, w5, b5) = params
    x = feat_seg.astype(jnp.bfloat16)          # (B, C, N)

    def layer(w, b, h, relu=True):
        y = jnp.einsum("oc,bcn->bon", w, h,
                       preferred_element_type=jnp.float32) + b[None]
        if relu:
            y = jnp.maximum(y, 0.0)
        return y.astype(jnp.bfloat16) if relu else y

    h = layer(w1, b1, x)
    h = layer(w2, b2, h)
    h = layer(w3, b3, h)
    h = layer(w4, b4, h)
    return layer(w5, b5, h, relu=False)        # (B, 16, N) float32


if __name__ == "__main__":
    key = jax.random.PRNGKey(0)
    k_param, k_in = jax.random.split(key)

    params = build_params(k_param)

    B, N = 2, 16  # small point count; channel widths are fixed by the module
    feat_seg = jax.random.normal(k_in, (B, CH_IN, N), jnp.float32)

    out = jax.block_until_ready(sc_seg_pallas(feat_seg, params))
    ref = jax.block_until_ready(sc_seg_reference(feat_seg, params))

    np.testing.assert_allclose(np.asarray(out), np.asarray(ref),
                               rtol=1e-3, atol=1e-3)
    assert out.shape == (B, 16, N)
    print("KERNEL_OK")
</pallas_src>

<mosaic_0001>
module attributes {stable_mosaic.version = 11 : i64} {
  func.func @_sc_seg_kernel(%arg0: i32, %arg1: i32, %arg2: memref<1x1289x128xf32, #tpu.memory_space<vmem>>, %arg3: memref<1024x1289xbf16, #tpu.memory_space<vmem>>, %arg4: memref<1024x1xf32, #tpu.memory_space<vmem>>, %arg5: memref<512x1024xbf16, #tpu.memory_space<vmem>>, %arg6: memref<512x1xf32, #tpu.memory_space<vmem>>, %arg7: memref<256x512xbf16, #tpu.memory_space<vmem>>, %arg8: memref<256x1xf32, #tpu.memory_space<vmem>>, %arg9: memref<64x256xbf16, #tpu.memory_space<vmem>>, %arg10: memref<64x1xf32, #tpu.memory_space<vmem>>, %arg11: memref<16x64xbf16, #tpu.memory_space<vmem>>, %arg12: memref<16x1xf32, #tpu.memory_space<vmem>>, %arg13: memref<1x16x128xf32, #tpu.memory_space<vmem>>) attributes {dimension_semantics = [#tpu.dimension_semantics<parallel>, #tpu.dimension_semantics<parallel>], iteration_bounds = array<i64: 2, 1>, scalar_prefetch = 0 : i64, scratch_operands = 0 : i64, tpu.core_type = #tpu.core_type<tc>, window_params = [{transform_indices = @transform_0, window_bounds = array<i64: 1, 1289, 128>}, {pipeline_mode = #tpu.pipeline_mode<synchronous>, transform_indices = @transform_1, window_bounds = array<i64: 1024, 1289>}, {pipeline_mode = #tpu.pipeline_mode<synchronous>, transform_indices = @transform_2, window_bounds = array<i64: 1024, 1>}, {pipeline_mode = #tpu.pipeline_mode<synchronous>, transform_indices = @transform_3, window_bounds = array<i64: 512, 1024>}, {pipeline_mode = #tpu.pipeline_mode<synchronous>, transform_indices = @transform_4, window_bounds = array<i64: 512, 1>}, {pipeline_mode = #tpu.pipeline_mode<synchronous>, transform_indices = @transform_5, window_bounds = array<i64: 256, 512>}, {pipeline_mode = #tpu.pipeline_mode<synchronous>, transform_indices = @transform_6, window_bounds = array<i64: 256, 1>}, {pipeline_mode = #tpu.pipeline_mode<synchronous>, transform_indices = @transform_7, window_bounds = array<i64: 64, 256>}, {pipeline_mode = #tpu.pipeline_mode<synchronous>, transform_indices = @transform_8, window_bounds = array<i64: 64, 1>}, {pipeline_mode = #tpu.pipeline_mode<synchronous>, transform_indices = @transform_9, window_bounds = array<i64: 16, 64>}, {pipeline_mode = #tpu.pipeline_mode<synchronous>, transform_indices = @transform_10, window_bounds = array<i64: 16, 1>}, {transform_indices = @transform_11, window_bounds = array<i64: 1, 16, 128>}]} {
    %c0 = arith.constant 0 : index
    %c0_0 = arith.constant 0 : index
    %c0_1 = arith.constant 0 : index
    %0 = vector.load %arg2[%c0, %c0_0, %c0_1] : memref<1x1289x128xf32, #tpu.memory_space<vmem>>, vector<1x1289x128xf32>
    %1 = vector.shape_cast %0 : vector<1x1289x128xf32> to vector<1289x128xf32>
    %2 = arith.truncf %1 : vector<1289x128xf32> to vector<1289x128xbf16>
    %c0_2 = arith.constant 0 : index
    %c0_3 = arith.constant 0 : index
    %3 = vector.load %arg3[%c0_2, %c0_3] : memref<1024x1289xbf16, #tpu.memory_space<vmem>>, vector<1024x1289xbf16>
    %cst = arith.constant dense<0.000000e+00> : vector<1024x128xf32>
    %4 = tpu.matmul %3, %2, %cst {dimension_numbers = #tpu.dot_dimension_numbers<[1], [0], [0], [1], [0, 0, 1, 1], [], []>} : vector<1024x1289xbf16>, vector<1289x128xbf16>, vector<1024x128xf32> -> vector<1024x128xf32>
    %c0_4 = arith.constant 0 : index
    %c0_5 = arith.constant 0 : index
    %5 = vector.load %arg4[%c0_4, %c0_5] : memref<1024x1xf32, #tpu.memory_space<vmem>>, vector<1024x1xf32>
    %6 = vector.broadcast %5 : vector<1024x1xf32> to vector<1024x128xf32>
    %7 = arith.addf %4, %6 : vector<1024x128xf32>
    %cst_6 = arith.constant 0.000000e+00 : f32
    %8 = vector.broadcast %cst_6 : f32 to vector<1024x128xf32>
    %9 = arith.maximumf %7, %8 : vector<1024x128xf32>
    %10 = arith.truncf %9 : vector<1024x128xf32> to vector<1024x128xbf16>
    %c0_7 = arith.constant 0 : index
    %c0_8 = arith.constant 0 : index
    %11 = vector.load %arg5[%c0_7, %c0_8] : memref<512x1024xbf16, #tpu.memory_space<vmem>>, vector<512x1024xbf16>
    %cst_9 = arith.constant dense<0.000000e+00> : vector<512x128xf32>
    %12 = tpu.matmul %11, %10, %cst_9 {dimension_numbers = #tpu.dot_dimension_numbers<[1], [0], [0], [1], [0, 0, 1, 1], [], []>} : vector<512x1024xbf16>, vector<1024x128xbf16>, vector<512x128xf32> -> vector<512x128xf32>
    %c0_10 = arith.constant 0 : index
    %c0_11 = arith.constant 0 : index
    %13 = vector.load %arg6[%c0_10, %c0_11] : memref<512x1xf32, #tpu.memory_space<vmem>>, vector<512x1xf32>
    %14 = vector.broadcast %13 : vector<512x1xf32> to vector<512x128xf32>
    %15 = arith.addf %12, %14 : vector<512x128xf32>
    %cst_12 = arith.constant 0.000000e+00 : f32
    %16 = vector.broadcast %cst_12 : f32 to vector<512x128xf32>
    %17 = arith.maximumf %15, %16 : vector<512x128xf32>
    %18 = arith.truncf %17 : vector<512x128xf32> to vector<512x128xbf16>
    %c0_13 = arith.constant 0 : index
    %c0_14 = arith.constant 0 : index
    %19 = vector.load %arg7[%c0_13, %c0_14] : memref<256x512xbf16, #tpu.memory_space<vmem>>, vector<256x512xbf16>
    %cst_15 = arith.constant dense<0.000000e+00> : vector<256x128xf32>
    %20 = tpu.matmul %19, %18, %cst_15 {dimension_numbers = #tpu.dot_dimension_numbers<[1], [0], [0], [1], [0, 0, 1, 1], [], []>} : vector<256x512xbf16>, vector<512x128xbf16>, vector<256x128xf32> -> vector<256x128xf32>
    %c0_16 = arith.constant 0 : index
    %c0_17 = arith.constant 0 : index
    %21 = vector.load %arg8[%c0_16, %c0_17] : memref<256x1xf32, #tpu.memory_space<vmem>>, vector<256x1xf32>
    %22 = vector.broadcast %21 : vector<256x1xf32> to vector<256x128xf32>
    %23 = arith.addf %20, %22 : vector<256x128xf32>
    %cst_18 = arith.constant 0.000000e+00 : f32
    %24 = vector.broadcast %cst_18 : f32 to vector<256x128xf32>
    %25 = arith.maximumf %23, %24 : vector<256x128xf32>
    %26 = arith.truncf %25 : vector<256x128xf32> to vector<256x128xbf16>
    %c0_19 = arith.constant 0 : index
    %c0_20 = arith.constant 0 : index
    %27 = vector.load %arg9[%c0_19, %c0_20] : memref<64x256xbf16, #tpu.memory_space<vmem>>, vector<64x256xbf16>
    %cst_21 = arith.constant dense<0.000000e+00> : vector<64x128xf32>
    %28 = tpu.matmul %27, %26, %cst_21 {dimension_numbers = #tpu.dot_dimension_numbers<[1], [0], [0], [1], [0, 0, 1, 1], [], []>} : vector<64x256xbf16>, vector<256x128xbf16>, vector<64x128xf32> -> vector<64x128xf32>
    %c0_22 = arith.constant 0 : index
    %c0_23 = arith.constant 0 : index
    %29 = vector.load %arg10[%c0_22, %c0_23] : memref<64x1xf32, #tpu.memory_space<vmem>>, vector<64x1xf32>
    %30 = vector.broadcast %29 : vector<64x1xf32> to vector<64x128xf32>
    %31 = arith.addf %28, %30 : vector<64x128xf32>
    %cst_24 = arith.constant 0.000000e+00 : f32
    %32 = vector.broadcast %cst_24 : f32 to vector<64x128xf32>
    %33 = arith.maximumf %31, %32 : vector<64x128xf32>
    %34 = arith.truncf %33 : vector<64x128xf32> to vector<64x128xbf16>
    %c0_25 = arith.constant 0 : index
    %c0_26 = arith.constant 0 : index
    %35 = vector.load %arg11[%c0_25, %c0_26] : memref<16x64xbf16, #tpu.memory_space<vmem>>, vector<16x64xbf16>
    %cst_27 = arith.constant dense<0.000000e+00> : vector<16x128xf32>
    %36 = tpu.matmul %35, %34, %cst_27 {dimension_numbers = #tpu.dot_dimension_numbers<[1], [0], [0], [1], [0, 0, 1, 1], [], []>} : vector<16x64xbf16>, vector<64x128xbf16>, vector<16x128xf32> -> vector<16x128xf32>
    %c0_28 = arith.constant 0 : index
    %c0_29 = arith.constant 0 : index
    %37 = vector.load %arg12[%c0_28, %c0_29] : memref<16x1xf32, #tpu.memory_space<vmem>>, vector<16x1xf32>
    %38 = vector.broadcast %37 : vector<16x1xf32> to vector<16x128xf32>
    %39 = arith.addf %36, %38 : vector<16x128xf32>
    %c0_30 = arith.constant 0 : index
    %c0_31 = arith.constant 0 : index
    %c0_32 = arith.constant 0 : index
    %40 = vector.load %arg13[%c0_30, %c0_31, %c0_32] : memref<1x16x128xf32, #tpu.memory_space<vmem>>, vector<1x16x128xf32>
    %41 = vector.shape_cast %40 : vector<1x16x128xf32> to vector<16x128xf32>
    %42 = vector.shape_cast %39 : vector<16x128xf32> to vector<1x16x128xf32>
    tpu.vector_store %arg13[%c0_30, %c0_31, %c0_32], %42 {strides = array<i32>} : memref<1x16x128xf32, #tpu.memory_space<vmem>>, vector<1x16x128xf32>,
    return
  }
  func.func @transform_0(%arg0: i32, %arg1: i32) -> (i32, i32, i32) {
    %c0_i32 = arith.constant 0 : i32
    %c0_i32_0 = arith.constant 0 : i32
    return %arg0, %c0_i32, %arg1 : i32, i32, i32
  }
  func.func @transform_1(%arg0: i32, %arg1: i32) -> (i32, i32) {
    %c0_i32 = arith.constant 0 : i32
    %c0_i32_0 = arith.constant 0 : i32
    %c0_i32_1 = arith.constant 0 : i32
    return %c0_i32, %c0_i32_0 : i32, i32
  }
  func.func @transform_2(%arg0: i32, %arg1: i32) -> (i32, i32) {
    %c0_i32 = arith.constant 0 : i32
    %c0_i32_0 = arith.constant 0 : i32
    %c0_i32_1 = arith.constant 0 : i32
    return %c0_i32, %c0_i32_0 : i32, i32
  }
  func.func @transform_3(%arg0: i32, %arg1: i32) -> (i32, i32) {
    %c0_i32 = arith.constant 0 : i32
    %c0_i32_0 = arith.constant 0 : i32
    %c0_i32_1 = arith.constant 0 : i32
    return %c0_i32, %c0_i32_0 : i32, i32
  }
  func.func @transform_4(%arg0: i32, %arg1: i32) -> (i32, i32) {
    %c0_i32 = arith.constant 0 : i32
    %c0_i32_0 = arith.constant 0 : i32
    %c0_i32_1 = arith.constant 0 : i32
    return %c0_i32, %c0_i32_0 : i32, i32
  }
  func.func @transform_5(%arg0: i32, %arg1: i32) -> (i32, i32) {
    %c0_i32 = arith.constant 0 : i32
    %c0_i32_0 = arith.constant 0 : i32
    %c0_i32_1 = arith.constant 0 : i32
    return %c0_i32, %c0_i32_0 : i32, i32
  }
  func.func @transform_6(%arg0: i32, %arg1: i32) -> (i32, i32) {
    %c0_i32 = arith.constant 0 : i32
    %c0_i32_0 = arith.constant 0 : i32
    %c0_i32_1 = arith.constant 0 : i32
    return %c0_i32, %c0_i32_0 : i32, i32
  }
  func.func @transform_7(%arg0: i32, %arg1: i32) -> (i32, i32) {
    %c0_i32 = arith.constant 0 : i32
    %c0_i32_0 = arith.constant 0 : i32
    %c0_i32_1 = arith.constant 0 : i32
    return %c0_i32, %c0_i32_0 : i32, i32
  }
  func.func @transform_8(%arg0: i32, %arg1: i32) -> (i32, i32) {
    %c0_i32 = arith.constant 0 : i32
    %c0_i32_0 = arith.constant 0 : i32
    %c0_i32_1 = arith.constant 0 : i32
    return %c0_i32, %c0_i32_0 : i32, i32
  }
  func.func @transform_9(%arg0: i32, %arg1: i32) -> (i32, i32) {
    %c0_i32 = arith.constant 0 : i32
    %c0_i32_0 = arith.constant 0 : i32
    %c0_i32_1 = arith.constant 0 : i32
    return %c0_i32, %c0_i32_0 : i32, i32
  }
  func.func @transform_10(%arg0: i32, %arg1: i32) -> (i32, i32) {
    %c0_i32 = arith.constant 0 : i32
    %c0_i32_0 = arith.constant 0 : i32
    %c0_i32_1 = arith.constant 0 : i32
    return %c0_i32, %c0_i32_0 : i32, i32
  }
  func.func @transform_11(%arg0: i32, %arg1: i32) -> (i32, i32, i32) {
    %c0_i32 = arith.constant 0 : i32
    %c0_i32_0 = arith.constant 0 : i32
    return %arg0, %c0_i32, %arg1 : i32, i32, i32
  }
}

</mosaic_0001>

<bundles_post_ra>
// kernel: tpu_custom_call.1
= control target key start
LH: loop header
LB: loop body
LE: loop exit
PB: predicated region body
PF: predicated region fallthrough
CT: control target
= control target key end

     0   :  { %s24285_s0 = inlined_call_operand.vmem [shape: f32[2,1289,128], index: 0, kind: input, shape index: {}]   ;;  %s24286_s1 = inlined_call_operand.vmem [shape: bf16[1024,1289], index: 1, kind: input, shape index: {}]   ;;  %s24287_s2 = inlined_call_operand.vmem [shape: f32[1024,1], index: 2, kind: input, shape index: {}]   ;;  %s24288_s3 = inlined_call_operand.vmem [shape: bf16[512,1024], index: 3, kind: input, shape index: {}]   ;;  %s24289_s4 = inlined_call_operand.vmem [shape: f32[512,1], index: 4, kind: input, shape index: {}]   ;;  %s24290_s5 = inlined_call_operand.vmem [shape: bf16[256,512], index: 5, kind: input, shape index: {}]   ;;  %s24291_s6 = inlined_call_operand.vmem [shape: f32[256,1], index: 6, kind: input, shape index: {}]   ;;  %s24292_s7 = inlined_call_operand.vmem [shape: bf16[64,256], index: 7, kind: input, shape index: {}]   ;;  %s24293_s8 = inlined_call_operand.vmem [shape: f32[64,1], index: 8, kind: input, shape index: {}]   ;;  %s24294_s9 = inlined_call_operand.vmem [shape: bf16[16,64], index: 9, kind: input, shape index: {}]   ;;  %s24295_s10 = inlined_call_operand.vmem [shape: f32[16,1], index: 10, kind: input, shape index: {}]   ;;  %s24296_s11 = inlined_call_operand.hbm [shape: f32[2,16,128], index: 11, kind: output, shape index: {}]  }
   0x1   :  { %24301 = sst [smem:[#allocation186_spill]] %s24285_s0 }
   0x2   :  { %16 = vsyncpa [#allocation3], 0 }
   0x3   :  { %18 = vsyncpa [#allocation3 + $0x1], 0  ;;  %s18263_s17 = smov 0   ;;  %s18265_s18 = smov 0  }
   0x4   :  { %s18267_s19 = smov 0   ;;  %s18269_s20 = smov 0  }
   0x5   :  { %s18271_s21 = smov 0   ;;  %s18273_s22 = smov 0  }
   0x6 LB: > { %s13822_s23 = sadd.s32 4294967295, %s18194_s22   ;;  %s13823_s24 = sadd.s32 4294967294, %s18194_s22   ;;  %s18194_s22 = sphi %s18273_s22, %s24_s22   ;;  %s18190_s21 = sphi %s18271_s21, %s24847_s21   ;;  %s18186_s20 = sphi %s18269_s20, %s24846_s20   ;;  %s18182_s19 = sphi %s18267_s19, %s24845_s19   ;;  %s18178_s18 = sphi %s18265_s18, %s24844_s18   ;;  %s18174_s17 = sphi %s18263_s17, %s24843_s17  }
   0x7   : > { %s36_s25 = sadd.s32 1, %s18190_s21  ;;  %s283_s26 = sadd.s32 1, %s18182_s19 }
   0x8   : > { %p38_p0 = scmp.ge.s32.totalorder %s36_s25, 2  ;;  %p293_p1 = scmp.ne.s32.totalorder %s18182_s19, %s18178_s18 }
   0x9   : > { %p294_p2 = scmp.eq.s32.totalorder %s13822_s23, 1  ;;  %p299_p3 = scmp.ne.s32.totalorder %s18178_s18, %s18174_s17 }
   0xa   : > { %s24849_s25 = smov (%p38_p0, %s36_s25), 0  ;;  %p300_p5 = scmp.eq.s32.totalorder %s13823_s24, 1 }
   0xb   : > { %24302 = sst [smem:[#allocation5_spill]] %s24849_s25  ;;  %p18303_p4 = por %p294_p2, %p293_p1 }
   0xc   : > { %s278_s28 = ssub.s32 %s18190_s21, %s24849_s25  ;;  %p13826_p6 = scmp.ge.s32.totalorder %s18194_s22, 1 }
   0xd   : > { %p281_p7 = scmp.eq.s32.totalorder %s278_s28, 0  ;;  %p18310_p8 = por %p300_p5, %p299_p3 }
   0xe   : > { %p359_p9 = scmp.lt.s32.totalorder %s18194_s22, 3 }
   0xf   : > { %s18316_s30 = scalar_select %p281_p7, %s18182_s19, %s283_s26  }
  0x10   : > { %p360_p10 = pnand %p13826_p6, %p359_p9 }
  0x12   : > { %363 = sbr.rel (%p360_p10) target bundleno = 4507 (0x119b), region = 64 }
  0x19   : > { %p402_p11 = scmp.lt.s32.totalorder %s18186_s20, 1  ;;  %v24298_v0 = vmov 0   ;;  %v16985_v1 = vld [vmem:[%s24286_s1 + $0x4] ss:$44 sps:$4 sm:$0xff]   ;;  %s24305_s0 = sld [smem:[#allocation186_spill]]  ;;  %vm5903_vm0 = vcmask 1043456  }
  0x1a   : > { %5910 = vmatprep.subr.bf16.mxu0 %v24298_v0  ;;  %15409 = vmatprep.subr.bf16.mxu1 %v24298_v0  ;;  %v16983_v50 = vld [vmem:[%s24286_s1] ss:$44 sps:$4 sm:$0xff]   ;;  %v16986_v51 = vld [vmem:[%s24286_s1 + $0x5c] ss:$44 sps:$4 sm:$0xff]   ;;  %v16988_v52 = vld [vmem:[%s24286_s1 + $0x58] ss:$44 sps:$4 sm:$0xff]  }
  0x1b   : > { %s403_s14 = scalar_select %p402_p11, %s18186_s20, 1  ;;  %16981 = vset.pattern.permute.xlu0 %v24298_v0  ;;  %16982 = vset.pattern.permute.xlu1 %v24298_v0  ;;  %v16989_v53 = vld [vmem:[%s24286_s1 + $0xb4] ss:$44 sps:$4 sm:$0xff]   ;;  %v16991_v54 = vld [vmem:[%s24286_s1 + $0xb0] ss:$44 sps:$4 sm:$0xff]   ;;  %vm5904_vm1 = vcmask 1044480  }
  0x1c   : > { %5942 = vmatprep.mubr.bf16.mxu0 %v16985_v1  ;;  %v16992_v55 = vld [vmem:[%s24286_s1 + $0x10c] ss:$44 sps:$4 sm:$0xff]   ;;  %v16994_v56 = vld [vmem:[%s24286_s1 + $0x108] ss:$44 sps:$4 sm:$0xff]   ;;  %v16995_v57 = vld [vmem:[%s24286_s1 + $0x164] ss:$44 sps:$4 sm:$0xff]  }
  0x1d   : > { %s16919_s15 = smul.u32 1296, %s403_s14  ;;  %v16997_v58 = vld [vmem:[%s24286_s1 + $0x160] ss:$44 sps:$4 sm:$0xff]   ;;  %v16998_v59 = vld [vmem:[%s24286_s1 + $0x1bc] ss:$44 sps:$4 sm:$0xff]   ;;  %vm5710_vm2 = vcmask 72704  }
  0x1e   : > { %v17000_v60 = vld [vmem:[%s24286_s1 + $0x1b8] ss:$44 sps:$4 sm:$0xff]   ;;  %v17001_v61 = vld [vmem:[%s24286_s1 + $0x214] ss:$44 sps:$4 sm:$0xff]   ;;  %v17003_v62 = vld [vmem:[%s24286_s1 + $0x210] ss:$44 sps:$4 sm:$0xff]  }
  0x1f   : > { %s18330_s24 = scalar_lea.vmem %s24305_s0, %s16919_s15  ;;  %v17004_v63 = vld [vmem:[%s24286_s1 + $0x26c] ss:$44 sps:$4 sm:$0xff]   ;;  %v17006_v1 = vld [vmem:[%s24286_s1 + $0x268] ss:$44 sps:$4 sm:$0xff]   ;;  %vm18199_vm3 = vmmov 0   ;;  %vm13682_vm4 = vcmask 523264  }
  0x20   : > { %v411_v2 = vld [vmem:[%s18330_s24] sm:$0xff]  ;;  %v412_v3 = vld [vmem:[%s18330_s24 + $0x8] sm:$0xff]  ;;  %v413_v4 = vld [vmem:[%s18330_s24 + $0x10] sm:$0xff]  ;;  %s399_s28 = sand.u32 1, %s18178_s18   ;;  %s14932_s0 = sshll.u32 %s18186_s20, 8 }
  0x21   : > { %v573_v5 = vpack.c.bf16 %v412_v3, %v411_v2  ;;  %v414_v6 = vld [vmem:[%s18330_s24 + $0x18] sm:$0xff]  ;;  %v415_v8 = vld [vmem:[%s18330_s24 + $0x20] sm:$0xff]  ;;  %v416_v9 = vld [vmem:[%s18330_s24 + $0x28] sm:$0xff]  ;;  %s24237_s15 = scalar_lea.hbm %s24296_s11, %s14932_s0  ;;  %s24239_s16 = scalar_lea.sflag [#allocation3], %s399_s28 }
  0x22   : > { %v574_v7 = vpack.c.bf16 %v414_v6, %v413_v4  ;;  %v575_v10 = vpack.c.bf16 %v416_v9, %v415_v8  ;;  %v417_v11 = vld [vmem:[%s18330_s24 + $0x30] sm:$0xff]  ;;  %v418_v12 = vld [vmem:[%s18330_s24 + $0x38] sm:$0xff]  ;;  %v419_v14 = vld [vmem:[%s18330_s24 + $0x40] sm:$0xff]  ;;  %s18200_s23 = smov [#allocation2]  }
  0x23   : > { %5911 = vmatpush1.bf16.msra.mxu0 %v573_v5  ;;  %v576_v13 = vpack.c.bf16 %v418_v12, %v417_v11  ;;  %v420_v15 = vld [vmem:[%s18330_s24 + $0x48] sm:$0xff]  ;;  %v421_v17 = vld [vmem:[%s18330_s24 + $0x50] sm:$0xff]  ;;  %v422_v18 = vld [vmem:[%s18330_s24 + $0x58] sm:$0xff]  ;;  %s18120_s26 = sshll.u32 %s18200_s23, 4  ;;  %s18121_s26 = int_to_ptr.vmem [resolvable:$false] %s18120_s26 }
  0x24   : > { %5912 = vmatprep.subr.bf16.mxu0 %v24298_v0  ;;  %v577_v16 = vpack.c.bf16 %v420_v15, %v419_v14  ;;  %v578_v19 = vpack.c.bf16 %v422_v18, %v421_v17  ;;  %v423_v20 = vld [vmem:[%s18330_s24 + $0x60] sm:$0xff]  ;;  %v424_v21 = vld [vmem:[%s18330_s24 + $0x68] sm:$0xff]  ;;  %v425_v22 = vld [vmem:[%s18330_s24 + $0x70] sm:$0xff] }
  0x25   : > { %v426_v23 = vld [vmem:[%s18330_s24 + $0x78] sm:$0xff]  ;;  %v579_v24 = vpack.c.bf16 %v424_v21, %v423_v20  ;;  %v427_v25 = vld [vmem:[%s18330_s24 + $0x80] sm:$0xff]  ;;  %v428_v27 = vld [vmem:[%s18330_s24 + $0x88] sm:$0xff] }
  0x26   : > { %v580_v26 = vpack.c.bf16 %v426_v23, %v425_v22  ;;  %v429_v28 = vld [vmem:[%s18330_s24 + $0x90] sm:$0xff]  ;;  %v430_v29 = vld [vmem:[%s18330_s24 + $0x98] sm:$0xff]  ;;  %v581_v30 = vpack.c.bf16 %v428_v27, %v427_v25  ;;  %v431_v31 = vld [vmem:[%s18330_s24 + $0xa0] sm:$0xff] }
  0x27   : > { %5913 = vmatpush1.bf16.msra.mxu0 %v574_v7  ;;  %v582_v32 = vpack.c.bf16 %v430_v29, %v429_v28  ;;  %v432_v33 = vld [vmem:[%s18330_s24 + $0xa8] sm:$0xff]  ;;  %v433_v34 = vld [vmem:[%s18330_s24 + $0xb0] sm:$0xff]  ;;  %v434_v35 = vld [vmem:[%s18330_s24 + $0xb8] sm:$0xff] }
  0x28   : > { %5914 = vmatprep.subr.bf16.mxu0 %v24298_v0  ;;  %v583_v36 = vpack.c.bf16 %v432_v33, %v431_v31  ;;  %v435_v37 = vld [vmem:[%s18330_s24 + $0xc0] sm:$0xff]  ;;  %v584_v38 = vpack.c.bf16 %v434_v35, %v433_v34  ;;  %v436_v39 = vld [vmem:[%s18330_s24 + $0xc8] sm:$0xff]  ;;  %v437_v40 = vld [vmem:[%s18330_s24 + $0xd0] sm:$0xff] }
  0x29   : > { %v438_v41 = vld [vmem:[%s18330_s24 + $0xd8] sm:$0xff]  ;;  %v585_v42 = vpack.c.bf16 %v436_v39, %v435_v37  ;;  %v439_v43 = vld [vmem:[%s18330_s24 + $0xe0] sm:$0xff]  ;;  %v440_v45 = vld [vmem:[%s18330_s24 + $0xe8] sm:$0xff] }
  0x2a   : > { %v586_v44 = vpack.c.bf16 %v438_v41, %v437_v40  ;;  %v441_v46 = vld [vmem:[%s18330_s24 + $0xf0] sm:$0xff]  ;;  %v442_v47 = vld [vmem:[%s18330_s24 + $0xf8] sm:$0xff]  ;;  %v587_v48 = vpack.c.bf16 %v440_v45, %v439_v43  ;;  %v17009_v3 = vld [vmem:[%s24286_s1 + $0x2c0] ss:$44 sps:$4 sm:$0xff]  }
  0x2b   : > { %5915 = vmatpush1.bf16.msra.mxu0 %v575_v10  ;;  %v588_v49 = vpack.c.bf16 %v442_v47, %v441_v46  ;;  %v17007_v2 = vld [vmem:[%s24286_s1 + $0x2c4] ss:$44 sps:$4 sm:$0xff]   ;;  %v17010_v4 = vld [vmem:[%s24286_s1 + $0x31c] ss:$44 sps:$4 sm:$0xff]   ;;  %v17013_v9 = vld [vmem:[%s24286_s1 + $0x374] ss:$44 sps:$4 sm:$0xff]  }
  0x2c   : > { %5916 = vmatprep.subr.bf16.mxu0 %v24298_v0  ;;  %v443_v5 = vld [vmem:[%s18330_s24 + $0x100] sm:$0xff]  ;;  %v444_v6 = vld [vmem:[%s18330_s24 + $0x108] sm:$0xff]  ;;  %v17015_v10 = vld [vmem:[%s24286_s1 + $0x370] ss:$44 sps:$4 sm:$0xff]  }
  0x2d   : > { %v589_v7 = vpack.c.bf16 %v444_v6, %v443_v5  ;;  %v17012_v8 = vld [vmem:[%s24286_s1 + $0x318] ss:$44 sps:$4 sm:$0xff]   ;;  %v17018_v12 = vld [vmem:[%s24286_s1 + $0x3c8] ss:$44 sps:$4 sm:$0xff]   ;;  %v17021_v14 = vld [vmem:[%s24286_s1 + $0x420] ss:$44 sps:$4 sm:$0xff]  }
  0x2e   : > { %v17016_v11 = vld [vmem:[%s24286_s1 + $0x3cc] ss:$44 sps:$4 sm:$0xff]   ;;  %v17022_v15 = vld [vmem:[%s24286_s1 + $0x47c] ss:$44 sps:$4 sm:$0xff]   ;;  %v17025_v20 = vld [vmem:[%s24286_s1 + $0x4d4] ss:$44 sps:$4 sm:$0xff]  }
  0x2f   : > { %5917 = vmatpush1.bf16.msra.mxu0 %v576_v13  ;;  %v17019_v13 = vld [vmem:[%s24286_s1 + $0x424] ss:$44 sps:$4 sm:$0xff]   ;;  %v446_v17 = vld [vmem:[%s18330_s24 + $0x118] sm:$0xff]  ;;  %v17030_v23 = vld [vmem:[%s24286_s1 + $0x528] ss:$44 sps:$4 sm:$0xff]  }
  0x30   : > { %5918 = vmatprep.subr.bf16.mxu0 %v24298_v0  ;;  %v17027_v21 = vld [vmem:[%s24286_s1 + $0x4d0] ss:$44 sps:$4 sm:$0xff]   ;;  %v17028_v22 = vld [vmem:[%s24286_s1 + $0x52c] ss:$44 sps:$4 sm:$0xff]   ;;  %v447_v27 = vld [vmem:[%s18330_s24 + $0x120] sm:$0xff] }
  0x31   : > { %v17033_v25 = vld [vmem:[%s24286_s1 + $0x580] ss:$44 sps:$4 sm:$0xff]   ;;  %v17042_v34 = vld [vmem:[%s24286_s1 + $0x688] ss:$44 sps:$4 sm:$0xff]   ;;  %v17043_v35 = vld [vmem:[%s24286_s1 + $0x6e4] ss:$44 sps:$4 sm:$0xff]  }
  0x32   : > { %v448_v28 = vld [vmem:[%s18330_s24 + $0x128] sm:$0xff]  ;;  %v17037_v31 = vld [vmem:[%s24286_s1 + $0x634] ss:$44 sps:$4 sm:$0xff]   ;;  %v450_v39 = vld [vmem:[%s18330_s24 + $0x138] sm:$0xff] }
  0x33   : > { %5919 = vmatpush1.bf16.msra.mxu0 %v577_v16  ;;  %v445_v16 = vld [vmem:[%s18330_s24 + $0x110] sm:$0xff]  ;;  %v591_v29 = vpack.c.bf16 %v448_v28, %v447_v27  ;;  %v17040_v33 = vld [vmem:[%s24286_s1 + $0x68c] ss:$44 sps:$4 sm:$0xff]   ;;  %v17046_v37 = vld [vmem:[%s24286_s1 + $0x73c] ss:$44 sps:$4 sm:$0xff]  }
  0x34   : > { %5920 = vmatprep.subr.bf16.mxu0 %v24298_v0  ;;  %v590_v18 = vpack.c.bf16 %v446_v17, %v445_v16  ;;  %v17048_v41 = vld [vmem:[%s24286_s1 + $0x738] ss:$44 sps:$4 sm:$0xff]   ;;  %v17051_v43 = vld [vmem:[%s24286_s1 + $0x790] ss:$44 sps:$4 sm:$0xff]   ;;  %v17054_v45 = vld [vmem:[%s24286_s1 + $0x7e8] ss:$44 sps:$4 sm:$0xff]  }
  0x35   : > { %v17055_v46 = vld [vmem:[%s24286_s1 + $0x844] ss:$44 sps:$4 sm:$0xff]   ;;  %v17057_v47 = vld [vmem:[%s24286_s1 + $0x840] ss:$44 sps:$4 sm:$0xff]  }
  0x36   : > { %v17079_v5 = vld [vmem:[%s24286_s1 + $0xb04] ss:$44 sps:$4 sm:$0xff]   ;;  %v17081_v6 = vld [vmem:[%s24286_s1 + $0xb00] ss:$44 sps:$4 sm:$0xff]  }
  0x37   : > { %5921 = vmatpush1.bf16.msra.mxu0 %v578_v19  ;;  %v17024_v19 = vld [vmem:[%s24286_s1 + $0x478] ss:$44 sps:$4 sm:$0xff]   ;;  %v17093_v17 = vld [vmem:[%s24286_s1 + $0xc60] ss:$44 sps:$4 sm:$0xff]  }
  0x38   : > { %5922 = vmatprep.subr.bf16.mxu0 %v24298_v0  ;;  %v17091_v16 = vld [vmem:[%s24286_s1 + $0xc64] ss:$44 sps:$4 sm:$0xff]   ;;  %v17105_v28 = vld [vmem:[%s24286_s1 + $0xdc0] ss:$44 sps:$4 sm:$0xff]  }
  0x39   : > { %v17103_v27 = vld [vmem:[%s24286_s1 + $0xdc4] ss:$44 sps:$4 sm:$0xff]  }
  0x3b   : > { %5923 = vmatpush1.bf16.msra.mxu0 %v579_v24  ;;  %v17031_v24 = vld [vmem:[%s24286_s1 + $0x584] ss:$44 sps:$4 sm:$0xff]  }
  0x3c   : > { %5924 = vmatprep.subr.bf16.mxu0 %v24298_v0 }
  0x3f   : > { %5925 = vmatpush1.bf16.msra.mxu0 %v580_v26  ;;  %v17034_v26 = vld [vmem:[%s24286_s1 + $0x5dc] ss:$44 sps:$4 sm:$0xff]  }
  0x40   : > { %5926 = vmatprep.subr.bf16.mxu0 %v24298_v0 }
  0x43   : > { %5927 = vmatpush1.bf16.msra.mxu0 %v581_v30  ;;  %v17036_v30 = vld [vmem:[%s24286_s1 + $0x5d8] ss:$44 sps:$4 sm:$0xff]  }
  0x44   : > { %5928 = vmatprep.subr.bf16.mxu0 %v24298_v0 }
  0x47   : > { %5929 = vmatpush1.bf16.msra.mxu0 %v582_v32  ;;  %v17039_v32 = vld [vmem:[%s24286_s1 + $0x630] ss:$44 sps:$4 sm:$0xff]  }
  0x48   : > { %5930 = vmatprep.subr.bf16.mxu0 %v24298_v0 }
  0x4b   : > { %5931 = vmatpush1.bf16.msra.mxu0 %v583_v36  ;;  %v17045_v36 = vld [vmem:[%s24286_s1 + $0x6e0] ss:$44 sps:$4 sm:$0xff]  }
  0x4c   : > { %5932 = vmatprep.subr.bf16.mxu0 %v24298_v0 }
  0x4f   : > { %5933 = vmatpush1.bf16.msra.mxu0 %v584_v38  ;;  %v449_v38 = vld [vmem:[%s18330_s24 + $0x130] sm:$0xff] }
  0x50   : > { %5934 = vmatprep.subr.bf16.mxu0 %v24298_v0  ;;  %v592_v40 = vpack.c.bf16 %v450_v39, %v449_v38  ;;  %v17115_v38 = vld [vmem:[%s24286_s1 + $0xf24] ss:$44 sps:$4 sm:$0xff]   ;;  %v17117_v39 = vld [vmem:[%s24286_s1 + $0xf20] ss:$44 sps:$4 sm:$0xff]  }
  0x53   : > { %5935 = vmatpush1.bf16.msra.mxu0 %v585_v42  ;;  %v17049_v42 = vld [vmem:[%s24286_s1 + $0x794] ss:$44 sps:$4 sm:$0xff]  }
  0x54   : > { %5936 = vmatprep.subr.bf16.mxu0 %v24298_v0 }
  0x57   : > { %5937 = vmatpush1.bf16.msra.mxu0 %v586_v44  ;;  %v17052_v44 = vld [vmem:[%s24286_s1 + $0x7ec] ss:$44 sps:$4 sm:$0xff]  }
  0x58   : > { %5938 = vmatprep.subr.bf16.mxu0 %v24298_v0 }
  0x5b   : > { %5939 = vmatpush1.bf16.msra.mxu0 %v587_v48  ;;  %v17058_v48 = vld [vmem:[%s24286_s1 + $0x89c] ss:$44 sps:$4 sm:$0xff]  }
  0x5c   : > { %5940 = vmatprep.subr.bf16.mxu0 %v24298_v0 }
  0x5f   : > { %5941 = vmatpush1.bf16.msra.mxu0 %v588_v49  ;;  %v451_v49 = vld [vmem:[%s18330_s24 + $0x140] sm:$0xff] }
  0x60   : > { %6455 = vmatprep.subr.bf16.mxu0 %v24298_v0 }
  0x62   : > { %5943 = vmatmul.mubr.bf16.vlgmr.msra.gmra.mrb[0].mxu0 %v16983_v50  ;;  %v452_v50 = vld [vmem:[%s18330_s24 + $0x148] sm:$0xff] }
  0x63   : > { %5950 = vmatprep.mubr.bf16.mxu0 %v16986_v51  ;;  %6456 = vmatpush1.bf16.msra.mxu0 %v589_v7  ;;  %v593_v51 = vpack.c.bf16 %v452_v50, %v451_v49  ;;  %v17082_v7 = vld [vmem:[%s24286_s1 + $0xb5c] ss:$44 sps:$4 sm:$0xff]   ;;  %v465_v49 = vld [vmem:[%s18330_s24 + $0x1b0] sm:$0xff] }
  0x64   : > { %6457 = vmatprep.subr.bf16.mxu0 %v24298_v0  ;;  %v466_v50 = vld [vmem:[%s18330_s24 + $0x1b8] sm:$0xff] }
  0x67   : > { %6458 = vmatpush1.bf16.msra.mxu0 %v590_v18  ;;  %v17094_v18 = vld [vmem:[%s24286_s1 + $0xcbc] ss:$44 sps:$4 sm:$0xff]  }
  0x68   : > { %6459 = vmatprep.subr.bf16.mxu0 %v24298_v0 }
  0x6a   : > { %5951 = vmatmul.mubr.bf16.gmra.mrb[4].mxu0 %v16988_v52  ;;  %v17060_v52 = vld [vmem:[%s24286_s1 + $0x898] ss:$44 sps:$4 sm:$0xff]  }
  0x6b   : > { %5958 = vmatprep.mubr.bf16.mxu0 %v16989_v53  ;;  %6460 = vmatpush1.bf16.msra.mxu0 %v591_v29  ;;  %v17061_v53 = vld [vmem:[%s24286_s1 + $0x8f4] ss:$44 sps:$4 sm:$0xff]   ;;  %v17106_v29 = vld [vmem:[%s24286_s1 + $0xe1c] ss:$44 sps:$4 sm:$0xff]  }
  0x6c   : > { %6461 = vmatprep.subr.bf16.mxu0 %v24298_v0 }
  0x6f   : > { %6462 = vmatpush1.bf16.msra.mxu0 %v592_v40  ;;  %v17118_v40 = vld [vmem:[%s24286_s1 + $0xf7c] ss:$44 sps:$4 sm:$0xff]  }
  0x70   : > { %6463 = vmatprep.subr.bf16.mxu0 %v24298_v0 }
  0x72   : > { %5959 = vmatmul.mubr.bf16.gmra.mrb[8].mxu0 %v16991_v54  ;;  %v17063_v54 = vld [vmem:[%s24286_s1 + $0x8f0] ss:$44 sps:$4 sm:$0xff]  }
  0x73   : > { %5966 = vmatprep.mubr.bf16.mxu0 %v16992_v55  ;;  %6464 = vmatpush1.bf16.msra.mxu0 %v593_v51  ;;  %v17064_v55 = vld [vmem:[%s24286_s1 + $0x94c] ss:$44 sps:$4 sm:$0xff]   ;;  %v600_v51 = vpack.c.bf16 %v466_v50, %v465_v49  ;;  %v17196_v50 = vld [vmem:[%s24286_s1 + $0x274] ss:$44 sps:$4 sm:$0xff]  }
  0x74   : > { %6465 = vmatprep.subr.bf16.mxu0 %v24298_v0  ;;  %v17195_v49 = vld [vmem:[%s24286_s1 + $0x218] ss:$44 sps:$4 sm:$0xff]  }
  0x7a   : > { %5967 = vmatmul.mubr.bf16.gmra.mrb[12].mxu0 %v16994_v56  ;;  %v17066_v56 = vld [vmem:[%s24286_s1 + $0x948] ss:$44 sps:$4 sm:$0xff]  }
  0x7b   : > { %5974 = vmatprep.mubr.bf16.mxu0 %v16995_v57  ;;  %v17067_v57 = vld [vmem:[%s24286_s1 + $0x9a4] ss:$44 sps:$4 sm:$0xff]  }
  0x82   : > { %5975 = vmatmul.mubr.bf16.gmra.mrb[16].mxu0 %v16997_v58  ;;  %v17069_v58 = vld [vmem:[%s24286_s1 + $0x9a0] ss:$44 sps:$4 sm:$0xff]  }
  0x83   : > { %5982 = vmatprep.mubr.bf16.mxu0 %v16998_v59  ;;  %v17070_v59 = vld [vmem:[%s24286_s1 + $0x9fc] ss:$44 sps:$4 sm:$0xff]  }
  0x8a   : > { %5983 = vmatmul.mubr.bf16.gmra.mrb[20].mxu0 %v17000_v60  ;;  %v453_v60 = vld [vmem:[%s18330_s24 + $0x150] sm:$0xff] }
  0x8b   : > { %5990 = vmatprep.mubr.bf16.mxu0 %v17001_v61  ;;  %v454_v61 = vld [vmem:[%s18330_s24 + $0x158] sm:$0xff] }
  0x92   : > { %5991 = vmatmul.mubr.bf16.gmra.mrb[24].mxu0 %v17003_v62  ;;  %v594_v62 = vpack.c.bf16 %v454_v61, %v453_v60  ;;  %v17126_v60 = vld [vmem:[%s24286_s1 + $0x1028] ss:$44 sps:$4 sm:$0xff]   ;;  %v17127_v61 = vld [vmem:[%s24286_s1 + $0x1084] ss:$44 sps:$4 sm:$0xff]  }
  0x93   : > { %5998 = vmatprep.mubr.bf16.mxu0 %v17004_v63  ;;  %v17072_v63 = vld [vmem:[%s24286_s1 + $0x9f8] ss:$44 sps:$4 sm:$0xff]  }
  0x94   : > { %6466 = vmatpush1.bf16.msra.mxu0 %v594_v62  ;;  %v471_v62 = vld [vmem:[%s18330_s24 + $0x1e0] sm:$0xff] }
  0x95   : > { %6467 = vmatprep.subr.bf16.mxu0 %v24298_v0 }
  0x9a   : > { %5999 = vmatmul.mubr.bf16.gmra.mrb[28].mxu0 %v17006_v1  ;;  %v17073_v1 = vld [vmem:[%s24286_s1 + $0xa54] ss:$44 sps:$4 sm:$0xff]  }
  0x9b   : > { %6006 = vmatprep.mubr.bf16.mxu0 %v17007_v2  ;;  %v17075_v2 = vld [vmem:[%s24286_s1 + $0xa50] ss:$44 sps:$4 sm:$0xff]  }
  0xa2   : > { %6007 = vmatmul.mubr.bf16.gmra.mrb[32].mxu0 %v17009_v3  ;;  %v17076_v3 = vld [vmem:[%s24286_s1 + $0xaac] ss:$44 sps:$4 sm:$0xff]  }
  0xa3   : > { %6014 = vmatprep.mubr.bf16.mxu0 %v17010_v4  ;;  %v17078_v4 = vld [vmem:[%s24286_s1 + $0xaa8] ss:$44 sps:$4 sm:$0xff]  }
  0xaa   : > { %6015 = vmatmul.mubr.bf16.gmra.mrb[36].mxu0 %v17012_v8  ;;  %v455_v8 = vld [vmem:[%s18330_s24 + $0x160] sm:$0xff] }
  0xab   : > { %6022 = vmatprep.mubr.bf16.mxu0 %v17013_v9  ;;  %v456_v9 = vld [vmem:[%s18330_s24 + $0x168] sm:$0xff] }
  0xb2   : > { %6023 = vmatmul.mubr.bf16.gmra.mrb[40].mxu0 %v17015_v10  ;;  %v595_v10 = vpack.c.bf16 %v456_v9, %v455_v8  ;;  %v17133_v8 = vld [vmem:[%s24286_s1 + $0x1134] ss:$44 sps:$4 sm:$0xff]   ;;  %v17135_v9 = vld [vmem:[%s24286_s1 + $0x1130] ss:$44 sps:$4 sm:$0xff]  }
  0xb3   : > { %6030 = vmatprep.mubr.bf16.mxu0 %v17016_v11  ;;  %v17084_v11 = vld [vmem:[%s24286_s1 + $0xb58] ss:$44 sps:$4 sm:$0xff]  }
  0xb4   : > { %6468 = vmatpush1.bf16.msra.mxu0 %v595_v10  ;;  %v17136_v10 = vld [vmem:[%s24286_s1 + $0x118c] ss:$44 sps:$4 sm:$0xff]  }
  0xb5   : > { %6469 = vmatprep.subr.bf16.mxu0 %v24298_v0 }
  0xba   : > { %6031 = vmatmul.mubr.bf16.gmra.mrb[44].mxu0 %v17018_v12  ;;  %v17085_v12 = vld [vmem:[%s24286_s1 + $0xbb4] ss:$44 sps:$4 sm:$0xff]  }
  0xbb   : > { %6038 = vmatprep.mubr.bf16.mxu0 %v17019_v13  ;;  %v17087_v13 = vld [vmem:[%s24286_s1 + $0xbb0] ss:$44 sps:$4 sm:$0xff]  }
  0xc2   : > { %6039 = vmatmul.mubr.bf16.gmra.mrb[48].mxu0 %v17021_v14  ;;  %v17088_v14 = vld [vmem:[%s24286_s1 + $0xc0c] ss:$44 sps:$4 sm:$0xff]  }
  0xc3   : > { %6046 = vmatprep.mubr.bf16.mxu0 %v17022_v15  ;;  %v17090_v15 = vld [vmem:[%s24286_s1 + $0xc08] ss:$44 sps:$4 sm:$0xff]  }
  0xca   : > { %6047 = vmatmul.mubr.bf16.gmra.mrb[52].mxu0 %v17024_v19  ;;  %v457_v19 = vld [vmem:[%s18330_s24 + $0x170] sm:$0xff] }
  0xcb   : > { %6054 = vmatprep.mubr.bf16.mxu0 %v17025_v20  ;;  %v458_v20 = vld [vmem:[%s18330_s24 + $0x178] sm:$0xff] }
  0xd2   : > { %6055 = vmatmul.mubr.bf16.gmra.mrb[56].mxu0 %v17027_v21  ;;  %v596_v21 = vpack.c.bf16 %v458_v20, %v457_v19  ;;  %v17150_v19 = vld [vmem:[%s24286_s1 + $0x12e8] ss:$44 sps:$4 sm:$0xff]   ;;  %v17151_v20 = vld [vmem:[%s24286_s1 + $0x1344] ss:$44 sps:$4 sm:$0xff]  }
  0xd3   : > { %6062 = vmatprep.mubr.bf16.mxu0 %v17028_v22  ;;  %v17096_v22 = vld [vmem:[%s24286_s1 + $0xcb8] ss:$44 sps:$4 sm:$0xff]  }
  0xd4   : > { %6470 = vmatpush1.bf16.msra.mxu0 %v596_v21  ;;  %v17153_v21 = vld [vmem:[%s24286_s1 + $0x1340] ss:$44 sps:$4 sm:$0xff]  }
  0xd5   : > { %6471 = vmatprep.subr.bf16.mxu0 %v24298_v0 }
  0xda   : > { %6063 = vmatmul.mubr.bf16.gmra.mrb[60].mxu0 %v17030_v23  ;;  %v17097_v23 = vld [vmem:[%s24286_s1 + $0xd14] ss:$44 sps:$4 sm:$0xff]  }
  0xdb   : > { %6070 = vmatprep.mubr.bf16.mxu0 %v17031_v24  ;;  %v17099_v24 = vld [vmem:[%s24286_s1 + $0xd10] ss:$44 sps:$4 sm:$0xff]  }
  0xe2   : > { %6071 = vmatmul.mubr.bf16.gmra.mrb[64].mxu0 %v17033_v25  ;;  %v17100_v25 = vld [vmem:[%s24286_s1 + $0xd6c] ss:$44 sps:$4 sm:$0xff]  }
  0xe3   : > { %6078 = vmatprep.mubr.bf16.mxu0 %v17034_v26  ;;  %v17102_v26 = vld [vmem:[%s24286_s1 + $0xd68] ss:$44 sps:$4 sm:$0xff]  }
  0xea   : > { %6079 = vmatmul.mubr.bf16.gmra.mrb[68].mxu0 %v17036_v30  ;;  %v459_v30 = vld [vmem:[%s18330_s24 + $0x180] sm:$0xff] }
  0xeb   : > { %6086 = vmatprep.mubr.bf16.mxu0 %v17037_v31  ;;  %v460_v31 = vld [vmem:[%s18330_s24 + $0x188] sm:$0xff] }
  0xf2   : > { %6087 = vmatmul.mubr.bf16.gmra.mrb[72].mxu0 %v17039_v32  ;;  %v597_v32 = vpack.c.bf16 %v460_v31, %v459_v30  ;;  %v17166_v30 = vld [vmem:[%s24286_s1 + $0x14fc] ss:$44 sps:$4 sm:$0xff]   ;;  %v17168_v31 = vld [vmem:[%s24286_s1 + $0x14f8] ss:$44 sps:$4 sm:$0xff]  }
  0xf3   : > { %6094 = vmatprep.mubr.bf16.mxu0 %v17040_v33  ;;  %v17108_v33 = vld [vmem:[%s24286_s1 + $0xe18] ss:$44 sps:$4 sm:$0xff]  }
  0xf4   : > { %6472 = vmatpush1.bf16.msra.mxu0 %v597_v32  ;;  %v17169_v32 = vld [vmem:[%s24286_s1 + $0x1554] ss:$44 sps:$4 sm:$0xff]  }
  0xf5   : > { %6473 = vmatprep.subr.bf16.mxu0 %v24298_v0 }
  0xfa   : > { %6095 = vmatmul.mubr.bf16.gmra.mrb[76].mxu0 %v17042_v34  ;;  %v17109_v34 = vld [vmem:[%s24286_s1 + $0xe74] ss:$44 sps:$4 sm:$0xff]  }
  0xfb   : > { %6102 = vmatprep.mubr.bf16.mxu0 %v17043_v35  ;;  %v17111_v35 = vld [vmem:[%s24286_s1 + $0xe70] ss:$44 sps:$4 sm:$0xff]  }
 0x102   : > { %6103 = vmatmul.mubr.bf16.gmra.mrb[80].mxu0 %v17045_v36  ;;  %v17112_v36 = vld [vmem:[%s24286_s1 + $0xecc] ss:$44 sps:$4 sm:$0xff]  }
 0x103   : > { %6110 = vmatprep.mubr.bf16.mxu0 %v17046_v37  ;;  %v17114_v37 = vld [vmem:[%s24286_s1 + $0xec8] ss:$44 sps:$4 sm:$0xff]  }
 0x10a   : > { %6111 = vmatmul.mubr.bf16.gmra.mrb[84].mxu0 %v17048_v41  ;;  %v461_v41 = vld [vmem:[%s18330_s24 + $0x190] sm:$0xff] }
 0x10b   : > { %6118 = vmatprep.mubr.bf16.mxu0 %v17049_v42  ;;  %v462_v42 = vld [vmem:[%s18330_s24 + $0x198] sm:$0xff] }
 0x112   : > { %6119 = vmatmul.mubr.bf16.gmra.mrb[88].mxu0 %v17051_v43  ;;  %v598_v43 = vpack.c.bf16 %v462_v42, %v461_v41  ;;  %v17183_v41 = vld [vmem:[%s24286_s1 + $0xb8] ss:$44 sps:$4 sm:$0xff]   ;;  %v17184_v42 = vld [vmem:[%s24286_s1 + $0x114] ss:$44 sps:$4 sm:$0xff]  }
 0x113   : > { %6126 = vmatprep.mubr.bf16.mxu0 %v17052_v44  ;;  %v17120_v44 = vld [vmem:[%s24286_s1 + $0xf78] ss:$44 sps:$4 sm:$0xff]  }
 0x114   : > { %6474 = vmatpush1.bf16.msra.mxu0 %v598_v43  ;;  %v17186_v43 = vld [vmem:[%s24286_s1 + $0x110] ss:$44 sps:$4 sm:$0xff]  }
 0x115   : > { %6475 = vmatprep.subr.bf16.mxu0 %v24298_v0 }
 0x11a   : > { %6127 = vmatmul.mubr.bf16.gmra.mrb[92].mxu0 %v17054_v45  ;;  %v17121_v45 = vld [vmem:[%s24286_s1 + $0xfd4] ss:$44 sps:$4 sm:$0xff]  }
 0x11b   : > { %6134 = vmatprep.mubr.bf16.mxu0 %v17055_v46  ;;  %v463_v46 = vld [vmem:[%s18330_s24 + $0x1a0] sm:$0xff] }
 0x122   : > { %6135 = vmatmul.mubr.bf16.gmra.mrb[96].mxu0 %v17057_v47  ;;  %v464_v47 = vld [vmem:[%s18330_s24 + $0x1a8] sm:$0xff] }
 0x123   : > { %6142 = vmatprep.mubr.bf16.mxu0 %v17058_v48  ;;  %v599_v48 = vpack.c.bf16 %v464_v47, %v463_v46  ;;  %v17190_v46 = vld [vmem:[%s24286_s1 + $0x1c4] ss:$44 sps:$4 sm:$0xff]   ;;  %v17192_v47 = vld [vmem:[%s24286_s1 + $0x1c0] ss:$44 sps:$4 sm:$0xff]  }
 0x125   : > { %6476 = vmatpush1.bf16.msra.mxu0 %v599_v48  ;;  %v17193_v48 = vld [vmem:[%s24286_s1 + $0x21c] ss:$44 sps:$4 sm:$0xff]  }
 0x126   : > { %6477 = vmatprep.subr.bf16.mxu0 %v24298_v0 }
 0x129   : > { %6478 = vmatpush1.bf16.msra.mxu0 %v600_v51  ;;  %v17198_v51 = vld [vmem:[%s24286_s1 + $0x270] ss:$44 sps:$4 sm:$0xff]  }
 0x12a   : > { %6143 = vmatmul.mubr.bf16.gmra.mrb[100].mxu0 %v17060_v52  ;;  %v17123_v52 = vld [vmem:[%s24286_s1 + $0xfd0] ss:$44 sps:$4 sm:$0xff]   ;;  %6479 = vmatprep.subr.bf16.mxu0 %v24298_v0 }
 0x12b   : > { %6150 = vmatprep.mubr.bf16.mxu0 %v17061_v53  ;;  %v17124_v53 = vld [vmem:[%s24286_s1 + $0x102c] ss:$44 sps:$4 sm:$0xff]  }
 0x132   : > { %6151 = vmatmul.mubr.bf16.gmra.mrb[104].mxu0 %v17063_v54  ;;  %v467_v54 = vld [vmem:[%s18330_s24 + $0x1c0] sm:$0xff] }
 0x133   : > { %6158 = vmatprep.mubr.bf16.mxu0 %v17064_v55  ;;  %v468_v55 = vld [vmem:[%s18330_s24 + $0x1c8] sm:$0xff] }
 0x13a   : > { %6159 = vmatmul.mubr.bf16.gmra.mrb[108].mxu0 %v17066_v56  ;;  %v601_v56 = vpack.c.bf16 %v468_v55, %v467_v54  ;;  %v17202_v54 = vld [vmem:[%s24286_s1 + $0x324] ss:$44 sps:$4 sm:$0xff]  }
 0x13b   : > { %6166 = vmatprep.mubr.bf16.mxu0 %v17067_v57  ;;  %v469_v57 = vld [vmem:[%s18330_s24 + $0x1d0] sm:$0xff]  ;;  %v475_v55 = vld [vmem:[%s18330_s24 + $0x200] sm:$0xff] }
 0x13c   : > { %6480 = vmatpush1.bf16.msra.mxu0 %v601_v56  ;;  %v476_v56 = vld [vmem:[%s18330_s24 + $0x208] sm:$0xff] }
 0x13d   : > { %6481 = vmatprep.subr.bf16.mxu0 %v24298_v0 }
 0x142   : > { %6167 = vmatmul.mubr.bf16.gmra.mrb[112].mxu0 %v17069_v58  ;;  %v470_v58 = vld [vmem:[%s18330_s24 + $0x1d8] sm:$0xff] }
 0x143   : > { %6174 = vmatprep.mubr.bf16.mxu0 %v17070_v59  ;;  %v602_v59 = vpack.c.bf16 %v470_v58, %v469_v57  ;;  %v605_v57 = vpack.c.bf16 %v476_v56, %v475_v55  ;;  %v17204_v58 = vld [vmem:[%s24286_s1 + $0x320] ss:$44 sps:$4 sm:$0xff]   ;;  %v17273_v56 = vld [vmem:[%s24286_s1 + $0xb08] ss:$44 sps:$4 sm:$0xff]  }
 0x144   : > { %v17271_v55 = vld [vmem:[%s24286_s1 + $0xb0c] ss:$44 sps:$4 sm:$0xff]  }
 0x145   : > { %6482 = vmatpush1.bf16.msra.mxu0 %v602_v59  ;;  %v17205_v59 = vld [vmem:[%s24286_s1 + $0x37c] ss:$44 sps:$4 sm:$0xff]  }
 0x146   : > { %6483 = vmatprep.subr.bf16.mxu0 %v24298_v0 }
 0x14a   : > { %6175 = vmatmul.mubr.bf16.gmra.mrb[116].mxu0 %v17072_v63  ;;  %v472_v63 = vld [vmem:[%s18330_s24 + $0x1e8] sm:$0xff] }
 0x14b   : > { %6182 = vmatprep.mubr.bf16.mxu0 %v17073_v1  ;;  %v603_v1 = vpack.c.bf16 %v472_v63, %v471_v62  ;;  %v17210_v62 = vld [vmem:[%s24286_s1 + $0x3d0] ss:$44 sps:$4 sm:$0xff]   ;;  %v17211_v63 = vld [vmem:[%s24286_s1 + $0x42c] ss:$44 sps:$4 sm:$0xff]  }
 0x14d   : > { %6484 = vmatpush1.bf16.msra.mxu0 %v603_v1  ;;  %v17213_v1 = vld [vmem:[%s24286_s1 + $0x428] ss:$44 sps:$4 sm:$0xff]  }
 0x14e   : > { %6485 = vmatprep.subr.bf16.mxu0 %v24298_v0 }
 0x152   : > { %6183 = vmatmul.mubr.bf16.gmra.mrb[120].mxu0 %v17075_v2  ;;  %v473_v2 = vld [vmem:[%s18330_s24 + $0x1f0] sm:$0xff] }
 0x153   : > { %6190 = vmatprep.mubr.bf16.mxu0 %v17076_v3  ;;  %v474_v3 = vld [vmem:[%s18330_s24 + $0x1f8] sm:$0xff] }
 0x15a   : > { %6191 = vmatmul.mubr.bf16.gmra.mrb[124].mxu0 %v17078_v4  ;;  %v604_v4 = vpack.c.bf16 %v474_v3, %v473_v2  ;;  %v17214_v2 = vld [vmem:[%s24286_s1 + $0x484] ss:$44 sps:$4 sm:$0xff]  }
 0x15b   : > { %6198 = vmatprep.mubr.bf16.mxu0 %v17079_v5  ;;  %v17129_v5 = vld [vmem:[%s24286_s1 + $0x1080] ss:$44 sps:$4 sm:$0xff]   ;;  %v477_v3 = vld [vmem:[%s18330_s24 + $0x210] sm:$0xff] }
 0x15c   : > { %6486 = vmatpush1.bf16.msra.mxu0 %v604_v4  ;;  %v478_v4 = vld [vmem:[%s18330_s24 + $0x218] sm:$0xff] }
 0x15d   : > { %7000 = vmatprep.subr.bf16.mxu0 %v24298_v0 }
 0x162   : > { %6199 = vmatmul.mubr.bf16.gmra.mrb[128].mxu0 %v17081_v6  ;;  %v17130_v6 = vld [vmem:[%s24286_s1 + $0x10dc] ss:$44 sps:$4 sm:$0xff]  }
 0x163   : > { %6206 = vmatprep.mubr.bf16.mxu0 %v17082_v7  ;;  %v17132_v7 = vld [vmem:[%s24286_s1 + $0x10d8] ss:$44 sps:$4 sm:$0xff]  }
 0x16a   : > { %6207 = vmatmul.mubr.bf16.gmra.mrb[132].mxu0 %v17084_v11  ;;  %v17138_v11 = vld [vmem:[%s24286_s1 + $0x1188] ss:$44 sps:$4 sm:$0xff]  }
 0x16b   : > { %6214 = vmatprep.mubr.bf16.mxu0 %v17085_v12  ;;  %v17139_v12 = vld [vmem:[%s24286_s1 + $0x11e4] ss:$44 sps:$4 sm:$0xff]  }
 0x172   : > { %6215 = vmatmul.mubr.bf16.gmra.mrb[136].mxu0 %v17087_v13  ;;  %v17141_v13 = vld [vmem:[%s24286_s1 + $0x11e0] ss:$44 sps:$4 sm:$0xff]  }
 0x173   : > { %6222 = vmatprep.mubr.bf16.mxu0 %v17088_v14  ;;  %v17142_v14 = vld [vmem:[%s24286_s1 + $0x123c] ss:$44 sps:$4 sm:$0xff]  }
 0x17a   : > { %6223 = vmatmul.mubr.bf16.gmra.mrb[140].mxu0 %v17090_v15  ;;  %v17144_v15 = vld [vmem:[%s24286_s1 + $0x1238] ss:$44 sps:$4 sm:$0xff]  }
 0x17b   : > { %6230 = vmatprep.mubr.bf16.mxu0 %v17091_v16  ;;  %v17145_v16 = vld [vmem:[%s24286_s1 + $0x1294] ss:$44 sps:$4 sm:$0xff]  }
 0x182   : > { %6231 = vmatmul.mubr.bf16.gmra.mrb[144].mxu0 %v17093_v17  ;;  %v17147_v17 = vld [vmem:[%s24286_s1 + $0x1290] ss:$44 sps:$4 sm:$0xff]  }
 0x183   : > { %6238 = vmatprep.mubr.bf16.mxu0 %v17094_v18  ;;  %v17148_v18 = vld [vmem:[%s24286_s1 + $0x12ec] ss:$44 sps:$4 sm:$0xff]  }
 0x18a   : > { %6239 = vmatmul.mubr.bf16.gmra.mrb[148].mxu0 %v17096_v22  ;;  %v17154_v22 = vld [vmem:[%s24286_s1 + $0x139c] ss:$44 sps:$4 sm:$0xff]  }
 0x18b   : > { %6246 = vmatprep.mubr.bf16.mxu0 %v17097_v23  ;;  %v17156_v23 = vld [vmem:[%s24286_s1 + $0x1398] ss:$44 sps:$4 sm:$0xff]  }
 0x192   : > { %6247 = vmatmul.mubr.bf16.gmra.mrb[152].mxu0 %v17099_v24  ;;  %v17157_v24 = vld [vmem:[%s24286_s1 + $0x13f4] ss:$44 sps:$4 sm:$0xff]  }
 0x193   : > { %6254 = vmatprep.mubr.bf16.mxu0 %v17100_v25  ;;  %v17159_v25 = vld [vmem:[%s24286_s1 + $0x13f0] ss:$44 sps:$4 sm:$0xff]  }
 0x19a   : > { %6255 = vmatmul.mubr.bf16.gmra.mrb[156].mxu0 %v17102_v26  ;;  %v17160_v26 = vld [vmem:[%s24286_s1 + $0x144c] ss:$44 sps:$4 sm:$0xff]  }
 0x19b   : > { %6262 = vmatprep.mubr.bf16.mxu0 %v17103_v27  ;;  %v17162_v27 = vld [vmem:[%s24286_s1 + $0x1448] ss:$44 sps:$4 sm:$0xff]  }
 0x1a2   : > { %6263 = vmatmul.mubr.bf16.gmra.mrb[160].mxu0 %v17105_v28  ;;  %v17163_v28 = vld [vmem:[%s24286_s1 + $0x14a4] ss:$44 sps:$4 sm:$0xff]  }
 0x1a3   : > { %6270 = vmatprep.mubr.bf16.mxu0 %v17106_v29  ;;  %v17165_v29 = vld [vmem:[%s24286_s1 + $0x14a0] ss:$44 sps:$4 sm:$0xff]  }
 0x1aa   : > { %6271 = vmatmul.mubr.bf16.gmra.mrb[164].mxu0 %v17108_v33  ;;  %v17171_v33 = vld [vmem:[%s24286_s1 + $0x1550] ss:$44 sps:$4 sm:$0xff]  }
 0x1ab   : > { %6278 = vmatprep.mubr.bf16.mxu0 %v17109_v34  ;;  %v17172_v34 = vld [vmem:[%s24286_s1 + $0x15ac] ss:$44 sps:$4 sm:$0xff]  }
 0x1b2   : > { %6279 = vmatmul.mubr.bf16.gmra.mrb[168].mxu0 %v17111_v35  ;;  %v17174_v35 = vld [vmem:[%s24286_s1 + $0x15a8] ss:$44 sps:$4 sm:$0xff]  }
 0x1b3   : > { %6286 = vmatprep.mubr.bf16.mxu0 %v17112_v36  ;;  %v17177_v36 = vld [vmem:[%s24286_s1 + $0xc] ss:$44 sps:$4 sm:$0xff]  }
 0x1ba   : > { %6287 = vmatmul.mubr.bf16.gmra.mrb[172].mxu0 %v17114_v37  ;;  %v17175_v37 = vld [vmem:[%s24286_s1 + $0x8] ss:$44 sps:$4 sm:$0xff]  }
 0x1bb   : > { %6294 = vmatprep.mubr.bf16.mxu0 %v17115_v38  ;;  %v17178_v38 = vld [vmem:[%s24286_s1 + $0x64] ss:$44 sps:$4 sm:$0xff]  }
 0x1c2   : > { %6295 = vmatmul.mubr.bf16.gmra.mrb[176].mxu0 %v17117_v39  ;;  %v17180_v39 = vld [vmem:[%s24286_s1 + $0x60] ss:$44 sps:$4 sm:$0xff]  }
 0x1c3   : > { %6302 = vmatprep.mubr.bf16.mxu0 %v17118_v40  ;;  %v17181_v40 = vld [vmem:[%s24286_s1 + $0xbc] ss:$44 sps:$4 sm:$0xff]  }
 0x1ca   : > { %6303 = vmatmul.mubr.bf16.gmra.mrb[180].mxu0 %v17120_v44  ;;  %v17187_v44 = vld [vmem:[%s24286_s1 + $0x16c] ss:$44 sps:$4 sm:$0xff]  }
 0x1cb   : > { %6310 = vmatprep.mubr.bf16.mxu0 %v17121_v45  ;;  %v17189_v45 = vld [vmem:[%s24286_s1 + $0x168] ss:$44 sps:$4 sm:$0xff]  }
 0x1d2   : > { %6311 = vmatmul.mubr.bf16.gmra.mrb[184].mxu0 %v17123_v52  ;;  %v17199_v52 = vld [vmem:[%s24286_s1 + $0x2cc] ss:$44 sps:$4 sm:$0xff]  }
 0x1d3   : > { %6318 = vmatprep.mubr.bf16.mxu0 %v17124_v53  ;;  %v17201_v53 = vld [vmem:[%s24286_s1 + $0x2c8] ss:$44 sps:$4 sm:$0xff]  }
 0x1da   : > { %6319 = vmatmul.mubr.bf16.gmra.mrb[188].mxu0 %v17126_v60  ;;  %v17207_v60 = vld [vmem:[%s24286_s1 + $0x378] ss:$44 sps:$4 sm:$0xff]  }
 0x1db   : > { %6326 = vmatprep.mubr.bf16.mxu0 %v17127_v61  ;;  %v17208_v61 = vld [vmem:[%s24286_s1 + $0x3d4] ss:$44 sps:$4 sm:$0xff]  }
 0x1e2   : > { %6327 = vmatmul.mubr.bf16.gmra.mrb[192].mxu0 %v17129_v5  ;;  %v606_v5 = vpack.c.bf16 %v478_v4, %v477_v3  ;;  %v17283_v3 = vld [vmem:[%s24286_s1 + $0xc6c] ss:$44 sps:$4 sm:$0xff]   ;;  %v17285_v4 = vld [vmem:[%s24286_s1 + $0xc68] ss:$44 sps:$4 sm:$0xff]  }
 0x1e3   : > { %6334 = vmatprep.mubr.bf16.mxu0 %v17130_v6  ;;  %v17216_v6 = vld [vmem:[%s24286_s1 + $0x480] ss:$44 sps:$4 sm:$0xff]  }
 0x1ea   : > { %6335 = vmatmul.mubr.bf16.gmra.mrb[196].mxu0 %v17132_v7  ;;  %v17217_v7 = vld [vmem:[%s24286_s1 + $0x4dc] ss:$44 sps:$4 sm:$0xff]  }
 0x1eb   : > { %6342 = vmatprep.mubr.bf16.mxu0 %v17133_v8  ;;  %v17219_v8 = vld [vmem:[%s24286_s1 + $0x4d8] ss:$44 sps:$4 sm:$0xff]  }
 0x1f2   : > { %6343 = vmatmul.mubr.bf16.gmra.mrb[200].mxu0 %v17135_v9  ;;  %v17220_v9 = vld [vmem:[%s24286_s1 + $0x534] ss:$44 sps:$4 sm:$0xff]  }
 0x1f3   : > { %6350 = vmatprep.mubr.bf16.mxu0 %v17136_v10  ;;  %v17222_v10 = vld [vmem:[%s24286_s1 + $0x530] ss:$44 sps:$4 sm:$0xff]  }
 0x1fa   : > { %6351 = vmatmul.mubr.bf16.gmra.mrb[204].mxu0 %v17138_v11  ;;  %v17223_v11 = vld [vmem:[%s24286_s1 + $0x58c] ss:$44 sps:$4 sm:$0xff]  }
 0x1fb   : > { %6358 = vmatprep.mubr.bf16.mxu0 %v17139_v12  ;;  %v17225_v12 = vld [vmem:[%s24286_s1 + $0x588] ss:$44 sps:$4 sm:$0xff]  }
 0x202   : > { %6359 = vmatmul.mubr.bf16.gmra.mrb[208].mxu0 %v17141_v13  ;;  %v17226_v13 = vld [vmem:[%s24286_s1 + $0x5e4] ss:$44 sps:$4 sm:$0xff]  }
 0x203   : > { %6366 = vmatprep.mubr.bf16.mxu0 %v17142_v14  ;;  %v479_v14 = vld [vmem:[%s18330_s24 + $0x220] sm:$0xff] }
 0x20a   : > { %6367 = vmatmul.mubr.bf16.gmra.mrb[212].mxu0 %v17144_v15  ;;  %v480_v15 = vld [vmem:[%s18330_s24 + $0x228] sm:$0xff] }
 0x20b   : > { %6374 = vmatprep.mubr.bf16.mxu0 %v17145_v16  ;;  %v607_v16 = vpack.c.bf16 %v480_v15, %v479_v14  ;;  %v17295_v14 = vld [vmem:[%s24286_s1 + $0xdcc] ss:$44 sps:$4 sm:$0xff]   ;;  %v17297_v15 = vld [vmem:[%s24286_s1 + $0xdc8] ss:$44 sps:$4 sm:$0xff]  }
 0x212   : > { %6375 = vmatmul.mubr.bf16.gmra.mrb[216].mxu0 %v17147_v17  ;;  %v17228_v17 = vld [vmem:[%s24286_s1 + $0x5e0] ss:$44 sps:$4 sm:$0xff]  }
 0x213   : > { %6382 = vmatprep.mubr.bf16.mxu0 %v17148_v18  ;;  %v17229_v18 = vld [vmem:[%s24286_s1 + $0x63c] ss:$44 sps:$4 sm:$0xff]  }
 0x21a   : > { %6383 = vmatmul.mubr.bf16.gmra.mrb[220].mxu0 %v17150_v19  ;;  %v17231_v19 = vld [vmem:[%s24286_s1 + $0x638] ss:$44 sps:$4 sm:$0xff]  }
 0x21b   : > { %6390 = vmatprep.mubr.bf16.mxu0 %v17151_v20  ;;  %v17232_v20 = vld [vmem:[%s24286_s1 + $0x694] ss:$44 sps:$4 sm:$0xff]  }
 0x222   : > { %6391 = vmatmul.mubr.bf16.gmra.mrb[224].mxu0 %v17153_v21  ;;  %v17234_v21 = vld [vmem:[%s24286_s1 + $0x690] ss:$44 sps:$4 sm:$0xff]  }
 0x223   : > { %6398 = vmatprep.mubr.bf16.mxu0 %v17154_v22  ;;  %v17235_v22 = vld [vmem:[%s24286_s1 + $0x6ec] ss:$44 sps:$4 sm:$0xff]  }
 0x22a   : > { %6399 = vmatmul.mubr.bf16.gmra.mrb[228].mxu0 %v17156_v23  ;;  %v17237_v23 = vld [vmem:[%s24286_s1 + $0x6e8] ss:$44 sps:$4 sm:$0xff]  }
 0x22b   : > { %6406 = vmatprep.mubr.bf16.mxu0 %v17157_v24  ;;  %v17238_v24 = vld [vmem:[%s24286_s1 + $0x744] ss:$44 sps:$4 sm:$0xff]  }
 0x232   : > { %6407 = vmatmul.mubr.bf16.gmra.mrb[232].mxu0 %v17159_v25  ;;  %v481_v25 = vld [vmem:[%s18330_s24 + $0x230] sm:$0xff] }
 0x233   : > { %6414 = vmatprep.mubr.bf16.mxu0 %v17160_v26  ;;  %v482_v26 = vld [vmem:[%s18330_s24 + $0x238] sm:$0xff] }
 0x23a   : > { %6415 = vmatmul.mubr.bf16.gmra.mrb[236].mxu0 %v17162_v27  ;;  %v608_v27 = vpack.c.bf16 %v482_v26, %v481_v25  ;;  %v17307_v25 = vld [vmem:[%s24286_s1 + $0xf2c] ss:$44 sps:$4 sm:$0xff]   ;;  %v17309_v26 = vld [vmem:[%s24286_s1 + $0xf28] ss:$44 sps:$4 sm:$0xff]  }
 0x23b   : > { %6422 = vmatprep.mubr.bf16.mxu0 %v17163_v28  ;;  %v17240_v28 = vld [vmem:[%s24286_s1 + $0x740] ss:$44 sps:$4 sm:$0xff]  }
 0x242   : > { %6423 = vmatmul.mubr.bf16.gmra.mrb[240].mxu0 %v17165_v29  ;;  %v17241_v29 = vld [vmem:[%s24286_s1 + $0x79c] ss:$44 sps:$4 sm:$0xff]  }
 0x243   : > { %6430 = vmatprep.mubr.bf16.mxu0 %v17166_v30  ;;  %v17243_v30 = vld [vmem:[%s24286_s1 + $0x798] ss:$44 sps:$4 sm:$0xff]  }
 0x24a   : > { %6431 = vmatmul.mubr.bf16.gmra.mrb[244].mxu0 %v17168_v31  ;;  %v17244_v31 = vld [vmem:[%s24286_s1 + $0x7f4] ss:$44 sps:$4 sm:$0xff]  }
 0x24b   : > { %6438 = vmatprep.mubr.bf16.mxu0 %v17169_v32  ;;  %v17246_v32 = vld [vmem:[%s24286_s1 + $0x7f0] ss:$44 sps:$4 sm:$0xff]  }
 0x252   : > { %6439 = vmatmul.mubr.bf16.gmra.mrb[248].mxu0 %v17171_v33  ;;  %v17247_v33 = vld [vmem:[%s24286_s1 + $0x84c] ss:$44 sps:$4 sm:$0xff]  }
 0x253   : > { %6446 = vmatprep.mubr.bf16.mxu0 %v17172_v34  ;;  %v17249_v34 = vld [vmem:[%s24286_s1 + $0x848] ss:$44 sps:$4 sm:$0xff]  }
 0x25a   : > { %6447 = vmatmul.mubr.bf16.gmra.mrb[252].mxu0 %v17174_v35  ;;  %v17250_v35 = vld [vmem:[%s24286_s1 + $0x8a4] ss:$44 sps:$4 sm:$0xff]  }
 0x25b   : > { %6487 = vmatprep.mubr.bf16.mxu0 %v17177_v36  ;;  %v483_v36 = vld [vmem:[%s18330_s24 + $0x240] sm:$0xff] }
 0x262   : > { %6488 = vmatmul.mubr.bf16.vlgmr.msra.gmra.mrb[0].mxu0 %v17175_v37  ;;  %v484_v37 = vld [vmem:[%s18330_s24 + $0x248] sm:$0xff] }
 0x263   : > { %6495 = vmatprep.mubr.bf16.mxu0 %v17178_v38  ;;  %7001 = vmatpush1.bf16.msra.mxu0 %v605_v57  ;;  %v609_v38 = vpack.c.bf16 %v484_v37, %v483_v36  ;;  %v17274_v57 = vld [vmem:[%s24286_s1 + $0xb64] ss:$44 sps:$4 sm:$0xff]   ;;  %v540_v37 = vld [vmem:[%s18330_s24 + $0x408] sm:$0xff] }
 0x264   : > { %7002 = vmatprep.subr.bf16.mxu0 %v24298_v0  ;;  %v539_v36 = vld [vmem:[%s18330_s24 + $0x400] sm:$0xff] }
 0x267   : > { %7003 = vmatpush1.bf16.msra.mxu0 %v606_v5  ;;  %v17286_v5 = vld [vmem:[%s24286_s1 + $0xcc4] ss:$44 sps:$4 sm:$0xff]  }
 0x268   : > { %7004 = vmatprep.subr.bf16.mxu0 %v24298_v0 }
 0x26a   : > { %6496 = vmatmul.mubr.bf16.gmra.mrb[4].mxu0 %v17180_v39  ;;  %v17252_v39 = vld [vmem:[%s24286_s1 + $0x8a0] ss:$44 sps:$4 sm:$0xff]  }
 0x26b   : > { %6503 = vmatprep.mubr.bf16.mxu0 %v17181_v40  ;;  %7005 = vmatpush1.bf16.msra.mxu0 %v607_v16  ;;  %v17253_v40 = vld [vmem:[%s24286_s1 + $0x8fc] ss:$44 sps:$4 sm:$0xff]   ;;  %v17298_v16 = vld [vmem:[%s24286_s1 + $0xe24] ss:$44 sps:$4 sm:$0xff]  }
 0x26c   : > { %7006 = vmatprep.subr.bf16.mxu0 %v24298_v0 }
 0x26f   : > { %7007 = vmatpush1.bf16.msra.mxu0 %v608_v27  ;;  %v17310_v27 = vld [vmem:[%s24286_s1 + $0xf84] ss:$44 sps:$4 sm:$0xff]  }
 0x270   : > { %7008 = vmatprep.subr.bf16.mxu0 %v24298_v0 }
 0x272   : > { %6504 = vmatmul.mubr.bf16.gmra.mrb[8].mxu0 %v17183_v41  ;;  %v17255_v41 = vld [vmem:[%s24286_s1 + $0x8f8] ss:$44 sps:$4 sm:$0xff]  }
 0x273   : > { %6511 = vmatprep.mubr.bf16.mxu0 %v17184_v42  ;;  %7009 = vmatpush1.bf16.msra.mxu0 %v609_v38  ;;  %v17256_v42 = vld [vmem:[%s24286_s1 + $0x954] ss:$44 sps:$4 sm:$0xff]  }
 0x274   : > { %7010 = vmatprep.subr.bf16.mxu0 %v24298_v0  ;;  %v497_v38 = vld [vmem:[%s18330_s24 + $0x2b0] sm:$0xff] }
 0x27a   : > { %6512 = vmatmul.mubr.bf16.gmra.mrb[12].mxu0 %v17186_v43  ;;  %v17258_v43 = vld [vmem:[%s24286_s1 + $0x950] ss:$44 sps:$4 sm:$0xff]  }
 0x27b   : > { %6519 = vmatprep.mubr.bf16.mxu0 %v17187_v44  ;;  %v17259_v44 = vld [vmem:[%s24286_s1 + $0x9ac] ss:$44 sps:$4 sm:$0xff]  }
 0x282   : > { %6520 = vmatmul.mubr.bf16.gmra.mrb[16].mxu0 %v17189_v45  ;;  %v17261_v45 = vld [vmem:[%s24286_s1 + $0x9a8] ss:$44 sps:$4 sm:$0xff]  }
 0x283   : > { %6527 = vmatprep.mubr.bf16.mxu0 %v17190_v46  ;;  %v17262_v46 = vld [vmem:[%s24286_s1 + $0xa04] ss:$44 sps:$4 sm:$0xff]  }
 0x28a   : > { %6528 = vmatmul.mubr.bf16.gmra.mrb[20].mxu0 %v17192_v47  ;;  %v485_v47 = vld [vmem:[%s18330_s24 + $0x250] sm:$0xff] }
 0x28b   : > { %6535 = vmatprep.mubr.bf16.mxu0 %v17193_v48  ;;  %v486_v48 = vld [vmem:[%s18330_s24 + $0x258] sm:$0xff] }
 0x292   : > { %6536 = vmatmul.mubr.bf16.gmra.mrb[24].mxu0 %v17195_v49  ;;  %v610_v49 = vpack.c.bf16 %v486_v48, %v485_v47  ;;  %v499_v47 = vld [vmem:[%s18330_s24 + $0x2c0] sm:$0xff]  ;;  %v500_v48 = vld [vmem:[%s18330_s24 + $0x2c8] sm:$0xff] }
 0x293   : > { %6543 = vmatprep.mubr.bf16.mxu0 %v17196_v50  ;;  %v17264_v50 = vld [vmem:[%s24286_s1 + $0xa00] ss:$44 sps:$4 sm:$0xff]  }
 0x294   : > { %7011 = vmatpush1.bf16.msra.mxu0 %v610_v49  ;;  %v617_v49 = vpack.c.bf16 %v500_v48, %v499_v47  ;;  %v568_v47 = vld [vmem:[%s18330_s24 + $0x4e8] sm:$0xff] }
 0x295   : > { %7012 = vmatprep.subr.bf16.mxu0 %v24298_v0 }
 0x29a   : > { %6544 = vmatmul.mubr.bf16.gmra.mrb[28].mxu0 %v17198_v51  ;;  %v17265_v51 = vld [vmem:[%s24286_s1 + $0xa5c] ss:$44 sps:$4 sm:$0xff]  }
 0x29b   : > { %6551 = vmatprep.mubr.bf16.mxu0 %v17199_v52  ;;  %v17267_v52 = vld [vmem:[%s24286_s1 + $0xa58] ss:$44 sps:$4 sm:$0xff]  }
 0x2a2   : > { %6552 = vmatmul.mubr.bf16.gmra.mrb[32].mxu0 %v17201_v53  ;;  %v17268_v53 = vld [vmem:[%s24286_s1 + $0xab4] ss:$44 sps:$4 sm:$0xff]  }
 0x2a3   : > { %6559 = vmatprep.mubr.bf16.mxu0 %v17202_v54  ;;  %v17270_v54 = vld [vmem:[%s24286_s1 + $0xab0] ss:$44 sps:$4 sm:$0xff]  }
 0x2aa   : > { %6560 = vmatmul.mubr.bf16.gmra.mrb[36].mxu0 %v17204_v58  ;;  %v487_v58 = vld [vmem:[%s18330_s24 + $0x260] sm:$0xff] }
 0x2ab   : > { %6567 = vmatprep.mubr.bf16.mxu0 %v17205_v59  ;;  %v488_v59 = vld [vmem:[%s18330_s24 + $0x268] sm:$0xff] }
 0x2b2   : > { %6568 = vmatmul.mubr.bf16.gmra.mrb[40].mxu0 %v17207_v60  ;;  %v611_v60 = vpack.c.bf16 %v488_v59, %v487_v58  ;;  %v545_v58 = vld [vmem:[%s18330_s24 + $0x430] sm:$0xff]  ;;  %v546_v59 = vld [vmem:[%s18330_s24 + $0x438] sm:$0xff] }
 0x2b3   : > { %6575 = vmatprep.mubr.bf16.mxu0 %v17208_v61  ;;  %v17276_v61 = vld [vmem:[%s24286_s1 + $0xb60] ss:$44 sps:$4 sm:$0xff]  }
 0x2b4   : > { %7013 = vmatpush1.bf16.msra.mxu0 %v611_v60  ;;  %v19162_v60 = vpack.c.bf16 %v546_v59, %v545_v58  ;;  %v17340_v58 = vld [vmem:[%s24286_s1 + $0x12f4] ss:$44 sps:$4 sm:$0xff]   ;;  %v17391_v59 = vld [vmem:[%s24286_s1 + $0x184] ss:$44 sps:$4 sm:$0xff]  }
 0x2b5   : > { %7014 = vmatprep.subr.bf16.mxu0 %v24298_v0 }
 0x2ba   : > { %6576 = vmatmul.mubr.bf16.gmra.mrb[44].mxu0 %v17210_v62  ;;  %v17277_v62 = vld [vmem:[%s24286_s1 + $0xbbc] ss:$44 sps:$4 sm:$0xff]  }
 0x2bb   : > { %6583 = vmatprep.mubr.bf16.mxu0 %v17211_v63  ;;  %v17279_v63 = vld [vmem:[%s24286_s1 + $0xbb8] ss:$44 sps:$4 sm:$0xff]  }
 0x2c2   : > { %6584 = vmatmul.mubr.bf16.gmra.mrb[48].mxu0 %v17213_v1  ;;  %v17280_v1 = vld [vmem:[%s24286_s1 + $0xc14] ss:$44 sps:$4 sm:$0xff]  }
 0x2c3   : > { %6591 = vmatprep.mubr.bf16.mxu0 %v17214_v2  ;;  %v17282_v2 = vld [vmem:[%s24286_s1 + $0xc10] ss:$44 sps:$4 sm:$0xff]  }
 0x2ca   : > { %6592 = vmatmul.mubr.bf16.gmra.mrb[52].mxu0 %v17216_v6  ;;  %v489_v6 = vld [vmem:[%s18330_s24 + $0x270] sm:$0xff] }
 0x2cb   : > { %6599 = vmatprep.mubr.bf16.mxu0 %v17217_v7  ;;  %v490_v7 = vld [vmem:[%s18330_s24 + $0x278] sm:$0xff] }
 0x2d2   : > { %6600 = vmatmul.mubr.bf16.gmra.mrb[56].mxu0 %v17219_v8  ;;  %v612_v8 = vpack.c.bf16 %v490_v7, %v489_v6  ;;  %v17321_v7 = vld [vmem:[%s24286_s1 + $0x1088] ss:$44 sps:$4 sm:$0xff]  }
 0x2d3   : > { %6607 = vmatprep.mubr.bf16.mxu0 %v17220_v9  ;;  %v17288_v9 = vld [vmem:[%s24286_s1 + $0xcc0] ss:$44 sps:$4 sm:$0xff]  }
 0x2d4   : > { %7015 = vmatpush1.bf16.msra.mxu0 %v612_v8  ;;  %v17322_v8 = vld [vmem:[%s24286_s1 + $0x10e4] ss:$44 sps:$4 sm:$0xff]  }
 0x2d5   : > { %7016 = vmatprep.subr.bf16.mxu0 %v24298_v0 }
 0x2da   : > { %6608 = vmatmul.mubr.bf16.gmra.mrb[60].mxu0 %v17222_v10  ;;  %v17289_v10 = vld [vmem:[%s24286_s1 + $0xd1c] ss:$44 sps:$4 sm:$0xff]  }
 0x2db   : > { %6615 = vmatprep.mubr.bf16.mxu0 %v17223_v11  ;;  %v17291_v11 = vld [vmem:[%s24286_s1 + $0xd18] ss:$44 sps:$4 sm:$0xff]  }
 0x2e2   : > { %6616 = vmatmul.mubr.bf16.gmra.mrb[64].mxu0 %v17225_v12  ;;  %v17292_v12 = vld [vmem:[%s24286_s1 + $0xd74] ss:$44 sps:$4 sm:$0xff]  }
 0x2e3   : > { %6623 = vmatprep.mubr.bf16.mxu0 %v17226_v13  ;;  %v17294_v13 = vld [vmem:[%s24286_s1 + $0xd70] ss:$44 sps:$4 sm:$0xff]  }
 0x2ea   : > { %6624 = vmatmul.mubr.bf16.gmra.mrb[68].mxu0 %v17228_v17  ;;  %v491_v17 = vld [vmem:[%s18330_s24 + $0x280] sm:$0xff] }
 0x2eb   : > { %6631 = vmatprep.mubr.bf16.mxu0 %v17229_v18  ;;  %v492_v18 = vld [vmem:[%s18330_s24 + $0x288] sm:$0xff] }
 0x2f2   : > { %6632 = vmatmul.mubr.bf16.gmra.mrb[72].mxu0 %v17231_v19  ;;  %v613_v19 = vpack.c.bf16 %v492_v18, %v491_v17  ;;  %v553_v17 = vld [vmem:[%s18330_s24 + $0x470] sm:$0xff]  ;;  %v554_v18 = vld [vmem:[%s18330_s24 + $0x478] sm:$0xff] }
 0x2f3   : > { %6639 = vmatprep.mubr.bf16.mxu0 %v17232_v20  ;;  %v17300_v20 = vld [vmem:[%s24286_s1 + $0xe20] ss:$44 sps:$4 sm:$0xff]  }
 0x2f4   : > { %7017 = vmatpush1.bf16.msra.mxu0 %v613_v19  ;;  %v19204_v19 = vpack.c.bf16 %v554_v18, %v553_v17  ;;  %v17417_v17 = vld [vmem:[%s24286_s1 + $0x2e0] ss:$44 sps:$4 sm:$0xff]   ;;  %v17354_v18 = vld [vmem:[%s24286_s1 + $0x1450] ss:$44 sps:$4 sm:$0xff]  }
 0x2f5   : > { %7018 = vmatprep.subr.bf16.mxu0 %v24298_v0 }
 0x2fa   : > { %6640 = vmatmul.mubr.bf16.gmra.mrb[76].mxu0 %v17234_v21  ;;  %v17301_v21 = vld [vmem:[%s24286_s1 + $0xe7c] ss:$44 sps:$4 sm:$0xff]  }
 0x2fb   : > { %6647 = vmatprep.mubr.bf16.mxu0 %v17235_v22  ;;  %v17303_v22 = vld [vmem:[%s24286_s1 + $0xe78] ss:$44 sps:$4 sm:$0xff]  }
 0x302   : > { %6648 = vmatmul.mubr.bf16.gmra.mrb[80].mxu0 %v17237_v23  ;;  %v17304_v23 = vld [vmem:[%s24286_s1 + $0xed4] ss:$44 sps:$4 sm:$0xff]  }
 0x303   : > { %6655 = vmatprep.mubr.bf16.mxu0 %v17238_v24  ;;  %v17306_v24 = vld [vmem:[%s24286_s1 + $0xed0] ss:$44 sps:$4 sm:$0xff]  }
 0x30a   : > { %6656 = vmatmul.mubr.bf16.gmra.mrb[84].mxu0 %v17240_v28  ;;  %v493_v28 = vld [vmem:[%s18330_s24 + $0x290] sm:$0xff] }
 0x30b   : > { %6663 = vmatprep.mubr.bf16.mxu0 %v17241_v29  ;;  %v494_v29 = vld [vmem:[%s18330_s24 + $0x298] sm:$0xff] }
 0x312   : > { %6664 = vmatmul.mubr.bf16.gmra.mrb[88].mxu0 %v17243_v30  ;;  %v614_v30 = vpack.c.bf16 %v494_v29, %v493_v28  ;;  %v559_v28 = vld [vmem:[%s18330_s24 + $0x4a0] sm:$0xff]  ;;  %v560_v29 = vld [vmem:[%s18330_s24 + $0x4a8] sm:$0xff] }
 0x313   : > { %6671 = vmatprep.mubr.bf16.mxu0 %v17244_v31  ;;  %v17312_v31 = vld [vmem:[%s24286_s1 + $0xf80] ss:$44 sps:$4 sm:$0xff]  }
 0x314   : > { %7019 = vmatpush1.bf16.msra.mxu0 %v614_v30  ;;  %v19228_v30 = vpack.c.bf16 %v560_v29, %v559_v28  ;;  %v17429_v28 = vld [vmem:[%s24286_s1 + $0x390] ss:$44 sps:$4 sm:$0xff]   ;;  %v17360_v29 = vld [vmem:[%s24286_s1 + $0x1500] ss:$44 sps:$4 sm:$0xff]  }
 0x315   : > { %7020 = vmatprep.subr.bf16.mxu0 %v24298_v0 }
 0x31a   : > { %6672 = vmatmul.mubr.bf16.gmra.mrb[92].mxu0 %v17246_v32  ;;  %v17313_v32 = vld [vmem:[%s24286_s1 + $0xfdc] ss:$44 sps:$4 sm:$0xff]  }
 0x31b   : > { %6679 = vmatprep.mubr.bf16.mxu0 %v17247_v33  ;;  %v495_v33 = vld [vmem:[%s18330_s24 + $0x2a0] sm:$0xff] }
 0x322   : > { %6680 = vmatmul.mubr.bf16.gmra.mrb[96].mxu0 %v17249_v34  ;;  %v496_v34 = vld [vmem:[%s18330_s24 + $0x2a8] sm:$0xff] }
 0x323   : > { %6687 = vmatprep.mubr.bf16.mxu0 %v17250_v35  ;;  %v615_v35 = vpack.c.bf16 %v496_v34, %v495_v33  ;;  %v561_v33 = vld [vmem:[%s18330_s24 + $0x4b0] sm:$0xff]  ;;  %v562_v34 = vld [vmem:[%s18330_s24 + $0x4b8] sm:$0xff] }
 0x325   : > { %7021 = vmatpush1.bf16.msra.mxu0 %v615_v35  ;;  %v19240_v35 = vpack.c.bf16 %v562_v34, %v561_v33  ;;  %v17435_v33 = vld [vmem:[%s24286_s1 + $0x3e8] ss:$44 sps:$4 sm:$0xff]   ;;  %v17363_v34 = vld [vmem:[%s24286_s1 + $0x1558] ss:$44 sps:$4 sm:$0xff]  }
 0x326   : > { %7022 = vmatprep.subr.bf16.mxu0 %v24298_v0 }
 0x32a   : > { %6688 = vmatmul.mubr.bf16.gmra.mrb[100].mxu0 %v17252_v39  ;;  %v19123_v39 = vpack.c.bf16 %v540_v37, %v539_v36  ;;  %v563_v36 = vld [vmem:[%s18330_s24 + $0x4c0] sm:$0xff]  ;;  %v564_v37 = vld [vmem:[%s18330_s24 + $0x4c8] sm:$0xff] }
 0x32b   : > { %6695 = vmatprep.mubr.bf16.mxu0 %v17253_v40  ;;  %v498_v40 = vld [vmem:[%s18330_s24 + $0x2b8] sm:$0xff] }
 0x32c   : > { %15425 = vmatpush1.bf16.msra.mxu1 %v19123_v39 }
 0x32d   : > { %15410 = vmatprep.subr.bf16.mxu1 %v24298_v0 }
 0x332   : > { %6696 = vmatmul.mubr.bf16.gmra.mrb[104].mxu0 %v17255_v41  ;;  %v616_v41 = vpack.c.bf16 %v498_v40, %v497_v38  ;;  %v19246_v38 = vpack.c.bf16 %v564_v37, %v563_v36  ;;  %v17333_v40 = vld [vmem:[%s24286_s1 + $0x11e8] ss:$44 sps:$4 sm:$0xff]   ;;  %v17439_v37 = vld [vmem:[%s24286_s1 + $0x444] ss:$44 sps:$4 sm:$0xff]  }
 0x333   : > { %6703 = vmatprep.mubr.bf16.mxu0 %v17256_v42  ;;  %v17315_v42 = vld [vmem:[%s24286_s1 + $0xfd8] ss:$44 sps:$4 sm:$0xff]   ;;  %v17364_v36 = vld [vmem:[%s24286_s1 + $0x15b4] ss:$44 sps:$4 sm:$0xff]  }
 0x334   : > { %7023 = vmatpush1.bf16.msra.mxu0 %v616_v41  ;;  %v17334_v41 = vld [vmem:[%s24286_s1 + $0x1244] ss:$44 sps:$4 sm:$0xff]  }
 0x335   : > { %7024 = vmatprep.subr.bf16.mxu0 %v24298_v0 }
 0x338   : > { %7025 = vmatpush1.bf16.msra.mxu0 %v617_v49  ;;  %v17336_v49 = vld [vmem:[%s24286_s1 + $0x1240] ss:$44 sps:$4 sm:$0xff]  }
 0x339   : > { %7026 = vmatprep.subr.bf16.mxu0 %v24298_v0 }
 0x33a   : > { %6704 = vmatmul.mubr.bf16.gmra.mrb[108].mxu0 %v17258_v43  ;;  %v17316_v43 = vld [vmem:[%s24286_s1 + $0x1034] ss:$44 sps:$4 sm:$0xff]  }
 0x33b   : > { %6711 = vmatprep.mubr.bf16.mxu0 %v17259_v44  ;;  %v541_v44 = vld [vmem:[%s18330_s24 + $0x410] sm:$0xff] }
 0x342   : > { %6712 = vmatmul.mubr.bf16.gmra.mrb[112].mxu0 %v17261_v45  ;;  %v542_v45 = vld [vmem:[%s18330_s24 + $0x418] sm:$0xff] }
 0x343   : > { %6719 = vmatprep.mubr.bf16.mxu0 %v17262_v46  ;;  %v19138_v46 = vpack.c.bf16 %v542_v45, %v541_v44  ;;  %v567_v45 = vld [vmem:[%s18330_s24 + $0x4e0] sm:$0xff] }
 0x344   : > { %v19264_v48 = vpack.c.bf16 %v568_v47, %v567_v45  ;;  %v17447_v45 = vld [vmem:[%s24286_s1 + $0x498] ss:$44 sps:$4 sm:$0xff]   ;;  %v17367_v47 = vld [vmem:[%s24286_s1 + $0x10] ss:$44 sps:$4 sm:$0xff]  }
 0x345   : > { %15426 = vmatpush1.bf16.msra.mxu1 %v19138_v46 }
 0x346   : > { %15411 = vmatprep.subr.bf16.mxu1 %v24298_v0 }
 0x34a   : > { %6720 = vmatmul.mubr.bf16.gmra.mrb[116].mxu0 %v17264_v50  ;;  %v543_v50 = vld [vmem:[%s18330_s24 + $0x420] sm:$0xff] }
 0x34b   : > { %6727 = vmatprep.mubr.bf16.mxu0 %v17265_v51  ;;  %v544_v51 = vld [vmem:[%s18330_s24 + $0x428] sm:$0xff] }
 0x352   : > { %6728 = vmatmul.mubr.bf16.gmra.mrb[120].mxu0 %v17267_v52  ;;  %v501_v52 = vld [vmem:[%s18330_s24 + $0x2d0] sm:$0xff] }
 0x353   : > { %6735 = vmatprep.mubr.bf16.mxu0 %v17268_v53  ;;  %v19146_v53 = vpack.c.bf16 %v544_v51, %v543_v50  ;;  %v17337_v50 = vld [vmem:[%s24286_s1 + $0x129c] ss:$44 sps:$4 sm:$0xff]   ;;  %v569_v51 = vld [vmem:[%s18330_s24 + $0x4f0] sm:$0xff] }
 0x355   : > { %15427 = vmatpush1.bf16.msra.mxu1 %v19146_v53 }
 0x356   : > { %15412 = vmatprep.subr.bf16.mxu1 %v24298_v0 }
 0x359   : > { %15428 = vmatpush1.bf16.msra.mxu1 %v19162_v60 }
 0x35a   : > { %6736 = vmatmul.mubr.bf16.gmra.mrb[124].mxu0 %v17270_v54  ;;  %v502_v54 = vld [vmem:[%s18330_s24 + $0x2d8] sm:$0xff]  ;;  %15413 = vmatprep.subr.bf16.mxu1 %v24298_v0 }
 0x35b   : > { %6743 = vmatprep.mubr.bf16.mxu0 %v17271_v55  ;;  %v618_v55 = vpack.c.bf16 %v502_v54, %v501_v52  ;;  %v570_v52 = vld [vmem:[%s18330_s24 + $0x4f8] sm:$0xff] }
 0x35c   : > { %v19276_v54 = vpack.c.bf16 %v570_v52, %v569_v51  ;;  %v17453_v51 = vld [vmem:[%s24286_s1 + $0x4f0] ss:$44 sps:$4 sm:$0xff]   ;;  %v17372_v52 = vld [vmem:[%s24286_s1 + $0x68] ss:$44 sps:$4 sm:$0xff]  }
 0x35d   : > { %7027 = vmatpush1.bf16.msra.mxu0 %v618_v55  ;;  %v17385_v55 = vld [vmem:[%s24286_s1 + $0x128] ss:$44 sps:$4 sm:$0xff]  }
 0x35e   : > { %7028 = vmatprep.subr.bf16.mxu0 %v24298_v0 }
 0x362   : > { %6744 = vmatmul.mubr.bf16.gmra.mrb[128].mxu0 %v17273_v56  ;;  %v17318_v56 = vld [vmem:[%s24286_s1 + $0x1030] ss:$44 sps:$4 sm:$0xff]  }
 0x363   : > { %6751 = vmatprep.mubr.bf16.mxu0 %v17274_v57  ;;  %v17319_v57 = vld [vmem:[%s24286_s1 + $0x108c] ss:$44 sps:$4 sm:$0xff]  }
 0x36a   : > { %6752 = vmatmul.mubr.bf16.gmra.mrb[132].mxu0 %v17276_v61  ;;  %v503_v61 = vld [vmem:[%s18330_s24 + $0x2e0] sm:$0xff] }
 0x36b   : > { %6759 = vmatprep.mubr.bf16.mxu0 %v17277_v62  ;;  %v504_v62 = vld [vmem:[%s18330_s24 + $0x2e8] sm:$0xff] }
 0x372   : > { %6760 = vmatmul.mubr.bf16.gmra.mrb[136].mxu0 %v17279_v63  ;;  %v619_v63 = vpack.c.bf16 %v504_v62, %v503_v61  ;;  %v17393_v61 = vld [vmem:[%s24286_s1 + $0x180] ss:$44 sps:$4 sm:$0xff]   ;;  %v17342_v62 = vld [vmem:[%s24286_s1 + $0x12f0] ss:$44 sps:$4 sm:$0xff]  }
 0x373   : > { %6767 = vmatprep.mubr.bf16.mxu0 %v17280_v1  ;;  %v547_v1 = vld [vmem:[%s18330_s24 + $0x440] sm:$0xff] }
 0x374   : > { %7029 = vmatpush1.bf16.msra.mxu0 %v619_v63  ;;  %v17343_v63 = vld [vmem:[%s24286_s1 + $0x134c] ss:$44 sps:$4 sm:$0xff]  }
 0x375   : > { %7030 = vmatprep.subr.bf16.mxu0 %v24298_v0 }
 0x37a   : > { %6768 = vmatmul.mubr.bf16.gmra.mrb[140].mxu0 %v17282_v2  ;;  %v548_v2 = vld [vmem:[%s18330_s24 + $0x448] sm:$0xff] }
 0x37b   : > { %6775 = vmatprep.mubr.bf16.mxu0 %v17283_v3  ;;  %v505_v3 = vld [vmem:[%s18330_s24 + $0x2f0] sm:$0xff] }
 0x382   : > { %6776 = vmatmul.mubr.bf16.gmra.mrb[144].mxu0 %v17285_v4  ;;  %v19170_v4 = vpack.c.bf16 %v548_v2, %v547_v1  ;;  %v17397_v1 = vld [vmem:[%s24286_s1 + $0x1dc] ss:$44 sps:$4 sm:$0xff]   ;;  %v17399_v2 = vld [vmem:[%s24286_s1 + $0x1d8] ss:$44 sps:$4 sm:$0xff]  }
 0x383   : > { %6783 = vmatprep.mubr.bf16.mxu0 %v17286_v5  ;;  %v506_v5 = vld [vmem:[%s18330_s24 + $0x2f8] sm:$0xff] }
 0x384   : > { %v620_v6 = vpack.c.bf16 %v506_v5, %v505_v3  ;;  %15429 = vmatpush1.bf16.msra.mxu1 %v19170_v4  ;;  %v17345_v3 = vld [vmem:[%s24286_s1 + $0x1348] ss:$44 sps:$4 sm:$0xff]   ;;  %v17346_v5 = vld [vmem:[%s24286_s1 + $0x13a4] ss:$44 sps:$4 sm:$0xff]  }
 0x385   : > { %15414 = vmatprep.subr.bf16.mxu1 %v24298_v0 }
 0x386   : > { %7031 = vmatpush1.bf16.msra.mxu0 %v620_v6  ;;  %v17403_v6 = vld [vmem:[%s24286_s1 + $0x234] ss:$44 sps:$4 sm:$0xff]  }
 0x387   : > { %7545 = vmatprep.subr.bf16.mxu0 %v24298_v0 }
 0x38a   : > { %6784 = vmatmul.mubr.bf16.gmra.mrb[148].mxu0 %v17288_v9  ;;  %v549_v9 = vld [vmem:[%s18330_s24 + $0x450] sm:$0xff] }
 0x38b   : > { %6791 = vmatprep.mubr.bf16.mxu0 %v17289_v10  ;;  %v550_v10 = vld [vmem:[%s18330_s24 + $0x458] sm:$0xff] }
 0x392   : > { %6792 = vmatmul.mubr.bf16.gmra.mrb[152].mxu0 %v17291_v11  ;;  %v19185_v11 = vpack.c.bf16 %v550_v10, %v549_v9  ;;  %v17349_v9 = vld [vmem:[%s24286_s1 + $0x13fc] ss:$44 sps:$4 sm:$0xff]   ;;  %v17409_v10 = vld [vmem:[%s24286_s1 + $0x28c] ss:$44 sps:$4 sm:$0xff]  }
 0x393   : > { %6799 = vmatprep.mubr.bf16.mxu0 %v17292_v12  ;;  %v551_v12 = vld [vmem:[%s18330_s24 + $0x460] sm:$0xff] }
 0x394   : > { %15430 = vmatpush1.bf16.msra.mxu1 %v19185_v11 }
 0x395   : > { %15415 = vmatprep.subr.bf16.mxu1 %v24298_v0 }
 0x39a   : > { %6800 = vmatmul.mubr.bf16.gmra.mrb[156].mxu0 %v17294_v13  ;;  %v552_v13 = vld [vmem:[%s18330_s24 + $0x468] sm:$0xff] }
 0x39b   : > { %6807 = vmatprep.mubr.bf16.mxu0 %v17295_v14  ;;  %v19192_v14 = vpack.c.bf16 %v552_v13, %v551_v12  ;;  %v17411_v12 = vld [vmem:[%s24286_s1 + $0x288] ss:$44 sps:$4 sm:$0xff]   ;;  %v17351_v13 = vld [vmem:[%s24286_s1 + $0x13f8] ss:$44 sps:$4 sm:$0xff]  }
 0x39d   : > { %15431 = vmatpush1.bf16.msra.mxu1 %v19192_v14 }
 0x39e   : > { %15416 = vmatprep.subr.bf16.mxu1 %v24298_v0 }
 0x3a1   : > { %15432 = vmatpush1.bf16.msra.mxu1 %v19204_v19 }
 0x3a2   : > { %6808 = vmatmul.mubr.bf16.gmra.mrb[160].mxu0 %v17297_v15  ;;  %v17324_v15 = vld [vmem:[%s24286_s1 + $0x10e0] ss:$44 sps:$4 sm:$0xff]   ;;  %15417 = vmatprep.subr.bf16.mxu1 %v24298_v0 }
 0x3a3   : > { %6815 = vmatprep.mubr.bf16.mxu0 %v17298_v16  ;;  %v17325_v16 = vld [vmem:[%s24286_s1 + $0x113c] ss:$44 sps:$4 sm:$0xff]  }
 0x3aa   : > { %6816 = vmatmul.mubr.bf16.gmra.mrb[164].mxu0 %v17300_v20  ;;  %v555_v20 = vld [vmem:[%s18330_s24 + $0x480] sm:$0xff] }
 0x3ab   : > { %6823 = vmatprep.mubr.bf16.mxu0 %v17301_v21  ;;  %v556_v21 = vld [vmem:[%s18330_s24 + $0x488] sm:$0xff] }
 0x3b2   : > { %6824 = vmatmul.mubr.bf16.gmra.mrb[168].mxu0 %v17303_v22  ;;  %v19210_v22 = vpack.c.bf16 %v556_v21, %v555_v20  ;;  %v17355_v20 = vld [vmem:[%s24286_s1 + $0x14ac] ss:$44 sps:$4 sm:$0xff]   ;;  %v17421_v21 = vld [vmem:[%s24286_s1 + $0x33c] ss:$44 sps:$4 sm:$0xff]  }
 0x3b3   : > { %6831 = vmatprep.mubr.bf16.mxu0 %v17304_v23  ;;  %v17327_v23 = vld [vmem:[%s24286_s1 + $0x1138] ss:$44 sps:$4 sm:$0xff]  }
 0x3b4   : > { %15433 = vmatpush1.bf16.msra.mxu1 %v19210_v22 }
 0x3b5   : > { %15418 = vmatprep.subr.bf16.mxu1 %v24298_v0 }
 0x3ba   : > { %6832 = vmatmul.mubr.bf16.gmra.mrb[172].mxu0 %v17306_v24  ;;  %v17328_v24 = vld [vmem:[%s24286_s1 + $0x1194] ss:$44 sps:$4 sm:$0xff]  }
 0x3bb   : > { %6839 = vmatprep.mubr.bf16.mxu0 %v17307_v25  ;;  %v557_v25 = vld [vmem:[%s18330_s24 + $0x490] sm:$0xff] }
 0x3c2   : > { %6840 = vmatmul.mubr.bf16.gmra.mrb[176].mxu0 %v17309_v26  ;;  %v558_v26 = vld [vmem:[%s18330_s24 + $0x498] sm:$0xff] }
 0x3c3   : > { %6847 = vmatprep.mubr.bf16.mxu0 %v17310_v27  ;;  %v19222_v27 = vpack.c.bf16 %v558_v26, %v557_v25  ;;  %v17358_v25 = vld [vmem:[%s24286_s1 + $0x1504] ss:$44 sps:$4 sm:$0xff]   ;;  %v17427_v26 = vld [vmem:[%s24286_s1 + $0x394] ss:$44 sps:$4 sm:$0xff]  }
 0x3c5   : > { %15434 = vmatpush1.bf16.msra.mxu1 %v19222_v27 }
 0x3c6   : > { %15419 = vmatprep.subr.bf16.mxu1 %v24298_v0 }
 0x3c9   : > { %15435 = vmatpush1.bf16.msra.mxu1 %v19228_v30 }
 0x3ca   : > { %6848 = vmatmul.mubr.bf16.gmra.mrb[180].mxu0 %v17312_v31  ;;  %v17330_v31 = vld [vmem:[%s24286_s1 + $0x1190] ss:$44 sps:$4 sm:$0xff]   ;;  %15420 = vmatprep.subr.bf16.mxu1 %v24298_v0 }
 0x3cb   : > { %6855 = vmatprep.mubr.bf16.mxu0 %v17313_v32  ;;  %v17331_v32 = vld [vmem:[%s24286_s1 + $0x11ec] ss:$44 sps:$4 sm:$0xff]  }
 0x3cd   : > { %15436 = vmatpush1.bf16.msra.mxu1 %v19240_v35 }
 0x3ce   : > { %15421 = vmatprep.subr.bf16.mxu1 %v24298_v0 }
 0x3d1   : > { %15437 = vmatpush1.bf16.msra.mxu1 %v19246_v38 }
 0x3d2   : > { %6856 = vmatmul.mubr.bf16.gmra.mrb[184].mxu0 %v17315_v42  ;;  %15422 = vmatprep.subr.bf16.mxu1 %v24298_v0  ;;  %v565_v42 = vld [vmem:[%s18330_s24 + $0x4d0] sm:$0xff] }
 0x3d3   : > { %6863 = vmatprep.mubr.bf16.mxu0 %v17316_v43  ;;  %v566_v43 = vld [vmem:[%s18330_s24 + $0x4d8] sm:$0xff] }
 0x3d4   : > { %v19258_v44 = vpack.c.bf16 %v566_v43, %v565_v42  ;;  %v17369_v42 = vld [vmem:[%s24286_s1 + $0x14] ss:$44 sps:$4 sm:$0xff]   ;;  %v17445_v43 = vld [vmem:[%s24286_s1 + $0x49c] ss:$44 sps:$4 sm:$0xff]  }
 0x3d6   : > { %15438 = vmatpush1.bf16.msra.mxu1 %v19258_v44 }
 0x3d7   : > { %15423 = vmatprep.subr.bf16.mxu1 %v24298_v0 }
 0x3da   : > { %6864 = vmatmul.mubr.bf16.gmra.mrb[188].mxu0 %v17318_v56  ;;  %15439 = vmatpush1.bf16.msra.mxu1 %v19264_v48  ;;  %v17387_v56 = vld [vmem:[%s24286_s1 + $0x12c] ss:$44 sps:$4 sm:$0xff]  }
 0x3db   : > { %6871 = vmatprep.mubr.bf16.mxu0 %v17319_v57  ;;  %15424 = vmatprep.subr.bf16.mxu1 %v24298_v0  ;;  %v17339_v57 = vld [vmem:[%s24286_s1 + $0x1298] ss:$44 sps:$4 sm:$0xff]  }
 0x3dc   : > { %8146 = vmatprep.mubr.bf16.mxu1 %v17387_v56  ;;  %v17457_v56 = vld [vmem:[%s24286_s1 + $0x54c] ss:$44 sps:$4 sm:$0xff]  }
 0x3de   : > { %15440 = vmatpush1.bf16.msra.mxu1 %v19276_v54 }
 0x3e1   : > { %8147 = vmatmul.mubr.bf16.vlgmr.msra.gmra.mrb[0].mxu1 %v17385_v55  ;;  %v17373_v55 = vld [vmem:[%s24286_s1 + $0xc4] ss:$44 sps:$4 sm:$0xff]  }
 0x3e2   : > { %6872 = vmatmul.mubr.bf16.gmra.mrb[192].mxu0 %v17321_v7  ;;  %8154 = vmatprep.mubr.bf16.mxu1 %v17391_v59  ;;  %v17405_v7 = vld [vmem:[%s24286_s1 + $0x230] ss:$44 sps:$4 sm:$0xff]  }
 0x3e3   : > { %6879 = vmatprep.mubr.bf16.mxu0 %v17322_v8  ;;  %v17348_v8 = vld [vmem:[%s24286_s1 + $0x13a0] ss:$44 sps:$4 sm:$0xff]   ;;  %v17376_v59 = vld [vmem:[%s24286_s1 + $0x11c] ss:$44 sps:$4 sm:$0xff]  }
 0x3e9   : > { %8155 = vmatmul.mubr.bf16.gmra.mrb[4].mxu1 %v17393_v61  ;;  %v17463_v61 = vld [vmem:[%s24286_s1 + $0x5a4] ss:$44 sps:$4 sm:$0xff]  }
 0x3ea   : > { %6880 = vmatmul.mubr.bf16.gmra.mrb[196].mxu0 %v17324_v15  ;;  %8162 = vmatprep.mubr.bf16.mxu1 %v17397_v1  ;;  %v17352_v15 = vld [vmem:[%s24286_s1 + $0x1454] ss:$44 sps:$4 sm:$0xff]  }
 0x3eb   : > { %6887 = vmatprep.mubr.bf16.mxu0 %v17325_v16  ;;  %v17415_v16 = vld [vmem:[%s24286_s1 + $0x2e4] ss:$44 sps:$4 sm:$0xff]   ;;  %v17379_v1 = vld [vmem:[%s24286_s1 + $0x174] ss:$44 sps:$4 sm:$0xff]  }
 0x3f1   : > { %8163 = vmatmul.mubr.bf16.gmra.mrb[8].mxu1 %v17399_v2  ;;  %v17469_v2 = vld [vmem:[%s24286_s1 + $0x5fc] ss:$44 sps:$4 sm:$0xff]  }
 0x3f2   : > { %6888 = vmatmul.mubr.bf16.gmra.mrb[200].mxu0 %v17327_v23  ;;  %8170 = vmatprep.mubr.bf16.mxu1 %v17403_v6  ;;  %v17423_v23 = vld [vmem:[%s24286_s1 + $0x338] ss:$44 sps:$4 sm:$0xff]  }
 0x3f3   : > { %6895 = vmatprep.mubr.bf16.mxu0 %v17328_v24  ;;  %v17357_v24 = vld [vmem:[%s24286_s1 + $0x14a8] ss:$44 sps:$4 sm:$0xff]   ;;  %v17382_v6 = vld [vmem:[%s24286_s1 + $0x1cc] ss:$44 sps:$4 sm:$0xff]  }
 0x3f9   : > { %8171 = vmatmul.mubr.bf16.gmra.mrb[12].mxu1 %v17405_v7  ;;  %v17475_v7 = vld [vmem:[%s24286_s1 + $0x654] ss:$44 sps:$4 sm:$0xff]  }
 0x3fa   : > { %6896 = vmatmul.mubr.bf16.gmra.mrb[204].mxu0 %v17330_v31  ;;  %8178 = vmatprep.mubr.bf16.mxu1 %v17409_v10  ;;  %v17361_v31 = vld [vmem:[%s24286_s1 + $0x155c] ss:$44 sps:$4 sm:$0xff]   ;;  %v17388_v10 = vld [vmem:[%s24286_s1 + $0x224] ss:$44 sps:$4 sm:$0xff]  }
 0x3fb   : > { %6903 = vmatprep.mubr.bf16.mxu0 %v17331_v32  ;;  %v17433_v32 = vld [vmem:[%s24286_s1 + $0x3ec] ss:$44 sps:$4 sm:$0xff]  }
 0x401   : > { %8179 = vmatmul.mubr.bf16.gmra.mrb[16].mxu1 %v17411_v12  ;;  %v17481_v12 = vld [vmem:[%s24286_s1 + $0x6ac] ss:$44 sps:$4 sm:$0xff]  }
 0x402   : > { %6904 = vmatmul.mubr.bf16.gmra.mrb[208].mxu0 %v17333_v40  ;;  %8186 = vmatprep.mubr.bf16.mxu1 %v17415_v16  ;;  %v17441_v40 = vld [vmem:[%s24286_s1 + $0x440] ss:$44 sps:$4 sm:$0xff]   ;;  %v17394_v16 = vld [vmem:[%s24286_s1 + $0x27c] ss:$44 sps:$4 sm:$0xff]  }
 0x403   : > { %6911 = vmatprep.mubr.bf16.mxu0 %v17334_v41  ;;  %v17366_v41 = vld [vmem:[%s24286_s1 + $0x15b0] ss:$44 sps:$4 sm:$0xff]  }
 0x409   : > { %8187 = vmatmul.mubr.bf16.gmra.mrb[20].mxu1 %v17417_v17  ;;  %v17487_v17 = vld [vmem:[%s24286_s1 + $0x704] ss:$44 sps:$4 sm:$0xff]  }
 0x40a   : > { %6912 = vmatmul.mubr.bf16.gmra.mrb[212].mxu0 %v17336_v49  ;;  %8194 = vmatprep.mubr.bf16.mxu1 %v17421_v21  ;;  %v17370_v49 = vld [vmem:[%s24286_s1 + $0x6c] ss:$44 sps:$4 sm:$0xff]   ;;  %v17400_v21 = vld [vmem:[%s24286_s1 + $0x2d4] ss:$44 sps:$4 sm:$0xff]  }
 0x40b   : > { %6919 = vmatprep.mubr.bf16.mxu0 %v17337_v50  ;;  %v17451_v50 = vld [vmem:[%s24286_s1 + $0x4f4] ss:$44 sps:$4 sm:$0xff]  }
 0x411   : > { %8195 = vmatmul.mubr.bf16.gmra.mrb[24].mxu1 %v17423_v23  ;;  %v17493_v23 = vld [vmem:[%s24286_s1 + $0x75c] ss:$44 sps:$4 sm:$0xff]  }
 0x412   : > { %6920 = vmatmul.mubr.bf16.gmra.mrb[216].mxu0 %v17339_v57  ;;  %8202 = vmatprep.mubr.bf16.mxu1 %v17427_v26  ;;  %v17459_v57 = vld [vmem:[%s24286_s1 + $0x548] ss:$44 sps:$4 sm:$0xff]   ;;  %v17406_v26 = vld [vmem:[%s24286_s1 + $0x32c] ss:$44 sps:$4 sm:$0xff]  }
 0x413   : > { %6927 = vmatprep.mubr.bf16.mxu0 %v17340_v58  ;;  %v17375_v58 = vld [vmem:[%s24286_s1 + $0xc0] ss:$44 sps:$4 sm:$0xff]  }
 0x419   : > { %8203 = vmatmul.mubr.bf16.gmra.mrb[28].mxu1 %v17429_v28  ;;  %v17499_v28 = vld [vmem:[%s24286_s1 + $0x7b4] ss:$44 sps:$4 sm:$0xff]  }
 0x41a   : > { %6928 = vmatmul.mubr.bf16.gmra.mrb[220].mxu0 %v17342_v62  ;;  %8210 = vmatprep.mubr.bf16.mxu1 %v17433_v32  ;;  %v17465_v62 = vld [vmem:[%s24286_s1 + $0x5a0] ss:$44 sps:$4 sm:$0xff]  }
 0x41b   : > { %6935 = vmatprep.mubr.bf16.mxu0 %v17343_v63  ;;  %v17378_v63 = vld [vmem:[%s24286_s1 + $0x118] ss:$44 sps:$4 sm:$0xff]   ;;  %v508_v32 = vld [vmem:[%s18330_s24 + $0x308] sm:$0xff] }
 0x421   : > { %8211 = vmatmul.mubr.bf16.gmra.mrb[32].mxu1 %v17435_v33 }
 0x422   : > { %6936 = vmatmul.mubr.bf16.gmra.mrb[224].mxu0 %v17345_v3  ;;  %8218 = vmatprep.mubr.bf16.mxu1 %v17439_v37  ;;  %v17471_v3 = vld [vmem:[%s24286_s1 + $0x5f8] ss:$44 sps:$4 sm:$0xff]  }
 0x423   : > { %6943 = vmatprep.mubr.bf16.mxu0 %v17346_v5  ;;  %v17381_v5 = vld [vmem:[%s24286_s1 + $0x170] ss:$44 sps:$4 sm:$0xff]   ;;  %v17505_v37 = vld [vmem:[%s24286_s1 + $0x80c] ss:$44 sps:$4 sm:$0xff]  }
 0x429   : > { %8219 = vmatmul.mubr.bf16.gmra.mrb[36].mxu1 %v17441_v40  ;;  %v17507_v40 = vld [vmem:[%s24286_s1 + $0x808] ss:$44 sps:$4 sm:$0xff]  }
 0x42a   : > { %6944 = vmatmul.mubr.bf16.gmra.mrb[228].mxu0 %v17348_v8  ;;  %8226 = vmatprep.mubr.bf16.mxu1 %v17445_v43  ;;  %v17477_v8 = vld [vmem:[%s24286_s1 + $0x650] ss:$44 sps:$4 sm:$0xff]  }
 0x42b   : > { %6951 = vmatprep.mubr.bf16.mxu0 %v17349_v9  ;;  %v17384_v9 = vld [vmem:[%s24286_s1 + $0x1c8] ss:$44 sps:$4 sm:$0xff]   ;;  %v17511_v43 = vld [vmem:[%s24286_s1 + $0x864] ss:$44 sps:$4 sm:$0xff]  }
 0x431   : > { %8227 = vmatmul.mubr.bf16.gmra.mrb[40].mxu1 %v17447_v45  ;;  %v17513_v45 = vld [vmem:[%s24286_s1 + $0x860] ss:$44 sps:$4 sm:$0xff]  }
 0x432   : > { %6952 = vmatmul.mubr.bf16.gmra.mrb[232].mxu0 %v17351_v13  ;;  %8234 = vmatprep.mubr.bf16.mxu1 %v17451_v50  ;;  %v17483_v13 = vld [vmem:[%s24286_s1 + $0x6a8] ss:$44 sps:$4 sm:$0xff]  }
 0x433   : > { %6959 = vmatprep.mubr.bf16.mxu0 %v17352_v15  ;;  %v17390_v15 = vld [vmem:[%s24286_s1 + $0x220] ss:$44 sps:$4 sm:$0xff]   ;;  %v17517_v50 = vld [vmem:[%s24286_s1 + $0x8bc] ss:$44 sps:$4 sm:$0xff]  }
 0x439   : > { %8235 = vmatmul.mubr.bf16.gmra.mrb[44].mxu1 %v17453_v51  ;;  %v17519_v51 = vld [vmem:[%s24286_s1 + $0x8b8] ss:$44 sps:$4 sm:$0xff]  }
 0x43a   : > { %6960 = vmatmul.mubr.bf16.gmra.mrb[236].mxu0 %v17354_v18  ;;  %8242 = vmatprep.mubr.bf16.mxu1 %v17457_v56  ;;  %v17489_v18 = vld [vmem:[%s24286_s1 + $0x700] ss:$44 sps:$4 sm:$0xff]  }
 0x43b   : > { %6967 = vmatprep.mubr.bf16.mxu0 %v17355_v20  ;;  %v17396_v20 = vld [vmem:[%s24286_s1 + $0x278] ss:$44 sps:$4 sm:$0xff]   ;;  %v17523_v56 = vld [vmem:[%s24286_s1 + $0x914] ss:$44 sps:$4 sm:$0xff]  }
 0x441   : > { %8243 = vmatmul.mubr.bf16.gmra.mrb[48].mxu1 %v17459_v57  ;;  %v17525_v57 = vld [vmem:[%s24286_s1 + $0x910] ss:$44 sps:$4 sm:$0xff]  }
 0x442   : > { %6968 = vmatmul.mubr.bf16.gmra.mrb[240].mxu0 %v17357_v24  ;;  %8250 = vmatprep.mubr.bf16.mxu1 %v17463_v61  ;;  %v17495_v24 = vld [vmem:[%s24286_s1 + $0x758] ss:$44 sps:$4 sm:$0xff]  }
 0x443   : > { %6975 = vmatprep.mubr.bf16.mxu0 %v17358_v25  ;;  %v17402_v25 = vld [vmem:[%s24286_s1 + $0x2d0] ss:$44 sps:$4 sm:$0xff]  }
 0x449   : > { %8251 = vmatmul.mubr.bf16.gmra.mrb[52].mxu1 %v17465_v62  ;;  %v17432_v62 = vld [vmem:[%s24286_s1 + $0x488] ss:$44 sps:$4 sm:$0xff]  }
 0x44a   : > { %6976 = vmatmul.mubr.bf16.gmra.mrb[244].mxu0 %v17360_v29  ;;  %8258 = vmatprep.mubr.bf16.mxu1 %v17469_v2  ;;  %v17501_v29 = vld [vmem:[%s24286_s1 + $0x7b0] ss:$44 sps:$4 sm:$0xff]   ;;  %v17531_v2 = vld [vmem:[%s24286_s1 + $0x968] ss:$44 sps:$4 sm:$0xff]  }
 0x44b   : > { %6983 = vmatprep.mubr.bf16.mxu0 %v17361_v31  ;;  %v507_v31 = vld [vmem:[%s18330_s24 + $0x300] sm:$0xff] }
 0x44c   : > { %v621_v33 = vpack.c.bf16 %v508_v32, %v507_v31  ;;  %v17559_v31 = vld [vmem:[%s24286_s1 + $0xb24] ss:$44 sps:$4 sm:$0xff]   ;;  %v17561_v32 = vld [vmem:[%s24286_s1 + $0xb20] ss:$44 sps:$4 sm:$0xff]  }
 0x451   : > { %8259 = vmatmul.mubr.bf16.gmra.mrb[56].mxu1 %v17471_v3  ;;  %v17438_v3 = vld [vmem:[%s24286_s1 + $0x4e0] ss:$44 sps:$4 sm:$0xff]  }
 0x452   : > { %6984 = vmatmul.mubr.bf16.gmra.mrb[248].mxu0 %v17363_v34  ;;  %8266 = vmatprep.mubr.bf16.mxu1 %v17475_v7  ;;  %v17408_v34 = vld [vmem:[%s24286_s1 + $0x328] ss:$44 sps:$4 sm:$0xff]   ;;  %v17537_v7 = vld [vmem:[%s24286_s1 + $0x9c0] ss:$44 sps:$4 sm:$0xff]  }
 0x453   : > { %6991 = vmatprep.mubr.bf16.mxu0 %v17364_v36  ;;  %v17412_v36 = vld [vmem:[%s24286_s1 + $0x384] ss:$44 sps:$4 sm:$0xff]  }
 0x459   : > { %8267 = vmatmul.mubr.bf16.gmra.mrb[60].mxu1 %v17477_v8  ;;  %v17444_v8 = vld [vmem:[%s24286_s1 + $0x538] ss:$44 sps:$4 sm:$0xff]  }
 0x45a   : > { %6992 = vmatmul.mubr.bf16.gmra.mrb[252].mxu0 %v17366_v41  ;;  %8274 = vmatprep.mubr.bf16.mxu1 %v17481_v12  ;;  %v17414_v41 = vld [vmem:[%s24286_s1 + $0x380] ss:$44 sps:$4 sm:$0xff]   ;;  %v17543_v12 = vld [vmem:[%s24286_s1 + $0xa18] ss:$44 sps:$4 sm:$0xff]  }
 0x45b   : > { %7032 = vmatprep.mubr.bf16.mxu0 %v17369_v42  ;;  %v17418_v42 = vld [vmem:[%s24286_s1 + $0x3dc] ss:$44 sps:$4 sm:$0xff]  }
 0x461   : > { %8275 = vmatmul.mubr.bf16.gmra.mrb[64].mxu1 %v17483_v13  ;;  %v17450_v13 = vld [vmem:[%s24286_s1 + $0x590] ss:$44 sps:$4 sm:$0xff]  }
 0x462   : > { %7033 = vmatmul.mubr.bf16.vlgmr.msra.gmra.mrb[0].mxu0 %v17367_v47  ;;  %8282 = vmatprep.mubr.bf16.mxu1 %v17487_v17  ;;  %v17420_v47 = vld [vmem:[%s24286_s1 + $0x3d8] ss:$44 sps:$4 sm:$0xff]   ;;  %v17549_v17 = vld [vmem:[%s24286_s1 + $0xa70] ss:$44 sps:$4 sm:$0xff]  }
 0x463   : > { %7040 = vmatprep.mubr.bf16.mxu0 %v17370_v49  ;;  %7546 = vmatpush1.bf16.msra.mxu0 %v621_v33  ;;  %v17424_v49 = vld [vmem:[%s24286_s1 + $0x434] ss:$44 sps:$4 sm:$0xff]   ;;  %v17468_v33 = vld [vmem:[%s24286_s1 + $0x698] ss:$44 sps:$4 sm:$0xff]  }
 0x464   : > { %7547 = vmatprep.subr.bf16.mxu0 %v24298_v0 }
 0x469   : > { %8283 = vmatmul.mubr.bf16.gmra.mrb[68].mxu1 %v17489_v18  ;;  %v511_v18 = vld [vmem:[%s18330_s24 + $0x320] sm:$0xff] }
 0x46a   : > { %7041 = vmatmul.mubr.bf16.gmra.mrb[4].mxu0 %v17372_v52  ;;  %8290 = vmatprep.mubr.bf16.mxu1 %v17493_v23  ;;  %v17426_v52 = vld [vmem:[%s24286_s1 + $0x430] ss:$44 sps:$4 sm:$0xff]   ;;  %v17456_v23 = vld [vmem:[%s24286_s1 + $0x5e8] ss:$44 sps:$4 sm:$0xff]  }
 0x46b   : > { %7048 = vmatprep.mubr.bf16.mxu0 %v17373_v55  ;;  %v17430_v55 = vld [vmem:[%s24286_s1 + $0x48c] ss:$44 sps:$4 sm:$0xff]  }
 0x471   : > { %8291 = vmatmul.mubr.bf16.gmra.mrb[72].mxu1 %v17495_v24  ;;  %v17460_v24 = vld [vmem:[%s24286_s1 + $0x644] ss:$44 sps:$4 sm:$0xff]  }
 0x472   : > { %7049 = vmatmul.mubr.bf16.gmra.mrb[8].mxu0 %v17375_v58  ;;  %8298 = vmatprep.mubr.bf16.mxu1 %v17499_v28  ;;  %v509_v58 = vld [vmem:[%s18330_s24 + $0x310] sm:$0xff]  ;;  %v17462_v28 = vld [vmem:[%s24286_s1 + $0x640] ss:$44 sps:$4 sm:$0xff]  }
 0x473   : > { %7056 = vmatprep.mubr.bf16.mxu0 %v17376_v59  ;;  %v510_v59 = vld [vmem:[%s18330_s24 + $0x318] sm:$0xff] }
 0x474   : > { %v622_v61 = vpack.c.bf16 %v510_v59, %v509_v58  ;;  %v17583_v58 = vld [vmem:[%s24286_s1 + $0xc84] ss:$44 sps:$4 sm:$0xff]   ;;  %v17585_v59 = vld [vmem:[%s24286_s1 + $0xc80] ss:$44 sps:$4 sm:$0xff]  }
 0x476   : > { %7548 = vmatpush1.bf16.msra.mxu0 %v622_v61  ;;  %v17492_v61 = vld [vmem:[%s24286_s1 + $0x7f8] ss:$44 sps:$4 sm:$0xff]  }
 0x477   : > { %7549 = vmatprep.subr.bf16.mxu0 %v24298_v0 }
 0x479   : > { %8299 = vmatmul.mubr.bf16.gmra.mrb[76].mxu1 %v17501_v29  ;;  %v17466_v29 = vld [vmem:[%s24286_s1 + $0x69c] ss:$44 sps:$4 sm:$0xff]  }
 0x47a   : > { %7057 = vmatmul.mubr.bf16.gmra.mrb[12].mxu0 %v17378_v63  ;;  %8306 = vmatprep.mubr.bf16.mxu1 %v17505_v37  ;;  %v17436_v63 = vld [vmem:[%s24286_s1 + $0x4e4] ss:$44 sps:$4 sm:$0xff]  }
 0x47b   : > { %7064 = vmatprep.mubr.bf16.mxu0 %v17379_v1  ;;  %v17529_v1 = vld [vmem:[%s24286_s1 + $0x96c] ss:$44 sps:$4 sm:$0xff]  }
 0x47c   : > { %v17567_v37 = vld [vmem:[%s24286_s1 + $0xb78] ss:$44 sps:$4 sm:$0xff]  }
 0x481   : > { %8307 = vmatmul.mubr.bf16.gmra.mrb[80].mxu1 %v17507_v40  ;;  %v17474_v40 = vld [vmem:[%s24286_s1 + $0x6f0] ss:$44 sps:$4 sm:$0xff]  }
 0x482   : > { %7065 = vmatmul.mubr.bf16.gmra.mrb[16].mxu0 %v17381_v5  ;;  %8314 = vmatprep.mubr.bf16.mxu1 %v17511_v43  ;;  %v17442_v5 = vld [vmem:[%s24286_s1 + $0x53c] ss:$44 sps:$4 sm:$0xff]  }
 0x483   : > { %7072 = vmatprep.mubr.bf16.mxu0 %v17382_v6  ;;  %v17535_v6 = vld [vmem:[%s24286_s1 + $0x9c4] ss:$44 sps:$4 sm:$0xff]  }
 0x484   : > { %v17573_v43 = vld [vmem:[%s24286_s1 + $0xbd0] ss:$44 sps:$4 sm:$0xff]  }
 0x489   : > { %8315 = vmatmul.mubr.bf16.gmra.mrb[84].mxu1 %v17513_v45  ;;  %v513_v45 = vld [vmem:[%s18330_s24 + $0x330] sm:$0xff] }
 0x48a   : > { %7073 = vmatmul.mubr.bf16.gmra.mrb[20].mxu0 %v17384_v9  ;;  %8322 = vmatprep.mubr.bf16.mxu1 %v17517_v50  ;;  %v17448_v9 = vld [vmem:[%s24286_s1 + $0x594] ss:$44 sps:$4 sm:$0xff]  }
 0x48b   : > { %7080 = vmatprep.mubr.bf16.mxu0 %v17388_v10  ;;  %v17541_v10 = vld [vmem:[%s24286_s1 + $0xa1c] ss:$44 sps:$4 sm:$0xff]  }
 0x48c   : > { %v17480_v50 = vld [vmem:[%s24286_s1 + $0x748] ss:$44 sps:$4 sm:$0xff]  }
 0x491   : > { %8323 = vmatmul.mubr.bf16.gmra.mrb[88].mxu1 %v17519_v51  ;;  %v17484_v51 = vld [vmem:[%s24286_s1 + $0x7a4] ss:$44 sps:$4 sm:$0xff]  }
 0x492   : > { %7081 = vmatmul.mubr.bf16.gmra.mrb[24].mxu0 %v17390_v15  ;;  %8330 = vmatprep.mubr.bf16.mxu1 %v17523_v56  ;;  %v17454_v15 = vld [vmem:[%s24286_s1 + $0x5ec] ss:$44 sps:$4 sm:$0xff]  }
 0x493   : > { %7088 = vmatprep.mubr.bf16.mxu0 %v17394_v16  ;;  %v17547_v16 = vld [vmem:[%s24286_s1 + $0xa74] ss:$44 sps:$4 sm:$0xff]  }
 0x494   : > { %v17486_v56 = vld [vmem:[%s24286_s1 + $0x7a0] ss:$44 sps:$4 sm:$0xff]  }
 0x499   : > { %8331 = vmatmul.mubr.bf16.gmra.mrb[92].mxu1 %v17525_v57  ;;  %v17490_v57 = vld [vmem:[%s24286_s1 + $0x7fc] ss:$44 sps:$4 sm:$0xff]  }
 0x49a   : > { %7089 = vmatmul.mubr.bf16.gmra.mrb[28].mxu0 %v17396_v20  ;;  %8338 = vmatprep.mubr.bf16.mxu1 %v17529_v1  ;;  %v512_v20 = vld [vmem:[%s18330_s24 + $0x328] sm:$0xff]  ;;  %v17591_v1 = vld [vmem:[%s24286_s1 + $0xcd8] ss:$44 sps:$4 sm:$0xff]  }
 0x49b   : > { %7096 = vmatprep.mubr.bf16.mxu0 %v17400_v21  ;;  %v623_v21 = vpack.c.bf16 %v512_v20, %v511_v18  ;;  %v17607_v18 = vld [vmem:[%s24286_s1 + $0xde4] ss:$44 sps:$4 sm:$0xff]   ;;  %v17609_v20 = vld [vmem:[%s24286_s1 + $0xde0] ss:$44 sps:$4 sm:$0xff]  }
 0x49d   : > { %7550 = vmatpush1.bf16.msra.mxu0 %v623_v21  ;;  %v17516_v21 = vld [vmem:[%s24286_s1 + $0x958] ss:$44 sps:$4 sm:$0xff]  }
 0x49e   : > { %7551 = vmatprep.subr.bf16.mxu0 %v24298_v0 }
 0x4a1   : > { %8339 = vmatmul.mubr.bf16.gmra.mrb[96].mxu1 %v17531_v2  ;;  %v17498_v2 = vld [vmem:[%s24286_s1 + $0x850] ss:$44 sps:$4 sm:$0xff]  }
 0x4a2   : > { %7097 = vmatmul.mubr.bf16.gmra.mrb[32].mxu0 %v17402_v25  ;;  %8346 = vmatprep.mubr.bf16.mxu1 %v17535_v6  ;;  %v17553_v25 = vld [vmem:[%s24286_s1 + $0xacc] ss:$44 sps:$4 sm:$0xff]   ;;  %v17597_v6 = vld [vmem:[%s24286_s1 + $0xd30] ss:$44 sps:$4 sm:$0xff]  }
 0x4a3   : > { %7104 = vmatprep.mubr.bf16.mxu0 %v17406_v26  ;;  %v17555_v26 = vld [vmem:[%s24286_s1 + $0xac8] ss:$44 sps:$4 sm:$0xff]  }
 0x4a9   : > { %8347 = vmatmul.mubr.bf16.gmra.mrb[100].mxu1 %v17537_v7  ;;  %v515_v7 = vld [vmem:[%s18330_s24 + $0x340] sm:$0xff] }
 0x4aa   : > { %7105 = vmatmul.mubr.bf16.gmra.mrb[36].mxu0 %v17408_v34  ;;  %8354 = vmatprep.mubr.bf16.mxu1 %v17541_v10  ;;  %v17472_v34 = vld [vmem:[%s24286_s1 + $0x6f4] ss:$44 sps:$4 sm:$0xff]  }
 0x4ab   : > { %7112 = vmatprep.mubr.bf16.mxu0 %v17412_v36  ;;  %v17565_v36 = vld [vmem:[%s24286_s1 + $0xb7c] ss:$44 sps:$4 sm:$0xff]  }
 0x4ac   : > { %v17504_v10 = vld [vmem:[%s24286_s1 + $0x8a8] ss:$44 sps:$4 sm:$0xff]  }
 0x4b1   : > { %8355 = vmatmul.mubr.bf16.gmra.mrb[104].mxu1 %v17543_v12  ;;  %v17508_v12 = vld [vmem:[%s24286_s1 + $0x904] ss:$44 sps:$4 sm:$0xff]  }
 0x4b2   : > { %7113 = vmatmul.mubr.bf16.gmra.mrb[40].mxu0 %v17414_v41  ;;  %8362 = vmatprep.mubr.bf16.mxu1 %v17547_v16  ;;  %v17478_v41 = vld [vmem:[%s24286_s1 + $0x74c] ss:$44 sps:$4 sm:$0xff]  }
 0x4b3   : > { %7120 = vmatprep.mubr.bf16.mxu0 %v17418_v42  ;;  %v17571_v42 = vld [vmem:[%s24286_s1 + $0xbd4] ss:$44 sps:$4 sm:$0xff]  }
 0x4b4   : > { %v17510_v16 = vld [vmem:[%s24286_s1 + $0x900] ss:$44 sps:$4 sm:$0xff]  }
 0x4b9   : > { %8363 = vmatmul.mubr.bf16.gmra.mrb[108].mxu1 %v17549_v17  ;;  %v17514_v17 = vld [vmem:[%s24286_s1 + $0x95c] ss:$44 sps:$4 sm:$0xff]  }
 0x4ba   : > { %7121 = vmatmul.mubr.bf16.gmra.mrb[44].mxu0 %v17420_v47  ;;  %8370 = vmatprep.mubr.bf16.mxu1 %v17553_v25  ;;  %v514_v47 = vld [vmem:[%s18330_s24 + $0x338] sm:$0xff] }
 0x4bb   : > { %7128 = vmatprep.mubr.bf16.mxu0 %v17424_v49  ;;  %v624_v49 = vpack.c.bf16 %v514_v47, %v513_v45  ;;  %v17615_v25 = vld [vmem:[%s24286_s1 + $0xe38] ss:$44 sps:$4 sm:$0xff]   ;;  %v17633_v47 = vld [vmem:[%s24286_s1 + $0xf40] ss:$44 sps:$4 sm:$0xff]  }
 0x4bc   : > { %v17631_v45 = vld [vmem:[%s24286_s1 + $0xf44] ss:$44 sps:$4 sm:$0xff]  }
 0x4bd   : > { %7552 = vmatpush1.bf16.msra.mxu0 %v624_v49  ;;  %v17540_v49 = vld [vmem:[%s24286_s1 + $0xab8] ss:$44 sps:$4 sm:$0xff]  }
 0x4be   : > { %7553 = vmatprep.subr.bf16.mxu0 %v24298_v0 }
 0x4c1   : > { %8371 = vmatmul.mubr.bf16.gmra.mrb[112].mxu1 %v17555_v26  ;;  %v17522_v26 = vld [vmem:[%s24286_s1 + $0x9b0] ss:$44 sps:$4 sm:$0xff]  }
 0x4c2   : > { %7129 = vmatmul.mubr.bf16.gmra.mrb[48].mxu0 %v17426_v52  ;;  %8378 = vmatprep.mubr.bf16.mxu1 %v17559_v31  ;;  %v17577_v52 = vld [vmem:[%s24286_s1 + $0xc2c] ss:$44 sps:$4 sm:$0xff]   ;;  %v17621_v31 = vld [vmem:[%s24286_s1 + $0xe90] ss:$44 sps:$4 sm:$0xff]  }
 0x4c3   : > { %7136 = vmatprep.mubr.bf16.mxu0 %v17430_v55  ;;  %v17579_v55 = vld [vmem:[%s24286_s1 + $0xc28] ss:$44 sps:$4 sm:$0xff]  }
 0x4c9   : > { %8379 = vmatmul.mubr.bf16.gmra.mrb[116].mxu1 %v17561_v32  ;;  %v517_v32 = vld [vmem:[%s18330_s24 + $0x350] sm:$0xff] }
 0x4ca   : > { %7137 = vmatmul.mubr.bf16.gmra.mrb[52].mxu0 %v17432_v62  ;;  %8386 = vmatprep.mubr.bf16.mxu1 %v17565_v36  ;;  %v17496_v62 = vld [vmem:[%s24286_s1 + $0x854] ss:$44 sps:$4 sm:$0xff]  }
 0x4cb   : > { %7144 = vmatprep.mubr.bf16.mxu0 %v17436_v63  ;;  %v17589_v63 = vld [vmem:[%s24286_s1 + $0xcdc] ss:$44 sps:$4 sm:$0xff]  }
 0x4cc   : > { %v17528_v36 = vld [vmem:[%s24286_s1 + $0xa08] ss:$44 sps:$4 sm:$0xff]  }
 0x4d1   : > { %8387 = vmatmul.mubr.bf16.gmra.mrb[120].mxu1 %v17567_v37  ;;  %v17532_v37 = vld [vmem:[%s24286_s1 + $0xa64] ss:$44 sps:$4 sm:$0xff]  }
 0x4d2   : > { %7145 = vmatmul.mubr.bf16.gmra.mrb[56].mxu0 %v17438_v3  ;;  %8394 = vmatprep.mubr.bf16.mxu1 %v17571_v42  ;;  %v17502_v3 = vld [vmem:[%s24286_s1 + $0x8ac] ss:$44 sps:$4 sm:$0xff]  }
 0x4d3   : > { %7152 = vmatprep.mubr.bf16.mxu0 %v17442_v5  ;;  %v17595_v5 = vld [vmem:[%s24286_s1 + $0xd34] ss:$44 sps:$4 sm:$0xff]  }
 0x4d4   : > { %v17534_v42 = vld [vmem:[%s24286_s1 + $0xa60] ss:$44 sps:$4 sm:$0xff]  }
 0x4d9   : > { %8395 = vmatmul.mubr.bf16.gmra.mrb[124].mxu1 %v17573_v43  ;;  %v17538_v43 = vld [vmem:[%s24286_s1 + $0xabc] ss:$44 sps:$4 sm:$0xff]  }
 0x4da   : > { %7153 = vmatmul.mubr.bf16.gmra.mrb[60].mxu0 %v17444_v8  ;;  %8402 = vmatprep.mubr.bf16.mxu1 %v17577_v52  ;;  %v516_v8 = vld [vmem:[%s18330_s24 + $0x348] sm:$0xff]  ;;  %v17639_v52 = vld [vmem:[%s24286_s1 + $0xf98] ss:$44 sps:$4 sm:$0xff]  }
 0x4db   : > { %7160 = vmatprep.mubr.bf16.mxu0 %v17448_v9  ;;  %v625_v9 = vpack.c.bf16 %v516_v8, %v515_v7  ;;  %v17655_v7 = vld [vmem:[%s24286_s1 + $0x10a4] ss:$44 sps:$4 sm:$0xff]   ;;  %v17657_v8 = vld [vmem:[%s24286_s1 + $0x10a0] ss:$44 sps:$4 sm:$0xff]  }
 0x4dd   : > { %7554 = vmatpush1.bf16.msra.mxu0 %v625_v9  ;;  %v17564_v9 = vld [vmem:[%s24286_s1 + $0xc18] ss:$44 sps:$4 sm:$0xff]  }
 0x4de   : > { %7555 = vmatprep.subr.bf16.mxu0 %v24298_v0 }
 0x4e1   : > { %8403 = vmatmul.mubr.bf16.gmra.mrb[128].mxu1 %v17579_v55  ;;  %v17546_v55 = vld [vmem:[%s24286_s1 + $0xb10] ss:$44 sps:$4 sm:$0xff]  }
 0x4e2   : > { %7161 = vmatmul.mubr.bf16.gmra.mrb[64].mxu0 %v17450_v13  ;;  %8410 = vmatprep.mubr.bf16.mxu1 %v17583_v58  ;;  %v17601_v13 = vld [vmem:[%s24286_s1 + $0xd8c] ss:$44 sps:$4 sm:$0xff]   ;;  %v17645_v58 = vld [vmem:[%s24286_s1 + $0xff0] ss:$44 sps:$4 sm:$0xff]  }
 0x4e3   : > { %7168 = vmatprep.mubr.bf16.mxu0 %v17454_v15  ;;  %v17603_v15 = vld [vmem:[%s24286_s1 + $0xd88] ss:$44 sps:$4 sm:$0xff]  }
 0x4e9   : > { %8411 = vmatmul.mubr.bf16.gmra.mrb[132].mxu1 %v17585_v59  ;;  %v519_v59 = vld [vmem:[%s18330_s24 + $0x360] sm:$0xff] }
 0x4ea   : > { %7169 = vmatmul.mubr.bf16.gmra.mrb[68].mxu0 %v17456_v23  ;;  %8418 = vmatprep.mubr.bf16.mxu1 %v17589_v63  ;;  %v17520_v23 = vld [vmem:[%s24286_s1 + $0x9b4] ss:$44 sps:$4 sm:$0xff]  }
 0x4eb   : > { %7176 = vmatprep.mubr.bf16.mxu0 %v17460_v24  ;;  %v17613_v24 = vld [vmem:[%s24286_s1 + $0xe3c] ss:$44 sps:$4 sm:$0xff]  }
 0x4ec   : > { %v17552_v63 = vld [vmem:[%s24286_s1 + $0xb68] ss:$44 sps:$4 sm:$0xff]  }
 0x4f1   : > { %8419 = vmatmul.mubr.bf16.gmra.mrb[136].mxu1 %v17591_v1  ;;  %v17556_v1 = vld [vmem:[%s24286_s1 + $0xbc4] ss:$44 sps:$4 sm:$0xff]  }
 0x4f2   : > { %7177 = vmatmul.mubr.bf16.gmra.mrb[72].mxu0 %v17462_v28  ;;  %8426 = vmatprep.mubr.bf16.mxu1 %v17595_v5  ;;  %v17526_v28 = vld [vmem:[%s24286_s1 + $0xa0c] ss:$44 sps:$4 sm:$0xff]  }
 0x4f3   : > { %7184 = vmatprep.mubr.bf16.mxu0 %v17466_v29  ;;  %v17619_v29 = vld [vmem:[%s24286_s1 + $0xe94] ss:$44 sps:$4 sm:$0xff]  }
 0x4f4   : > { %v17558_v5 = vld [vmem:[%s24286_s1 + $0xbc0] ss:$44 sps:$4 sm:$0xff]  }
 0x4f9   : > { %8427 = vmatmul.mubr.bf16.gmra.mrb[140].mxu1 %v17597_v6  ;;  %v17562_v6 = vld [vmem:[%s24286_s1 + $0xc1c] ss:$44 sps:$4 sm:$0xff]  }
 0x4fa   : > { %7185 = vmatmul.mubr.bf16.gmra.mrb[76].mxu0 %v17468_v33  ;;  %8434 = vmatprep.mubr.bf16.mxu1 %v17601_v13  ;;  %v518_v33 = vld [vmem:[%s18330_s24 + $0x358] sm:$0xff] }
 0x4fb   : > { %7192 = vmatprep.mubr.bf16.mxu0 %v17472_v34  ;;  %v626_v34 = vpack.c.bf16 %v518_v33, %v517_v32  ;;  %v17663_v13 = vld [vmem:[%s24286_s1 + $0x10f8] ss:$44 sps:$4 sm:$0xff]   ;;  %v17681_v33 = vld [vmem:[%s24286_s1 + $0x1200] ss:$44 sps:$4 sm:$0xff]  }
 0x4fc   : > { %v17679_v32 = vld [vmem:[%s24286_s1 + $0x1204] ss:$44 sps:$4 sm:$0xff]  }
 0x4fd   : > { %7556 = vmatpush1.bf16.msra.mxu0 %v626_v34  ;;  %v17588_v34 = vld [vmem:[%s24286_s1 + $0xd78] ss:$44 sps:$4 sm:$0xff]  }
 0x4fe   : > { %7557 = vmatprep.subr.bf16.mxu0 %v24298_v0 }
 0x501   : > { %8435 = vmatmul.mubr.bf16.gmra.mrb[144].mxu1 %v17603_v15  ;;  %v17570_v15 = vld [vmem:[%s24286_s1 + $0xc70] ss:$44 sps:$4 sm:$0xff]  }
 0x502   : > { %7193 = vmatmul.mubr.bf16.gmra.mrb[80].mxu0 %v17474_v40  ;;  %8442 = vmatprep.mubr.bf16.mxu1 %v17607_v18  ;;  %v17625_v40 = vld [vmem:[%s24286_s1 + $0xeec] ss:$44 sps:$4 sm:$0xff]   ;;  %v17669_v18 = vld [vmem:[%s24286_s1 + $0x1150] ss:$44 sps:$4 sm:$0xff]  }
 0x503   : > { %7200 = vmatprep.mubr.bf16.mxu0 %v17478_v41  ;;  %v17627_v41 = vld [vmem:[%s24286_s1 + $0xee8] ss:$44 sps:$4 sm:$0xff]  }
 0x509   : > { %8443 = vmatmul.mubr.bf16.gmra.mrb[148].mxu1 %v17609_v20  ;;  %v521_v20 = vld [vmem:[%s18330_s24 + $0x370] sm:$0xff] }
 0x50a   : > { %7201 = vmatmul.mubr.bf16.gmra.mrb[84].mxu0 %v17480_v50  ;;  %8450 = vmatprep.mubr.bf16.mxu1 %v17613_v24  ;;  %v17544_v50 = vld [vmem:[%s24286_s1 + $0xb14] ss:$44 sps:$4 sm:$0xff]  }
 0x50b   : > { %7208 = vmatprep.mubr.bf16.mxu0 %v17484_v51  ;;  %v17637_v51 = vld [vmem:[%s24286_s1 + $0xf9c] ss:$44 sps:$4 sm:$0xff]  }
 0x50c   : > { %v17576_v24 = vld [vmem:[%s24286_s1 + $0xcc8] ss:$44 sps:$4 sm:$0xff]  }
 0x511   : > { %8451 = vmatmul.mubr.bf16.gmra.mrb[152].mxu1 %v17615_v25  ;;  %v17580_v25 = vld [vmem:[%s24286_s1 + $0xd24] ss:$44 sps:$4 sm:$0xff]  }
 0x512   : > { %7209 = vmatmul.mubr.bf16.gmra.mrb[88].mxu0 %v17486_v56  ;;  %8458 = vmatprep.mubr.bf16.mxu1 %v17619_v29  ;;  %v17550_v56 = vld [vmem:[%s24286_s1 + $0xb6c] ss:$44 sps:$4 sm:$0xff]  }
 0x513   : > { %7216 = vmatprep.mubr.bf16.mxu0 %v17490_v57  ;;  %v17643_v57 = vld [vmem:[%s24286_s1 + $0xff4] ss:$44 sps:$4 sm:$0xff]  }
 0x514   : > { %v17582_v29 = vld [vmem:[%s24286_s1 + $0xd20] ss:$44 sps:$4 sm:$0xff]  }
 0x519   : > { %8459 = vmatmul.mubr.bf16.gmra.mrb[156].mxu1 %v17621_v31  ;;  %v17586_v31 = vld [vmem:[%s24286_s1 + $0xd7c] ss:$44 sps:$4 sm:$0xff]  }
 0x51a   : > { %7217 = vmatmul.mubr.bf16.gmra.mrb[92].mxu0 %v17492_v61  ;;  %8466 = vmatprep.mubr.bf16.mxu1 %v17625_v40  ;;  %v520_v61 = vld [vmem:[%s18330_s24 + $0x368] sm:$0xff]  ;;  %v17687_v40 = vld [vmem:[%s24286_s1 + $0x1258] ss:$44 sps:$4 sm:$0xff]  }
 0x51b   : > { %7224 = vmatprep.mubr.bf16.mxu0 %v17496_v62  ;;  %v627_v62 = vpack.c.bf16 %v520_v61, %v519_v59  ;;  %v17703_v59 = vld [vmem:[%s24286_s1 + $0x1364] ss:$44 sps:$4 sm:$0xff]   ;;  %v17705_v61 = vld [vmem:[%s24286_s1 + $0x1360] ss:$44 sps:$4 sm:$0xff]  }
 0x51d   : > { %7558 = vmatpush1.bf16.msra.mxu0 %v627_v62  ;;  %v17612_v62 = vld [vmem:[%s24286_s1 + $0xed8] ss:$44 sps:$4 sm:$0xff]  }
 0x51e   : > { %7559 = vmatprep.subr.bf16.mxu0 %v24298_v0 }
 0x521   : > { %8467 = vmatmul.mubr.bf16.gmra.mrb[160].mxu1 %v17627_v41  ;;  %v17594_v41 = vld [vmem:[%s24286_s1 + $0xdd0] ss:$44 sps:$4 sm:$0xff]  }
 0x522   : > { %7225 = vmatmul.mubr.bf16.gmra.mrb[96].mxu0 %v17498_v2  ;;  %8474 = vmatprep.mubr.bf16.mxu1 %v17631_v45  ;;  %v17649_v2 = vld [vmem:[%s24286_s1 + $0x104c] ss:$44 sps:$4 sm:$0xff]   ;;  %v17693_v45 = vld [vmem:[%s24286_s1 + $0x12b0] ss:$44 sps:$4 sm:$0xff]  }
 0x523   : > { %7232 = vmatprep.mubr.bf16.mxu0 %v17502_v3  ;;  %v17651_v3 = vld [vmem:[%s24286_s1 + $0x1048] ss:$44 sps:$4 sm:$0xff]  }
 0x529   : > { %8475 = vmatmul.mubr.bf16.gmra.mrb[164].mxu1 %v17633_v47  ;;  %v523_v47 = vld [vmem:[%s18330_s24 + $0x380] sm:$0xff] }
 0x52a   : > { %7233 = vmatmul.mubr.bf16.gmra.mrb[100].mxu0 %v17504_v10  ;;  %8482 = vmatprep.mubr.bf16.mxu1 %v17637_v51  ;;  %v17568_v10 = vld [vmem:[%s24286_s1 + $0xc74] ss:$44 sps:$4 sm:$0xff]  }
 0x52b   : > { %7240 = vmatprep.mubr.bf16.mxu0 %v17508_v12  ;;  %v17661_v12 = vld [vmem:[%s24286_s1 + $0x10fc] ss:$44 sps:$4 sm:$0xff]  }
 0x52c   : > { %v17600_v51 = vld [vmem:[%s24286_s1 + $0xe28] ss:$44 sps:$4 sm:$0xff]  }
 0x531   : > { %8483 = vmatmul.mubr.bf16.gmra.mrb[168].mxu1 %v17639_v52  ;;  %v17604_v52 = vld [vmem:[%s24286_s1 + $0xe84] ss:$44 sps:$4 sm:$0xff]  }
 0x532   : > { %7241 = vmatmul.mubr.bf16.gmra.mrb[104].mxu0 %v17510_v16  ;;  %8490 = vmatprep.mubr.bf16.mxu1 %v17643_v57  ;;  %v17574_v16 = vld [vmem:[%s24286_s1 + $0xccc] ss:$44 sps:$4 sm:$0xff]  }
 0x533   : > { %7248 = vmatprep.mubr.bf16.mxu0 %v17514_v17  ;;  %v17667_v17 = vld [vmem:[%s24286_s1 + $0x1154] ss:$44 sps:$4 sm:$0xff]  }
 0x534   : > { %v17606_v57 = vld [vmem:[%s24286_s1 + $0xe80] ss:$44 sps:$4 sm:$0xff]  }
 0x539   : > { %8491 = vmatmul.mubr.bf16.gmra.mrb[172].mxu1 %v17645_v58  ;;  %v17610_v58 = vld [vmem:[%s24286_s1 + $0xedc] ss:$44 sps:$4 sm:$0xff]  }
 0x53a   : > { %7249 = vmatmul.mubr.bf16.gmra.mrb[108].mxu0 %v17516_v21  ;;  %8498 = vmatprep.mubr.bf16.mxu1 %v17649_v2  ;;  %v522_v21 = vld [vmem:[%s18330_s24 + $0x378] sm:$0xff] }
 0x53b   : > { %7256 = vmatprep.mubr.bf16.mxu0 %v17520_v23  ;;  %v628_v23 = vpack.c.bf16 %v522_v21, %v521_v20  ;;  %v17711_v2 = vld [vmem:[%s24286_s1 + $0x13b8] ss:$44 sps:$4 sm:$0xff]   ;;  %v17723_v20 = vld [vmem:[%s24286_s1 + $0x1468] ss:$44 sps:$4 sm:$0xff]  }
 0x53c   : > { %v529_v21 = vld [vmem:[%s18330_s24 + $0x3b0] sm:$0xff] }
 0x53d   : > { %7560 = vmatpush1.bf16.msra.mxu0 %v628_v23  ;;  %v530_v23 = vld [vmem:[%s18330_s24 + $0x3b8] sm:$0xff] }
 0x53e   : > { %7561 = vmatprep.subr.bf16.mxu0 %v24298_v0 }
 0x541   : > { %8499 = vmatmul.mubr.bf16.gmra.mrb[176].mxu1 %v17651_v3  ;;  %v17618_v3 = vld [vmem:[%s24286_s1 + $0xf30] ss:$44 sps:$4 sm:$0xff]  }
 0x542   : > { %7257 = vmatmul.mubr.bf16.gmra.mrb[112].mxu0 %v17522_v26  ;;  %8506 = vmatprep.mubr.bf16.mxu1 %v17655_v7  ;;  %v17673_v26 = vld [vmem:[%s24286_s1 + $0x11ac] ss:$44 sps:$4 sm:$0xff]   ;;  %v17717_v7 = vld [vmem:[%s24286_s1 + $0x1410] ss:$44 sps:$4 sm:$0xff]  }
 0x543   : > { %7264 = vmatprep.mubr.bf16.mxu0 %v17526_v28  ;;  %v17675_v28 = vld [vmem:[%s24286_s1 + $0x11a8] ss:$44 sps:$4 sm:$0xff]  }
 0x549   : > { %8507 = vmatmul.mubr.bf16.gmra.mrb[180].mxu1 %v17657_v8  ;;  %v525_v8 = vld [vmem:[%s18330_s24 + $0x390] sm:$0xff] }
 0x54a   : > { %7265 = vmatmul.mubr.bf16.gmra.mrb[116].mxu0 %v17528_v36  ;;  %8514 = vmatprep.mubr.bf16.mxu1 %v17661_v12  ;;  %v17592_v36 = vld [vmem:[%s24286_s1 + $0xdd4] ss:$44 sps:$4 sm:$0xff]  }
 0x54b   : > { %7272 = vmatprep.mubr.bf16.mxu0 %v17532_v37  ;;  %v17685_v37 = vld [vmem:[%s24286_s1 + $0x125c] ss:$44 sps:$4 sm:$0xff]  }
 0x54c   : > { %v17624_v12 = vld [vmem:[%s24286_s1 + $0xf88] ss:$44 sps:$4 sm:$0xff]  }
 0x551   : > { %8515 = vmatmul.mubr.bf16.gmra.mrb[184].mxu1 %v17663_v13  ;;  %v17628_v13 = vld [vmem:[%s24286_s1 + $0xfe4] ss:$44 sps:$4 sm:$0xff]  }
 0x552   : > { %7273 = vmatmul.mubr.bf16.gmra.mrb[120].mxu0 %v17534_v42  ;;  %8522 = vmatprep.mubr.bf16.mxu1 %v17667_v17  ;;  %v17598_v42 = vld [vmem:[%s24286_s1 + $0xe2c] ss:$44 sps:$4 sm:$0xff]  }
 0x553   : > { %7280 = vmatprep.mubr.bf16.mxu0 %v17538_v43  ;;  %v17691_v43 = vld [vmem:[%s24286_s1 + $0x12b4] ss:$44 sps:$4 sm:$0xff]  }
 0x559   : > { %8523 = vmatmul.mubr.bf16.gmra.mrb[188].mxu1 %v17669_v18  ;;  %v17721_v18 = vld [vmem:[%s24286_s1 + $0x146c] ss:$44 sps:$4 sm:$0xff]  }
 0x55a   : > { %7281 = vmatmul.mubr.bf16.gmra.mrb[124].mxu0 %v17540_v49  ;;  %8530 = vmatprep.mubr.bf16.mxu1 %v17673_v26  ;;  %v524_v49 = vld [vmem:[%s18330_s24 + $0x388] sm:$0xff] }
 0x55b   : > { %7288 = vmatprep.mubr.bf16.mxu0 %v17544_v50  ;;  %v629_v50 = vpack.c.bf16 %v524_v49, %v523_v47  ;;  %v17634_v26 = vld [vmem:[%s24286_s1 + $0x103c] ss:$44 sps:$4 sm:$0xff]  }
 0x55c   : > { %v536_v47 = vld [vmem:[%s18330_s24 + $0x3e8] sm:$0xff] }
 0x55d   : > { %7562 = vmatpush1.bf16.msra.mxu0 %v629_v50 }
 0x55e   : > { %7563 = vmatprep.subr.bf16.mxu0 %v24298_v0 }
 0x561   : > { %8531 = vmatmul.mubr.bf16.gmra.mrb[192].mxu1 %v17675_v28  ;;  %v531_v28 = vld [vmem:[%s18330_s24 + $0x3c0] sm:$0xff] }
 0x562   : > { %7289 = vmatmul.mubr.bf16.gmra.mrb[128].mxu0 %v17546_v55  ;;  %8538 = vmatprep.mubr.bf16.mxu1 %v17679_v32  ;;  %v17697_v55 = vld [vmem:[%s24286_s1 + $0x130c] ss:$44 sps:$4 sm:$0xff]   ;;  %v17727_v32 = vld [vmem:[%s24286_s1 + $0x14c4] ss:$44 sps:$4 sm:$0xff]  }
 0x563   : > { %7296 = vmatprep.mubr.bf16.mxu0 %v17550_v56  ;;  %v17699_v56 = vld [vmem:[%s24286_s1 + $0x1308] ss:$44 sps:$4 sm:$0xff]  }
 0x569   : > { %8539 = vmatmul.mubr.bf16.gmra.mrb[196].mxu1 %v17681_v33  ;;  %v17729_v33 = vld [vmem:[%s24286_s1 + $0x14c0] ss:$44 sps:$4 sm:$0xff]  }
 0x56a   : > { %7297 = vmatmul.mubr.bf16.gmra.mrb[132].mxu0 %v17552_v63  ;;  %8546 = vmatprep.mubr.bf16.mxu1 %v17685_v37  ;;  %v17616_v63 = vld [vmem:[%s24286_s1 + $0xf34] ss:$44 sps:$4 sm:$0xff]   ;;  %v20009_v37 = vpop.f32.mrb[0].mxu1 }
 0x56b   : > { %7304 = vmatprep.mubr.bf16.mxu0 %v17556_v1  ;;  %v17709_v1 = vld [vmem:[%s24286_s1 + $0x13bc] ss:$44 sps:$4 sm:$0xff]  }
 0x571   : > { %8547 = vmatmul.mubr.bf16.gmra.mrb[200].mxu1 %v17687_v40 }
 0x572   : > { %7305 = vmatmul.mubr.bf16.gmra.mrb[136].mxu0 %v17558_v5  ;;  %8554 = vmatprep.mubr.bf16.mxu1 %v17691_v43  ;;  %v17622_v5 = vld [vmem:[%s24286_s1 + $0xf8c] ss:$44 sps:$4 sm:$0xff]   ;;  %v17640_v43 = vld [vmem:[%s24286_s1 + $0x1094] ss:$44 sps:$4 sm:$0xff]  }
 0x573   : > { %7312 = vmatprep.mubr.bf16.mxu0 %v17562_v6  ;;  %v17715_v6 = vld [vmem:[%s24286_s1 + $0x1414] ss:$44 sps:$4 sm:$0xff]  }
 0x579   : > { %8555 = vmatmul.mubr.bf16.gmra.mrb[204].mxu1 %v17693_v45  ;;  %v535_v45 = vld [vmem:[%s18330_s24 + $0x3e0] sm:$0xff] }
 0x57a   : > { %7313 = vmatmul.mubr.bf16.gmra.mrb[140].mxu0 %v17564_v9  ;;  %8562 = vmatprep.mubr.bf16.mxu1 %v17697_v55  ;;  %v526_v9 = vld [vmem:[%s18330_s24 + $0x398] sm:$0xff]  ;;  %v635_v49 = vpack.c.bf16 %v536_v47, %v535_v45  ;;  %v537_v55 = vld [vmem:[%s18330_s24 + $0x3f0] sm:$0xff] }
 0x57b   : > { %7320 = vmatprep.mubr.bf16.mxu0 %v17568_v10  ;;  %v630_v10 = vpack.c.bf16 %v526_v9, %v525_v8  ;;  %v17741_v8 = vld [vmem:[%s24286_s1 + $0x1570] ss:$44 sps:$4 sm:$0xff]  }
 0x57d   : > { %7564 = vmatpush1.bf16.msra.mxu0 %v630_v10 }
 0x57e   : > { %7565 = vmatprep.subr.bf16.mxu0 %v24298_v0 }
 0x581   : > { %8563 = vmatmul.mubr.bf16.gmra.mrb[208].mxu1 %v17699_v56 }
 0x582   : > { %7321 = vmatmul.mubr.bf16.gmra.mrb[144].mxu0 %v17570_v15  ;;  %8570 = vmatprep.mubr.bf16.mxu1 %v17703_v59  ;;  %v527_v15 = vld [vmem:[%s18330_s24 + $0x3a0] sm:$0xff] }
 0x583   : > { %7328 = vmatprep.mubr.bf16.mxu0 %v17574_v16  ;;  %v528_v16 = vld [vmem:[%s18330_s24 + $0x3a8] sm:$0xff] }
 0x584   : > { %v631_v17 = vpack.c.bf16 %v528_v16, %v527_v15  ;;  %v17652_v16 = vld [vmem:[%s24286_s1 + $0x1144] ss:$44 sps:$4 sm:$0xff]  }
 0x586   : > { %7566 = vmatpush1.bf16.msra.mxu0 %v631_v17 }
 0x587   : > { %7567 = vmatprep.subr.bf16.mxu0 %v24298_v0 }
 0x589   : > { %8571 = vmatmul.mubr.bf16.gmra.mrb[212].mxu1 %v17705_v61 }
 0x58a   : > { %7329 = vmatmul.mubr.bf16.gmra.mrb[148].mxu0 %v17576_v24  ;;  %8578 = vmatprep.mubr.bf16.mxu1 %v17709_v1  ;;  %v632_v24 = vpack.c.bf16 %v530_v23, %v529_v21  ;;  %v17646_v1 = vld [vmem:[%s24286_s1 + $0x10ec] ss:$44 sps:$4 sm:$0xff]  }
 0x58b   : > { %7336 = vmatprep.mubr.bf16.mxu0 %v17580_v25  ;;  %v17630_v25 = vld [vmem:[%s24286_s1 + $0xfe0] ss:$44 sps:$4 sm:$0xff]  }
 0x58c   : > { %7568 = vmatpush1.bf16.msra.mxu0 %v632_v24  ;;  %v17745_v23 = vld [vmem:[%s24286_s1 + $0x15cc] ss:$44 sps:$4 sm:$0xff]   ;;  %v17747_v24 = vld [vmem:[%s24286_s1 + $0x15c8] ss:$44 sps:$4 sm:$0xff]  }
 0x58d   : > { %7569 = vmatprep.subr.bf16.mxu0 %v24298_v0 }
 0x591   : > { %8579 = vmatmul.mubr.bf16.gmra.mrb[216].mxu1 %v17711_v2 }
 0x592   : > { %7337 = vmatmul.mubr.bf16.gmra.mrb[152].mxu0 %v17582_v29  ;;  %8586 = vmatprep.mubr.bf16.mxu1 %v17715_v6  ;;  %v532_v29 = vld [vmem:[%s18330_s24 + $0x3c8] sm:$0xff] }
 0x593   : > { %7344 = vmatprep.mubr.bf16.mxu0 %v17586_v31  ;;  %v633_v31 = vpack.c.bf16 %v532_v29, %v531_v28  ;;  %v572_v28 = vld [vmem:[%s18330_s24 + $0x508] sm:$0x1] }
 0x595   : > { %7570 = vmatpush1.bf16.msra.mxu0 %v633_v31 }
 0x596   : > { %7571 = vmatprep.subr.bf16.mxu0 %v24298_v0 }
 0x599   : > { %8587 = vmatmul.mubr.bf16.gmra.mrb[220].mxu1 %v17717_v7  ;;  %v17739_v7 = vld [vmem:[%s24286_s1 + $0x1574] ss:$44 sps:$4 sm:$0xff]  }
 0x59a   : > { %7345 = vmatmul.mubr.bf16.gmra.mrb[156].mxu0 %v17588_v34  ;;  %8594 = vmatprep.mubr.bf16.mxu1 %v17721_v18  ;;  %v533_v34 = vld [vmem:[%s18330_s24 + $0x3d0] sm:$0xff] }
 0x59b   : > { %7352 = vmatprep.mubr.bf16.mxu0 %v17592_v36  ;;  %v534_v36 = vld [vmem:[%s18330_s24 + $0x3d8] sm:$0xff] }
 0x59c   : > { %v634_v40 = vpack.c.bf16 %v534_v36, %v533_v34  ;;  %v17654_v36 = vld [vmem:[%s24286_s1 + $0x1140] ss:$44 sps:$4 sm:$0xff]  }
 0x59e   : > { %7572 = vmatpush1.bf16.msra.mxu0 %v634_v40 }
 0x59f   : > { %7573 = vmatprep.subr.bf16.mxu0 %v24298_v0 }
 0x5a1   : > { %8595 = vmatmul.mubr.bf16.gmra.mrb[224].mxu1 %v17723_v20 }
 0x5a2   : > { %7353 = vmatmul.mubr.bf16.gmra.mrb[160].mxu0 %v17594_v41  ;;  %8602 = vmatprep.mubr.bf16.mxu1 %v17727_v32  ;;  %v8150_v41 = vpop.f32.mrb[1].mxu1 }
 0x5a3   : > { %7360 = vmatprep.mubr.bf16.mxu0 %v17598_v42  ;;  %v17636_v42 = vld [vmem:[%s24286_s1 + $0x1038] ss:$44 sps:$4 sm:$0xff]   ;;  %v20021_v50 = vpop.f32.mrb[2].mxu1  ;;  %7574 = vmatpush1.bf16.msra.mxu0 %v635_v49 }
 0x5a4   : > { %v8153_v56 = vpop.f32.mrb[3].mxu1  ;;  %7575 = vmatprep.subr.bf16.mxu0 %v24298_v0 }
 0x5a9   : > { %8603 = vmatmul.mubr.bf16.gmra.mrb[228].mxu1 %v17729_v33  ;;  %v18197_v33 = vmov 65535  }
 0x5aa   : > { %7361 = vmatmul.mubr.bf16.gmra.mrb[164].mxu0 %v17600_v51  ;;  %v17733_v51 = vld [vmem:[%s24286_s1 + $0x151c] ss:$44 sps:$4 sm:$0xff]   ;;  %v5905_v34 = vsel %vm5903_vm0, 4294967295, %v18197_v33  ;;  %v17762_v33 = vld [vmem:[%s24286_s1 + $0x1e0] ss:$44 sps:$4 sm:$0xff]  }
 0x5ab   : > { %7368 = vmatprep.mubr.bf16.mxu0 %v17604_v52  ;;  %v17735_v52 = vld [vmem:[%s24286_s1 + $0x1518] ss:$44 sps:$4 sm:$0xff]   ;;  %8610 = vmatprep.mubr.bf16.mxu1 %v17733_v51  ;;  %v5906_v41 = vsel %vm5904_vm1, %v5905_v34, 0 }
 0x5b1   : > { %8611 = vmatmul.mubr.bf16.gmra.mrb[232].mxu1 %v17735_v52  ;;  %v17751_v52 = vld [vmem:[%s24286_s1 + $0x28] ss:$44 sps:$4 sm:$0xff]  }
 0x5b2   : > { %7369 = vmatmul.mubr.bf16.gmra.mrb[168].mxu0 %v17606_v57  ;;  %v538_v57 = vld [vmem:[%s18330_s24 + $0x3f8] sm:$0xff]  ;;  %8618 = vmatprep.mubr.bf16.mxu1 %v17739_v7 }
 0x5b3   : > { %7376 = vmatprep.mubr.bf16.mxu0 %v17610_v58  ;;  %v20031_v58 = vpop.f32.mrb[4].mxu1  ;;  %v636_v59 = vpack.c.bf16 %v538_v57, %v537_v55  ;;  %v17752_v55 = vld [vmem:[%s24286_s1 + $0x80] ss:$44 sps:$4 sm:$0xff]  }
 0x5b4   : > { %v8158_v61 = vpop.f32.mrb[5].mxu1 }
 0x5b5   : > { %7576 = vmatpush1.bf16.msra.mxu0 %v636_v59  ;;  %v17660_v61 = vld [vmem:[%s24286_s1 + $0x1198] ss:$44 sps:$4 sm:$0xff]  }
 0x5b6   : > { %8090 = vmatprep.subr.bf16.mxu0 %v24298_v0 }
 0x5b9   : > { %8619 = vmatmul.mubr.bf16.gmra.mrb[236].mxu1 %v17741_v8 }
 0x5ba   : > { %7377 = vmatmul.mubr.bf16.gmra.mrb[172].mxu0 %v17612_v62  ;;  %v17642_v62 = vld [vmem:[%s24286_s1 + $0x1090] ss:$44 sps:$4 sm:$0xff]   ;;  %8626 = vmatprep.mubr.bf16.mxu1 %v17745_v23 }
 0x5bb   : > { %7384 = vmatprep.mubr.bf16.mxu0 %v17616_v63  ;;  %v20037_v63 = vpop.f32.mrb[6].mxu1 }
 0x5bc   : > { %v8161_v2 = vpop.f32.mrb[7].mxu1 }
 0x5c1   : > { %8627 = vmatmul.mubr.bf16.gmra.mrb[240].mxu1 %v17747_v24  ;;  %v17670_v24 = vld [vmem:[%s24286_s1 + $0x124c] ss:$44 sps:$4 sm:$0xff]  }
 0x5c2   : > { %7385 = vmatmul.mubr.bf16.gmra.mrb[176].mxu0 %v17618_v3  ;;  %v20042_v3 = vpop.f32.mrb[8].mxu1  ;;  %15269 = vmatprep.mubr.msk.bf16.mxu1 %vm5710_vm2, %v17751_v52 }
 0x5c3   : > { %7392 = vmatprep.mubr.bf16.mxu0 %v17622_v5  ;;  %v8166_v5 = vpop.f32.mrb[9].mxu1 }
 0x5c4   : > { %v20045_v6 = vpop.f32.mrb[10].mxu1 }
 0x5c5   : > { %v8169_v9 = vpop.f32.mrb[11].mxu1 }
 0x5c6   : > { %v20053_v10 = vpop.f32.mrb[12].mxu1  ;;  %v17756_v9 = vld [vmem:[%s24286_s1 + $0xd8] ss:$44 sps:$4 sm:$0xff]  }
 0x5ca   : > { %7393 = vmatmul.mubr.bf16.gmra.mrb[180].mxu0 %v17624_v12  ;;  %v8174_v12 = vpop.f32.mrb[13].mxu1 }
 0x5cb   : > { %7400 = vmatprep.mubr.bf16.mxu0 %v17628_v13  ;;  %v17648_v13 = vld [vmem:[%s24286_s1 + $0x10e8] ss:$44 sps:$4 sm:$0xff]   ;;  %v20058_v15 = vpop.f32.mrb[14].mxu1  ;;  %v17757_v12 = vld [vmem:[%s24286_s1 + $0x130] ss:$44 sps:$4 sm:$0xff]  }
 0x5cc   : > { %v8177_v17 = vpop.f32.mrb[15].mxu1 }
 0x5cd   : > { %v20063_v18 = vpop.f32.mrb[16].mxu1 }
 0x5ce   : > { %v8182_v20 = vpop.f32.mrb[17].mxu1 }
 0x5cf   : > { %v20065_v21 = vpop.f32.mrb[18].mxu1  ;;  %v17666_v20 = vld [vmem:[%s24286_s1 + $0x11f0] ss:$44 sps:$4 sm:$0xff]  }
 0x5d2   : > { %7401 = vmatmul.mubr.bf16.gmra.mrb[184].mxu0 %v17630_v25  ;;  %v8185_v25 = vpop.f32.mrb[19].mxu1 }
 0x5d3   : > { %7408 = vmatprep.mubr.bf16.mxu0 %v17634_v26  ;;  %v571_v26 = vld [vmem:[%s18330_s24 + $0x500] sm:$0xff]  ;;  %v20075_v29 = vpop.f32.mrb[20].mxu1  ;;  %s13827_s24 = sshll.u32 %s399_s28, 4 }
 0x5d4   : > { %v653_v31 = vpack.c.bf16 %v572_v28, %v571_v26  ;;  %v8190_v32 = vpop.f32.mrb[21].mxu1  ;;  %s401_s12 = scalar_lea.vmem [#allocation2], %s13827_s24  ;;  %s18122_s24 = scalar_lea.vmem %s18121_s26, 512 }
 0x5d5   : > { %v20080_v40 = vpop.f32.mrb[22].mxu1  ;;  %v17761_v32 = vld [vmem:[%s24286_s1 + $0x188] ss:$44 sps:$4 sm:$0xff]   ;;  %s13744_s13 = sshll.u32 %s401_s12, 4  ;;  %s24232_s13 = int_to_ptr.vmem [resolvable:$true] %s13744_s13 }
 0x5d6   : > { %v5908_v45 = vand.u32 %v5906_v41, %v653_v31  ;;  %s18116_s20 = scalar_lea.vmem %s24232_s13, 256  ;;  %p18123_p1 = scmp.lt.s32.totalorder %s24232_s13, %s18121_s26 }
 0x5d7   : > { %p18117_p12 = scmp.ne.s32.totalorder %s24232_s13, %s18116_s20  ;;  %p18124_p2 = scmp.lt.s32.totalorder %s18122_s24, %s18116_s20 }
 0x5d8   : > { %15267 = vmatprep.subr.bf16.mxu1 %v5908_v45 }
 0x5d9   : > { %15268 = vmatpush3.bf16.msra.mxu1 %v5908_v45  ;;  %v17676_v45 = vld [vmem:[%s24286_s1 + $0x12a4] ss:$44 sps:$4 sm:$0xff]   ;;  %p18118_p13 = pnand %p18117_p12, %p18303_p4  ;;  %p18125_p3 = por %p18124_p2, %p18123_p1 }
 0x5da   : > { %7409 = vmatmul.mubr.bf16.gmra.mrb[188].mxu0 %v17636_v42  ;;  %v17658_v42 = vld [vmem:[%s24286_s1 + $0x119c] ss:$44 sps:$4 sm:$0xff]   ;;  %11292 = vmatprep.subr.bf16.mxu1 %v24298_v0 }
 0x5db   : > { %7416 = vmatprep.mubr.bf16.mxu0 %v17640_v43  ;;  %v8193_v43 = vpop.f32.mrb[23].mxu1  ;;  %p18119_p0 = pneg %p18118_p13 }
 0x5dc   : > { %v20085_v47 = vpop.f32.mrb[24].mxu1  ;;  %15270 = vmatmul.mubr.msk.bf16.vlgmr.msra.gmra.mrb[244].mxu1 %vm5710_vm2, %v17752_v55 }
 0x5dd   : > { %v8198_v49 = vpop.f32.mrb[25].mxu1  ;;  %15273 = vmatprep.mubr.msk.bf16.mxu1 %vm5710_vm2, %v17756_v9  ;;  %v17682_v9 = vld [vmem:[%s24286_s1 + $0x12fc] ss:$44 sps:$4 sm:$0xff]   ;;  %p18126_p5 = pnand %p18125_p3, %p18119_p0 }
 0x5de   : > { %v20087_v51 = vpop.f32.mrb[26].mxu1 }
 0x5df   : > { %v8201_v56 = vpop.f32.mrb[27].mxu1 }
 0x5e0   : > { %v20097_v57 = vpop.f32.mrb[28].mxu1 }
 0x5e1   : > { %v8206_v59 = vpop.f32.mrb[29].mxu1 }
 0x5e2   : > { %7417 = vmatmul.mubr.bf16.gmra.mrb[192].mxu0 %v17642_v62  ;;  %v20103_v62 = vpop.f32.mrb[30].mxu1 }
 0x5e3   : > { %7424 = vmatprep.mubr.bf16.mxu0 %v17646_v1  ;;  %v17664_v1 = vld [vmem:[%s24286_s1 + $0x11f4] ss:$44 sps:$4 sm:$0xff]   ;;  %v8209_v2 = vpop.f32.mrb[31].mxu1 }
 0x5e4   : > { %v20108_v5 = vpop.f32.mrb[32].mxu1  ;;  %15274 = vmatmul.mubr.msk.bf16.gmra.mrb[248].mxu1 %vm5710_vm2, %v17757_v12  ;;  %v17678_v2 = vld [vmem:[%s24286_s1 + $0x12a0] ss:$44 sps:$4 sm:$0xff]  }
 0x5e5   : > { %v8214_v7 = vpop.f32.mrb[33].mxu1  ;;  %15277 = vmatprep.mubr.msk.bf16.mxu1 %vm5710_vm2, %v17761_v32 }
 0x5e6   : > { %v20110_v8 = vpop.f32.mrb[34].mxu1 }
 0x5ea   : > { %7425 = vmatmul.mubr.bf16.gmra.mrb[196].mxu0 %v17648_v13  ;;  %v8217_v13 = vpop.f32.mrb[35].mxu1 }
 0x5eb   : > { %7432 = vmatprep.mubr.bf16.mxu0 %v17652_v16  ;;  %v20119_v16 = vpop.f32.mrb[36].mxu1 }
 0x5ec   : > { %24306 = vst [vmem:[#allocation6_spill] sm:$0xff] %v20119_v16  ;;  %v8222_v17 = vpop.f32.mrb[37].mxu1  ;;  %15278 = vmatmul.mubr.msk.bf16.gmra.mrb[252].mxu1 %vm5710_vm2, %v17762_v33 }
 0x5ed   : > { %v20125_v23 = vpop.f32.mrb[38].mxu1 }
 0x5ee   : > { %24307 = vst [vmem:[#allocation7_spill] sm:$0xff] %v20125_v23  ;;  %v8225_v25 = vpop.f32.mrb[39].mxu1 }
 0x5ef   : > { %v20130_v26 = vpop.f32.mrb[40].mxu1  ;;  %v17770_v25 = vld [vmem:[%s24286_s1 + $0x290] ss:$44 sps:$4 sm:$0xff]  }
 0x5f0   : > { %24308 = vst [vmem:[#allocation8_spill] sm:$0xff] %v20130_v26  ;;  %v8230_v28 = vpop.f32.mrb[41].mxu1 }
 0x5f1   : > { %v20132_v31 = vpop.f32.mrb[42].mxu1 }
 0x5f2   : > { %7433 = vmatmul.mubr.bf16.gmra.mrb[200].mxu0 %v17654_v36  ;;  %24309 = vst [vmem:[#allocation9_spill] sm:$0xff] %v20132_v31  ;;  %v8233_v34 = vpop.f32.mrb[43].mxu1 }
 0x5f3   : > { %7440 = vmatprep.mubr.bf16.mxu0 %v17658_v42  ;;  %v20141_v36 = vpop.f32.mrb[44].mxu1  ;;  %v17672_v42 = vld [vmem:[%s24286_s1 + $0x1248] ss:$44 sps:$4 sm:$0xff]   ;;  %v17684_v34 = vld [vmem:[%s24286_s1 + $0x12f8] ss:$44 sps:$4 sm:$0xff]  }
 0x5f4   : > { %24310 = vst [vmem:[#allocation10_spill] sm:$0xff] %v20141_v36  ;;  %v8238_v41 = vpop.f32.mrb[45].mxu1 }
 0x5f5   : > { %v20147_v43 = vpop.f32.mrb[46].mxu1 }
 0x5f6   : > { %24311 = vst [vmem:[#allocation11_spill] sm:$0xff] %v20147_v43  ;;  %v8241_v49 = vpop.f32.mrb[47].mxu1 }
 0x5f7   : > { %v20152_v52 = vpop.f32.mrb[48].mxu1 }
 0x5f8   : > { %24312 = vst [vmem:[#allocation12_spill] sm:$0xff] %v20152_v52  ;;  %v8246_v55 = vpop.f32.mrb[49].mxu1  ;;  %v17838_v52 = vld [vmem:[%s24286_s1 + $0x85c] ss:$44 sps:$4 sm:$0xff]  }
 0x5f9   : > { %v20154_v56 = vpop.f32.mrb[50].mxu1 }
 0x5fa   : > { %7441 = vmatmul.mubr.bf16.gmra.mrb[204].mxu0 %v17660_v61  ;;  %24313 = vst [vmem:[#allocation13_spill] sm:$0xff] %v20154_v56  ;;  %v8249_v59 = vpop.f32.mrb[51].mxu1  ;;  %v1506_v56 = vld [vmem:[%s24287_s2 + $0x2a0] sm:$0xff] }
 0x5fb   : > { %7448 = vmatprep.mubr.bf16.mxu0 %v17664_v1  ;;  %v20156_v61 = vpop.f32.mrb[52].mxu1 }
 0x5fc   : > { %24314 = vst [vmem:[#allocation14_spill] sm:$0xff] %v20156_v61  ;;  %v8254_v1 = vpop.f32.mrb[53].mxu1 }
 0x5fd   : > { %v20161_v7 = vpop.f32.mrb[54].mxu1 }
 0x5fe   : > { %24315 = vst [vmem:[#allocation15_spill] sm:$0xff] %v20161_v7  ;;  %v8257_v12 = vpop.f32.mrb[55].mxu1  ;;  %v1505_v7 = vld [vmem:[%s24287_s2 + $0x298] sm:$0xff] }
 0x5ff   : > { %v20166_v13 = vpop.f32.mrb[56].mxu1  ;;  %v17690_v12 = vld [vmem:[%s24286_s1 + $0x1350] ss:$44 sps:$4 sm:$0xff]  }
 0x600   : > { %24316 = vst [vmem:[#allocation16_spill] sm:$0xff] %v20166_v13  ;;  %v8262_v17 = vpop.f32.mrb[57].mxu1 }
 0x602   : > { %7449 = vmatmul.mubr.bf16.gmra.mrb[208].mxu0 %v17666_v20  ;;  %v20168_v20 = vpop.f32.mrb[58].mxu1 }
 0x603   : > { %7456 = vmatprep.mubr.bf16.mxu0 %v17670_v24  ;;  %24317 = vst [vmem:[#allocation17_spill] sm:$0xff] %v20168_v20  ;;  %v17769_v24 = vld [vmem:[%s24286_s1 + $0x238] ss:$44 sps:$4 sm:$0xff]   ;;  %v8265_v28 = vpop.f32.mrb[59].mxu1  ;;  %v1503_v20 = vld [vmem:[%s24287_s2 + $0x288] sm:$0xff] }
 0x604   : > { %15281 = vmatprep.mubr.msk.bf16.mxu1 %vm5710_vm2, %v17769_v24  ;;  %v20177_v32 = vpop.f32.mrb[60].mxu1  ;;  %v17694_v24 = vld [vmem:[%s24286_s1 + $0x13ac] ss:$44 sps:$4 sm:$0xff]  }
 0x605   : > { %24318 = vst [vmem:[#allocation18_spill] sm:$0xff] %v20177_v32  ;;  %15282 = vmatmul.mubr.msk.bf16.gmra.mrb[0].mxu1 %vm5710_vm2, %v17770_v25  ;;  %v8270_v33 = vpop.f32.mrb[61].mxu1 }
 0x606   : > { %v20183_v41 = vpop.f32.mrb[62].mxu1 }
 0x607   : > { %24319 = vst [vmem:[#allocation19_spill] sm:$0xff] %v20183_v41 }
 0x60a   : > { %7457 = vmatmul.mubr.bf16.gmra.mrb[212].mxu0 %v17672_v42  ;;  %v17688_v42 = vld [vmem:[%s24286_s1 + $0x1354] ss:$44 sps:$4 sm:$0xff]  }
 0x60b   : > { %7464 = vmatprep.mubr.bf16.mxu0 %v17676_v45  ;;  %v8273_v45 = vpop.f32.mrb[63].mxu1 }
 0x60c   : > { %v20188_v49 = vpop.f32.mrb[64].mxu1  ;;  %v17778_v45 = vld [vmem:[%s24286_s1 + $0x340] ss:$44 sps:$4 sm:$0xff]  }
 0x60d   : > { %24320 = vst [vmem:[#allocation20_spill] sm:$0xff] %v20188_v49  ;;  %v8278_v55 = vpop.f32.mrb[65].mxu1 }
 0x60e   : > { %v20190_v59 = vpop.f32.mrb[66].mxu1 }
 0x60f   : > { %24321 = vst [vmem:[#allocation21_spill] sm:$0xff] %v20190_v59  ;;  %v8281_v1 = vpop.f32.mrb[67].mxu1 }
 0x612   : > { %7465 = vmatmul.mubr.bf16.gmra.mrb[216].mxu0 %v17678_v2  ;;  %v20192_v2 = vpop.f32.mrb[68].mxu1 }
 0x613   : > { %7472 = vmatprep.mubr.bf16.mxu0 %v17682_v9  ;;  %24322 = vst [vmem:[#allocation22_spill] sm:$0xff] %v20192_v2  ;;  %v8286_v9 = vpop.f32.mrb[69].mxu1 }
 0x614   : > { %v20197_v17 = vpop.f32.mrb[70].mxu1 }
 0x615   : > { %24323 = vst [vmem:[#allocation23_spill] sm:$0xff] %v20197_v17  ;;  %v8289_v25 = vpop.f32.mrb[71].mxu1 }
 0x616   : > { %v20202_v28 = vpop.f32.mrb[72].mxu1 }
 0x617   : > { %24324 = vst [vmem:[#allocation24_spill] sm:$0xff] %v20202_v28  ;;  %v8294_v33 = vpop.f32.mrb[73].mxu1  ;;  %v17830_v28 = vld [vmem:[%s24286_s1 + $0x7ac] ss:$44 sps:$4 sm:$0xff]  }
 0x618   : > { %v17700_v33 = vld [vmem:[%s24286_s1 + $0x1404] ss:$44 sps:$4 sm:$0xff]  }
 0x61a   : > { %7473 = vmatmul.mubr.bf16.gmra.mrb[220].mxu0 %v17684_v34  ;;  %v20204_v34 = vpop.f32.mrb[74].mxu1 }
 0x61b   : > { %7480 = vmatprep.mubr.bf16.mxu0 %v17688_v42  ;;  %24325 = vst [vmem:[#allocation25_spill] sm:$0xff] %v20204_v34  ;;  %v17777_v42 = vld [vmem:[%s24286_s1 + $0x2e8] ss:$44 sps:$4 sm:$0xff]   ;;  %v8297_v55 = vpop.f32.mrb[75].mxu1 }
 0x61c   : > { %15285 = vmatprep.mubr.msk.bf16.mxu1 %vm5710_vm2, %v17777_v42  ;;  %v20213_v1 = vpop.f32.mrb[76].mxu1 }
 0x61d   : > { %24326 = vst [vmem:[#allocation26_spill] sm:$0xff] %v20213_v1  ;;  %15286 = vmatmul.mubr.msk.bf16.gmra.mrb[4].mxu1 %vm5710_vm2, %v17778_v45  ;;  %v8302_v9 = vpop.f32.mrb[77].mxu1 }
 0x61e   : > { %v20219_v25 = vpop.f32.mrb[78].mxu1 }
 0x61f   : > { %24327 = vst [vmem:[#allocation27_spill] sm:$0xff] %v20219_v25  ;;  %v8305_v0 = vpop.f32.mrb[79].mxu1  ;;  %v17702_v25 = vld [vmem:[%s24286_s1 + $0x1400] ss:$44 sps:$4 sm:$0xff]  }
 0x620   : > { %v17706_v0 = vld [vmem:[%s24286_s1 + $0x145c] ss:$44 sps:$4 sm:$0xff]  }
 0x622   : > { %7481 = vmatmul.mubr.bf16.gmra.mrb[224].mxu0 %v17690_v12  ;;  %v17696_v12 = vld [vmem:[%s24286_s1 + $0x13a8] ss:$44 sps:$4 sm:$0xff]  }
 0x623   : > { %7488 = vmatprep.mubr.bf16.mxu0 %v17694_v24  ;;  %v20224_v24 = vpop.f32.mrb[80].mxu1 }
 0x624   : > { %24328 = vst [vmem:[#allocation28_spill] sm:$0xff] %v20224_v24  ;;  %v8310_v55 = vpop.f32.mrb[81].mxu1 }
 0x625   : > { %v20226_v42 = vpop.f32.mrb[82].mxu1 }
 0x626   : > { %24329 = vst [vmem:[#allocation29_spill] sm:$0xff] %v20226_v42  ;;  %v8313_v45 = vpop.f32.mrb[83].mxu1 }
 0x627   : > { %v20228_v9 = vpop.f32.mrb[84].mxu1  ;;  %v17786_v45 = vld [vmem:[%s24286_s1 + $0x3f0] ss:$44 sps:$4 sm:$0xff]  }
 0x628   : > { %24330 = vst [vmem:[#allocation30_spill] sm:$0xff] %v20228_v9  ;;  %v8318_v1 = vpop.f32.mrb[85].mxu1 }
 0x629   : > { %v20233_v34 = vpop.f32.mrb[86].mxu1  ;;  %v17785_v1 = vld [vmem:[%s24286_s1 + $0x398] ss:$44 sps:$4 sm:$0xff]  }
 0x62a   : > { %7489 = vmatmul.mubr.bf16.gmra.mrb[228].mxu0 %v17696_v12  ;;  %24331 = vst [vmem:[#allocation31_spill] sm:$0xff] %v20233_v34  ;;  %v8321_v24 = vpop.f32.mrb[87].mxu1  ;;  %15289 = vmatprep.mubr.msk.bf16.mxu1 %vm5710_vm2, %v17785_v1 }
 0x62b   : > { %7496 = vmatprep.mubr.bf16.mxu0 %v17700_v33  ;;  %v20238_v55 = vpop.f32.mrb[88].mxu1  ;;  %15290 = vmatmul.mubr.msk.bf16.gmra.mrb[8].mxu1 %vm5710_vm2, %v17786_v45 }
 0x62c   : > { %24332 = vst [vmem:[#allocation32_spill] sm:$0xff] %v20238_v55  ;;  %v8326_v12 = vpop.f32.mrb[89].mxu1 }
 0x62d   : > { %v20240_v33 = vpop.f32.mrb[90].mxu1 }
 0x62e   : > { %24333 = vst [vmem:[#allocation33_spill] sm:$0xff] %v20240_v33  ;;  %v8329_v34 = vpop.f32.mrb[91].mxu1  ;;  %v17712_v33 = vld [vmem:[%s24286_s1 + $0x14b4] ss:$44 sps:$4 sm:$0xff]  }
 0x62f   : > { %v20249_v9 = vpop.f32.mrb[92].mxu1 }
 0x630   : > { %24334 = vst [vmem:[#allocation34_spill] sm:$0xff] %v20249_v9  ;;  %v8334_v24 = vpop.f32.mrb[93].mxu1 }
 0x631   : > { %v20255_v12 = vpop.f32.mrb[94].mxu1  ;;  %v1422_v24 = vld [vmem:[%s24287_s2] sm:$0xff] }
 0x632   : > { %7497 = vmatmul.mubr.bf16.gmra.mrb[232].mxu0 %v17702_v25  ;;  %v17708_v25 = vld [vmem:[%s24286_s1 + $0x1458] ss:$44 sps:$4 sm:$0xff]   ;;  %24335 = vst [vmem:[#allocation35_spill] sm:$0xff] %v20255_v12  ;;  %v8337_v55 = vpop.f32.mrb[95].mxu1  ;;  %1552 = vperm.xlu0 %16981, %v1422_v24   ;;  %v17793_v24 = vld [vmem:[%s24286_s1 + $0x448] ss:$44 sps:$4 sm:$0xff]  }
 0x633   : > { %7504 = vmatprep.mubr.bf16.mxu0 %v17706_v0  ;;  %v20260_v0 = vpop.f32.mrb[96].mxu1  ;;  %v17714_v55 = vld [vmem:[%s24286_s1 + $0x14b0] ss:$44 sps:$4 sm:$0xff]   ;;  %15293 = vmatprep.mubr.msk.bf16.mxu1 %vm5710_vm2, %v17793_v24 }
 0x634   : > { %24336 = vst [vmem:[#allocation36_spill] sm:$0xff] %v20260_v0  ;;  %v8342_v34 = vpop.f32.mrb[97].mxu1  ;;  %v17724_v24 = vld [vmem:[%s24286_s1 + $0x1564] ss:$44 sps:$4 sm:$0xff]  }
 0x635   : > { %v20262_v1 = vpop.f32.mrb[98].mxu1 }
 0x636   : > { %24337 = vst [vmem:[#allocation37_spill] sm:$0xff] %v20262_v1  ;;  %v8345_v45 = vpop.f32.mrb[99].mxu1 }
 0x637   : > { %v20267_v9 = vpop.f32.mrb[100].mxu1 }
 0x638   : > { %24338 = vst [vmem:[#allocation38_spill] sm:$0xff] %v20267_v9  ;;  %v8350_v12 = vpop.f32.mrb[101].mxu1  ;;  %v1427_v9 = vld [vmem:[%s24287_s2 + $0x28] sm:$0xff] }
 0x639   : > { %v20272_v42 = vpop.f32.mrb[102].mxu1  ;;  %v1424_v12 = vld [vmem:[%s24287_s2 + $0x10] sm:$0xff] }
 0x63a   : > { %7505 = vmatmul.mubr.bf16.gmra.mrb[236].mxu0 %v17708_v25  ;;  %24339 = vst [vmem:[#allocation39_spill] sm:$0xff] %v20272_v42  ;;  %v17718_v25 = vld [vmem:[%s24286_s1 + $0x150c] ss:$44 sps:$4 sm:$0xff]   ;;  %1562 = vperm.xlu1 %16982, %v1424_v12   ;;  %v17720_v12 = vld [vmem:[%s24286_s1 + $0x1508] ss:$44 sps:$4 sm:$0xff]  }
 0x63b   : > { %7512 = vmatprep.mubr.bf16.mxu0 %v17712_v33  ;;  %v8353_v33 = vpop.f32.mrb[103].mxu1  ;;  %v17794_v42 = vld [vmem:[%s24286_s1 + $0x4a0] ss:$44 sps:$4 sm:$0xff]  }
 0x63c   : > { %v20277_v34 = vpop.f32.mrb[104].mxu1  ;;  %15294 = vmatmul.mubr.msk.bf16.gmra.mrb[12].mxu1 %vm5710_vm2, %v17794_v42 }
 0x63d   : > { %24340 = vst [vmem:[#allocation40_spill] sm:$0xff] %v20277_v34  ;;  %v8358_v45 = vpop.f32.mrb[105].mxu1 }
 0x63e   : > { %v20279_v1 = vpop.f32.mrb[106].mxu1 }
 0x63f   : > { %24341 = vst [vmem:[#allocation41_spill] sm:$0xff] %v20279_v1  ;;  %v8361_v33 = vpop.f32.mrb[107].mxu1  ;;  %v1425_v1 = vld [vmem:[%s24287_s2 + $0x18] sm:$0xff] }
 0x640   : > { %v20294_v45 = vpop.f32.mrb[108].mxu1  ;;  %1567 = vperm.xlu1 %16982, %v1425_v1  }
 0x641   : > { %24342 = vst [vmem:[#allocation42_spill] sm:$0xff] %v20294_v45  ;;  %v8366_v34 = vpop.f32.mrb[109].mxu1 }
 0x642   : > { %7513 = vmatmul.mubr.bf16.gmra.mrb[240].mxu0 %v17714_v55  ;;  %v1423_v55 = vld [vmem:[%s24287_s2 + $0x8] sm:$0xff]  ;;  %v20306_v33 = vpop.f32.mrb[110].mxu1 }
 0x643   : > { %7520 = vmatprep.mubr.bf16.mxu0 %v17718_v25  ;;  %1557 = vperm.xlu0 %16981, %v1423_v55   ;;  %v1426_v25 = vld [vmem:[%s24287_s2 + $0x20] sm:$0xff]  ;;  %24343 = vst [vmem:[#allocation43_spill] sm:$0xff] %v20306_v33  ;;  %v8369_v55 = vpop.f32.mrb[111].mxu1  ;;  %v1428_v33 = vld [vmem:[%s24287_s2 + $0x30] sm:$0xff] }
 0x644   : > { %v20311_v45 = vpop.f32.mrb[112].mxu1  ;;  %1577 = vperm.xlu1 %16982, %v1427_v9   ;;  %v17726_v55 = vld [vmem:[%s24286_s1 + $0x1560] ss:$44 sps:$4 sm:$0xff]  }
 0x645   : > { %24344 = vst [vmem:[#allocation44_spill] sm:$0xff] %v20311_v45  ;;  %v8374_v42 = vpop.f32.mrb[113].mxu1 }
 0x646   : > { %v20313_v34 = vpop.f32.mrb[114].mxu1 }
 0x647   : > { %1572 = vperm.xlu0 %16981, %v1426_v25   ;;  %24345 = vst [vmem:[#allocation45_spill] sm:$0xff] %v20313_v34  ;;  %v8377_v0 = vpop.f32.mrb[115].mxu1  ;;  %v1429_v25 = vld [vmem:[%s24287_s2 + $0x38] sm:$0xff]  ;;  %v1430_v34 = vld [vmem:[%s24287_s2 + $0x40] sm:$0xff] }
 0x648   : > { %v20321_v1 = vpop.f32.mrb[116].mxu1  ;;  %1587 = vperm.xlu1 %16982, %v1429_v25  }
 0x649   : > { %24346 = vst [vmem:[#allocation46_spill] sm:$0xff] %v20321_v1 }
 0x64a   : > { %7521 = vmatmul.mubr.bf16.gmra.mrb[244].mxu0 %v17720_v12  ;;  %v8382_v12 = vpop.f32.mrb[117].mxu1 }
 0x64b   : > { %7528 = vmatprep.mubr.bf16.mxu0 %v17724_v24  ;;  %1582 = vperm.xlu0 %16981, %v1428_v33   ;;  %v20329_v42 = vpop.f32.mrb[118].mxu1  ;;  %v17730_v24 = vld [vmem:[%s24286_s1 + $0x15bc] ss:$44 sps:$4 sm:$0xff]   ;;  %v17801_v12 = vld [vmem:[%s24286_s1 + $0x4f8] ss:$44 sps:$4 sm:$0xff]  }
 0x64c   : > { %24347 = vst [vmem:[#allocation47_spill] sm:$0xff] %v20329_v42  ;;  %v8385_v9 = vpop.f32.mrb[119].mxu1  ;;  %v17802_v42 = vld [vmem:[%s24286_s1 + $0x550] ss:$44 sps:$4 sm:$0xff]   ;;  %15297 = vmatprep.mubr.msk.bf16.mxu1 %vm5710_vm2, %v17801_v12 }
 0x64d   : > { %v20334_v0 = vpop.f32.mrb[120].mxu1  ;;  %15298 = vmatmul.mubr.msk.bf16.gmra.mrb[16].mxu1 %vm5710_vm2, %v17802_v42  ;;  %v1432_v42 = vld [vmem:[%s24287_s2 + $0x50] sm:$0xff] }
 0x64e   : > { %24348 = vst [vmem:[#allocation48_spill] sm:$0xff] %v20334_v0  ;;  %v8390_v33 = vpop.f32.mrb[121].mxu1 }
 0x64f   : > { %v20336_v1 = vpop.f32.mrb[122].mxu1  ;;  %1592 = vperm.xlu0 %16981, %v1430_v34   ;;  %v17738_v34 = vld [vmem:[%s24286_s1 + $0x1c] ss:$44 sps:$4 sm:$0xff]  }
 0x650   : > { %24349 = vst [vmem:[#allocation49_spill] sm:$0xff] %v20336_v1  ;;  %v8393_v25 = vpop.f32.mrb[123].mxu1  ;;  %v17732_v1 = vld [vmem:[%s24286_s1 + $0x15b8] ss:$44 sps:$4 sm:$0xff]  }
 0x651   : > { %v20351_v9 = vpop.f32.mrb[124].mxu1 }
 0x652   : > { %7529 = vmatmul.mubr.bf16.gmra.mrb[248].mxu0 %v17726_v55  ;;  %v1431_v55 = vld [vmem:[%s24287_s2 + $0x48] sm:$0xff]  ;;  %24350 = vst [vmem:[#allocation50_spill] sm:$0xff] %v20351_v9  ;;  %v8398_v33 = vpop.f32.mrb[125].mxu1 }
 0x653   : > { %7536 = vmatprep.mubr.bf16.mxu0 %v17730_v24  ;;  %1597 = vperm.xlu1 %16982, %v1431_v55   ;;  %v20357_v0 = vpop.f32.mrb[126].mxu1  ;;  %v1433_v55 = vld [vmem:[%s24287_s2 + $0x58] sm:$0xff] }
 0x654   : > { %24351 = vst [vmem:[#allocation51_spill] sm:$0xff] %v20357_v0  ;;  %v8401_v24 = vpop.f32.mrb[127].mxu1  ;;  %1602 = vperm.xlu0 %16981, %v1432_v42  }
 0x655   : > { %v20362_v25 = vpop.f32.mrb[128].mxu1 }
 0x656   : > { %24352 = vst [vmem:[#allocation52_spill] sm:$0xff] %v20362_v25  ;;  %v8406_v12 = vpop.f32.mrb[129].mxu1 }
 0x657   : > { %v20364_v9 = vpop.f32.mrb[130].mxu1  ;;  %1607 = vperm.xlu1 %16982, %v1433_v55   ;;  %v17809_v55 = vld [vmem:[%s24286_s1 + $0x5a8] ss:$44 sps:$4 sm:$0xff]  }
 0x658   : > { %24353 = vst [vmem:[#allocation53_spill] sm:$0xff] %v20364_v9  ;;  %v8409_v33 = vpop.f32.mrb[131].mxu1  ;;  %v17742_v9 = vld [vmem:[%s24286_s1 + $0x74] ss:$44 sps:$4 sm:$0xff]   ;;  %15301 = vmatprep.mubr.msk.bf16.mxu1 %vm5710_vm2, %v17809_v55  ;;  %v17748_v55 = vld [vmem:[%s24286_s1 + $0xcc] ss:$44 sps:$4 sm:$0xff]  }
 0x659   : > { %v20372_v0 = vpop.f32.mrb[132].mxu1  ;;  %v17810_v33 = vld [vmem:[%s24286_s1 + $0x600] ss:$44 sps:$4 sm:$0xff]  }
 0x65a   : > { %7537 = vmatmul.mubr.bf16.gmra.mrb[252].mxu0 %v17732_v1  ;;  %24354 = vst [vmem:[#allocation54_spill] sm:$0xff] %v20372_v0  ;;  %v8414_v24 = vpop.f32.mrb[133].mxu1  ;;  %v17736_v1 = vld [vmem:[%s24286_s1 + $0x18] ss:$44 sps:$4 sm:$0xff]   ;;  %15302 = vmatmul.mubr.msk.bf16.gmra.mrb[20].mxu1 %vm5710_vm2, %v17810_v33 }
 0x65b   : > { %7577 = vmatprep.mubr.bf16.mxu0 %v17738_v34  ;;  %v20377_v12 = vpop.f32.mrb[134].mxu1  ;;  %v1434_v24 = vld [vmem:[%s24287_s2 + $0x60] sm:$0xff]  ;;  %v1437_v33 = vld [vmem:[%s24287_s2 + $0x78] sm:$0xff] }
 0x65c   : > { %24355 = vst [vmem:[#allocation55_spill] sm:$0xff] %v20377_v12  ;;  %v8417_v25 = vpop.f32.mrb[135].mxu1  ;;  %1612 = vperm.xlu0 %16981, %v1434_v24   ;;  %v24360_v24 = vmov 0   ;;  %v1498_v0 = vld [vmem:[%s24287_s2 + $0x260] sm:$0xff] }
 0x65d   : > { %v20382_v45 = vpop.f32.mrb[136].mxu1 }
 0x65e   : > { %24356 = vst [vmem:[#allocation56_spill] sm:$0xff] %v20382_v45  ;;  %v8422_v34 = vpop.f32.mrb[137].mxu1 }
 0x65f   : > { %v20384_v42 = vpop.f32.mrb[138].mxu1 }
 0x660   : > { %24357 = vst [vmem:[#allocation57_spill] sm:$0xff] %v20384_v42  ;;  %v8425_v25 = vpop.f32.mrb[139].mxu1 }
 0x661   : > { %v20399_v34 = vpop.f32.mrb[140].mxu1 }
 0x662   : > { %7578 = vmatmul.mubr.bf16.vlgmr.msra.gmra.mrb[0].mxu0 %v17736_v1  ;;  %v1435_v1 = vld [vmem:[%s24287_s2 + $0x68] sm:$0xff]  ;;  %24358 = vst [vmem:[#allocation58_spill] sm:$0xff] %v20399_v34  ;;  %v8430_v42 = vpop.f32.mrb[141].mxu1 }
 0x663   : > { %7585 = vmatprep.mubr.bf16.mxu0 %v17742_v9  ;;  %1617 = vperm.xlu1 %16982, %v1435_v1   ;;  %v17744_v9 = vld [vmem:[%s24286_s1 + $0x70] ss:$44 sps:$4 sm:$0xff]   ;;  %v20406_v25 = vpop.f32.mrb[142].mxu1 }
 0x664   : > { %8091 = vmatpush1.bf16.msra.mxu0 %v19123_v39  ;;  %24359 = vst [vmem:[#allocation59_spill] sm:$0xff] %v20406_v25  ;;  %v8433_v45 = vpop.f32.mrb[143].mxu1  ;;  %v1436_v42 = vld [vmem:[%s24287_s2 + $0x70] sm:$0xff]  ;;  %v1497_v25 = vld [vmem:[%s24287_s2 + $0x258] sm:$0xff] }
 0x665   : > { %8092 = vmatprep.subr.bf16.mxu0 %v24360_v24  ;;  %v20412_v34 = vpop.f32.mrb[144].mxu1  ;;  %1622 = vperm.xlu0 %16981, %v1436_v42  }
 0x666   : > { %24361 = vst [vmem:[#allocation60_spill] sm:$0xff] %v20412_v34  ;;  %v8438_v1 = vpop.f32.mrb[145].mxu1 }
 0x667   : > { %v20415_v39 = vpop.f32.mrb[146].mxu1  ;;  %1627 = vperm.xlu1 %16982, %v1437_v33   ;;  %v17817_v33 = vld [vmem:[%s24286_s1 + $0x658] ss:$44 sps:$4 sm:$0xff]  }
 0x668   : > { %8093 = vmatpush1.bf16.msra.mxu0 %v19138_v46  ;;  %24362 = vst [vmem:[#allocation61_spill] sm:$0xff] %v20415_v39  ;;  %v8441_v45 = vpop.f32.mrb[147].mxu1  ;;  %15305 = vmatprep.mubr.msk.bf16.mxu1 %vm5710_vm2, %v17817_v33  ;;  %v17758_v33 = vld [vmem:[%s24286_s1 + $0x17c] ss:$44 sps:$4 sm:$0xff]  }
 0x669   : > { %8094 = vmatprep.subr.bf16.mxu0 %v24360_v24  ;;  %v20424_v34 = vpop.f32.mrb[148].mxu1 }
 0x66a   : > { %7586 = vmatmul.mubr.bf16.gmra.mrb[4].mxu0 %v17744_v9  ;;  %24363 = vst [vmem:[#allocation62_spill] sm:$0xff] %v20424_v34  ;;  %v8446_v46 = vpop.f32.mrb[149].mxu1  ;;  %v17750_v9 = vld [vmem:[%s24286_s1 + $0xc8] ss:$44 sps:$4 sm:$0xff]  }
 0x66b   : > { %7593 = vmatprep.mubr.bf16.mxu0 %v17748_v55  ;;  %v20430_v1 = vpop.f32.mrb[150].mxu1  ;;  %v17753_v55 = vld [vmem:[%s24286_s1 + $0x124] ss:$44 sps:$4 sm:$0xff]  }
 0x66c   : > { %8095 = vmatpush1.bf16.msra.mxu0 %v19146_v53  ;;  %24364 = vst [vmem:[#allocation63_spill] sm:$0xff] %v20430_v1  ;;  %v8449_v45 = vpop.f32.mrb[151].mxu1  ;;  %v17818_v46 = vld [vmem:[%s24286_s1 + $0x6b0] ss:$44 sps:$4 sm:$0xff]   ;;  %v1495_v1 = vld [vmem:[%s24287_s2 + $0x248] sm:$0xff] }
 0x66d   : > { %8096 = vmatprep.subr.bf16.mxu0 %v24360_v24  ;;  %v20436_v42 = vpop.f32.mrb[152].mxu1  ;;  %v1438_v45 = vld [vmem:[%s24287_s2 + $0x80] sm:$0xff]  ;;  %15306 = vmatmul.mubr.msk.bf16.gmra.mrb[24].mxu1 %vm5710_vm2, %v17818_v46  ;;  %v1441_v46 = vld [vmem:[%s24287_s2 + $0x98] sm:$0xff] }
 0x66e   : > { %24365 = vst [vmem:[#allocation64_spill] sm:$0xff] %v20436_v42  ;;  %v8454_v34 = vpop.f32.mrb[153].mxu1  ;;  %1632 = vperm.xlu0 %16981, %v1438_v45  }
 0x66f   : > { %v20439_v53 = vpop.f32.mrb[154].mxu1 }
 0x670   : > { %8097 = vmatpush1.bf16.msra.mxu0 %v19162_v60  ;;  %24366 = vst [vmem:[#allocation65_spill] sm:$0xff] %v20439_v53  ;;  %v8457_v34 = vpop.f32.mrb[155].mxu1  ;;  %v1439_v60 = vld [vmem:[%s24287_s2 + $0x88] sm:$0xff] }
 0x671   : > { %8098 = vmatprep.subr.bf16.mxu0 %v24360_v24  ;;  %1637 = vperm.xlu1 %16982, %v1439_v60  }
 0x672   : > { %7594 = vmatmul.mubr.bf16.gmra.mrb[8].mxu0 %v17750_v9  ;;  %v20455_v9 = vpop.f32.mrb[156].mxu1 }
 0x673   : > { %7601 = vmatprep.mubr.bf16.mxu0 %v17753_v55  ;;  %24367 = vst [vmem:[#allocation66_spill] sm:$0xff] %v20455_v9  ;;  %v8462_v53 = vpop.f32.mrb[157].mxu1  ;;  %v17755_v55 = vld [vmem:[%s24286_s1 + $0x120] ss:$44 sps:$4 sm:$0xff]  }
 0x674   : > { %8099 = vmatpush1.bf16.msra.mxu0 %v19170_v4  ;;  %v20462_v34 = vpop.f32.mrb[158].mxu1  ;;  %v1440_v53 = vld [vmem:[%s24287_s2 + $0x90] sm:$0xff] }
 0x675   : > { %24368 = vst [vmem:[#allocation67_spill] sm:$0xff] %v20462_v34  ;;  %8100 = vmatprep.subr.bf16.mxu0 %v24360_v24  ;;  %v8465_v45 = vpop.f32.mrb[159].mxu1  ;;  %1642 = vperm.xlu0 %16981, %v1440_v53  }
 0x676   : > { %v20468_v9 = vpop.f32.mrb[160].mxu1  ;;  %1647 = vperm.xlu1 %16982, %v1441_v46   ;;  %v17825_v46 = vld [vmem:[%s24286_s1 + $0x708] ss:$44 sps:$4 sm:$0xff]  }
 0x677   : > { %24369 = vst [vmem:[#allocation68_spill] sm:$0xff] %v20468_v9  ;;  %v8470_v60 = vpop.f32.mrb[161].mxu1  ;;  %15309 = vmatprep.mubr.msk.bf16.mxu1 %vm5710_vm2, %v17825_v46  ;;  %v17766_v46 = vld [vmem:[%s24286_s1 + $0x22c] ss:$44 sps:$4 sm:$0xff]  }
 0x678   : > { %8101 = vmatpush1.bf16.msra.mxu0 %v19185_v11  ;;  %v20471_v4 = vpop.f32.mrb[162].mxu1 }
 0x679   : > { %24370 = vst [vmem:[#allocation69_spill] sm:$0xff] %v20471_v4  ;;  %8102 = vmatprep.subr.bf16.mxu0 %v24360_v24  ;;  %v8473_v45 = vpop.f32.mrb[163].mxu1 }
 0x67a   : > { %7602 = vmatmul.mubr.bf16.gmra.mrb[12].mxu0 %v17755_v55  ;;  %v20480_v9 = vpop.f32.mrb[164].mxu1  ;;  %v17760_v55 = vld [vmem:[%s24286_s1 + $0x178] ss:$44 sps:$4 sm:$0xff]  }
 0x67b   : > { %7609 = vmatprep.mubr.bf16.mxu0 %v17758_v33  ;;  %24371 = vst [vmem:[#allocation70_spill] sm:$0xff] %v20480_v9  ;;  %v8478_v11 = vpop.f32.mrb[165].mxu1  ;;  %v17763_v33 = vld [vmem:[%s24286_s1 + $0x1d4] ss:$44 sps:$4 sm:$0xff]  }
 0x67c   : > { %8103 = vmatpush1.bf16.msra.mxu0 %v19192_v14  ;;  %v20486_v60 = vpop.f32.mrb[166].mxu1  ;;  %v17826_v11 = vld [vmem:[%s24286_s1 + $0x760] ss:$44 sps:$4 sm:$0xff]  }
 0x67d   : > { %24372 = vst [vmem:[#allocation71_spill] sm:$0xff] %v20486_v60  ;;  %8104 = vmatprep.subr.bf16.mxu0 %v24360_v24  ;;  %v8481_v45 = vpop.f32.mrb[167].mxu1  ;;  %15310 = vmatmul.mubr.msk.bf16.gmra.mrb[28].mxu1 %vm5710_vm2, %v17826_v11  ;;  %v1445_v11 = vld [vmem:[%s24287_s2 + $0xb8] sm:$0xff] }
 0x67e   : > { %v20492_v53 = vpop.f32.mrb[168].mxu1  ;;  %v1442_v45 = vld [vmem:[%s24287_s2 + $0xa0] sm:$0xff] }
 0x67f   : > { %24373 = vst [vmem:[#allocation72_spill] sm:$0xff] %v20492_v53  ;;  %v8486_v9 = vpop.f32.mrb[169].mxu1  ;;  %1652 = vperm.xlu0 %16981, %v1442_v45   ;;  %v1490_v53 = vld [vmem:[%s24287_s2 + $0x220] sm:$0xff] }
 0x680   : > { %8105 = vmatpush1.bf16.msra.mxu0 %v19204_v19  ;;  %v20495_v14 = vpop.f32.mrb[170].mxu1  ;;  %v1443_v19 = vld [vmem:[%s24287_s2 + $0xa8] sm:$0xff] }
 0x681   : > { %24374 = vst [vmem:[#allocation73_spill] sm:$0xff] %v20495_v14  ;;  %8106 = vmatprep.subr.bf16.mxu0 %v24360_v24  ;;  %v8489_v9 = vpop.f32.mrb[171].mxu1  ;;  %1657 = vperm.xlu1 %16982, %v1443_v19  }
 0x682   : > { %7610 = vmatmul.mubr.bf16.gmra.mrb[16].mxu0 %v17760_v55  ;;  %v20511_v55 = vpop.f32.mrb[172].mxu1 }
 0x683   : > { %7617 = vmatprep.mubr.bf16.mxu0 %v17763_v33  ;;  %24375 = vst [vmem:[#allocation74_spill] sm:$0xff] %v20511_v55  ;;  %v8494_v14 = vpop.f32.mrb[173].mxu1  ;;  %v17765_v33 = vld [vmem:[%s24286_s1 + $0x1d0] ss:$44 sps:$4 sm:$0xff]  }
 0x684   : > { %8107 = vmatpush1.bf16.msra.mxu0 %v19210_v22  ;;  %v20518_v9 = vpop.f32.mrb[174].mxu1  ;;  %v1444_v14 = vld [vmem:[%s24287_s2 + $0xb0] sm:$0xff] }
 0x685   : > { %24376 = vst [vmem:[#allocation75_spill] sm:$0xff] %v20518_v9  ;;  %8108 = vmatprep.subr.bf16.mxu0 %v24360_v24  ;;  %v8497_v45 = vpop.f32.mrb[175].mxu1  ;;  %1662 = vperm.xlu0 %16981, %v1444_v14   ;;  %v1487_v9 = vld [vmem:[%s24287_s2 + $0x208] sm:$0xff] }
 0x686   : > { %v20524_v55 = vpop.f32.mrb[176].mxu1  ;;  %1667 = vperm.xlu1 %16982, %v1445_v11   ;;  %v17833_v11 = vld [vmem:[%s24286_s1 + $0x7b8] ss:$44 sps:$4 sm:$0xff]  }
 0x687   : > { %24377 = vst [vmem:[#allocation76_spill] sm:$0xff] %v20524_v55  ;;  %v8502_v19 = vpop.f32.mrb[177].mxu1  ;;  %15313 = vmatprep.mubr.msk.bf16.mxu1 %vm5710_vm2, %v17833_v11  ;;  %v17774_v11 = vld [vmem:[%s24286_s1 + $0x2dc] ss:$44 sps:$4 sm:$0xff]  }
 0x688   : > { %8109 = vmatpush1.bf16.msra.mxu0 %v19222_v27  ;;  %v20527_v22 = vpop.f32.mrb[178].mxu1 }
 0x689   : > { %24378 = vst [vmem:[#allocation77_spill] sm:$0xff] %v20527_v22  ;;  %8110 = vmatprep.subr.bf16.mxu0 %v24360_v24  ;;  %v8505_v45 = vpop.f32.mrb[179].mxu1 }
 0x68a   : > { %7618 = vmatmul.mubr.bf16.gmra.mrb[20].mxu0 %v17765_v33  ;;  %v20536_v55 = vpop.f32.mrb[180].mxu1  ;;  %v17768_v33 = vld [vmem:[%s24286_s1 + $0x228] ss:$44 sps:$4 sm:$0xff]  }
 0x68b   : > { %7625 = vmatprep.mubr.bf16.mxu0 %v17766_v46  ;;  %24379 = vst [vmem:[#allocation78_spill] sm:$0xff] %v20536_v55  ;;  %v8510_v27 = vpop.f32.mrb[181].mxu1  ;;  %v17771_v46 = vld [vmem:[%s24286_s1 + $0x284] ss:$44 sps:$4 sm:$0xff]  }
 0x68c   : > { %8111 = vmatpush1.bf16.msra.mxu0 %v19228_v30  ;;  %v20542_v19 = vpop.f32.mrb[182].mxu1  ;;  %v17834_v27 = vld [vmem:[%s24286_s1 + $0x810] ss:$44 sps:$4 sm:$0xff]  }
 0x68d   : > { %24380 = vst [vmem:[#allocation79_spill] sm:$0xff] %v20542_v19  ;;  %8112 = vmatprep.subr.bf16.mxu0 %v24360_v24  ;;  %v8513_v45 = vpop.f32.mrb[183].mxu1  ;;  %15314 = vmatmul.mubr.msk.bf16.gmra.mrb[32].mxu1 %vm5710_vm2, %v17834_v27  ;;  %v1449_v27 = vld [vmem:[%s24287_s2 + $0xd8] sm:$0xff] }
 0x68e   : > { %v20548_v14 = vpop.f32.mrb[184].mxu1  ;;  %v1446_v45 = vld [vmem:[%s24287_s2 + $0xc0] sm:$0xff] }
 0x68f   : > { %24381 = vst [vmem:[#allocation80_spill] sm:$0xff] %v20548_v14  ;;  %v8518_v55 = vpop.f32.mrb[185].mxu1  ;;  %1672 = vperm.xlu0 %16981, %v1446_v45   ;;  %v1485_v14 = vld [vmem:[%s24287_s2 + $0x1f8] sm:$0xff] }
 0x690   : > { %8113 = vmatpush1.bf16.msra.mxu0 %v19240_v35  ;;  %v20551_v30 = vpop.f32.mrb[186].mxu1  ;;  %v1447_v35 = vld [vmem:[%s24287_s2 + $0xc8] sm:$0xff] }
 0x691   : > { %24382 = vst [vmem:[#allocation81_spill] sm:$0xff] %v20551_v30  ;;  %8114 = vmatprep.subr.bf16.mxu0 %v24360_v24  ;;  %v8521_v55 = vpop.f32.mrb[187].mxu1  ;;  %1677 = vperm.xlu1 %16982, %v1447_v35  }
 0x692   : > { %7626 = vmatmul.mubr.bf16.gmra.mrb[24].mxu0 %v17768_v33  ;;  %v20567_v33 = vpop.f32.mrb[188].mxu1 }
 0x693   : > { %7633 = vmatprep.mubr.bf16.mxu0 %v17771_v46  ;;  %24383 = vst [vmem:[#allocation82_spill] sm:$0xff] %v20567_v33  ;;  %v8526_v30 = vpop.f32.mrb[189].mxu1  ;;  %v17773_v46 = vld [vmem:[%s24286_s1 + $0x280] ss:$44 sps:$4 sm:$0xff]  }
 0x694   : > { %8115 = vmatpush1.bf16.msra.mxu0 %v19246_v38  ;;  %v20574_v55 = vpop.f32.mrb[190].mxu1  ;;  %v1448_v30 = vld [vmem:[%s24287_s2 + $0xd0] sm:$0xff] }
 0x695   : > { %24384 = vst [vmem:[#allocation83_spill] sm:$0xff] %v20574_v55  ;;  %8116 = vmatprep.subr.bf16.mxu0 %v24360_v24  ;;  %v8529_v45 = vpop.f32.mrb[191].mxu1  ;;  %1682 = vperm.xlu0 %16981, %v1448_v30   ;;  %v17874_v55 = vld [vmem:[%s24286_s1 + $0xb80] ss:$44 sps:$4 sm:$0xff]  }
 0x696   : > { %v20580_v33 = vpop.f32.mrb[192].mxu1  ;;  %1687 = vperm.xlu1 %16982, %v1449_v27   ;;  %v1450_v27 = vld [vmem:[%s24287_s2 + $0xe0] sm:$0xff] }
 0x697   : > { %24385 = vst [vmem:[#allocation84_spill] sm:$0xff] %v20580_v33  ;;  %v8534_v35 = vpop.f32.mrb[193].mxu1 }
 0x698   : > { %8117 = vmatpush1.bf16.msra.mxu0 %v19258_v44  ;;  %v20583_v38 = vpop.f32.mrb[194].mxu1 }
 0x699   : > { %24386 = vst [vmem:[#allocation85_spill] sm:$0xff] %v20583_v38  ;;  %8118 = vmatprep.subr.bf16.mxu0 %v24360_v24  ;;  %v8537_v45 = vpop.f32.mrb[195].mxu1  ;;  %1692 = vperm.xlu0 %16981, %v1450_v27   ;;  %v17781_v27 = vld [vmem:[%s24286_s1 + $0x330] ss:$44 sps:$4 sm:$0xff]   ;;  %v17808_v38 = vld [vmem:[%s24286_s1 + $0x598] ss:$44 sps:$4 sm:$0xff]  }
 0x69a   : > { %7634 = vmatmul.mubr.bf16.gmra.mrb[28].mxu0 %v17773_v46  ;;  %v20592_v33 = vpop.f32.mrb[196].mxu1  ;;  %v17776_v46 = vld [vmem:[%s24286_s1 + $0x2d8] ss:$44 sps:$4 sm:$0xff]  }
 0x69b   : > { %7641 = vmatprep.mubr.bf16.mxu0 %v17774_v11  ;;  %24387 = vst [vmem:[#allocation86_spill] sm:$0xff] %v20592_v33  ;;  %v8542_v44 = vpop.f32.mrb[197].mxu1  ;;  %v17779_v11 = vld [vmem:[%s24286_s1 + $0x334] ss:$44 sps:$4 sm:$0xff]  }
 0x69c   : > { %8119 = vmatpush1.bf16.msra.mxu0 %v19264_v48  ;;  %v20598_v35 = vpop.f32.mrb[198].mxu1  ;;  %v17841_v44 = vld [vmem:[%s24286_s1 + $0x868] ss:$44 sps:$4 sm:$0xff]  }
 0x69d   : > { %24388 = vst [vmem:[#allocation87_spill] sm:$0xff] %v20598_v35  ;;  %8120 = vmatprep.subr.bf16.mxu0 %v24360_v24  ;;  %v8545_v45 = vpop.f32.mrb[199].mxu1  ;;  %15317 = vmatprep.mubr.msk.bf16.mxu1 %vm5710_vm2, %v17841_v44  ;;  %v1452_v24 = vld [vmem:[%s24287_s2 + $0xf0] sm:$0xff]  ;;  %v17782_v44 = vld [vmem:[%s24286_s1 + $0x38c] ss:$44 sps:$4 sm:$0xff]  }
 0x69e   : > { %v20604_v30 = vpop.f32.mrb[200].mxu1  ;;  %v17842_v45 = vld [vmem:[%s24286_s1 + $0x8c0] ss:$44 sps:$4 sm:$0xff]   ;;  %1702 = vperm.xlu0 %16981, %v1452_v24  }
 0x69f   : > { %24389 = vst [vmem:[#allocation88_spill] sm:$0xff] %v20604_v30  ;;  %v8550_v33 = vpop.f32.mrb[201].mxu1  ;;  %15318 = vmatmul.mubr.msk.bf16.gmra.mrb[36].mxu1 %vm5710_vm2, %v17842_v45  ;;  %v1454_v30 = vld [vmem:[%s24287_s2 + $0x100] sm:$0xff] }
 0x6a0   : > { %8121 = vmatpush1.bf16.msra.mxu0 %v19276_v54  ;;  %v20607_v48 = vpop.f32.mrb[202].mxu1  ;;  %v1451_v54 = vld [vmem:[%s24287_s2 + $0xe8] sm:$0xff] }
 0x6a1   : > { %24390 = vst [vmem:[#allocation89_spill] sm:$0xff] %v20607_v48  ;;  %v8553_v33 = vpop.f32.mrb[203].mxu1  ;;  %1697 = vperm.xlu1 %16982, %v1451_v54  }
 0x6a2   : > { %7642 = vmatmul.mubr.bf16.gmra.mrb[32].mxu0 %v17776_v46  ;;  %v20622_v46 = vpop.f32.mrb[204].mxu1  ;;  %1712 = vperm.xlu0 %16981, %v1454_v30  }
 0x6a3   : > { %7649 = vmatprep.mubr.bf16.mxu0 %v17779_v11  ;;  %24391 = vst [vmem:[#allocation90_spill] sm:$0xff] %v20622_v46  ;;  %v8558_v48 = vpop.f32.mrb[205].mxu1  ;;  %v1453_v11 = vld [vmem:[%s24287_s2 + $0xf8] sm:$0xff] }
 0x6a4   : > { %v20634_v33 = vpop.f32.mrb[206].mxu1 }
 0x6a5   : > { %24392 = vst [vmem:[#allocation91_spill] sm:$0xff] %v20634_v33  ;;  %v8561_v54 = vpop.f32.mrb[207].mxu1  ;;  %1707 = vperm.xlu1 %16982, %v1453_v11   ;;  %v1455_v33 = vld [vmem:[%s24287_s2 + $0x108] sm:$0xff]  ;;  %v1456_v11 = vld [vmem:[%s24287_s2 + $0x110] sm:$0xff] }
 0x6a6   : > { %v20639_v46 = vpop.f32.mrb[208].mxu1  ;;  %v1457_v54 = vld [vmem:[%s24287_s2 + $0x118] sm:$0xff]  ;;  %1722 = vperm.xlu0 %16981, %v1456_v11  }
 0x6a7   : > { %24393 = vst [vmem:[#allocation92_spill] sm:$0xff] %v20639_v46  ;;  %v8566_v48 = vpop.f32.mrb[209].mxu1  ;;  %v17850_v11 = vld [vmem:[%s24286_s1 + $0x970] ss:$44 sps:$4 sm:$0xff]  }
 0x6a8   : > { %v20641_v45 = vpop.f32.mrb[210].mxu1  ;;  %v17784_v48 = vld [vmem:[%s24286_s1 + $0x388] ss:$44 sps:$4 sm:$0xff]  }
 0x6a9   : > { %24394 = vst [vmem:[#allocation93_spill] sm:$0xff] %v20641_v45  ;;  %v8569_v35 = vpop.f32.mrb[211].mxu1  ;;  %1717 = vperm.xlu1 %16982, %v1455_v33  }
 0x6aa   : > { %7650 = vmatmul.mubr.bf16.gmra.mrb[36].mxu0 %v17781_v27  ;;  %v20649_v24 = vpop.f32.mrb[212].mxu1  ;;  %v17787_v35 = vld [vmem:[%s24286_s1 + $0x3e4] ss:$44 sps:$4 sm:$0xff]  }
 0x6ab   : > { %7657 = vmatprep.mubr.bf16.mxu0 %v17782_v44  ;;  %24395 = vst [vmem:[#allocation94_spill] sm:$0xff] %v20649_v24  ;;  %v8574_v27 = vpop.f32.mrb[213].mxu1  ;;  %v1458_v24 = vld [vmem:[%s24287_s2 + $0x120] sm:$0xff] }
 0x6ac   : > { %v20660_v45 = vpop.f32.mrb[214].mxu1  ;;  %1732 = vperm.xlu0 %16981, %v1458_v24   ;;  %v1461_v24 = vld [vmem:[%s24287_s2 + $0x138] sm:$0xff] }
 0x6ad   : > { %24396 = vst [vmem:[#allocation95_spill] sm:$0xff] %v20660_v45  ;;  %v8577_v30 = vpop.f32.mrb[215].mxu1  ;;  %1727 = vperm.xlu1 %16982, %v1457_v54   ;;  %v17849_v45 = vld [vmem:[%s24286_s1 + $0x918] ss:$44 sps:$4 sm:$0xff]   ;;  %v1459_v54 = vld [vmem:[%s24287_s2 + $0x128] sm:$0xff] }
 0x6ae   : > { %v20665_v33 = vpop.f32.mrb[216].mxu1  ;;  %15321 = vmatprep.mubr.msk.bf16.mxu1 %vm5710_vm2, %v17849_v45  ;;  %v17790_v45 = vld [vmem:[%s24286_s1 + $0x43c] ss:$44 sps:$4 sm:$0xff]  }
 0x6af   : > { %24397 = vst [vmem:[#allocation96_spill] sm:$0xff] %v20665_v33  ;;  %v8582_v44 = vpop.f32.mrb[217].mxu1  ;;  %15322 = vmatmul.mubr.msk.bf16.gmra.mrb[40].mxu1 %vm5710_vm2, %v17850_v11  ;;  %v1462_v33 = vld [vmem:[%s24287_s2 + $0x140] sm:$0xff] }
 0x6b0   : > { %v20667_v27 = vpop.f32.mrb[218].mxu1  ;;  %v1460_v44 = vld [vmem:[%s24287_s2 + $0x130] sm:$0xff] }
 0x6b1   : > { %24398 = vst [vmem:[#allocation97_spill] sm:$0xff] %v20667_v27  ;;  %v8585_v30 = vpop.f32.mrb[219].mxu1  ;;  %1737 = vperm.xlu1 %16982, %v1459_v54   ;;  %1742 = vperm.xlu0 %16981, %v1460_v44  }
 0x6b2   : > { %7658 = vmatmul.mubr.bf16.gmra.mrb[40].mxu0 %v17784_v48  ;;  %v20682_v48 = vpop.f32.mrb[220].mxu1 }
 0x6b3   : > { %7665 = vmatprep.mubr.bf16.mxu0 %v17787_v35  ;;  %24399 = vst [vmem:[#allocation98_spill] sm:$0xff] %v20682_v48  ;;  %v8590_v27 = vpop.f32.mrb[221].mxu1  ;;  %v17789_v35 = vld [vmem:[%s24286_s1 + $0x3e0] ss:$44 sps:$4 sm:$0xff]  }
 0x6b4   : > { %v20694_v30 = vpop.f32.mrb[222].mxu1 }
 0x6b5   : > { %24400 = vst [vmem:[#allocation99_spill] sm:$0xff] %v20694_v30  ;;  %v8593_v54 = vpop.f32.mrb[223].mxu1  ;;  %1747 = vperm.xlu1 %16982, %v1461_v24   ;;  %v1463_v30 = vld [vmem:[%s24287_s2 + $0x148] sm:$0xff]  ;;  %1752 = vperm.xlu0 %16981, %v1462_v33   ;;  %v1464_v24 = vld [vmem:[%s24287_s2 + $0x150] sm:$0xff] }
 0x6b6   : > { %v20699_v48 = vpop.f32.mrb[224].mxu1  ;;  %v1465_v54 = vld [vmem:[%s24287_s2 + $0x158] sm:$0xff] }
 0x6b7   : > { %24401 = vst [vmem:[#allocation100_spill] sm:$0xff] %v20699_v48  ;;  %v8598_v27 = vpop.f32.mrb[225].mxu1 }
 0x6b8   : > { %v20701_v11 = vpop.f32.mrb[226].mxu1  ;;  %v17792_v27 = vld [vmem:[%s24286_s1 + $0x438] ss:$44 sps:$4 sm:$0xff]  }
 0x6b9   : > { %24402 = vst [vmem:[#allocation101_spill] sm:$0xff] %v20701_v11  ;;  %v8601_v46 = vpop.f32.mrb[227].mxu1  ;;  %1757 = vperm.xlu1 %16982, %v1463_v30   ;;  %1762 = vperm.xlu0 %16981, %v1464_v24   ;;  %v17858_v24 = vld [vmem:[%s24286_s1 + $0xa20] ss:$44 sps:$4 sm:$0xff]  }
 0x6ba   : > { %7666 = vmatmul.mubr.bf16.gmra.mrb[44].mxu0 %v17789_v35  ;;  %v20709_v44 = vpop.f32.mrb[228].mxu1  ;;  %v17795_v46 = vld [vmem:[%s24286_s1 + $0x494] ss:$44 sps:$4 sm:$0xff]  }
 0x6bb   : > { %7673 = vmatprep.mubr.bf16.mxu0 %v17790_v45  ;;  %24403 = vst [vmem:[#allocation102_spill] sm:$0xff] %v20709_v44  ;;  %v8606_v35 = vpop.f32.mrb[229].mxu1  ;;  %v1466_v44 = vld [vmem:[%s24287_s2 + $0x160] sm:$0xff] }
 0x6bc   : > { %v20720_v11 = vpop.f32.mrb[230].mxu1 }
 0x6bd   : > { %24404 = vst [vmem:[#allocation103_spill] sm:$0xff] %v20720_v11  ;;  %v8609_v33 = vpop.f32.mrb[231].mxu1  ;;  %1767 = vperm.xlu1 %16982, %v1465_v54   ;;  %v17857_v11 = vld [vmem:[%s24286_s1 + $0x9c8] ss:$44 sps:$4 sm:$0xff]   ;;  %1772 = vperm.xlu0 %16981, %v1466_v44   ;;  %v1469_v44 = vld [vmem:[%s24287_s2 + $0x178] sm:$0xff] }
 0x6be   : > { %v20725_v30 = vpop.f32.mrb[232].mxu1  ;;  %v1467_v54 = vld [vmem:[%s24287_s2 + $0x168] sm:$0xff]  ;;  %15325 = vmatprep.mubr.msk.bf16.mxu1 %vm5710_vm2, %v17857_v11 }
 0x6bf   : > { %24405 = vst [vmem:[#allocation104_spill] sm:$0xff] %v20725_v30  ;;  %v8614_v45 = vpop.f32.mrb[233].mxu1  ;;  %15326 = vmatmul.mubr.msk.bf16.gmra.mrb[44].mxu1 %vm5710_vm2, %v17858_v24  ;;  %v17798_v11 = vld [vmem:[%s24286_s1 + $0x4ec] ss:$44 sps:$4 sm:$0xff]   ;;  %v1470_v30 = vld [vmem:[%s24287_s2 + $0x180] sm:$0xff] }
 0x6c0   : > { %v20727_v35 = vpop.f32.mrb[234].mxu1  ;;  %v1468_v45 = vld [vmem:[%s24287_s2 + $0x170] sm:$0xff] }
 0x6c1   : > { %24406 = vst [vmem:[#allocation105_spill] sm:$0xff] %v20727_v35  ;;  %v8617_v33 = vpop.f32.mrb[235].mxu1  ;;  %1777 = vperm.xlu1 %16982, %v1467_v54   ;;  %1782 = vperm.xlu0 %16981, %v1468_v45   ;;  %v1471_v45 = vld [vmem:[%s24287_s2 + $0x188] sm:$0xff] }
 0x6c2   : > { %7674 = vmatmul.mubr.bf16.gmra.mrb[48].mxu0 %v17792_v27  ;;  %v20742_v27 = vpop.f32.mrb[236].mxu1 }
 0x6c3   : > { %7681 = vmatprep.mubr.bf16.mxu0 %v17795_v46  ;;  %24407 = vst [vmem:[#allocation106_spill] sm:$0xff] %v20742_v27  ;;  %v8622_v35 = vpop.f32.mrb[237].mxu1  ;;  %v17797_v46 = vld [vmem:[%s24286_s1 + $0x490] ss:$44 sps:$4 sm:$0xff]  }
 0x6c4   : > { %v20754_v33 = vpop.f32.mrb[238].mxu1 }
 0x6c5   : > { %24408 = vst [vmem:[#allocation107_spill] sm:$0xff] %v20754_v33  ;;  %v8625_v54 = vpop.f32.mrb[239].mxu1  ;;  %1787 = vperm.xlu1 %16982, %v1469_v44   ;;  %1792 = vperm.xlu0 %16981, %v1470_v30   ;;  %v17800_v44 = vld [vmem:[%s24286_s1 + $0x4e8] ss:$44 sps:$4 sm:$0xff]  }
 0x6c6   : > { %v20759_v27 = vpop.f32.mrb[240].mxu1  ;;  %v17803_v54 = vld [vmem:[%s24286_s1 + $0x544] ss:$44 sps:$4 sm:$0xff]  }
 0x6c7   : > { %24409 = vst [vmem:[#allocation108_spill] sm:$0xff] %v20759_v27  ;;  %v8630_v35 = vpop.f32.mrb[241].mxu1  ;;  %v1472_v30 = vld [vmem:[%s24287_s2 + $0x190] sm:$0xff] }
 0x6c8   : > { %v20761_v24 = vpop.f32.mrb[242].mxu1 }
 0x6c9   : > { %24410 = vst [vmem:[#allocation109_spill] sm:$0xff] %v20761_v24  ;;  %v8633_v33 = vpop.f32.mrb[243].mxu1  ;;  %1797 = vperm.xlu1 %16982, %v1471_v45   ;;  %1802 = vperm.xlu0 %16981, %v1472_v30   ;;  %v1473_v45 = vld [vmem:[%s24287_s2 + $0x198] sm:$0xff]  ;;  %v1474_v30 = vld [vmem:[%s24287_s2 + $0x1a0] sm:$0xff] }
 0x6ca   : > { %7682 = vmatmul.mubr.bf16.gmra.mrb[52].mxu0 %v17797_v46  ;;  %v20766_v48 = vpop.f32.mrb[244].mxu1  ;;  %v1477_v24 = vld [vmem:[%s24287_s2 + $0x1b8] sm:$0xff] }
 0x6cb   : > { %7689 = vmatprep.mubr.bf16.mxu0 %v17798_v11  ;;  %24411 = vst [vmem:[#allocation110_spill] sm:$0xff] %v20766_v48  ;;  %v20774_v46 = vpop.f32.mrb[245].mxu1 }
 0x6cc   : > { %24412 = vst [vmem:[#allocation111_spill] sm:$0xff] %v20774_v46  ;;  %v20779_v11 = vpop.f32.mrb[246].mxu1 }
 0x6cd   : > { %24413 = vst [vmem:[#allocation112_spill] sm:$0xff] %v20779_v11  ;;  %v20784_v33 = vpop.f32.mrb[247].mxu1  ;;  %1807 = vperm.xlu1 %16982, %v1473_v45   ;;  %v17865_v11 = vld [vmem:[%s24286_s1 + $0xa78] ss:$44 sps:$4 sm:$0xff]   ;;  %1812 = vperm.xlu0 %16981, %v1474_v30   ;;  %v17806_v45 = vld [vmem:[%s24286_s1 + $0x59c] ss:$44 sps:$4 sm:$0xff]  }
 0x6ce   : > { %24414 = vst [vmem:[#allocation113_spill] sm:$0xff] %v20784_v33  ;;  %v20786_v35 = vpop.f32.mrb[248].mxu1  ;;  %v17866_v33 = vld [vmem:[%s24286_s1 + $0xad0] ss:$44 sps:$4 sm:$0xff]   ;;  %15329 = vmatprep.mubr.msk.bf16.mxu1 %vm5710_vm2, %v17865_v11 }
 0x6cf   : > { %v20791_v48 = vpop.f32.mrb[249].mxu1  ;;  %15330 = vmatmul.mubr.msk.bf16.gmra.mrb[48].mxu1 %vm5710_vm2, %v17866_v33  ;;  %v1476_v11 = vld [vmem:[%s24287_s2 + $0x1b0] sm:$0xff] }
 0x6d0   : > { %24415 = vst [vmem:[#allocation114_spill] sm:$0xff] %v20791_v48  ;;  %v20796_v46 = vpop.f32.mrb[250].mxu1 }
 0x6d1   : > { %v20815_v48 = vpop.f32.mrb[251].mxu1  ;;  %1822 = vperm.xlu0 %16981, %v1476_v11   ;;  %v1479_v11 = vld [vmem:[%s24287_s2 + $0x1c8] sm:$0xff] }
 0x6d2   : > { %7690 = vmatmul.mubr.bf16.gmra.mrb[56].mxu0 %v17800_v44  ;;  %v1475_v44 = vld [vmem:[%s24287_s2 + $0x1a8] sm:$0xff]  ;;  %24416 = vst [vmem:[#allocation115_spill] sm:$0xff] %v20815_v48  ;;  %v20820_v33 = vpop.f32.mrb[252].mxu1  ;;  %v1478_v48 = vld [vmem:[%s24287_s2 + $0x1c0] sm:$0xff] }
 0x6d3   : > { %7697 = vmatprep.mubr.bf16.mxu0 %v17803_v54  ;;  %v17805_v54 = vld [vmem:[%s24286_s1 + $0x540] ss:$44 sps:$4 sm:$0xff]   ;;  %1817 = vperm.xlu1 %16982, %v1475_v44   ;;  %v20822_v30 = vpop.f32.mrb[253].mxu1 }
 0x6d4   : > { %v20827_v44 = vpop.f32.mrb[254].mxu1 }
 0x6d5   : > { %v20829_v27 = vpop.f32.mrb[255].mxu1  ;;  %1832 = vperm.xlu0 %16981, %v1478_v48   ;;  %v1481_v48 = vld [vmem:[%s24287_s2 + $0x1d8] sm:$0xff] }
 0x6d7   : > { %1827 = vperm.xlu1 %16982, %v1477_v24   ;;  %v17811_v24 = vld [vmem:[%s24286_s1 + $0x5f4] ss:$44 sps:$4 sm:$0xff]  }
 0x6da   : > { %7698 = vmatmul.mubr.bf16.gmra.mrb[60].mxu0 %v17805_v54  ;;  %v1480_v54 = vld [vmem:[%s24287_s2 + $0x1d0] sm:$0xff] }
 0x6db   : > { %7705 = vmatprep.mubr.bf16.mxu0 %v17806_v45  ;;  %1837 = vperm.xlu1 %16982, %v1479_v11   ;;  %v17873_v45 = vld [vmem:[%s24286_s1 + $0xb28] ss:$44 sps:$4 sm:$0xff]   ;;  %v1482_v11 = vld [vmem:[%s24287_s2 + $0x1e0] sm:$0xff] }
 0x6dc   : > { %1842 = vperm.xlu0 %16981, %v1480_v54   ;;  %15333 = vmatprep.mubr.msk.bf16.mxu1 %vm5710_vm2, %v17873_v45  ;;  %v20859_v54 = vpop.permute.xlu0 %1552  ;;  %v1484_v45 = vld [vmem:[%s24287_s2 + $0x1f0] sm:$0xff] }
 0x6dd   : > { %24417 = vst [vmem:[#allocation116_spill] sm:$0xff] %v20859_v54  ;;  %15334 = vmatmul.mubr.msk.bf16.gmra.mrb[52].mxu1 %vm5710_vm2, %v17874_v55  ;;  %v20876_v55 = vpop.f32.mrb[0].mxu1 }
 0x6de   : > { %v20878_v54 = vpop.f32.mrb[1].mxu1 }
 0x6df   : > { %1847 = vperm.xlu1 %16982, %v1481_v48   ;;  %v17814_v48 = vld [vmem:[%s24286_s1 + $0x64c] ss:$44 sps:$4 sm:$0xff]  }
 0x6e0   : > { %1852 = vperm.xlu0 %16981, %v1482_v11   ;;  %v20871_v11 = vpop.permute.xlu1 %1562  ;;  %v20885_v19 = vpop.permute.xlu0 %1557 }
 0x6e1   : > { %24418 = vst [vmem:[#allocation117_spill] sm:$0xff] %v20871_v11  ;;  %24419 = vst [vmem:[#allocation118_spill] sm:$0xff] %v20885_v19 }
 0x6e2   : > { %7706 = vmatmul.mubr.bf16.gmra.mrb[64].mxu0 %v17808_v38  ;;  %v1483_v38 = vld [vmem:[%s24287_s2 + $0x1e8] sm:$0xff] }
 0x6e3   : > { %7713 = vmatprep.mubr.bf16.mxu0 %v17811_v24  ;;  %v17813_v24 = vld [vmem:[%s24286_s1 + $0x5f0] ss:$44 sps:$4 sm:$0xff]   ;;  %1857 = vperm.xlu1 %16982, %v1483_v38   ;;  %v20883_v38 = vpop.f32.mrb[2].mxu1 }
 0x6e4   : > { %1862 = vperm.xlu0 %16981, %v1484_v45   ;;  %v20887_v11 = vpop.f32.mrb[3].mxu1  ;;  %v1486_v45 = vld [vmem:[%s24287_s2 + $0x200] sm:$0xff]  ;;  %v20892_v22 = vpop.permute.xlu1 %1567 }
 0x6e5   : > { %24420 = vst [vmem:[#allocation119_spill] sm:$0xff] %v20892_v22  ;;  %v1489_v22 = vld [vmem:[%s24287_s2 + $0x218] sm:$0xff] }
 0x6e7   : > { %1867 = vperm.xlu1 %16982, %v1485_v14   ;;  %v17816_v14 = vld [vmem:[%s24286_s1 + $0x648] ss:$44 sps:$4 sm:$0xff]  }
 0x6e8   : > { %1872 = vperm.xlu0 %16981, %v1486_v45   ;;  %v20906_v45 = vpop.permute.xlu0 %1572  ;;  %v20914_v19 = vpop.permute.xlu1 %1577 }
 0x6e9   : > { %24421 = vst [vmem:[#allocation120_spill] sm:$0xff] %v20906_v45  ;;  %24422 = vst [vmem:[#allocation121_spill] sm:$0xff] %v20914_v19 }
 0x6ea   : > { %7714 = vmatmul.mubr.bf16.gmra.mrb[68].mxu0 %v17813_v24  ;;  %v17819_v24 = vld [vmem:[%s24286_s1 + $0x6a4] ss:$44 sps:$4 sm:$0xff]  }
 0x6eb   : > { %7721 = vmatprep.mubr.bf16.mxu0 %v17814_v48  ;;  %1877 = vperm.xlu1 %16982, %v1487_v9   ;;  %v1488_v48 = vld [vmem:[%s24287_s2 + $0x210] sm:$0xff]  ;;  %v17881_v9 = vld [vmem:[%s24286_s1 + $0xbd8] ss:$44 sps:$4 sm:$0xff]  }
 0x6ec   : > { %1882 = vperm.xlu0 %16981, %v1488_v48   ;;  %v17882_v48 = vld [vmem:[%s24286_s1 + $0xc30] ss:$44 sps:$4 sm:$0xff]   ;;  %15337 = vmatprep.mubr.msk.bf16.mxu1 %vm5710_vm2, %v17881_v9  ;;  %v20933_v19 = vpop.permute.xlu0 %1582 }
 0x6ed   : > { %15338 = vmatmul.mubr.msk.bf16.gmra.mrb[56].mxu1 %vm5710_vm2, %v17882_v48  ;;  %v20940_v48 = vpop.permute.xlu1 %1587 }
 0x6ef   : > { %1887 = vperm.xlu1 %16982, %v1489_v22   ;;  %v1491_v22 = vld [vmem:[%s24287_s2 + $0x228] sm:$0xff] }
 0x6f0   : > { %1892 = vperm.xlu0 %16981, %v1490_v53   ;;  %v1492_v53 = vld [vmem:[%s24287_s2 + $0x230] sm:$0xff]  ;;  %v20938_v9 = vpop.f32.mrb[4].mxu1  ;;  %v20949_v4 = vpop.permute.xlu0 %1592 }
 0x6f1   : > { %v20942_v45 = vpop.f32.mrb[5].mxu1  ;;  %v20956_v42 = vpop.permute.xlu1 %1597 }
 0x6f2   : > { %7722 = vmatmul.mubr.bf16.gmra.mrb[72].mxu0 %v17816_v14  ;;  %v17821_v14 = vld [vmem:[%s24286_s1 + $0x6a0] ss:$44 sps:$4 sm:$0xff]   ;;  %v20947_v60 = vpop.f32.mrb[6].mxu1 }
 0x6f3   : > { %7729 = vmatprep.mubr.bf16.mxu0 %v17819_v24  ;;  %1897 = vperm.xlu1 %16982, %v1491_v22   ;;  %v17822_v24 = vld [vmem:[%s24286_s1 + $0x6fc] ss:$44 sps:$4 sm:$0xff]   ;;  %v20951_v34 = vpop.f32.mrb[7].mxu1 }
 0x6f4   : > { %1902 = vperm.xlu0 %16981, %v1492_v53   ;;  %v1493_v22 = vld [vmem:[%s24287_s2 + $0x238] sm:$0xff]  ;;  %v1494_v53 = vld [vmem:[%s24287_s2 + $0x240] sm:$0xff] }
 0x6f5   : > { %v20972_v39 = vpop.permute.xlu1 %1607 }
 0x6f7   : > { %1907 = vperm.xlu1 %16982, %v1493_v22   ;;  %v20967_v22 = vpop.permute.xlu0 %1602 }
 0x6f8   : > { %1912 = vperm.xlu0 %16981, %v1494_v53   ;;  %v1496_v53 = vld [vmem:[%s24287_s2 + $0x250] sm:$0xff] }
 0x6fa   : > { %7730 = vmatmul.mubr.bf16.gmra.mrb[76].mxu0 %v17821_v14  ;;  %v17824_v14 = vld [vmem:[%s24286_s1 + $0x6f8] ss:$44 sps:$4 sm:$0xff]  }
 0x6fb   : > { %7737 = vmatprep.mubr.bf16.mxu0 %v17822_v24  ;;  %1917 = vperm.xlu1 %16982, %v1495_v1   ;;  %v17827_v24 = vld [vmem:[%s24286_s1 + $0x754] ss:$44 sps:$4 sm:$0xff]   ;;  %v20980_v12 = vpop.permute.xlu0 %1612 }
 0x6fc   : > { %1922 = vperm.xlu0 %16981, %v1496_v53   ;;  %v17889_v1 = vld [vmem:[%s24286_s1 + $0xc88] ss:$44 sps:$4 sm:$0xff]   ;;  %v17890_v53 = vld [vmem:[%s24286_s1 + $0xce0] ss:$44 sps:$4 sm:$0xff]  }
 0x6fd   : > { %15341 = vmatprep.mubr.msk.bf16.mxu1 %vm5710_vm2, %v17889_v1  ;;  %v1500_v1 = vld [vmem:[%s24287_s2 + $0x270] sm:$0xff] }
 0x6fe   : > { %15342 = vmatmul.mubr.msk.bf16.gmra.mrb[60].mxu1 %vm5710_vm2, %v17890_v53  ;;  %v21006_v53 = vpop.f32.mrb[8].mxu1 }
 0x6ff   : > { %1927 = vperm.xlu1 %16982, %v1497_v25   ;;  %v1499_v25 = vld [vmem:[%s24287_s2 + $0x268] sm:$0xff]  ;;  %v21010_v2 = vpop.f32.mrb[9].mxu1 }
 0x700   : > { %1932 = vperm.xlu0 %16981, %v1498_v0   ;;  %v21001_v0 = vpop.permute.xlu0 %1622  ;;  %v21015_v59 = vpop.f32.mrb[10].mxu1 }
 0x701   : > { %24423 = vst [vmem:[#allocation122_spill] sm:$0xff] %v21015_v59  ;;  %v21019_v41 = vpop.f32.mrb[11].mxu1 }
 0x702   : > { %7738 = vmatmul.mubr.bf16.gmra.mrb[80].mxu0 %v17824_v14  ;;  %v20989_v14 = vpop.permute.xlu1 %1617 }
 0x703   : > { %7745 = vmatprep.mubr.bf16.mxu0 %v17827_v24  ;;  %v17829_v24 = vld [vmem:[%s24286_s1 + $0x750] ss:$44 sps:$4 sm:$0xff]   ;;  %1937 = vperm.xlu1 %16982, %v1499_v25  }
 0x704   : > { %1942 = vperm.xlu0 %16981, %v1500_v1   ;;  %v1501_v25 = vld [vmem:[%s24287_s2 + $0x278] sm:$0xff]  ;;  %v21017_v49 = vpop.permute.xlu0 %1632  ;;  %v1502_v1 = vld [vmem:[%s24287_s2 + $0x280] sm:$0xff] }
 0x706   : > { %v21008_v17 = vpop.permute.xlu1 %1627 }
 0x707   : > { %1947 = vperm.xlu1 %16982, %v1501_v25  }
 0x708   : > { %1952 = vperm.xlu0 %16981, %v1502_v1   ;;  %v21035_v25 = vpop.permute.xlu0 %1642  ;;  %v1504_v1 = vld [vmem:[%s24287_s2 + $0x290] sm:$0xff] }
 0x70a   : > { %7746 = vmatmul.mubr.bf16.gmra.mrb[84].mxu0 %v17829_v24  ;;  %v21024_v32 = vpop.permute.xlu1 %1637  ;;  %v17832_v24 = vld [vmem:[%s24286_s1 + $0x7a8] ss:$44 sps:$4 sm:$0xff]  }
 0x70b   : > { %7753 = vmatprep.mubr.bf16.mxu0 %v17830_v28  ;;  %1957 = vperm.xlu1 %16982, %v1503_v20   ;;  %v17835_v28 = vld [vmem:[%s24286_s1 + $0x804] ss:$44 sps:$4 sm:$0xff]  }
 0x70c   : > { %1962 = vperm.xlu0 %16981, %v1504_v1   ;;  %v17897_v20 = vld [vmem:[%s24286_s1 + $0xd38] ss:$44 sps:$4 sm:$0xff]   ;;  %v21048_v61 = vpop.permute.xlu0 %1652  ;;  %v17898_v1 = vld [vmem:[%s24286_s1 + $0xd90] ss:$44 sps:$4 sm:$0xff]  }
 0x70d   : > { %15345 = vmatprep.mubr.msk.bf16.mxu1 %vm5710_vm2, %v17897_v20  ;;  %v1508_v20 = vld [vmem:[%s24287_s2 + $0x2b0] sm:$0xff] }
 0x70e   : > { %v21040_v13 = vpop.permute.xlu1 %1647  ;;  %15346 = vmatmul.mubr.msk.bf16.gmra.mrb[64].mxu1 %vm5710_vm2, %v17898_v1 }
 0x70f   : > { %1967 = vperm.xlu1 %16982, %v1505_v7   ;;  %v1507_v7 = vld [vmem:[%s24287_s2 + $0x2a8] sm:$0xff]  ;;  %v21074_v1 = vpop.f32.mrb[12].mxu1 }
 0x710   : > { %1972 = vperm.xlu0 %16981, %v1506_v56   ;;  %v21069_v56 = vpop.permute.xlu0 %1662  ;;  %24424 = vst [vmem:[#allocation123_spill] sm:$0xff] %v21074_v1  ;;  %v21078_v36 = vpop.f32.mrb[13].mxu1 }
 0x711   : > { %24425 = vst [vmem:[#allocation124_spill] sm:$0xff] %v21078_v36  ;;  %v21083_v31 = vpop.f32.mrb[14].mxu1  ;;  %v1511_v36 = vld [vmem:[%s24287_s2 + $0x2c8] sm:$0xff] }
 0x712   : > { %7754 = vmatmul.mubr.bf16.gmra.mrb[88].mxu0 %v17832_v24  ;;  %v21057_v24 = vpop.permute.xlu1 %1657  ;;  %24426 = vst [vmem:[#allocation125_spill] sm:$0xff] %v21083_v31  ;;  %v21087_v23 = vpop.f32.mrb[15].mxu1 }
 0x713   : > { %7761 = vmatprep.mubr.bf16.mxu0 %v17835_v28  ;;  %v17837_v28 = vld [vmem:[%s24286_s1 + $0x800] ss:$44 sps:$4 sm:$0xff]   ;;  %1977 = vperm.xlu1 %16982, %v1507_v7   ;;  %v1509_v7 = vld [vmem:[%s24287_s2 + $0x2b8] sm:$0xff]  ;;  %24428 = vst [vmem:[#allocation127_spill] sm:$0xff] %v21087_v23 }
 0x714   : > { %1982 = vperm.xlu0 %16981, %v1508_v20   ;;  %v21085_v26 = vpop.permute.xlu0 %1672  ;;  %v1510_v20 = vld [vmem:[%s24287_s2 + $0x2c0] sm:$0xff]  ;;  %v1513_v23 = vld [vmem:[%s24287_s2 + $0x2d8] sm:$0xff] }
 0x715   : > { %24427 = vst [vmem:[#allocation126_spill] sm:$0xff] %v21085_v26 }
 0x716   : > { %v21076_v43 = vpop.permute.xlu1 %1667 }
 0x717   : > { %1987 = vperm.xlu1 %16982, %v1509_v7  }
 0x718   : > { %1992 = vperm.xlu0 %16981, %v1510_v20   ;;  %v21103_v7 = vpop.permute.xlu0 %1682  ;;  %v1512_v20 = vld [vmem:[%s24287_s2 + $0x2d0] sm:$0xff] }
 0x719   : > { %24430 = vst [vmem:[#allocation129_spill] sm:$0xff] %v21103_v7  ;;  %v1514_v7 = vld [vmem:[%s24287_s2 + $0x2e0] sm:$0xff] }
 0x71a   : > { %7762 = vmatmul.mubr.bf16.gmra.mrb[92].mxu0 %v17837_v28  ;;  %v21092_v1 = vpop.permute.xlu1 %1677  ;;  %v17840_v28 = vld [vmem:[%s24286_s1 + $0x858] ss:$44 sps:$4 sm:$0xff]  }
 0x71b   : > { %7769 = vmatprep.mubr.bf16.mxu0 %v17838_v52  ;;  %24429 = vst [vmem:[#allocation128_spill] sm:$0xff] %v21092_v1  ;;  %1997 = vperm.xlu1 %16982, %v1511_v36   ;;  %v17843_v52 = vld [vmem:[%s24286_s1 + $0x8b4] ss:$44 sps:$4 sm:$0xff]  }
 0x71c   : > { %2002 = vperm.xlu0 %16981, %v1512_v20   ;;  %v17905_v36 = vld [vmem:[%s24286_s1 + $0xde8] ss:$44 sps:$4 sm:$0xff]   ;;  %v21116_v1 = vpop.permute.xlu0 %1692  ;;  %v17906_v20 = vld [vmem:[%s24286_s1 + $0xe40] ss:$44 sps:$4 sm:$0xff]  }
 0x71d   : > { %24432 = vst [vmem:[#allocation131_spill] sm:$0xff] %v21116_v1  ;;  %15349 = vmatprep.mubr.msk.bf16.mxu1 %vm5710_vm2, %v17905_v36  ;;  %v17846_v1 = vld [vmem:[%s24286_s1 + $0x90c] ss:$44 sps:$4 sm:$0xff]   ;;  %v1516_v36 = vld [vmem:[%s24287_s2 + $0x2f0] sm:$0xff] }
 0x71e   : > { %v21108_v31 = vpop.permute.xlu1 %1687  ;;  %15350 = vmatmul.mubr.msk.bf16.gmra.mrb[68].mxu1 %vm5710_vm2, %v17906_v20 }
 0x71f   : > { %24431 = vst [vmem:[#allocation130_spill] sm:$0xff] %v21108_v31  ;;  %2007 = vperm.xlu1 %16982, %v1513_v23   ;;  %v1515_v23 = vld [vmem:[%s24287_s2 + $0x2e8] sm:$0xff] }
 0x720   : > { %2012 = vperm.xlu0 %16981, %v1514_v7   ;;  %v21137_v7 = vpop.permute.xlu0 %1702  ;;  %v21142_v20 = vpop.f32.mrb[16].mxu1 }
 0x721   : > { %24434 = vst [vmem:[#allocation133_spill] sm:$0xff] %v21137_v7  ;;  %24435 = vst [vmem:[#allocation134_spill] sm:$0xff] %v21142_v20  ;;  %v21146_v31 = vpop.f32.mrb[17].mxu1 }
 0x722   : > { %7770 = vmatmul.mubr.bf16.gmra.mrb[96].mxu0 %v17840_v28  ;;  %v21125_v28 = vpop.permute.xlu1 %1697  ;;  %24437 = vst [vmem:[#allocation136_spill] sm:$0xff] %v21146_v31  ;;  %v21151_v16 = vpop.f32.mrb[18].mxu1 }
 0x723   : > { %7777 = vmatprep.mubr.bf16.mxu0 %v17843_v52  ;;  %24433 = vst [vmem:[#allocation132_spill] sm:$0xff] %v21125_v28  ;;  %v17845_v52 = vld [vmem:[%s24286_s1 + $0x8b0] ss:$44 sps:$4 sm:$0xff]   ;;  %2017 = vperm.xlu1 %16982, %v1515_v23   ;;  %24438 = vst [vmem:[#allocation137_spill] sm:$0xff] %v21151_v16  ;;  %v21155_v26 = vpop.f32.mrb[19].mxu1 }
 0x724   : > { %2022 = vperm.xlu0 %16981, %v1516_v36   ;;  %v1517_v23 = vld [vmem:[%s24287_s2 + $0x2f8] sm:$0xff]  ;;  %v21153_v7 = vpop.permute.xlu0 %1712  ;;  %24440 = vst [vmem:[#allocation139_spill] sm:$0xff] %v21155_v26  ;;  %v1518_v36 = vld [vmem:[%s24287_s2 + $0x300] sm:$0xff] }
 0x725   : > { %24439 = vst [vmem:[#allocation138_spill] sm:$0xff] %v21153_v7  ;;  %v1521_v7 = vld [vmem:[%s24287_s2 + $0x318] sm:$0xff] }
 0x726   : > { %v21144_v28 = vpop.permute.xlu1 %1707 }
 0x727   : > { %24436 = vst [vmem:[#allocation135_spill] sm:$0xff] %v21144_v28  ;;  %2027 = vperm.xlu1 %16982, %v1517_v23   ;;  %v1519_v28 = vld [vmem:[%s24287_s2 + $0x308] sm:$0xff] }
 0x728   : > { %2032 = vperm.xlu0 %16981, %v1518_v36   ;;  %v21171_v23 = vpop.permute.xlu0 %1722  ;;  %v1520_v36 = vld [vmem:[%s24287_s2 + $0x310] sm:$0xff] }
 0x729   : > { %24442 = vst [vmem:[#allocation141_spill] sm:$0xff] %v21171_v23  ;;  %v1522_v23 = vld [vmem:[%s24287_s2 + $0x320] sm:$0xff] }
 0x72a   : > { %7778 = vmatmul.mubr.bf16.gmra.mrb[100].mxu0 %v17845_v52  ;;  %v21160_v20 = vpop.permute.xlu1 %1717  ;;  %v17848_v52 = vld [vmem:[%s24286_s1 + $0x908] ss:$44 sps:$4 sm:$0xff]  }
 0x72b   : > { %7785 = vmatprep.mubr.bf16.mxu0 %v17846_v1  ;;  %24441 = vst [vmem:[#allocation140_spill] sm:$0xff] %v21160_v20  ;;  %2037 = vperm.xlu1 %16982, %v1519_v28   ;;  %v17851_v1 = vld [vmem:[%s24286_s1 + $0x964] ss:$44 sps:$4 sm:$0xff]  }
 0x72c   : > { %2042 = vperm.xlu0 %16981, %v1520_v36   ;;  %v17913_v28 = vld [vmem:[%s24286_s1 + $0xe98] ss:$44 sps:$4 sm:$0xff]   ;;  %v21184_v16 = vpop.permute.xlu0 %1732  ;;  %v17914_v36 = vld [vmem:[%s24286_s1 + $0xef0] ss:$44 sps:$4 sm:$0xff]  }
 0x72d   : > { %24444 = vst [vmem:[#allocation143_spill] sm:$0xff] %v21184_v16  ;;  %15353 = vmatprep.mubr.msk.bf16.mxu1 %vm5710_vm2, %v17913_v28  ;;  %v17854_v16 = vld [vmem:[%s24286_s1 + $0x9bc] ss:$44 sps:$4 sm:$0xff]   ;;  %v1524_v28 = vld [vmem:[%s24287_s2 + $0x330] sm:$0xff] }
 0x72e   : > { %v21176_v20 = vpop.permute.xlu1 %1727  ;;  %15354 = vmatmul.mubr.msk.bf16.gmra.mrb[72].mxu1 %vm5710_vm2, %v17914_v36  ;;  %v21210_v36 = vpop.f32.mrb[20].mxu1 }
 0x72f   : > { %24443 = vst [vmem:[#allocation142_spill] sm:$0xff] %v21176_v20  ;;  %2047 = vperm.xlu1 %16982, %v1521_v7   ;;  %v1523_v7 = vld [vmem:[%s24287_s2 + $0x328] sm:$0xff]  ;;  %24447 = vst [vmem:[#allocation146_spill] sm:$0xff] %v21210_v36  ;;  %v21214_v20 = vpop.f32.mrb[21].mxu1 }
 0x730   : > { %2052 = vperm.xlu0 %16981, %v1522_v23   ;;  %v21205_v23 = vpop.permute.xlu0 %1742  ;;  %24449 = vst [vmem:[#allocation148_spill] sm:$0xff] %v21214_v20  ;;  %v21219_v26 = vpop.f32.mrb[22].mxu1  ;;  %v1527_v36 = vld [vmem:[%s24287_s2 + $0x348] sm:$0xff] }
 0x731   : > { %24446 = vst [vmem:[#allocation145_spill] sm:$0xff] %v21205_v23  ;;  %24450 = vst [vmem:[#allocation149_spill] sm:$0xff] %v21219_v26  ;;  %v21223_v31 = vpop.f32.mrb[23].mxu1 }
 0x732   : > { %7786 = vmatmul.mubr.bf16.gmra.mrb[104].mxu0 %v17848_v52  ;;  %v21193_v52 = vpop.permute.xlu1 %1737  ;;  %24452 = vst [vmem:[#allocation151_spill] sm:$0xff] %v21223_v31 }
 0x733   : > { %7793 = vmatprep.mubr.bf16.mxu0 %v17851_v1  ;;  %24445 = vst [vmem:[#allocation144_spill] sm:$0xff] %v21193_v52  ;;  %v17853_v1 = vld [vmem:[%s24286_s1 + $0x960] ss:$44 sps:$4 sm:$0xff]   ;;  %2057 = vperm.xlu1 %16982, %v1523_v7   ;;  %v1525_v7 = vld [vmem:[%s24287_s2 + $0x338] sm:$0xff] }
 0x734   : > { %2062 = vperm.xlu0 %16981, %v1524_v28   ;;  %v21221_v23 = vpop.permute.xlu0 %1752  ;;  %v1526_v28 = vld [vmem:[%s24287_s2 + $0x340] sm:$0xff] }
 0x735   : > { %24451 = vst [vmem:[#allocation150_spill] sm:$0xff] %v21221_v23  ;;  %v1529_v23 = vld [vmem:[%s24287_s2 + $0x358] sm:$0xff] }
 0x736   : > { %v21212_v52 = vpop.permute.xlu1 %1747 }
 0x737   : > { %24448 = vst [vmem:[#allocation147_spill] sm:$0xff] %v21212_v52  ;;  %2067 = vperm.xlu1 %16982, %v1525_v7  }
 0x738   : > { %2072 = vperm.xlu0 %16981, %v1526_v28   ;;  %v21239_v7 = vpop.permute.xlu0 %1762  ;;  %v1528_v28 = vld [vmem:[%s24287_s2 + $0x350] sm:$0xff] }
 0x739   : > { %24454 = vst [vmem:[#allocation153_spill] sm:$0xff] %v21239_v7  ;;  %v1530_v7 = vld [vmem:[%s24287_s2 + $0x360] sm:$0xff] }
 0x73a   : > { %7794 = vmatmul.mubr.bf16.gmra.mrb[108].mxu0 %v17853_v1  ;;  %v21228_v52 = vpop.permute.xlu1 %1757  ;;  %v17856_v1 = vld [vmem:[%s24286_s1 + $0x9b8] ss:$44 sps:$4 sm:$0xff]  }
 0x73b   : > { %7801 = vmatprep.mubr.bf16.mxu0 %v17854_v16  ;;  %24453 = vst [vmem:[#allocation152_spill] sm:$0xff] %v21228_v52  ;;  %2077 = vperm.xlu1 %16982, %v1527_v36   ;;  %v17859_v16 = vld [vmem:[%s24286_s1 + $0xa14] ss:$44 sps:$4 sm:$0xff]  }
 0x73c   : > { %2082 = vperm.xlu0 %16981, %v1528_v28   ;;  %v17921_v36 = vld [vmem:[%s24286_s1 + $0xf48] ss:$44 sps:$4 sm:$0xff]   ;;  %v21252_v26 = vpop.permute.xlu0 %1772  ;;  %v17922_v28 = vld [vmem:[%s24286_s1 + $0xfa0] ss:$44 sps:$4 sm:$0xff]  }
 0x73d   : > { %24456 = vst [vmem:[#allocation155_spill] sm:$0xff] %v21252_v26  ;;  %15357 = vmatprep.mubr.msk.bf16.mxu1 %vm5710_vm2, %v17921_v36  ;;  %v17862_v26 = vld [vmem:[%s24286_s1 + $0xa6c] ss:$44 sps:$4 sm:$0xff]   ;;  %v1532_v36 = vld [vmem:[%s24287_s2 + $0x370] sm:$0xff] }
 0x73e   : > { %v21244_v52 = vpop.permute.xlu1 %1767  ;;  %15358 = vmatmul.mubr.msk.bf16.gmra.mrb[76].mxu1 %vm5710_vm2, %v17922_v28 }
 0x73f   : > { %24455 = vst [vmem:[#allocation154_spill] sm:$0xff] %v21244_v52  ;;  %2087 = vperm.xlu1 %16982, %v1529_v23   ;;  %v1531_v23 = vld [vmem:[%s24287_s2 + $0x368] sm:$0xff] }
 0x740   : > { %2092 = vperm.xlu0 %16981, %v1530_v7   ;;  %v21273_v7 = vpop.permute.xlu0 %1782  ;;  %v21278_v28 = vpop.f32.mrb[24].mxu1 }
 0x741   : > { %24458 = vst [vmem:[#allocation157_spill] sm:$0xff] %v21273_v7  ;;  %24459 = vst [vmem:[#allocation158_spill] sm:$0xff] %v21278_v28  ;;  %v21282_v52 = vpop.f32.mrb[25].mxu1 }
 0x742   : > { %7802 = vmatmul.mubr.bf16.gmra.mrb[112].mxu0 %v17856_v1  ;;  %v21261_v1 = vpop.permute.xlu1 %1777  ;;  %24461 = vst [vmem:[#allocation160_spill] sm:$0xff] %v21282_v52  ;;  %v21287_v31 = vpop.f32.mrb[26].mxu1 }
 0x743   : > { %7809 = vmatprep.mubr.bf16.mxu0 %v17859_v16  ;;  %24457 = vst [vmem:[#allocation156_spill] sm:$0xff] %v21261_v1  ;;  %v17861_v16 = vld [vmem:[%s24286_s1 + $0xa10] ss:$44 sps:$4 sm:$0xff]   ;;  %2097 = vperm.xlu1 %16982, %v1531_v23   ;;  %24462 = vst [vmem:[#allocation161_spill] sm:$0xff] %v21287_v31  ;;  %v21291_v20 = vpop.f32.mrb[27].mxu1 }
 0x744   : > { %2102 = vperm.xlu0 %16981, %v1532_v36   ;;  %v1533_v23 = vld [vmem:[%s24287_s2 + $0x378] sm:$0xff]  ;;  %v21289_v7 = vpop.permute.xlu0 %1792  ;;  %24464 = vst [vmem:[#allocation163_spill] sm:$0xff] %v21291_v20  ;;  %v1534_v36 = vld [vmem:[%s24287_s2 + $0x380] sm:$0xff] }
 0x745   : > { %24463 = vst [vmem:[#allocation162_spill] sm:$0xff] %v21289_v7 }
 0x746   : > { %v21280_v1 = vpop.permute.xlu1 %1787 }
 0x747   : > { %24460 = vst [vmem:[#allocation159_spill] sm:$0xff] %v21280_v1  ;;  %2107 = vperm.xlu1 %16982, %v1533_v23  }
 0x748   : > { %2112 = vperm.xlu0 %16981, %v1534_v36   ;;  %v17867_v36 = vld [vmem:[%s24286_s1 + $0xac4] ss:$44 sps:$4 sm:$0xff]   ;;  %v21308_v20 = vpop.permute.xlu0 %1802 }
 0x749   : > { %24466 = vst [vmem:[#allocation165_spill] sm:$0xff] %v21308_v20 }
 0x74a   : > { %7810 = vmatmul.mubr.bf16.gmra.mrb[116].mxu0 %v17861_v16  ;;  %v21296_v28 = vpop.permute.xlu1 %1797  ;;  %v1535_v16 = vld [vmem:[%s24287_s2 + $0x388] sm:$0xff] }
 0x74b   : > { %7817 = vmatprep.mubr.bf16.mxu0 %v17862_v26  ;;  %24465 = vst [vmem:[#allocation164_spill] sm:$0xff] %v21296_v28  ;;  %v17864_v26 = vld [vmem:[%s24286_s1 + $0xa68] ss:$44 sps:$4 sm:$0xff]   ;;  %2117 = vperm.xlu1 %16982, %v1535_v16   ;;  %v1537_v16 = vld [vmem:[%s24287_s2 + $0x398] sm:$0xff] }
 0x74c   : > { %v1536_v28 = vld [vmem:[%s24287_s2 + $0x390] sm:$0xff] }
 0x74d   : > { %v7603_v1 = vpop.f32.mrb[12].mxu0  ;;  %2122 = vperm.xlu0 %16981, %v1536_v28   ;;  %v17930_v28 = vld [vmem:[%s24286_s1 + $0x1050] ss:$44 sps:$4 sm:$0xff]  }
 0x74e   : > { %v15447_v23 = vadd.f32 %v7603_v1, %v20933_v19  ;;  %v7605_v31 = vpop.f32.mrb[13].mxu0  ;;  %v21315_v1 = vpop.permute.xlu1 %1807 }
 0x74f   : > { %v7606_v7 = vpop.f32.mrb[14].mxu0  ;;  %2127 = vperm.xlu1 %16982, %v1537_v16   ;;  %v17870_v16 = vld [vmem:[%s24286_s1 + $0xb1c] ss:$44 sps:$4 sm:$0xff]  }
 0x750   : > { %v15448_v52 = vadd.f32 %v15447_v23, %v20009_v37  ;;  %v15449_v31 = vadd.f32 %v7606_v7, %v20940_v48  ;;  %v7608_v19 = vpop.f32.mrb[15].mxu0  ;;  %v17929_v37 = vld [vmem:[%s24286_s1 + $0xff8] ss:$44 sps:$4 sm:$0xff]   ;;  %v21325_v48 = vpop.permute.xlu0 %1812  ;;  %v1539_v23 = vld [vmem:[%s24287_s2 + $0x3a8] sm:$0xff] }
 0x751   : > { %v1538_v7 = vld [vmem:[%s24287_s2 + $0x3a0] sm:$0xff]  ;;  %15361 = vmatprep.mubr.msk.bf16.mxu1 %vm5710_vm2, %v17929_v37 }
 0x752   : > { %v15450_v59 = vadd.f32 %v15449_v31, %v20021_v50  ;;  %v8694_v20 = vadd.f32 %v15448_v52, %v20786_v35  ;;  %7818 = vmatmul.mubr.bf16.gmra.mrb[120].mxu0 %v17864_v26  ;;  %2132 = vperm.xlu0 %16981, %v1538_v7   ;;  %v21335_v52 = vpop.permute.xlu1 %1817 }
 0x753   : > { %7825 = vmatprep.mubr.bf16.mxu0 %v17867_v36  ;;  %24467 = vst [vmem:[#allocation166_spill] sm:$0xff] %v21335_v52  ;;  %15362 = vmatmul.mubr.msk.bf16.gmra.mrb[80].mxu1 %vm5710_vm2, %v17930_v28 }
 0x754   : > { %v8697_v50 = vadd.f32 %v15450_v59, %v20796_v46  ;;  %v9186_v26 = vmax.f32 %v8694_v20, 0.0  ;;  %v17869_v59 = vld [vmem:[%s24286_s1 + $0xac0] ss:$44 sps:$4 sm:$0xff]   ;;  %2137 = vperm.xlu1 %16982, %v1539_v23   ;;  %v21348_v37 = vpop.permute.xlu0 %1822  ;;  %v1540_v20 = vld [vmem:[%s24287_s2 + $0x3b0] sm:$0xff] }
 0x755   : > { %v7611_v35 = vpop.f32.mrb[16].mxu0  ;;  %24468 = vst [vmem:[#allocation167_spill] sm:$0xff] %v21348_v37  ;;  %v1541_v37 = vld [vmem:[%s24287_s2 + $0x3b8] sm:$0xff] }
 0x756   : > { %v9187_v36 = vmax.f32 %v8697_v50, 0.0  ;;  %v15451_v31 = vadd.f32 %v7611_v35, %v20949_v4  ;;  %v7613_v19 = vpop.f32.mrb[17].mxu0  ;;  %2142 = vperm.xlu0 %16981, %v1540_v20   ;;  %v21357_v35 = vpop.f32.mrb[28].mxu1 }
 0x757   : > { %v7614_v46 = vpop.f32.mrb[18].mxu0  ;;  %v21359_v23 = vpop.permute.xlu1 %1827 }
 0x758   : > { %v21353_v7 = vpack.c.bf16 %v9187_v36, %v9186_v26  ;;  %v15452_v4 = vadd.f32 %v15451_v31, %v20031_v58  ;;  %v15453_v28 = vadd.f32 %v7614_v46, %v20956_v42  ;;  %v7616_v50 = vpop.f32.mrb[19].mxu0  ;;  %v21361_v19 = vpop.f32.mrb[29].mxu1  ;;  %2147 = vperm.xlu1 %16982, %v1541_v37   ;;  %v1542_v31 = vld [vmem:[%s24287_s2 + $0x3c0] sm:$0xff] }
 0x759   : > { %v21368_v58 = vpop.f32.mrb[30].mxu1  ;;  %v21370_v42 = vpop.permute.xlu0 %1832 }
 0x75a   : > { %24469 = vst [vmem:[#allocation168_spill] sm:$0xff] %v21353_v7  ;;  %v15454_v52 = vadd.f32 %v15453_v28, %v20037_v63  ;;  %v8702_v26 = vadd.f32 %v15452_v4, %v20822_v30  ;;  %7826 = vmatmul.mubr.bf16.gmra.mrb[124].mxu0 %v17869_v59  ;;  %v21372_v36 = vpop.f32.mrb[31].mxu1  ;;  %2152 = vperm.xlu0 %16981, %v1542_v31   ;;  %v1543_v30 = vld [vmem:[%s24287_s2 + $0x3c8] sm:$0xff]  ;;  %v17872_v28 = vld [vmem:[%s24286_s1 + $0xb18] ss:$44 sps:$4 sm:$0xff]  }
 0x75b   : > { %7833 = vmatprep.mubr.bf16.mxu0 %v17870_v16  ;;  %v21378_v63 = vpop.permute.xlu1 %1837 }
 0x75c   : > { %v8705_v46 = vadd.f32 %v15454_v52, %v20829_v27  ;;  %v9188_v59 = vmax.f32 %v8702_v26, 0.0  ;;  %2157 = vperm.xlu1 %16982, %v1543_v30   ;;  %v17875_v27 = vld [vmem:[%s24286_s1 + $0xb74] ss:$44 sps:$4 sm:$0xff]  }
 0x75d   : > { %v7619_v20 = vpop.f32.mrb[20].mxu0  ;;  %v21390_v52 = vpop.permute.xlu0 %1842  ;;  %v1544_v26 = vld [vmem:[%s24287_s2 + $0x3d0] sm:$0xff] }
 0x75e   : > { %v9189_v16 = vmax.f32 %v8705_v46, 0.0  ;;  %v15455_v37 = vadd.f32 %v7619_v20, %v20967_v22  ;;  %v7621_v4 = vpop.f32.mrb[21].mxu0  ;;  %24470 = vst [vmem:[#allocation169_spill] sm:$0xff] %v21390_v52  ;;  %2162 = vperm.xlu0 %16981, %v1544_v26  }
 0x75f   : > { %v7622_v50 = vpop.f32.mrb[22].mxu0  ;;  %v21399_v30 = vpop.permute.xlu1 %1847  ;;  %v1545_v4 = vld [vmem:[%s24287_s2 + $0x3d8] sm:$0xff] }
 0x760   : > { %v21395_v31 = vpack.c.bf16 %v9189_v16, %v9188_v59  ;;  %v15456_v22 = vadd.f32 %v15455_v37, %v20042_v3  ;;  %v15457_v46 = vadd.f32 %v7622_v50, %v20972_v39  ;;  %v7624_v20 = vpop.f32.mrb[23].mxu0  ;;  %2167 = vperm.xlu1 %16982, %v1545_v4   ;;  %v17937_v3 = vld [vmem:[%s24286_s1 + $0x10a8] ss:$44 sps:$4 sm:$0xff]   ;;  %v1546_v59 = vld [vmem:[%s24287_s2 + $0x3e0] sm:$0xff] }
 0x761   : > { %v21409_v39 = vpop.permute.xlu0 %1852  ;;  %v17938_v16 = vld [vmem:[%s24286_s1 + $0x1100] ss:$44 sps:$4 sm:$0xff]   ;;  %15365 = vmatprep.mubr.msk.bf16.mxu1 %vm5710_vm2, %v17937_v3 }
 0x762   : > { %24471 = vst [vmem:[#allocation170_spill] sm:$0xff] %v21395_v31  ;;  %v8710_v7 = vadd.f32 %v15456_v22, %v20820_v33  ;;  %v15458_v52 = vadd.f32 %v15457_v46, %v20045_v6  ;;  %7834 = vmatmul.mubr.bf16.gmra.mrb[128].mxu0 %v17872_v28  ;;  %2172 = vperm.xlu0 %16981, %v1546_v59   ;;  %v1547_v28 = vld [vmem:[%s24287_s2 + $0x3e8] sm:$0xff] }
 0x763   : > { %7841 = vmatprep.mubr.bf16.mxu0 %v17875_v27  ;;  %v21419_v37 = vpop.permute.xlu1 %1857  ;;  %15366 = vmatmul.mubr.msk.bf16.gmra.mrb[84].mxu1 %vm5710_vm2, %v17938_v16  ;;  %v17878_v46 = vld [vmem:[%s24286_s1 + $0xbcc] ss:$44 sps:$4 sm:$0xff]   ;;  %v21441_v16 = vpop.f32.mrb[32].mxu1 }
 0x764   : > { %v8713_v33 = vadd.f32 %v15458_v52, %v20827_v44  ;;  %v9190_v50 = vmax.f32 %v8710_v7, 0.0  ;;  %v17877_v44 = vld [vmem:[%s24286_s1 + $0xb70] ss:$44 sps:$4 sm:$0xff]   ;;  %2177 = vperm.xlu1 %16982, %v1547_v28  }
 0x765   : > { %v7627_v6 = vpop.f32.mrb[24].mxu0  ;;  %v21432_v20 = vpop.permute.xlu0 %1862  ;;  %v1548_v7 = vld [vmem:[%s24287_s2 + $0x3f0] sm:$0xff]  ;;  %v1549_v28 = vld [vmem:[%s24287_s2 + $0x3f8] sm:$0xff] }
 0x766   : > { %v9191_v27 = vmax.f32 %v8713_v33, 0.0  ;;  %v15459_v26 = vadd.f32 %v7627_v6, %v20980_v12  ;;  %v7629_v22 = vpop.f32.mrb[25].mxu0  ;;  %2182 = vperm.xlu0 %16981, %v1548_v7   ;;  %v21445_v6 = vpop.f32.mrb[33].mxu1 }
 0x767   : > { %v7630_v52 = vpop.f32.mrb[26].mxu0  ;;  %v21443_v33 = vpop.permute.xlu1 %1867 }
 0x768   : > { %v21437_v4 = vpack.c.bf16 %v9191_v27, %v9190_v50  ;;  %v15460_v12 = vadd.f32 %v15459_v26, %v20053_v10  ;;  %v15461_v3 = vadd.f32 %v7630_v52, %v20989_v14  ;;  %v7632_v59 = vpop.f32.mrb[27].mxu0  ;;  %2187 = vperm.xlu1 %16982, %v1549_v28   ;;  %v21452_v10 = vpop.f32.mrb[34].mxu1  ;;  %v9644_v26 = vld [vmem:[%s24289_s4 + $0x80] sm:$0xff] }
 0x769   : > { %v21454_v14 = vpop.permute.xlu0 %1872  ;;  %v21456_v27 = vpop.f32.mrb[35].mxu1  ;;  %v17880_v59 = vld [vmem:[%s24286_s1 + $0xbc8] ss:$44 sps:$4 sm:$0xff]  }
 0x76a   : > { %24472 = vst [vmem:[#allocation171_spill] sm:$0xff] %v21437_v4  ;;  %v15462_v22 = vadd.f32 %v15461_v3, %v20058_v15  ;;  %v8718_v50 = vadd.f32 %v15460_v12, %v20878_v54  ;;  %7842 = vmatmul.mubr.bf16.gmra.mrb[132].mxu0 %v17877_v44  ;;  %9774 = vperm.xlu0 %16981, %v9644_v26   ;;  %v9645_v54 = vld [vmem:[%s24289_s4 + $0x88] sm:$0xff] }
 0x76b   : > { %7849 = vmatprep.mubr.bf16.mxu0 %v17878_v46  ;;  %v21462_v15 = vpop.permute.xlu1 %1877 }
 0x76c   : > { %v8721_v52 = vadd.f32 %v15462_v22, %v20887_v11  ;;  %v9192_v44 = vmax.f32 %v8718_v50, 0.0  ;;  %9779 = vperm.xlu1 %16982, %v9645_v54   ;;  %v17883_v11 = vld [vmem:[%s24286_s1 + $0xc24] ss:$44 sps:$4 sm:$0xff]  }
 0x76d   : > { %v7635_v7 = vpop.f32.mrb[28].mxu0  ;;  %v21474_v22 = vpop.permute.xlu0 %1882  ;;  %v9628_v50 = vld [vmem:[%s24289_s4] sm:$0xff] }
 0x76e   : > { %v9193_v46 = vmax.f32 %v8721_v52, 0.0  ;;  %v15463_v12 = vadd.f32 %v7635_v7, %v21001_v0  ;;  %v7637_v3 = vpop.f32.mrb[29].mxu0  ;;  %9694 = vperm.xlu0 %16981, %v9628_v50  }
 0x76f   : > { %v7638_v28 = vpop.f32.mrb[30].mxu0  ;;  %v21483_v54 = vpop.permute.xlu1 %1887  ;;  %v9629_v3 = vld [vmem:[%s24289_s4 + $0x8] sm:$0xff] }
 0x770   : > { %v21479_v26 = vpack.c.bf16 %v9193_v46, %v9192_v44  ;;  %v15464_v0 = vadd.f32 %v15463_v12, %v20063_v18  ;;  %v15465_v52 = vadd.f32 %v7638_v28, %v21008_v17  ;;  %v7640_v7 = vpop.f32.mrb[31].mxu0  ;;  %9699 = vperm.xlu1 %16982, %v9629_v3   ;;  %v17945_v18 = vld [vmem:[%s24286_s1 + $0x1158] ss:$44 sps:$4 sm:$0xff]   ;;  %v9646_v17 = vld [vmem:[%s24289_s4 + $0x90] sm:$0xff] }
 0x771   : > { %v17946_v44 = vld [vmem:[%s24286_s1 + $0x11b0] ss:$44 sps:$4 sm:$0xff]   ;;  %15369 = vmatprep.mubr.msk.bf16.mxu1 %vm5710_vm2, %v17945_v18 }
 0x772   : > { %24473 = vst [vmem:[#allocation172_spill] sm:$0xff] %v21479_v26  ;;  %v8726_v4 = vadd.f32 %v15464_v0, %v20876_v55  ;;  %v15466_v31 = vadd.f32 %v15465_v52, %v20065_v21  ;;  %7850 = vmatmul.mubr.bf16.gmra.mrb[136].mxu0 %v17880_v59  ;;  %9784 = vperm.xlu0 %16981, %v9646_v17   ;;  %v21501_v55 = vpop.permute.xlu0 %1892  ;;  %v9647_v12 = vld [vmem:[%s24289_s4 + $0x98] sm:$0xff]  ;;  %v21523_v17 = vpop.f32.mrb[36].mxu1  ;;  %v9641_v26 = vld [vmem:[%s24289_s4 + $0x68] sm:$0xff] }
 0x773   : > { %7857 = vmatprep.mubr.bf16.mxu0 %v17883_v11  ;;  %15370 = vmatmul.mubr.msk.bf16.gmra.mrb[88].mxu1 %vm5710_vm2, %v17946_v44  ;;  %v17886_v0 = vld [vmem:[%s24286_s1 + $0xc7c] ss:$44 sps:$4 sm:$0xff]   ;;  %v21514_v52 = vpop.permute.xlu1 %1897  ;;  %v21525_v44 = vpop.f32.mrb[37].mxu1 }
 0x774   : > { %v8729_v46 = vadd.f32 %v15466_v31, %v20883_v38  ;;  %v9194_v59 = vmax.f32 %v8726_v4, 0.0  ;;  %v17885_v38 = vld [vmem:[%s24286_s1 + $0xc20] ss:$44 sps:$4 sm:$0xff]   ;;  %9789 = vperm.xlu1 %16982, %v9647_v12   ;;  %v9630_v4 = vld [vmem:[%s24289_s4 + $0x10] sm:$0xff] }
 0x775   : > { %v7643_v21 = vpop.f32.mrb[32].mxu0 }
 0x776   : > { %v9195_v28 = vmax.f32 %v8729_v46, 0.0  ;;  %v15467_v11 = vadd.f32 %v7643_v21, %v21017_v49  ;;  %v7645_v50 = vpop.f32.mrb[33].mxu0  ;;  %9704 = vperm.xlu0 %16981, %v9630_v4   ;;  %v9631_v46 = vld [vmem:[%s24289_s4 + $0x18] sm:$0xff] }
 0x777   : > { %v7646_v31 = vpop.f32.mrb[34].mxu0 }
 0x778   : > { %v21519_v7 = vpack.c.bf16 %v9195_v28, %v9194_v59  ;;  %v15468_v49 = vadd.f32 %v15467_v11, %v20075_v29  ;;  %v15469_v3 = vadd.f32 %v7646_v31, %v21024_v32  ;;  %v7648_v18 = vpop.f32.mrb[35].mxu0  ;;  %9709 = vperm.xlu1 %16982, %v9631_v46   ;;  %v21532_v59 = vpop.f32.mrb[38].mxu1  ;;  %v9648_v28 = vld [vmem:[%s24289_s4 + $0xa0] sm:$0xff] }
 0x779   : > { %v21534_v29 = vpop.permute.xlu0 %1902  ;;  %v21536_v32 = vpop.f32.mrb[39].mxu1  ;;  %v9632_v18 = vld [vmem:[%s24289_s4 + $0x20] sm:$0xff] }
 0x77a   : > { %24474 = vst [vmem:[#allocation173_spill] sm:$0xff] %v21519_v7  ;;  %v15470_v21 = vadd.f32 %v15469_v3, %v20080_v40  ;;  %v8734_v12 = vadd.f32 %v15468_v49, %v20942_v45  ;;  %7858 = vmatmul.mubr.bf16.gmra.mrb[140].mxu0 %v17885_v38  ;;  %24475 = vst [vmem:[#allocation174_spill] sm:$0xff] %v21534_v29  ;;  %9794 = vperm.xlu0 %16981, %v9648_v28   ;;  %v21542_v40 = vpop.permute.xlu1 %1907  ;;  %v9649_v45 = vld [vmem:[%s24289_s4 + $0xa8] sm:$0xff]  ;;  %v17888_v49 = vld [vmem:[%s24286_s1 + $0xc78] ss:$44 sps:$4 sm:$0xff]  }
 0x77b   : > { %7865 = vmatprep.mubr.bf16.mxu0 %v17886_v0  ;;  %24476 = vst [vmem:[#allocation175_spill] sm:$0xff] %v21542_v40  ;;  %v24566_v29 = vld [vmem:[#allocation21_spill] sm:$0xff] }
 0x77c   : > { %v8737_v11 = vadd.f32 %v15470_v21, %v20951_v34  ;;  %v9196_v38 = vmax.f32 %v8734_v12, 0.0  ;;  %9799 = vperm.xlu1 %16982, %v9649_v45   ;;  %v17891_v34 = vld [vmem:[%s24286_s1 + $0xcd4] ss:$44 sps:$4 sm:$0xff]  }
 0x77d   : > { %v7651_v50 = vpop.f32.mrb[36].mxu0  ;;  %v21561_v28 = vpop.permute.xlu0 %1912 }
 0x77e   : > { %v9197_v31 = vmax.f32 %v8737_v11, 0.0  ;;  %v15471_v0 = vadd.f32 %v7651_v50, %v21035_v25  ;;  %v7653_v4 = vpop.f32.mrb[37].mxu0  ;;  %9714 = vperm.xlu0 %16981, %v9632_v18   ;;  %24478 = vst [vmem:[#allocation177_spill] sm:$0xff] %v21561_v28  ;;  %v9633_v11 = vld [vmem:[%s24289_s4 + $0x28] sm:$0xff]  ;;  %v17893_v18 = vld [vmem:[%s24286_s1 + $0xcd0] ss:$44 sps:$4 sm:$0xff]  }
 0x77f   : > { %v7654_v3 = vpop.f32.mrb[38].mxu0  ;;  %v24543_v28 = vld [vmem:[#allocation17_spill] sm:$0xff] }
 0x780   : > { %v21557_v46 = vpack.c.bf16 %v9197_v31, %v9196_v38  ;;  %v15472_v21 = vadd.f32 %v15471_v0, %v20085_v47  ;;  %v15473_v25 = vadd.f32 %v7654_v3, %v21040_v13  ;;  %v7656_v12 = vpop.f32.mrb[39].mxu0  ;;  %9719 = vperm.xlu1 %16982, %v9633_v11   ;;  %v17953_v47 = vld [vmem:[%s24286_s1 + $0x1208] ss:$44 sps:$4 sm:$0xff]   ;;  %v21571_v13 = vpop.permute.xlu1 %1917  ;;  %v17954_v31 = vld [vmem:[%s24286_s1 + $0x1260] ss:$44 sps:$4 sm:$0xff]   ;;  %v9651_v0 = vld [vmem:[%s24289_s4 + $0xb8] sm:$0xff] }
 0x781   : > { %24479 = vst [vmem:[#allocation178_spill] sm:$0xff] %v21571_v13  ;;  %v9650_v38 = vld [vmem:[%s24289_s4 + $0xb0] sm:$0xff]  ;;  %15373 = vmatprep.mubr.msk.bf16.mxu1 %vm5710_vm2, %v17953_v47 }
 0x782   : > { %24477 = vst [vmem:[#allocation176_spill] sm:$0xff] %v21557_v46  ;;  %v8742_v50 = vadd.f32 %v15472_v21, %v20938_v9  ;;  %v15474_v45 = vadd.f32 %v15473_v25, %v20087_v51  ;;  %7866 = vmatmul.mubr.bf16.gmra.mrb[144].mxu0 %v17888_v49  ;;  %9804 = vperm.xlu0 %16981, %v9650_v38   ;;  %v17894_v21 = vld [vmem:[%s24286_s1 + $0xd2c] ss:$44 sps:$4 sm:$0xff]   ;;  %v21592_v25 = vpop.permute.xlu0 %1922  ;;  %v9634_v12 = vld [vmem:[%s24289_s4 + $0x30] sm:$0xff]  ;;  %v21601_v47 = vpop.f32.mrb[40].mxu1 }
 0x783   : > { %7873 = vmatprep.mubr.bf16.mxu0 %v17891_v34  ;;  %15374 = vmatmul.mubr.msk.bf16.gmra.mrb[92].mxu1 %vm5710_vm2, %v17954_v31  ;;  %24480 = vst [vmem:[#allocation179_spill] sm:$0xff] %v21592_v25  ;;  %v21605_v31 = vpop.f32.mrb[41].mxu1  ;;  %v24542_v25 = vld [vmem:[#allocation146_spill] sm:$0xff] }
 0x784   : > { %v8745_v9 = vadd.f32 %v15474_v45, %v20947_v60  ;;  %v9198_v4 = vmax.f32 %v8742_v50, 0.0  ;;  %9809 = vperm.xlu1 %16982, %v9651_v0   ;;  %v21603_v38 = vpop.permute.xlu1 %1927 }
 0x785   : > { %v7659_v51 = vpop.f32.mrb[40].mxu0  ;;  %24482 = vst [vmem:[#allocation181_spill] sm:$0xff] %v21603_v38 }
 0x786   : > { %v9199_v49 = vmax.f32 %v8745_v9, 0.0  ;;  %v15475_v3 = vadd.f32 %v7659_v51, %v21048_v61  ;;  %v7661_v34 = vpop.f32.mrb[41].mxu0  ;;  %9724 = vperm.xlu0 %16981, %v9634_v12   ;;  %v9635_v9 = vld [vmem:[%s24289_s4 + $0x38] sm:$0xff]  ;;  %v17896_v12 = vld [vmem:[%s24286_s1 + $0xd28] ss:$44 sps:$4 sm:$0xff]  }
 0x787   : > { %v7662_v60 = vpop.f32.mrb[42].mxu0  ;;  %v21620_v34 = vpop.permute.xlu0 %1932 }
 0x788   : > { %v21597_v11 = vpack.c.bf16 %v9199_v49, %v9198_v4  ;;  %v15476_v61 = vadd.f32 %v15475_v3, %v20097_v57  ;;  %v15477_v50 = vadd.f32 %v7662_v60, %v21057_v24  ;;  %v7664_v45 = vpop.f32.mrb[43].mxu0  ;;  %9729 = vperm.xlu1 %16982, %v9635_v9   ;;  %v21612_v57 = vpop.f32.mrb[42].mxu1  ;;  %v9652_v4 = vld [vmem:[%s24289_s4 + $0xc0] sm:$0xff]  ;;  %24483 = vst [vmem:[#allocation182_spill] sm:$0xff] %v21620_v34  ;;  %v24524_v34 = vld [vmem:[#allocation13_spill] sm:$0xff] }
 0x789   : > { %v21614_v24 = vpop.f32.mrb[43].mxu1  ;;  %v9636_v45 = vld [vmem:[%s24289_s4 + $0x40] sm:$0xff] }
 0x78a   : > { %24481 = vst [vmem:[#allocation180_spill] sm:$0xff] %v21597_v11  ;;  %v15478_v51 = vadd.f32 %v15477_v50, %v20103_v62  ;;  %v8750_v0 = vadd.f32 %v15476_v61, %v21010_v2  ;;  %7874 = vmatmul.mubr.bf16.gmra.mrb[148].mxu0 %v17893_v18  ;;  %9814 = vperm.xlu0 %16981, %v9652_v4   ;;  %v9653_v62 = vld [vmem:[%s24289_s4 + $0xc8] sm:$0xff]  ;;  %v21632_v50 = vpop.permute.xlu1 %1937 }
 0x78b   : > { %7881 = vmatprep.mubr.bf16.mxu0 %v17894_v21  ;;  %24484 = vst [vmem:[#allocation183_spill] sm:$0xff] %v21632_v50  ;;  %v9637_v4 = vld [vmem:[%s24289_s4 + $0x48] sm:$0xff] }
 0x78c   : > { %v8753_v49 = vadd.f32 %v15478_v51, %v21019_v41  ;;  %v9200_v2 = vmax.f32 %v8750_v0, 0.0  ;;  %9819 = vperm.xlu1 %16982, %v9653_v62   ;;  %v17899_v41 = vld [vmem:[%s24286_s1 + $0xd84] ss:$44 sps:$4 sm:$0xff]  }
 0x78d   : > { %v7667_v3 = vpop.f32.mrb[44].mxu0  ;;  %v17961_v62 = vld [vmem:[%s24286_s1 + $0x12b8] ss:$44 sps:$4 sm:$0xff]  }
 0x78e   : > { %v9201_v18 = vmax.f32 %v8753_v49, 0.0  ;;  %v15479_v60 = vadd.f32 %v7667_v3, %v21069_v56  ;;  %v7669_v21 = vpop.f32.mrb[45].mxu0  ;;  %9734 = vperm.xlu0 %16981, %v9636_v45   ;;  %15377 = vmatprep.mubr.msk.bf16.mxu1 %vm5710_vm2, %v17961_v62 }
 0x78f   : > { %v7670_v61 = vpop.f32.mrb[46].mxu0  ;;  %v9655_v21 = vld [vmem:[%s24289_s4 + $0xd8] sm:$0xff] }
 0x790   : > { %v21637_v9 = vpack.c.bf16 %v9201_v18, %v9200_v2  ;;  %v15480_v56 = vadd.f32 %v15479_v60, %v20108_v5  ;;  %v15481_v51 = vadd.f32 %v7670_v61, %v21076_v43  ;;  %v7672_v0 = vpop.f32.mrb[47].mxu0  ;;  %9739 = vperm.xlu1 %16982, %v9637_v4   ;;  %v21649_v5 = vpop.permute.xlu0 %1942  ;;  %v9654_v43 = vld [vmem:[%s24289_s4 + $0xd0] sm:$0xff]  ;;  %v17902_v4 = vld [vmem:[%s24286_s1 + $0xddc] ss:$44 sps:$4 sm:$0xff]  }
 0x791   : > { %24486 = vst [vmem:[#allocation185_spill] sm:$0xff] %v21649_v5  ;;  %v17962_v2 = vld [vmem:[%s24286_s1 + $0x1310] ss:$44 sps:$4 sm:$0xff]   ;;  %v21659_v60 = vpop.permute.xlu1 %1947 }
 0x792   : > { %24485 = vst [vmem:[#allocation184_spill] sm:$0xff] %v21637_v9  ;;  %v8758_v49 = vadd.f32 %v15480_v56, %v21006_v53  ;;  %v15482_v3 = vadd.f32 %v15481_v51, %v20110_v8  ;;  %7882 = vmatmul.mubr.bf16.gmra.mrb[152].mxu0 %v17896_v12  ;;  %v24487_v53 = vld [vmem:[#allocation122_spill] sm:$0xff]  ;;  %9824 = vperm.xlu0 %16981, %v9654_v43   ;;  %v24494_v9 = vld [vmem:[#allocation7_spill] sm:$0xff] }
 0x793   : > { %7889 = vmatprep.mubr.bf16.mxu0 %v17899_v41  ;;  %24488 = vst [vmem:[#allocation122_spill] sm:$0xff] %v21659_v60  ;;  %15378 = vmatmul.mubr.msk.bf16.gmra.mrb[96].mxu1 %vm5710_vm2, %v17962_v2  ;;  %v24489_v41 = vld [vmem:[#allocation126_spill] sm:$0xff]  ;;  %v24492_v2 = vld [vmem:[#allocation128_spill] sm:$0xff] }
 0x794   : > { %v8761_v18 = vadd.f32 %v15482_v3, %v24487_v53  ;;  %v9202_v12 = vmax.f32 %v8758_v49, 0.0  ;;  %v17901_v51 = vld [vmem:[%s24286_s1 + $0xd80] ss:$44 sps:$4 sm:$0xff]   ;;  %9829 = vperm.xlu1 %16982, %v9655_v21   ;;  %v9638_v3 = vld [vmem:[%s24289_s4 + $0x50] sm:$0xff]  ;;  %v21681_v21 = vpop.permute.xlu0 %1952 }
 0x795   : > { %v7675_v8 = vpop.f32.mrb[48].mxu0  ;;  %v24491_v49 = vld [vmem:[#allocation6_spill] sm:$0xff] }
 0x796   : > { %v9203_v61 = vmax.f32 %v8761_v18, 0.0  ;;  %v15483_v45 = vadd.f32 %v7675_v8, %v24489_v41  ;;  %v7677_v56 = vpop.f32.mrb[49].mxu0  ;;  %9744 = vperm.xlu0 %16981, %v9638_v3   ;;  %v21679_v8 = vpop.f32.mrb[44].mxu1  ;;  %24493 = vst [vmem:[#allocation6_spill] sm:$0xff] %v21681_v21  ;;  %v24505_v21 = vld [vmem:[#allocation9_spill] sm:$0xff] }
 0x797   : > { %v7678_v0 = vpop.f32.mrb[50].mxu0  ;;  %v21683_v41 = vpop.f32.mrb[45].mxu1  ;;  %v9639_v56 = vld [vmem:[%s24289_s4 + $0x58] sm:$0xff] }
 0x798   : > { %v21675_v62 = vpack.c.bf16 %v9203_v61, %v9202_v12  ;;  %v15484_v43 = vadd.f32 %v15483_v45, %v24491_v49  ;;  %v15485_v53 = vadd.f32 %v7678_v0, %v24492_v2  ;;  %v7680_v18 = vpop.f32.mrb[51].mxu0  ;;  %v24495_v12 = vld [vmem:[#allocation124_spill] sm:$0xff]  ;;  %9749 = vperm.xlu1 %16982, %v9639_v56   ;;  %v21690_v45 = vpop.f32.mrb[46].mxu1  ;;  %v9656_v49 = vld [vmem:[%s24289_s4 + $0xe0] sm:$0xff]  ;;  %v24497_v2 = vld [vmem:[#allocation127_spill] sm:$0xff] }
 0x799   : > { %v21692_v0 = vpop.permute.xlu1 %1957  ;;  %v21694_v3 = vpop.f32.mrb[47].mxu1 }
 0x79a   : > { %24490 = vst [vmem:[#allocation126_spill] sm:$0xff] %v21675_v62  ;;  %v15486_v11 = vadd.f32 %v15485_v53, %v24494_v9  ;;  %v8766_v61 = vadd.f32 %v15484_v43, %v24495_v12  ;;  %7890 = vmatmul.mubr.bf16.gmra.mrb[156].mxu0 %v17901_v51  ;;  %24496 = vst [vmem:[#allocation128_spill] sm:$0xff] %v21692_v0  ;;  %9834 = vperm.xlu0 %16981, %v9656_v49   ;;  %v9657_v9 = vld [vmem:[%s24289_s4 + $0xe8] sm:$0xff]  ;;  %v24498_v53 = vld [vmem:[#allocation129_spill] sm:$0xff]  ;;  %v21710_v49 = vpop.permute.xlu0 %1962 }
 0x79b   : > { %7897 = vmatprep.mubr.bf16.mxu0 %v17902_v4  ;;  %v17904_v12 = vld [vmem:[%s24286_s1 + $0xdd8] ss:$44 sps:$4 sm:$0xff]   ;;  %24499 = vst [vmem:[#allocation7_spill] sm:$0xff] %v21710_v49  ;;  %v24504_v0 = vld [vmem:[#allocation123_spill] sm:$0xff] }
 0x79c   : > { %v8769_v18 = vadd.f32 %v15486_v11, %v24497_v2  ;;  %v9204_v51 = vmax.f32 %v8766_v61, 0.0  ;;  %9839 = vperm.xlu1 %16982, %v9657_v9   ;;  %v17907_v11 = vld [vmem:[%s24286_s1 + $0xe34] ss:$44 sps:$4 sm:$0xff]  }
 0x79d   : > { %v7683_v62 = vpop.f32.mrb[52].mxu0  ;;  %v9640_v61 = vld [vmem:[%s24289_s4 + $0x60] sm:$0xff]  ;;  %v21719_v9 = vpop.permute.xlu1 %1967 }
 0x79e   : > { %v9205_v43 = vmax.f32 %v8769_v18, 0.0  ;;  %v15487_v4 = vadd.f32 %v7683_v62, %v24498_v53  ;;  %v7685_v56 = vpop.f32.mrb[53].mxu0  ;;  %v24501_v62 = vld [vmem:[#allocation8_spill] sm:$0xff]  ;;  %v24502_v53 = vld [vmem:[#allocation130_spill] sm:$0xff]  ;;  %9754 = vperm.xlu0 %16981, %v9640_v61   ;;  %24503 = vst [vmem:[#allocation127_spill] sm:$0xff] %v21719_v9  ;;  %v24508_v61 = vld [vmem:[#allocation131_spill] sm:$0xff] }
 0x79f   : > { %v7686_v46 = vpop.f32.mrb[54].mxu0  ;;  %v24514_v9 = vld [vmem:[#allocation136_spill] sm:$0xff] }
 0x7a0   : > { %v21715_v2 = vpack.c.bf16 %v9205_v43, %v9204_v51  ;;  %v15488_v18 = vadd.f32 %v15487_v4, %v24501_v62  ;;  %v15489_v56 = vadd.f32 %v7686_v46, %v24502_v53  ;;  %v7688_v7 = vpop.f32.mrb[55].mxu0  ;;  %9759 = vperm.xlu1 %16982, %v9641_v26   ;;  %v17969_v51 = vld [vmem:[%s24286_s1 + $0x1368] ss:$44 sps:$4 sm:$0xff]   ;;  %v17970_v46 = vld [vmem:[%s24286_s1 + $0x13c0] ss:$44 sps:$4 sm:$0xff]   ;;  %v24506_v43 = vld [vmem:[#allocation125_spill] sm:$0xff]  ;;  %v21737_v26 = vpop.permute.xlu0 %1972 }
 0x7a1   : > { %v9658_v7 = vld [vmem:[%s24289_s4 + $0xf0] sm:$0xff]  ;;  %15381 = vmatprep.mubr.msk.bf16.mxu1 %vm5710_vm2, %v17969_v51  ;;  %24507 = vst [vmem:[#allocation129_spill] sm:$0xff] %v21737_v26  ;;  %v21750_v51 = vpop.permute.xlu1 %1977 }
 0x7a2   : > { %24500 = vst [vmem:[#allocation124_spill] sm:$0xff] %v21715_v2  ;;  %v8774_v49 = vadd.f32 %v15488_v18, %v24504_v0  ;;  %v15490_v60 = vadd.f32 %v15489_v56, %v24505_v21  ;;  %7898 = vmatmul.mubr.bf16.gmra.mrb[160].mxu0 %v17904_v12  ;;  %9844 = vperm.xlu0 %16981, %v9658_v7   ;;  %v9659_v0 = vld [vmem:[%s24289_s4 + $0xf8] sm:$0xff]  ;;  %24509 = vst [vmem:[#allocation8_spill] sm:$0xff] %v21750_v51  ;;  %v24513_v51 = vld [vmem:[#allocation11_spill] sm:$0xff] }
 0x7a3   : > { %7905 = vmatprep.mubr.bf16.mxu0 %v17907_v11  ;;  %15382 = vmatmul.mubr.msk.bf16.gmra.mrb[100].mxu1 %vm5710_vm2, %v17970_v46  ;;  %v17910_v56 = vld [vmem:[%s24286_s1 + $0xe8c] ss:$44 sps:$4 sm:$0xff]   ;;  %v24511_v46 = vld [vmem:[#allocation10_spill] sm:$0xff] }
 0x7a4   : > { %v8777_v4 = vadd.f32 %v15490_v60, %v24506_v43  ;;  %v9206_v12 = vmax.f32 %v8774_v49, 0.0  ;;  %v17909_v60 = vld [vmem:[%s24286_s1 + $0xe30] ss:$44 sps:$4 sm:$0xff]   ;;  %9849 = vperm.xlu1 %16982, %v9659_v0   ;;  %v21759_v0 = vpop.f32.mrb[48].mxu1 }
 0x7a5   : > { %v7691_v21 = vpop.f32.mrb[56].mxu0  ;;  %v9642_v49 = vld [vmem:[%s24289_s4 + $0x70] sm:$0xff]  ;;  %v9643_v2 = vld [vmem:[%s24289_s4 + $0x78] sm:$0xff] }
 0x7a6   : > { %v9207_v11 = vmax.f32 %v8777_v4, 0.0  ;;  %v15491_v62 = vadd.f32 %v7691_v21, %v24508_v61  ;;  %v7693_v18 = vpop.f32.mrb[57].mxu0  ;;  %v24512_v4 = vld [vmem:[#allocation132_spill] sm:$0xff]  ;;  %9764 = vperm.xlu0 %16981, %v9642_v49   ;;  %v24516_v49 = vld [vmem:[#allocation139_spill] sm:$0xff] }
 0x7a7   : > { %v7694_v53 = vpop.f32.mrb[58].mxu0  ;;  %v21761_v18 = vpop.f32.mrb[49].mxu1 }
 0x7a8   : > { %v21755_v7 = vpack.c.bf16 %v9207_v11, %v9206_v12  ;;  %v15492_v43 = vadd.f32 %v15491_v62, %v24511_v46  ;;  %v15493_v21 = vadd.f32 %v7694_v53, %v24512_v4  ;;  %v7696_v61 = vpop.f32.mrb[59].mxu0  ;;  %9769 = vperm.xlu1 %16982, %v9643_v2   ;;  %v21768_v12 = vpop.f32.mrb[50].mxu1  ;;  %v9676_v53 = vld [vmem:[%s24289_s4 + $0x180] sm:$0xff]  ;;  %v9677_v2 = vld [vmem:[%s24289_s4 + $0x188] sm:$0xff] }
 0x7a9   : > { %v21770_v11 = vpop.permute.xlu0 %1982  ;;  %v21772_v62 = vpop.f32.mrb[51].mxu1  ;;  %v17912_v61 = vld [vmem:[%s24286_s1 + $0xe88] ss:$44 sps:$4 sm:$0xff]  }
 0x7aa   : > { %24510 = vst [vmem:[#allocation130_spill] sm:$0xff] %v21755_v7  ;;  %v15494_v26 = vadd.f32 %v15493_v21, %v24513_v51  ;;  %v8782_v5 = vadd.f32 %v15492_v43, %v24514_v9  ;;  %7906 = vmatmul.mubr.bf16.gmra.mrb[164].mxu0 %v17909_v60  ;;  %24515 = vst [vmem:[#allocation123_spill] sm:$0xff] %v21770_v11  ;;  %9934 = vperm.xlu0 %16981, %v9676_v53   ;;  %v21778_v51 = vpop.permute.xlu1 %1987  ;;  %v9660_v53 = vld [vmem:[%s24289_s4 + $0x100] sm:$0xff] }
 0x7ab   : > { %7913 = vmatprep.mubr.bf16.mxu0 %v17910_v56  ;;  %24517 = vst [vmem:[#allocation9_spill] sm:$0xff] %v21778_v51  ;;  %v24518_v56 = vld [vmem:[#allocation133_spill] sm:$0xff]  ;;  %v24523_v11 = vld [vmem:[#allocation134_spill] sm:$0xff] }
 0x7ac   : > { %v8785_v46 = vadd.f32 %v15494_v26, %v24516_v49  ;;  %v9208_v9 = vmax.f32 %v8782_v5, 0.0  ;;  %9939 = vperm.xlu1 %16982, %v9677_v2   ;;  %v17915_v26 = vld [vmem:[%s24286_s1 + $0xee4] ss:$44 sps:$4 sm:$0xff]   ;;  %v9661_v2 = vld [vmem:[%s24289_s4 + $0x108] sm:$0xff] }
 0x7ad   : > { %v7699_v4 = vpop.f32.mrb[60].mxu0  ;;  %v24520_v5 = vld [vmem:[#allocation12_spill] sm:$0xff]  ;;  %v21797_v51 = vpop.permute.xlu0 %1992 }
 0x7ae   : > { %v9209_v60 = vmax.f32 %v8785_v46, 0.0  ;;  %v15495_v43 = vadd.f32 %v7699_v4, %v24518_v56  ;;  %v7701_v21 = vpop.f32.mrb[61].mxu0  ;;  %v24521_v4 = vld [vmem:[#allocation135_spill] sm:$0xff]  ;;  %9854 = vperm.xlu0 %16981, %v9660_v53   ;;  %24522 = vst [vmem:[#allocation131_spill] sm:$0xff] %v21797_v51 }
 0x7af   : > { %v7702_v7 = vpop.f32.mrb[62].mxu0 }
 0x7b0   : > { %v21793_v49 = vpack.c.bf16 %v9209_v60, %v9208_v9  ;;  %v15496_v46 = vadd.f32 %v15495_v43, %v24520_v5  ;;  %v15497_v56 = vadd.f32 %v7702_v7, %v24521_v4  ;;  %v7704_v21 = vpop.f32.mrb[63].mxu0  ;;  %9859 = vperm.xlu1 %16982, %v9661_v2   ;;  %v17977_v9 = vld [vmem:[%s24286_s1 + $0x1418] ss:$44 sps:$4 sm:$0xff]   ;;  %v21807_v7 = vpop.permute.xlu1 %1997  ;;  %v9678_v60 = vld [vmem:[%s24289_s4 + $0x190] sm:$0xff]  ;;  %v17918_v2 = vld [vmem:[%s24286_s1 + $0xf3c] ss:$44 sps:$4 sm:$0xff]  }
 0x7b1   : > { %24525 = vst [vmem:[#allocation10_spill] sm:$0xff] %v21807_v7  ;;  %v17978_v43 = vld [vmem:[%s24286_s1 + $0x1470] ss:$44 sps:$4 sm:$0xff]   ;;  %15385 = vmatprep.mubr.msk.bf16.mxu1 %vm5710_vm2, %v17977_v9  ;;  %v17917_v21 = vld [vmem:[%s24286_s1 + $0xee0] ss:$44 sps:$4 sm:$0xff]   ;;  %v21828_v9 = vpop.permute.xlu0 %2002 }
 0x7b2   : > { %24519 = vst [vmem:[#allocation125_spill] sm:$0xff] %v21793_v49  ;;  %v8790_v50 = vadd.f32 %v15496_v46, %v24523_v11  ;;  %v15498_v38 = vadd.f32 %v15497_v56, %v24524_v34  ;;  %7914 = vmatmul.mubr.bf16.gmra.mrb[168].mxu0 %v17912_v61  ;;  %v24526_v11 = vld [vmem:[#allocation137_spill] sm:$0xff]  ;;  %9944 = vperm.xlu0 %16981, %v9678_v60   ;;  %v24527_v46 = vld [vmem:[#allocation138_spill] sm:$0xff]  ;;  %24528 = vst [vmem:[#allocation132_spill] sm:$0xff] %v21828_v9 }
 0x7b3   : > { %7921 = vmatprep.mubr.bf16.mxu0 %v17915_v26  ;;  %15386 = vmatmul.mubr.msk.bf16.gmra.mrb[104].mxu1 %vm5710_vm2, %v17978_v43  ;;  %v9679_v61 = vld [vmem:[%s24289_s4 + $0x198] sm:$0xff]  ;;  %v24530_v43 = vld [vmem:[#allocation14_spill] sm:$0xff]  ;;  %v24533_v7 = vld [vmem:[#allocation15_spill] sm:$0xff] }
 0x7b4   : > { %v8793_v53 = vadd.f32 %v15498_v38, %v24526_v11  ;;  %v9210_v26 = vmax.f32 %v8790_v50, 0.0  ;;  %9949 = vperm.xlu1 %16982, %v9679_v61   ;;  %v9662_v50 = vld [vmem:[%s24289_s4 + $0x110] sm:$0xff]  ;;  %v21837_v61 = vpop.f32.mrb[52].mxu1  ;;  %v9663_v9 = vld [vmem:[%s24289_s4 + $0x118] sm:$0xff] }
 0x7b5   : > { %v7707_v34 = vpop.f32.mrb[64].mxu0  ;;  %v21841_v49 = vpop.f32.mrb[53].mxu1 }
 0x7b6   : > { %v9211_v5 = vmax.f32 %v8793_v53, 0.0  ;;  %v15499_v4 = vadd.f32 %v7707_v34, %v24527_v46  ;;  %v7709_v56 = vpop.f32.mrb[65].mxu0  ;;  %v24531_v53 = vld [vmem:[#allocation140_spill] sm:$0xff]  ;;  %9864 = vperm.xlu0 %16981, %v9662_v50   ;;  %v9680_v50 = vld [vmem:[%s24289_s4 + $0x1a0] sm:$0xff] }
 0x7b7   : > { %v7710_v38 = vpop.f32.mrb[66].mxu0  ;;  %v21839_v56 = vpop.permute.xlu1 %2007 }
 0x7b8   : > { %v21833_v60 = vpack.c.bf16 %v9211_v5, %v9210_v26  ;;  %v15500_v11 = vadd.f32 %v15499_v4, %v24530_v43  ;;  %v15501_v34 = vadd.f32 %v7710_v38, %v24531_v53  ;;  %v7712_v46 = vpop.f32.mrb[67].mxu0  ;;  %24532 = vst [vmem:[#allocation136_spill] sm:$0xff] %v21839_v56  ;;  %v24534_v26 = vld [vmem:[#allocation148_spill] sm:$0xff]  ;;  %9869 = vperm.xlu1 %16982, %v9663_v9   ;;  %v21848_v4 = vpop.f32.mrb[54].mxu1  ;;  %v24535_v43 = vld [vmem:[#allocation151_spill] sm:$0xff] }
 0x7b9   : > { %v21850_v38 = vpop.f32.mrb[55].mxu1 }
 0x7ba   : > { %24529 = vst [vmem:[#allocation11_spill] sm:$0xff] %v21833_v60  ;;  %v15502_v51 = vadd.f32 %v15501_v34, %v24533_v7  ;;  %v8798_v5 = vadd.f32 %v15500_v11, %v24534_v26  ;;  %7922 = vmatmul.mubr.bf16.gmra.mrb[172].mxu0 %v17917_v21  ;;  %9954 = vperm.xlu0 %16981, %v9680_v50   ;;  %v21856_v60 = vpop.permute.xlu0 %2012  ;;  %v9681_v7 = vld [vmem:[%s24289_s4 + $0x1a8] sm:$0xff]  ;;  %v24537_v11 = vld [vmem:[#allocation141_spill] sm:$0xff] }
 0x7bb   : > { %7929 = vmatprep.mubr.bf16.mxu0 %v17918_v2  ;;  %24536 = vst [vmem:[#allocation139_spill] sm:$0xff] %v21856_v60  ;;  %v17920_v26 = vld [vmem:[%s24286_s1 + $0xf38] ss:$44 sps:$4 sm:$0xff]   ;;  %v21868_v50 = vpop.permute.xlu1 %2017 }
 0x7bc   : > { %v8801_v53 = vadd.f32 %v15502_v51, %v24535_v43  ;;  %v9212_v21 = vmax.f32 %v8798_v5, 0.0  ;;  %9959 = vperm.xlu1 %16982, %v9681_v7   ;;  %v17923_v51 = vld [vmem:[%s24286_s1 + $0xf94] ss:$44 sps:$4 sm:$0xff]   ;;  %24538 = vst [vmem:[#allocation133_spill] sm:$0xff] %v21868_v50  ;;  %v9665_v7 = vld [vmem:[%s24289_s4 + $0x128] sm:$0xff] }
 0x7bd   : > { %v7715_v46 = vpop.f32.mrb[68].mxu0  ;;  %v9664_v5 = vld [vmem:[%s24289_s4 + $0x120] sm:$0xff] }
 0x7be   : > { %v9213_v9 = vmax.f32 %v8801_v53, 0.0  ;;  %v15503_v2 = vadd.f32 %v7715_v46, %v24537_v11  ;;  %v7717_v34 = vpop.f32.mrb[69].mxu0  ;;  %v24540_v53 = vld [vmem:[#allocation16_spill] sm:$0xff]  ;;  %v24541_v11 = vld [vmem:[#allocation142_spill] sm:$0xff]  ;;  %9874 = vperm.xlu0 %16981, %v9664_v5  }
 0x7bf   : > { %v7718_v56 = vpop.f32.mrb[70].mxu0 }
 0x7c0   : > { %v21873_v43 = vpack.c.bf16 %v9213_v9, %v9212_v21  ;;  %v15504_v46 = vadd.f32 %v15503_v2, %v24540_v53  ;;  %v15505_v34 = vadd.f32 %v7718_v56, %v24541_v11  ;;  %v7720_v60 = vpop.f32.mrb[71].mxu0  ;;  %9879 = vperm.xlu1 %16982, %v9665_v7   ;;  %v17985_v21 = vld [vmem:[%s24286_s1 + $0x14c8] ss:$44 sps:$4 sm:$0xff]   ;;  %v21885_v9 = vpop.permute.xlu0 %2022  ;;  %v17986_v56 = vld [vmem:[%s24286_s1 + $0x1520] ss:$44 sps:$4 sm:$0xff]  }
 0x7c1   : > { %24544 = vst [vmem:[#allocation135_spill] sm:$0xff] %v21885_v9  ;;  %v9682_v60 = vld [vmem:[%s24289_s4 + $0x1b0] sm:$0xff]  ;;  %15389 = vmatprep.mubr.msk.bf16.mxu1 %vm5710_vm2, %v17985_v21  ;;  %v17926_v21 = vld [vmem:[%s24286_s1 + $0xfec] ss:$44 sps:$4 sm:$0xff]  }
 0x7c2   : > { %24539 = vst [vmem:[#allocation12_spill] sm:$0xff] %v21873_v43  ;;  %v8806_v13 = vadd.f32 %v15504_v46, %v24542_v25  ;;  %v15506_v50 = vadd.f32 %v15505_v34, %v24543_v28  ;;  %7930 = vmatmul.mubr.bf16.gmra.mrb[176].mxu0 %v17920_v26  ;;  %v24545_v25 = vld [vmem:[#allocation149_spill] sm:$0xff]  ;;  %9964 = vperm.xlu0 %16981, %v9682_v60   ;;  %v21895_v26 = vpop.permute.xlu1 %2027  ;;  %v24547_v46 = vld [vmem:[#allocation143_spill] sm:$0xff]  ;;  %v9666_v60 = vld [vmem:[%s24289_s4 + $0x130] sm:$0xff] }
 0x7c3   : > { %7937 = vmatprep.mubr.bf16.mxu0 %v17923_v51  ;;  %24546 = vst [vmem:[#allocation134_spill] sm:$0xff] %v21895_v26  ;;  %15390 = vmatmul.mubr.msk.bf16.gmra.mrb[108].mxu1 %vm5710_vm2, %v17986_v56  ;;  %v9683_v51 = vld [vmem:[%s24289_s4 + $0x1b8] sm:$0xff]  ;;  %v24553_v9 = vld [vmem:[#allocation19_spill] sm:$0xff] }
 0x7c4   : > { %v8809_v2 = vadd.f32 %v15506_v50, %v24545_v25  ;;  %v9214_v5 = vmax.f32 %v8806_v13, 0.0  ;;  %v17925_v50 = vld [vmem:[%s24286_s1 + $0xf90] ss:$44 sps:$4 sm:$0xff]   ;;  %9969 = vperm.xlu1 %16982, %v9683_v51   ;;  %v24549_v13 = vld [vmem:[#allocation18_spill] sm:$0xff]  ;;  %v21917_v51 = vpop.permute.xlu0 %2032 }
 0x7c5   : > { %v7723_v28 = vpop.f32.mrb[72].mxu0  ;;  %24552 = vst [vmem:[#allocation138_spill] sm:$0xff] %v21917_v51  ;;  %v9667_v26 = vld [vmem:[%s24289_s4 + $0x138] sm:$0xff] }
 0x7c6   : > { %v9215_v53 = vmax.f32 %v8809_v2, 0.0  ;;  %v15507_v11 = vadd.f32 %v7723_v28, %v24547_v46  ;;  %v7725_v34 = vpop.f32.mrb[73].mxu0  ;;  %v24550_v2 = vld [vmem:[#allocation144_spill] sm:$0xff]  ;;  %9884 = vperm.xlu0 %16981, %v9666_v60  }
 0x7c7   : > { %v7726_v7 = vpop.f32.mrb[74].mxu0  ;;  %v21915_v34 = vpop.f32.mrb[56].mxu1 }
 0x7c8   : > { %v21911_v56 = vpack.c.bf16 %v9215_v53, %v9214_v5  ;;  %v15508_v25 = vadd.f32 %v15507_v11, %v24549_v13  ;;  %v15509_v28 = vadd.f32 %v7726_v7, %v24550_v2  ;;  %v7728_v46 = vpop.f32.mrb[75].mxu0  ;;  %24551 = vst [vmem:[#allocation137_spill] sm:$0xff] %v21915_v34  ;;  %v21919_v43 = vpop.f32.mrb[57].mxu1  ;;  %v24554_v5 = vld [vmem:[#allocation160_spill] sm:$0xff]  ;;  %9889 = vperm.xlu1 %16982, %v9667_v26   ;;  %v9684_v13 = vld [vmem:[%s24289_s4 + $0x1c0] sm:$0xff]  ;;  %v24558_v2 = vld [vmem:[#allocation163_spill] sm:$0xff] }
 0x7c9   : > { %v21926_v11 = vpop.f32.mrb[58].mxu1  ;;  %v21928_v7 = vpop.permute.xlu1 %2037  ;;  %v24565_v34 = vld [vmem:[#allocation158_spill] sm:$0xff] }
 0x7ca   : > { %24548 = vst [vmem:[#allocation13_spill] sm:$0xff] %v21911_v56  ;;  %v15510_v40 = vadd.f32 %v15509_v28, %v24553_v9  ;;  %v8814_v53 = vadd.f32 %v15508_v25, %v24554_v5  ;;  %7938 = vmatmul.mubr.bf16.gmra.mrb[180].mxu0 %v17925_v50  ;;  %24555 = vst [vmem:[#allocation14_spill] sm:$0xff] %v21926_v11  ;;  %v21930_v60 = vpop.f32.mrb[59].mxu1  ;;  %9974 = vperm.xlu0 %16981, %v9684_v13   ;;  %v9685_v9 = vld [vmem:[%s24289_s4 + $0x1c8] sm:$0xff]  ;;  %v24559_v25 = vld [vmem:[#allocation145_spill] sm:$0xff]  ;;  %v21946_v13 = vpop.permute.xlu0 %2042 }
 0x7cb   : > { %7945 = vmatprep.mubr.bf16.mxu0 %v17926_v21  ;;  %24556 = vst [vmem:[#allocation140_spill] sm:$0xff] %v21928_v7  ;;  %24557 = vst [vmem:[#allocation15_spill] sm:$0xff] %v21930_v60  ;;  %v17928_v5 = vld [vmem:[%s24286_s1 + $0xfe8] ss:$44 sps:$4 sm:$0xff]  }
 0x7cc   : > { %v8817_v46 = vadd.f32 %v15510_v40, %v24558_v2  ;;  %v9216_v26 = vmax.f32 %v8814_v53, 0.0  ;;  %9979 = vperm.xlu1 %16982, %v9685_v9   ;;  %v17931_v40 = vld [vmem:[%s24286_s1 + $0x1044] ss:$44 sps:$4 sm:$0xff]   ;;  %24560 = vst [vmem:[#allocation148_spill] sm:$0xff] %v21946_v13  ;;  %v9669_v11 = vld [vmem:[%s24289_s4 + $0x148] sm:$0xff] }
 0x7cd   : > { %v7731_v56 = vpop.f32.mrb[76].mxu0  ;;  %v9668_v53 = vld [vmem:[%s24289_s4 + $0x140] sm:$0xff]  ;;  %v21955_v9 = vpop.permute.xlu1 %2047 }
 0x7ce   : > { %v9217_v50 = vmax.f32 %v8817_v46, 0.0  ;;  %v15511_v21 = vadd.f32 %v7731_v56, %v24559_v25  ;;  %v7733_v28 = vpop.f32.mrb[77].mxu0  ;;  %v24562_v56 = vld [vmem:[#allocation20_spill] sm:$0xff]  ;;  %v24563_v25 = vld [vmem:[#allocation147_spill] sm:$0xff]  ;;  %9894 = vperm.xlu0 %16981, %v9668_v53   ;;  %24564 = vst [vmem:[#allocation141_spill] sm:$0xff] %v21955_v9  ;;  %v24569_v53 = vld [vmem:[#allocation150_spill] sm:$0xff] }
 0x7cf   : > { %v7734_v7 = vpop.f32.mrb[78].mxu0 }
 0x7d0   : > { %v21951_v2 = vpack.c.bf16 %v9217_v50, %v9216_v26  ;;  %v15512_v46 = vadd.f32 %v15511_v21, %v24562_v56  ;;  %v15513_v28 = vadd.f32 %v7734_v7, %v24563_v25  ;;  %v7736_v51 = vpop.f32.mrb[79].mxu0  ;;  %9899 = vperm.xlu1 %16982, %v9669_v11   ;;  %v17993_v26 = vld [vmem:[%s24286_s1 + $0x1578] ss:$44 sps:$4 sm:$0xff]   ;;  %v17994_v7 = vld [vmem:[%s24286_s1 + $0x15d0] ss:$44 sps:$4 sm:$0xff]  }
 0x7d1   : > { %v9686_v51 = vld [vmem:[%s24289_s4 + $0x1d0] sm:$0xff]  ;;  %v24567_v50 = vld [vmem:[#allocation161_spill] sm:$0xff]  ;;  %15393 = vmatprep.mubr.msk.bf16.mxu1 %vm5710_vm2, %v17993_v26  ;;  %v21986_v26 = vpop.permute.xlu1 %2057 }
 0x7d2   : > { %24561 = vst [vmem:[#allocation151_spill] sm:$0xff] %v21951_v2  ;;  %v8822_v13 = vadd.f32 %v15512_v46, %v24565_v34  ;;  %v15514_v60 = vadd.f32 %v15513_v28, %v24566_v29  ;;  %7946 = vmatmul.mubr.bf16.gmra.mrb[184].mxu0 %v17928_v5  ;;  %9984 = vperm.xlu0 %16981, %v9686_v51   ;;  %v21973_v34 = vpop.permute.xlu0 %2052  ;;  %v9687_v11 = vld [vmem:[%s24289_s4 + $0x1d8] sm:$0xff]  ;;  %24570 = vst [vmem:[#allocation142_spill] sm:$0xff] %v21986_v26  ;;  %v24574_v26 = vld [vmem:[#allocation23_spill] sm:$0xff] }
 0x7d3   : > { %7953 = vmatprep.mubr.bf16.mxu0 %v17931_v40  ;;  %24568 = vst [vmem:[#allocation16_spill] sm:$0xff] %v21973_v34  ;;  %15394 = vmatmul.mubr.msk.bf16.gmra.mrb[112].mxu1 %vm5710_vm2, %v17994_v7  ;;  %v17934_v28 = vld [vmem:[%s24286_s1 + $0x109c] ss:$44 sps:$4 sm:$0xff]   ;;  %v24572_v7 = vld [vmem:[#allocation22_spill] sm:$0xff] }
 0x7d4   : > { %v8825_v21 = vadd.f32 %v15514_v60, %v24567_v50  ;;  %v9218_v5 = vmax.f32 %v8822_v13, 0.0  ;;  %v17933_v60 = vld [vmem:[%s24286_s1 + $0x1040] ss:$44 sps:$4 sm:$0xff]   ;;  %9989 = vperm.xlu1 %16982, %v9687_v11   ;;  %v9670_v13 = vld [vmem:[%s24289_s4 + $0x150] sm:$0xff]  ;;  %v21995_v11 = vpop.f32.mrb[60].mxu1  ;;  %v9671_v2 = vld [vmem:[%s24289_s4 + $0x158] sm:$0xff] }
 0x7d5   : > { %v7739_v29 = vpop.f32.mrb[80].mxu0 }
 0x7d6   : > { %v9219_v40 = vmax.f32 %v8825_v21, 0.0  ;;  %v15515_v56 = vadd.f32 %v7739_v29, %v24569_v53  ;;  %v7741_v46 = vpop.f32.mrb[81].mxu0  ;;  %v24573_v21 = vld [vmem:[#allocation152_spill] sm:$0xff]  ;;  %9904 = vperm.xlu0 %16981, %v9670_v13  }
 0x7d7   : > { %v7742_v25 = vpop.f32.mrb[82].mxu0  ;;  %v21997_v46 = vpop.f32.mrb[61].mxu1 }
 0x7d8   : > { %v21991_v51 = vpack.c.bf16 %v9219_v40, %v9218_v5  ;;  %v15516_v50 = vadd.f32 %v15515_v56, %v24572_v7  ;;  %v15517_v29 = vadd.f32 %v7742_v25, %v24573_v21  ;;  %v7744_v53 = vpop.f32.mrb[83].mxu0  ;;  %9909 = vperm.xlu1 %16982, %v9671_v2   ;;  %v22004_v5 = vpop.f32.mrb[62].mxu1  ;;  %v9688_v25 = vld [vmem:[%s24289_s4 + $0x1e0] sm:$0xff] }
 0x7d9   : > { %24575 = vst [vmem:[#allocation17_spill] sm:$0xff] %v22004_v5  ;;  %v22006_v40 = vpop.permute.xlu0 %2062  ;;  %v22008_v56 = vpop.f32.mrb[63].mxu1 }
 0x7da   : > { %24571 = vst [vmem:[#allocation146_spill] sm:$0xff] %v21991_v51  ;;  %v15518_v34 = vadd.f32 %v15517_v29, %v24574_v26  ;;  %v8830_v9 = vadd.f32 %v15516_v50, %v21361_v19  ;;  %7954 = vmatmul.mubr.bf16.gmra.mrb[188].mxu0 %v17933_v60  ;;  %24576 = vst [vmem:[#allocation149_spill] sm:$0xff] %v22006_v40  ;;  %9994 = vperm.xlu0 %16981, %v9688_v25   ;;  %v22014_v26 = vpop.permute.xlu1 %2067  ;;  %v9689_v19 = vld [vmem:[%s24289_s4 + $0x1e8] sm:$0xff]  ;;  %v17936_v29 = vld [vmem:[%s24286_s1 + $0x1098] ss:$44 sps:$4 sm:$0xff]  }
 0x7db   : > { %7961 = vmatprep.mubr.bf16.mxu0 %v17934_v28  ;;  %24577 = vst [vmem:[#allocation143_spill] sm:$0xff] %v22014_v26  ;;  %v24578_v28 = vld [vmem:[#allocation153_spill] sm:$0xff] }
 0x7dc   : > { %v8833_v13 = vadd.f32 %v15518_v34, %v21372_v36  ;;  %v9220_v2 = vmax.f32 %v8830_v9, 0.0  ;;  %9999 = vperm.xlu1 %16982, %v9689_v19   ;;  %v17939_v36 = vld [vmem:[%s24286_s1 + $0x10f4] ss:$44 sps:$4 sm:$0xff]   ;;  %v9673_v19 = vld [vmem:[%s24289_s4 + $0x168] sm:$0xff]  ;;  %v24583_v40 = vld [vmem:[#allocation25_spill] sm:$0xff] }
 0x7dd   : > { %v7747_v7 = vpop.f32.mrb[84].mxu0  ;;  %v9672_v34 = vld [vmem:[%s24289_s4 + $0x160] sm:$0xff]  ;;  %v24580_v9 = vld [vmem:[#allocation24_spill] sm:$0xff]  ;;  %v22033_v51 = vpop.permute.xlu0 %2072 }
 0x7de   : > { %v9221_v60 = vmax.f32 %v8833_v13, 0.0  ;;  %v15519_v50 = vadd.f32 %v7747_v7, %v24578_v28  ;;  %v7749_v21 = vpop.f32.mrb[85].mxu0  ;;  %v24581_v7 = vld [vmem:[#allocation154_spill] sm:$0xff]  ;;  %9914 = vperm.xlu0 %16981, %v9672_v34   ;;  %24582 = vst [vmem:[#allocation144_spill] sm:$0xff] %v22033_v51  ;;  %v9691_v34 = vld [vmem:[%s24289_s4 + $0x1f8] sm:$0xff] }
 0x7df   : > { %v7750_v53 = vpop.f32.mrb[86].mxu0 }
 0x7e0   : > { %v22029_v25 = vpack.c.bf16 %v9221_v60, %v9220_v2  ;;  %v15520_v13 = vadd.f32 %v15519_v50, %v24580_v9  ;;  %v15521_v28 = vadd.f32 %v7750_v53, %v24581_v7  ;;  %v7752_v21 = vpop.f32.mrb[87].mxu0  ;;  %9919 = vperm.xlu1 %16982, %v9673_v19   ;;  %v22040_v2 = vpop.permute.xlu1 %2077  ;;  %v9690_v60 = vld [vmem:[%s24289_s4 + $0x1f0] sm:$0xff] }
 0x7e1   : > { %24584 = vst [vmem:[#allocation19_spill] sm:$0xff] %v22040_v2  ;;  %v24588_v21 = vld [vmem:[#allocation26_spill] sm:$0xff] }
 0x7e2   : > { %24579 = vst [vmem:[#allocation18_spill] sm:$0xff] %v22029_v25  ;;  %v8838_v26 = vadd.f32 %v15520_v13, %v21357_v35  ;;  %v15522_v5 = vadd.f32 %v15521_v28, %v24583_v40  ;;  %7962 = vmatmul.mubr.bf16.gmra.mrb[192].mxu0 %v17936_v29  ;;  %10004 = vperm.xlu0 %16981, %v9690_v60   ;;  %v24585_v40 = vld [vmem:[#allocation155_spill] sm:$0xff]  ;;  %v24589_v60 = vld [vmem:[#allocation156_spill] sm:$0xff]  ;;  %v9675_v25 = vld [vmem:[%s24289_s4 + $0x178] sm:$0xff] }
 0x7e3   : > { %7969 = vmatprep.mubr.bf16.mxu0 %v17939_v36  ;;  %v17941_v36 = vld [vmem:[%s24286_s1 + $0x10f0] ss:$44 sps:$4 sm:$0xff]  }
 0x7e4   : > { %v8841_v50 = vadd.f32 %v15522_v5, %v21368_v58  ;;  %v9222_v35 = vmax.f32 %v8838_v26, 0.0  ;;  %10009 = vperm.xlu1 %16982, %v9691_v34   ;;  %v17942_v58 = vld [vmem:[%s24286_s1 + $0x114c] ss:$44 sps:$4 sm:$0xff]   ;;  %v22056_v5 = vpop.permute.xlu0 %2082  ;;  %v9674_v26 = vld [vmem:[%s24289_s4 + $0x170] sm:$0xff]  ;;  %v22065_v34 = vpop.f32.mrb[64].mxu1 }
 0x7e5   : > { %v7755_v53 = vpop.f32.mrb[88].mxu0  ;;  %24586 = vst [vmem:[#allocation160_spill] sm:$0xff] %v22056_v5  ;;  %v24591_v5 = vld [vmem:[#allocation27_spill] sm:$0xff] }
 0x7e6   : > { %v9223_v9 = vmax.f32 %v8841_v50, 0.0  ;;  %v15523_v29 = vadd.f32 %v7755_v53, %v24585_v40  ;;  %v7757_v13 = vpop.f32.mrb[89].mxu0  ;;  %9924 = vperm.xlu0 %16981, %v9674_v26   ;;  %v22067_v40 = vpop.permute.xlu1 %2087 }
 0x7e7   : > { %v7758_v7 = vpop.f32.mrb[90].mxu0  ;;  %24590 = vst [vmem:[#allocation145_spill] sm:$0xff] %v22067_v40  ;;  %v22069_v13 = vpop.f32.mrb[65].mxu1  ;;  %v24598_v40 = vld [vmem:[#allocation29_spill] sm:$0xff] }
 0x7e8   : > { %v22061_v28 = vpack.c.bf16 %v9223_v9, %v9222_v35  ;;  %v15524_v19 = vadd.f32 %v15523_v29, %v24588_v21  ;;  %v15525_v50 = vadd.f32 %v7758_v7, %v24589_v60  ;;  %v7760_v53 = vpop.f32.mrb[91].mxu0  ;;  %9929 = vperm.xlu1 %16982, %v9675_v25   ;;  %v22076_v9 = vpop.f32.mrb[66].mxu1  ;;  %v12624_v7 = vld [vmem:[%s24291_s6 + $0x80] sm:$0xff] }
 0x7e9   : > { %v22078_v29 = vpop.f32.mrb[67].mxu1  ;;  %v22084_v60 = vpop.permute.xlu0 %2092 }
 0x7ea   : > { %24587 = vst [vmem:[#allocation163_spill] sm:$0xff] %v22061_v28  ;;  %v15526_v2 = vadd.f32 %v15525_v50, %v24591_v5  ;;  %v8846_v35 = vadd.f32 %v15524_v19, %v21445_v6  ;;  %7970 = vmatmul.mubr.bf16.gmra.mrb[196].mxu0 %v17941_v36  ;;  %12722 = vperm.xlu0 %16981, %v12624_v7   ;;  %24592 = vst [vmem:[#allocation20_spill] sm:$0xff] %v22084_v60  ;;  %v12625_v6 = vld [vmem:[%s24291_s6 + $0x88] sm:$0xff]  ;;  %v24593_v5 = vld [vmem:[#allocation157_spill] sm:$0xff] }
 0x7eb   : > { %7977 = vmatprep.mubr.bf16.mxu0 %v17942_v58  ;;  %v17944_v50 = vld [vmem:[%s24286_s1 + $0x1148] ss:$44 sps:$4 sm:$0xff]  }
 0x7ec   : > { %v8849_v26 = vadd.f32 %v15526_v2, %v21456_v27  ;;  %v9224_v25 = vmax.f32 %v8846_v35, 0.0  ;;  %12727 = vperm.xlu1 %16982, %v12625_v6   ;;  %v17947_v27 = vld [vmem:[%s24286_s1 + $0x11a4] ss:$44 sps:$4 sm:$0xff]   ;;  %v22096_v2 = vpop.permute.xlu1 %2097  ;;  %v12609_v6 = vld [vmem:[%s24291_s6 + $0x8] sm:$0xff] }
 0x7ed   : > { %v7763_v21 = vpop.f32.mrb[92].mxu0  ;;  %24594 = vst [vmem:[#allocation147_spill] sm:$0xff] %v22096_v2  ;;  %v12608_v35 = vld [vmem:[%s24291_s6] sm:$0xff]  ;;  %v22110_v51 = vpop.permute.xlu0 %2102 }
 0x7ee   : > { %v9225_v36 = vmax.f32 %v8849_v26, 0.0  ;;  %v15527_v58 = vadd.f32 %v7763_v21, %v24593_v5  ;;  %v7765_v19 = vpop.f32.mrb[93].mxu0  ;;  %v24596_v26 = vld [vmem:[#allocation28_spill] sm:$0xff]  ;;  %v24597_v5 = vld [vmem:[#allocation159_spill] sm:$0xff]  ;;  %12642 = vperm.xlu0 %16981, %v12608_v35  }
 0x7ef   : > { %v7766_v53 = vpop.f32.mrb[94].mxu0 }
 0x7f0   : > { %v22101_v7 = vpack.c.bf16 %v9225_v36, %v9224_v25  ;;  %v15528_v21 = vadd.f32 %v15527_v58, %v24596_v26  ;;  %v15529_v19 = vadd.f32 %v7766_v53, %v24597_v5  ;;  %v7768_v28 = vpop.f32.mrb[95].mxu0  ;;  %12647 = vperm.xlu1 %16982, %v12609_v6   ;;  %v12626_v25 = vld [vmem:[%s24291_s6 + $0x90] sm:$0xff]  ;;  %v22116_v58 = vpop.permute.xlu1 %2107  ;;  %v24600_v53 = vld [vmem:[#allocation162_spill] sm:$0xff] }
 0x7f1   : > { %24599 = vst [vmem:[#allocation21_spill] sm:$0xff] %v22116_v58  ;;  %v17949_v26 = vld [vmem:[%s24286_s1 + $0x11a0] ss:$44 sps:$4 sm:$0xff]   ;;  %v24603_v6 = vld [vmem:[#allocation164_spill] sm:$0xff] }
 0x7f2   : > { %24595 = vst [vmem:[#allocation158_spill] sm:$0xff] %v22101_v7  ;;  %v8854_v60 = vadd.f32 %v15528_v21, %v21441_v16  ;;  %v15530_v2 = vadd.f32 %v15529_v19, %v24598_v40  ;;  %7978 = vmatmul.mubr.bf16.gmra.mrb[200].mxu0 %v17944_v50  ;;  %12732 = vperm.xlu0 %16981, %v12626_v25   ;;  %v12627_v16 = vld [vmem:[%s24291_s6 + $0x98] sm:$0xff]  ;;  %v24605_v7 = vld [vmem:[#allocation31_spill] sm:$0xff] }
 0x7f3   : > { %7985 = vmatprep.mubr.bf16.mxu0 %v17947_v27 }
 0x7f4   : > { %v8857_v28 = vadd.f32 %v15530_v2, %v21452_v10  ;;  %v9226_v40 = vmax.f32 %v8854_v60, 0.0  ;;  %12737 = vperm.xlu1 %16982, %v12627_v16   ;;  %v17950_v10 = vld [vmem:[%s24286_s1 + $0x11fc] ss:$44 sps:$4 sm:$0xff]   ;;  %v12610_v2 = vld [vmem:[%s24291_s6 + $0x10] sm:$0xff]  ;;  %v24602_v60 = vld [vmem:[#allocation30_spill] sm:$0xff]  ;;  %v22137_v16 = vpop.permute.xlu0 %2112 }
 0x7f5   : > { %v7771_v36 = vpop.f32.mrb[96].mxu0  ;;  %24604 = vst [vmem:[#allocation150_spill] sm:$0xff] %v22137_v16 }
 0x7f6   : > { %v9227_v50 = vmax.f32 %v8857_v28, 0.0  ;;  %v15531_v27 = vadd.f32 %v7771_v36, %v24600_v53  ;;  %v7773_v35 = vpop.f32.mrb[97].mxu0  ;;  %12652 = vperm.xlu0 %16981, %v12610_v2   ;;  %v22135_v36 = vpop.f32.mrb[68].mxu1  ;;  %v12628_v2 = vld [vmem:[%s24291_s6 + $0xa0] sm:$0xff] }
 0x7f7   : > { %v7774_v21 = vpop.f32.mrb[98].mxu0  ;;  %v22139_v53 = vpop.f32.mrb[69].mxu1  ;;  %v12611_v35 = vld [vmem:[%s24291_s6 + $0x18] sm:$0xff] }
 0x7f8   : > { %v22131_v5 = vpack.c.bf16 %v9227_v50, %v9226_v40  ;;  %v15532_v19 = vadd.f32 %v15531_v27, %v24602_v60  ;;  %v15533_v25 = vadd.f32 %v7774_v21, %v24603_v6  ;;  %v7776_v28 = vpop.f32.mrb[99].mxu0  ;;  %12657 = vperm.xlu1 %16982, %v12611_v35   ;;  %v22146_v50 = vpop.f32.mrb[70].mxu1 }
 0x7f9   : > { %v22148_v27 = vpop.permute.xlu1 %2117  ;;  %v22150_v21 = vpop.f32.mrb[71].mxu1  ;;  %v17952_v28 = vld [vmem:[%s24286_s1 + $0x11f8] ss:$44 sps:$4 sm:$0xff]  }
 0x7fa   : > { %24601 = vst [vmem:[#allocation161_spill] sm:$0xff] %v22131_v5  ;;  %v15534_v58 = vadd.f32 %v15533_v25, %v24605_v7  ;;  %v8862_v40 = vadd.f32 %v15532_v19, %v21525_v44  ;;  %7986 = vmatmul.mubr.bf16.gmra.mrb[204].mxu0 %v17949_v26  ;;  %24606 = vst [vmem:[#allocation22_spill] sm:$0xff] %v22148_v27  ;;  %12742 = vperm.xlu0 %16981, %v12628_v2   ;;  %v12629_v44 = vld [vmem:[%s24291_s6 + $0xa8] sm:$0xff]  ;;  %v24607_v19 = vld [vmem:[#allocation165_spill] sm:$0xff] }
 0x7fb   : > { %7993 = vmatprep.mubr.bf16.mxu0 %v17950_v10  ;;  %v12613_v5 = vld [vmem:[%s24291_s6 + $0x28] sm:$0xff]  ;;  %v24611_v27 = vld [vmem:[#allocation33_spill] sm:$0xff] }
 0x7fc   : > { %v8865_v60 = vadd.f32 %v15534_v58, %v21536_v32  ;;  %v9228_v7 = vmax.f32 %v8862_v40, 0.0  ;;  %12747 = vperm.xlu1 %16982, %v12629_v44   ;;  %v17955_v32 = vld [vmem:[%s24286_s1 + $0x1254] ss:$44 sps:$4 sm:$0xff]   ;;  %v22166_v58 = vpop.permute.xlu0 %2122 }
 0x7fd   : > { %v7779_v6 = vpop.f32.mrb[100].mxu0  ;;  %24608 = vst [vmem:[#allocation152_spill] sm:$0xff] %v22166_v58  ;;  %v12612_v40 = vld [vmem:[%s24291_s6 + $0x20] sm:$0xff]  ;;  %v22175_v44 = vpop.permute.xlu1 %2127 }
 0x7fe   : > { %v9229_v26 = vmax.f32 %v8865_v60, 0.0  ;;  %v15535_v10 = vadd.f32 %v7779_v6, %v24607_v19  ;;  %v7781_v25 = vpop.f32.mrb[101].mxu0  ;;  %v24610_v60 = vld [vmem:[#allocation32_spill] sm:$0xff]  ;;  %12662 = vperm.xlu0 %16981, %v12612_v40  }
 0x7ff   : > { %v7782_v35 = vpop.f32.mrb[102].mxu0 }
 0x800   : > { %v22171_v2 = vpack.c.bf16 %v9229_v26, %v9228_v7  ;;  %v15536_v6 = vadd.f32 %v15535_v10, %v24610_v60  ;;  %v15537_v19 = vadd.f32 %v7782_v35, %v21315_v1  ;;  %v7784_v25 = vpop.f32.mrb[103].mxu0  ;;  %12667 = vperm.xlu1 %16982, %v12613_v5   ;;  %v12630_v7 = vld [vmem:[%s24291_s6 + $0xb0] sm:$0xff]  ;;  %v22186_v10 = vpop.permute.xlu0 %2132  ;;  %v12631_v35 = vld [vmem:[%s24291_s6 + $0xb8] sm:$0xff] }
 0x802   : > { %24609 = vst [vmem:[#allocation23_spill] sm:$0xff] %v22171_v2  ;;  %v8870_v58 = vadd.f32 %v15536_v6, %v21523_v17  ;;  %v15538_v16 = vadd.f32 %v15537_v19, %v24611_v27  ;;  %7994 = vmatmul.mubr.bf16.gmra.mrb[208].mxu0 %v17952_v28  ;;  %12752 = vperm.xlu0 %16981, %v12630_v7   ;;  %v17957_v28 = vld [vmem:[%s24286_s1 + $0x1250] ss:$44 sps:$4 sm:$0xff]   ;;  %v24615_v19 = vld [vmem:[#allocation166_spill] sm:$0xff] }
 0x803   : > { %8001 = vmatprep.mubr.bf16.mxu0 %v17955_v32 }
 0x804   : > { %v8873_v1 = vadd.f32 %v15538_v16, %v21532_v59  ;;  %v9230_v17 = vmax.f32 %v8870_v58, 0.0  ;;  %12757 = vperm.xlu1 %16982, %v12631_v35   ;;  %v17958_v59 = vld [vmem:[%s24286_s1 + $0x12ac] ss:$44 sps:$4 sm:$0xff]   ;;  %v22198_v16 = vpop.permute.xlu1 %2137  ;;  %v12614_v58 = vld [vmem:[%s24291_s6 + $0x30] sm:$0xff] }
 0x805   : > { %v7787_v26 = vpop.f32.mrb[104].mxu0  ;;  %24612 = vst [vmem:[#allocation153_spill] sm:$0xff] %v22198_v16  ;;  %v12615_v35 = vld [vmem:[%s24291_s6 + $0x38] sm:$0xff] }
 0x806   : > { %v9231_v40 = vmax.f32 %v8873_v1, 0.0  ;;  %v15539_v27 = vadd.f32 %v7787_v26, %v21325_v48  ;;  %v7789_v5 = vpop.f32.mrb[105].mxu0  ;;  %v24614_v48 = vld [vmem:[#allocation34_spill] sm:$0xff]  ;;  %12672 = vperm.xlu0 %16981, %v12614_v58   ;;  %v22207_v1 = vpop.f32.mrb[72].mxu1 }
 0x807   : > { %v7790_v32 = vpop.f32.mrb[106].mxu0  ;;  %v22209_v26 = vpop.f32.mrb[73].mxu1  ;;  %v24616_v5 = vld [vmem:[#allocation35_spill] sm:$0xff] }
 0x808   : > { %v22203_v60 = vpack.c.bf16 %v9231_v40, %v9230_v17  ;;  %v15540_v6 = vadd.f32 %v15539_v27, %v24614_v48  ;;  %v15541_v25 = vadd.f32 %v7790_v32, %v24615_v19  ;;  %v7792_v7 = vpop.f32.mrb[107].mxu0  ;;  %12677 = vperm.xlu1 %16982, %v12615_v35   ;;  %v22216_v17 = vpop.f32.mrb[74].mxu1  ;;  %v12632_v32 = vld [vmem:[%s24291_s6 + $0xc0] sm:$0xff]  ;;  %v17960_v35 = vld [vmem:[%s24286_s1 + $0x12a8] ss:$44 sps:$4 sm:$0xff]  }
 0x809   : > { %v22218_v40 = vpop.permute.xlu0 %2142  ;;  %v22220_v27 = vpop.f32.mrb[75].mxu1 }
 0x80a   : > { %24613 = vst [vmem:[#allocation24_spill] sm:$0xff] %v22203_v60  ;;  %v15542_v2 = vadd.f32 %v15541_v25, %v24616_v5  ;;  %v8878_v16 = vadd.f32 %v15540_v6, %v21605_v31  ;;  %8002 = vmatmul.mubr.bf16.gmra.mrb[212].mxu0 %v17957_v28  ;;  %24617 = vst [vmem:[#allocation154_spill] sm:$0xff] %v22218_v40  ;;  %12762 = vperm.xlu0 %16981, %v12632_v32   ;;  %v22226_v19 = vpop.permute.xlu1 %2147  ;;  %v12633_v31 = vld [vmem:[%s24291_s6 + $0xc8] sm:$0xff] }
 0x80b   : > { %8009 = vmatprep.mubr.bf16.mxu0 %v17958_v59  ;;  %24618 = vst [vmem:[#allocation25_spill] sm:$0xff] %v22226_v19  ;;  %v24619_v6 = vld [vmem:[#allocation167_spill] sm:$0xff]  ;;  %v24622_v19 = vld [vmem:[#allocation37_spill] sm:$0xff] }
 0x80c   : > { %v8881_v58 = vadd.f32 %v15542_v2, %v21614_v24  ;;  %v9232_v28 = vmax.f32 %v8878_v16, 0.0  ;;  %12767 = vperm.xlu1 %16982, %v12633_v31   ;;  %v17963_v24 = vld [vmem:[%s24286_s1 + $0x1304] ss:$44 sps:$4 sm:$0xff]   ;;  %v12617_v31 = vld [vmem:[%s24291_s6 + $0x48] sm:$0xff] }
 0x80d   : > { %v7795_v48 = vpop.f32.mrb[108].mxu0  ;;  %v12616_v2 = vld [vmem:[%s24291_s6 + $0x40] sm:$0xff]  ;;  %v24621_v16 = vld [vmem:[#allocation36_spill] sm:$0xff] }
 0x80e   : > { %v9233_v59 = vmax.f32 %v8881_v58, 0.0  ;;  %v15543_v25 = vadd.f32 %v7795_v48, %v24619_v6  ;;  %v7797_v7 = vpop.f32.mrb[109].mxu0  ;;  %12682 = vperm.xlu0 %16981, %v12616_v2  }
 0x80f   : > { %v7798_v5 = vpop.f32.mrb[110].mxu0  ;;  %v22245_v7 = vpop.permute.xlu0 %2152 }
 0x810   : > { %v22241_v32 = vpack.c.bf16 %v9233_v59, %v9232_v28  ;;  %v15544_v58 = vadd.f32 %v15543_v25, %v24621_v16  ;;  %v15545_v48 = vadd.f32 %v7798_v5, %v21359_v23  ;;  %v7800_v6 = vpop.f32.mrb[111].mxu0  ;;  %12687 = vperm.xlu1 %16982, %v12617_v31   ;;  %v22252_v28 = vpop.permute.xlu1 %2157  ;;  %v12634_v23 = vld [vmem:[%s24291_s6 + $0xd0] sm:$0xff]  ;;  %v12635_v5 = vld [vmem:[%s24291_s6 + $0xd8] sm:$0xff] }
 0x812   : > { %24620 = vst [vmem:[#allocation155_spill] sm:$0xff] %v22241_v32  ;;  %v8886_v60 = vadd.f32 %v15544_v58, %v21601_v47  ;;  %v15546_v40 = vadd.f32 %v15545_v48, %v24622_v19  ;;  %8010 = vmatmul.mubr.bf16.gmra.mrb[216].mxu0 %v17960_v35  ;;  %12772 = vperm.xlu0 %16981, %v12634_v23   ;;  %v22277_v23 = vpop.f32.mrb[76].mxu1 }
 0x813   : > { %8017 = vmatprep.mubr.bf16.mxu0 %v17963_v24  ;;  %v17965_v24 = vld [vmem:[%s24286_s1 + $0x1300] ss:$44 sps:$4 sm:$0xff]  }
 0x814   : > { %v8889_v59 = vadd.f32 %v15546_v40, %v21612_v57  ;;  %v9234_v47 = vmax.f32 %v8886_v60, 0.0  ;;  %12777 = vperm.xlu1 %16982, %v12635_v5   ;;  %v17966_v57 = vld [vmem:[%s24286_s1 + $0x135c] ss:$44 sps:$4 sm:$0xff]   ;;  %v22268_v40 = vpop.permute.xlu0 %2162  ;;  %v12618_v60 = vld [vmem:[%s24291_s6 + $0x50] sm:$0xff] }
 0x815   : > { %v7803_v25 = vpop.f32.mrb[112].mxu0  ;;  %v12619_v5 = vld [vmem:[%s24291_s6 + $0x58] sm:$0xff] }
 0x816   : > { %v9235_v2 = vmax.f32 %v8889_v59, 0.0  ;;  %v15547_v19 = vadd.f32 %v7803_v25, %v21370_v42  ;;  %v7805_v35 = vpop.f32.mrb[113].mxu0  ;;  %v24624_v42 = vld [vmem:[#allocation38_spill] sm:$0xff]  ;;  %12692 = vperm.xlu0 %16981, %v12618_v60   ;;  %v22279_v59 = vpop.permute.xlu1 %2167 }
 0x817   : > { %v7806_v16 = vpop.f32.mrb[114].mxu0  ;;  %v22281_v25 = vpop.f32.mrb[77].mxu1  ;;  %v24625_v35 = vld [vmem:[#allocation39_spill] sm:$0xff] }
 0x818   : > { %v22273_v58 = vpack.c.bf16 %v9235_v2, %v9234_v47  ;;  %v15548_v48 = vadd.f32 %v15547_v19, %v24624_v42  ;;  %v15549_v6 = vadd.f32 %v7806_v16, %v21378_v63  ;;  %v7808_v31 = vpop.f32.mrb[115].mxu0  ;;  %12697 = vperm.xlu1 %16982, %v12619_v5   ;;  %v22288_v2 = vpop.f32.mrb[78].mxu1  ;;  %v12636_v19 = vld [vmem:[%s24291_s6 + $0xe0] sm:$0xff]  ;;  %v12637_v42 = vld [vmem:[%s24291_s6 + $0xe8] sm:$0xff] }
 0x819   : > { %v22290_v63 = vpop.f32.mrb[79].mxu1  ;;  %v22303_v5 = vpop.permute.xlu0 %2172 }
 0x81a   : > { %24623 = vst [vmem:[#allocation26_spill] sm:$0xff] %v22273_v58  ;;  %v15550_v32 = vadd.f32 %v15549_v6, %v24625_v35  ;;  %v8894_v47 = vadd.f32 %v15548_v48, %v21683_v41  ;;  %8018 = vmatmul.mubr.bf16.gmra.mrb[220].mxu0 %v17965_v24  ;;  %12782 = vperm.xlu0 %16981, %v12636_v19   ;;  %v24626_v48 = vld [vmem:[#allocation169_spill] sm:$0xff]  ;;  %24627 = vst [vmem:[#allocation156_spill] sm:$0xff] %v22303_v5 }
 0x81b   : > { %8025 = vmatprep.mubr.bf16.mxu0 %v17966_v57  ;;  %v17968_v57 = vld [vmem:[%s24286_s1 + $0x1358] ss:$44 sps:$4 sm:$0xff]  }
 0x81c   : > { %v8897_v16 = vadd.f32 %v15550_v32, %v21694_v3  ;;  %v9236_v41 = vmax.f32 %v8894_v47, 0.0  ;;  %12787 = vperm.xlu1 %16982, %v12637_v42   ;;  %v17971_v3 = vld [vmem:[%s24286_s1 + $0x13b4] ss:$44 sps:$4 sm:$0xff]   ;;  %v22308_v32 = vpop.permute.xlu1 %2177  ;;  %v12621_v42 = vld [vmem:[%s24291_s6 + $0x68] sm:$0xff]  ;;  %v24631_v5 = vld [vmem:[#allocation41_spill] sm:$0xff] }
 0x81d   : > { %v7811_v60 = vpop.f32.mrb[116].mxu0  ;;  %24628 = vst [vmem:[#allocation27_spill] sm:$0xff] %v22308_v32  ;;  %v12620_v47 = vld [vmem:[%s24291_s6 + $0x60] sm:$0xff] }
 0x81e   : > { %v9237_v24 = vmax.f32 %v8897_v16, 0.0  ;;  %v15551_v6 = vadd.f32 %v7811_v60, %v24626_v48  ;;  %v7813_v31 = vpop.f32.mrb[117].mxu0  ;;  %v24630_v16 = vld [vmem:[#allocation40_spill] sm:$0xff]  ;;  %12702 = vperm.xlu0 %16981, %v12620_v47  }
 0x81f   : > { %v7814_v35 = vpop.f32.mrb[118].mxu0 }
 0x820   : > { %v22313_v19 = vpack.c.bf16 %v9237_v24, %v9236_v41  ;;  %v15552_v60 = vadd.f32 %v15551_v6, %v24630_v16  ;;  %v15553_v48 = vadd.f32 %v7814_v35, %v21399_v30  ;;  %v7816_v31 = vpop.f32.mrb[119].mxu0  ;;  %12707 = vperm.xlu1 %16982, %v12621_v42   ;;  %v12638_v41 = vld [vmem:[%s24291_s6 + $0xf0] sm:$0xff]  ;;  %v22326_v30 = vpop.permute.xlu0 %2182 }
 0x821   : > { %v22328_v35 = vpop.permute.xlu1 %2187  ;;  %v17973_v16 = vld [vmem:[%s24286_s1 + $0x13b0] ss:$44 sps:$4 sm:$0xff]  }
 0x822   : > { %24629 = vst [vmem:[#allocation157_spill] sm:$0xff] %v22313_v19  ;;  %v8902_v58 = vadd.f32 %v15552_v60, %v21679_v8  ;;  %v15554_v32 = vadd.f32 %v15553_v48, %v24631_v5  ;;  %8026 = vmatmul.mubr.bf16.gmra.mrb[224].mxu0 %v17968_v57  ;;  %12792 = vperm.xlu0 %16981, %v12638_v41   ;;  %v12639_v8 = vld [vmem:[%s24291_s6 + $0xf8] sm:$0xff]  ;;  %v12622_v60 = vld [vmem:[%s24291_s6 + $0x70] sm:$0xff] }
 0x823   : > { %8033 = vmatprep.mubr.bf16.mxu0 %v17971_v3 }
 0x824   : > { %v8905_v24 = vadd.f32 %v15554_v32, %v21690_v45  ;;  %v9238_v5 = vmax.f32 %v8902_v58, 0.0  ;;  %12797 = vperm.xlu1 %16982, %v12639_v8   ;;  %v17974_v32 = vld [vmem:[%s24286_s1 + $0x140c] ss:$44 sps:$4 sm:$0xff]   ;;  %v24633_v58 = vld [vmem:[#allocation42_spill] sm:$0xff] }
 0x825   : > { %v7819_v6 = vpop.f32.mrb[120].mxu0  ;;  %v24634_v8 = vld [vmem:[#allocation43_spill] sm:$0xff] }
 0x826   : > { %v9239_v57 = vmax.f32 %v8905_v24, 0.0  ;;  %v15555_v3 = vadd.f32 %v7819_v6, %v21409_v39  ;;  %v7821_v47 = vpop.f32.mrb[121].mxu0  ;;  %12712 = vperm.xlu0 %16981, %v12622_v60   ;;  %v22347_v41 = vpop.f32.mrb[80].mxu1  ;;  %v12623_v6 = vld [vmem:[%s24291_s6 + $0x78] sm:$0xff] }
 0x827   : > { %v7822_v45 = vpop.f32.mrb[122].mxu0  ;;  %v22349_v24 = vpop.f32.mrb[81].mxu1 }
 0x828   : > { %v22343_v48 = vpack.c.bf16 %v9239_v57, %v9238_v5  ;;  %v15556_v31 = vadd.f32 %v15555_v3, %v24633_v58  ;;  %v15557_v39 = vadd.f32 %v7822_v45, %v21419_v37  ;;  %v7824_v42 = vpop.f32.mrb[123].mxu0  ;;  %v22356_v5 = vpop.permute.xlu0 %9774  ;;  %12717 = vperm.xlu1 %16982, %v12623_v6   ;;  %v13498_v45 = vld [vmem:[%s24293_s8] sm:$0xff] }
 0x829   : > { %24635 = vst [vmem:[#allocation159_spill] sm:$0xff] %v22356_v5  ;;  %v22358_v57 = vpop.f32.mrb[82].mxu1  ;;  %v22360_v37 = vpop.permute.xlu1 %9779  ;;  %v17976_v42 = vld [vmem:[%s24286_s1 + $0x1408] ss:$44 sps:$4 sm:$0xff]   ;;  %v24641_v5 = vld [vmem:[#allocation45_spill] sm:$0xff] }
 0x82a   : > { %24632 = vst [vmem:[#allocation28_spill] sm:$0xff] %v22343_v48  ;;  %v15558_v47 = vadd.f32 %v15557_v39, %v24634_v8  ;;  %v8910_v19 = vadd.f32 %v15556_v31, %v21761_v18  ;;  %8034 = vmatmul.mubr.bf16.gmra.mrb[228].mxu0 %v17973_v16  ;;  %24636 = vst [vmem:[#allocation29_spill] sm:$0xff] %v22360_v37  ;;  %v22362_v3 = vpop.f32.mrb[83].mxu1  ;;  %13508 = vperm.xlu0 %16981, %v13498_v45   ;;  %v13499_v18 = vld [vmem:[%s24293_s8 + $0x8] sm:$0xff]  ;;  %v13500_v8 = vld [vmem:[%s24293_s8 + $0x10] sm:$0xff] }
 0x82b   : > { %8041 = vmatprep.mubr.bf16.mxu0 %v17974_v32 }
 0x82c   : > { %v8913_v60 = vadd.f32 %v15558_v47, %v21772_v62  ;;  %v9240_v16 = vmax.f32 %v8910_v19, 0.0  ;;  %13513 = vperm.xlu1 %16982, %v13499_v18   ;;  %v17979_v62 = vld [vmem:[%s24286_s1 + $0x1464] ss:$44 sps:$4 sm:$0xff]  }
 0x82d   : > { %v7827_v58 = vpop.f32.mrb[124].mxu0  ;;  %v24638_v19 = vld [vmem:[#allocation44_spill] sm:$0xff]  ;;  %v22387_v18 = vpop.permute.xlu1 %9699 }
 0x82e   : > { %v9241_v31 = vmax.f32 %v8913_v60, 0.0  ;;  %v15559_v32 = vadd.f32 %v7827_v58, %v21432_v20  ;;  %v7829_v39 = vpop.f32.mrb[125].mxu0  ;;  %v22385_v58 = vpop.permute.xlu0 %9694  ;;  %13518 = vperm.xlu0 %16981, %v13500_v8   ;;  %24640 = vst [vmem:[#allocation164_spill] sm:$0xff] %v22387_v18 }
 0x82f   : > { %v7830_v6 = vpop.f32.mrb[126].mxu0  ;;  %24639 = vst [vmem:[#allocation30_spill] sm:$0xff] %v22385_v58  ;;  %v13501_v39 = vld [vmem:[%s24293_s8 + $0x18] sm:$0xff] }
 0x830   : > { %v22381_v47 = vpack.c.bf16 %v9241_v31, %v9240_v16  ;;  %v15560_v45 = vadd.f32 %v15559_v32, %v24638_v19  ;;  %v15561_v20 = vadd.f32 %v7830_v6, %v21443_v33  ;;  %v7832_v60 = vpop.f32.mrb[127].mxu0  ;;  %13523 = vperm.xlu1 %16982, %v13501_v39   ;;  %v13502_v33 = vld [vmem:[%s24293_s8 + $0x20] sm:$0xff]  ;;  %v13503_v32 = vld [vmem:[%s24293_s8 + $0x28] sm:$0xff] }
 0x832   : > { %24637 = vst [vmem:[#allocation162_spill] sm:$0xff] %v22381_v47  ;;  %v8918_v37 = vadd.f32 %v15560_v45, %v21759_v0  ;;  %v15562_v48 = vadd.f32 %v15561_v20, %v24641_v5  ;;  %8042 = vmatmul.mubr.bf16.gmra.mrb[232].mxu0 %v17976_v42  ;;  %13528 = vperm.xlu0 %16981, %v13502_v33   ;;  %v17981_v42 = vld [vmem:[%s24286_s1 + $0x1460] ss:$44 sps:$4 sm:$0xff]  }
 0x833   : > { %8049 = vmatprep.mubr.bf16.mxu0 %v17979_v62  ;;  %v22405_v62 = vpop.permute.xlu0 %9784  ;;  %v24645_v45 = vld [vmem:[#allocation46_spill] sm:$0xff] }
 0x834   : > { %v8921_v16 = vadd.f32 %v15562_v48, %v21768_v12  ;;  %v9242_v6 = vmax.f32 %v8918_v37, 0.0  ;;  %24642 = vst [vmem:[#allocation31_spill] sm:$0xff] %v22405_v62  ;;  %13533 = vperm.xlu1 %16982, %v13503_v32   ;;  %v17982_v12 = vld [vmem:[%s24286_s1 + $0x14bc] ss:$44 sps:$4 sm:$0xff]   ;;  %v22410_v48 = vpop.permute.xlu1 %9789  ;;  %v13504_v37 = vld [vmem:[%s24293_s8 + $0x30] sm:$0xff] }
 0x835   : > { %v7835_v31 = vpop.f32.mrb[128].mxu0  ;;  %24643 = vst [vmem:[#allocation165_spill] sm:$0xff] %v22410_v48  ;;  %v24646_v32 = vld [vmem:[#allocation47_spill] sm:$0xff] }
 0x836   : > { %v9243_v8 = vmax.f32 %v8921_v16, 0.0  ;;  %v15563_v0 = vadd.f32 %v7835_v31, %v21454_v14  ;;  %v7837_v5 = vpop.f32.mrb[129].mxu0  ;;  %13538 = vperm.xlu0 %16981, %v13504_v37   ;;  %v22419_v33 = vpop.f32.mrb[84].mxu1  ;;  %v13505_v31 = vld [vmem:[%s24293_s8 + $0x38] sm:$0xff] }
 0x837   : > { %v7838_v19 = vpop.f32.mrb[130].mxu0  ;;  %v22421_v16 = vpop.f32.mrb[85].mxu1 }
 0x838   : > { %v22415_v14 = vpack.c.bf16 %v9243_v8, %v9242_v6  ;;  %v15564_v20 = vadd.f32 %v15563_v0, %v24645_v45  ;;  %v15565_v60 = vadd.f32 %v7838_v19, %v21462_v15  ;;  %v7840_v39 = vpop.f32.mrb[131].mxu0  ;;  %13543 = vperm.xlu1 %16982, %v13505_v31   ;;  %v22428_v6 = vpop.f32.mrb[86].mxu1  ;;  %v13665_v8 = vld [vmem:[%s24295_s10] sm:$0xff] }
 0x839   : > { %v22430_v15 = vpop.f32.mrb[87].mxu1  ;;  %v22436_v19 = vpop.permute.xlu0 %9704  ;;  %v17987_v31 = vld [vmem:[%s24286_s1 + $0x1514] ss:$44 sps:$4 sm:$0xff]  }
 0x83a   : > { %24644 = vst [vmem:[#allocation32_spill] sm:$0xff] %v22415_v14  ;;  %v15566_v5 = vadd.f32 %v15565_v60, %v24646_v32  ;;  %v8926_v48 = vadd.f32 %v15564_v20, %v21841_v49  ;;  %8050 = vmatmul.mubr.bf16.gmra.mrb[236].mxu0 %v17981_v42  ;;  %24647 = vst [vmem:[#allocation33_spill] sm:$0xff] %v22436_v19  ;;  %13669 = vperm.xlu0 %16981, %v13665_v8   ;;  %v13666_v49 = vld [vmem:[%s24295_s10 + $0x8] sm:$0xff]  ;;  %v17984_v60 = vld [vmem:[%s24286_s1 + $0x14b8] ss:$44 sps:$4 sm:$0xff]   ;;  %v22445_v39 = vpop.permute.xlu1 %9709 }
 0x83b   : > { %8057 = vmatprep.mubr.bf16.mxu0 %v17982_v12  ;;  %24648 = vst [vmem:[#allocation34_spill] sm:$0xff] %v22445_v39 }
 0x83c   : > { %v8929_v0 = vadd.f32 %v15566_v5, %v21850_v38  ;;  %v9244_v42 = vmax.f32 %v8926_v48, 0.0  ;;  %13674 = vperm.xlu1 %16982, %v13666_v49   ;;  %v24650_v5 = vld [vmem:[#allocation48_spill] sm:$0xff] }
 0x83d   : > { %v7843_v37 = vpop.f32.mrb[132].mxu0 }
 0x83e   : > { %v9245_v45 = vmax.f32 %v8929_v0, 0.0  ;;  %v15567_v12 = vadd.f32 %v7843_v37, %v21474_v22  ;;  %v7845_v20 = vpop.f32.mrb[133].mxu0  ;;  %v24651_v37 = vld [vmem:[#allocation49_spill] sm:$0xff] }
 0x83f   : > { %v7846_v38 = vpop.f32.mrb[134].mxu0 }
 0x840   : > { %v22450_v32 = vpack.c.bf16 %v9245_v45, %v9244_v42  ;;  %v15568_v48 = vadd.f32 %v15567_v12, %v24650_v5  ;;  %v15569_v8 = vadd.f32 %v7846_v38, %v21483_v54  ;;  %v7848_v22 = vpop.f32.mrb[135].mxu0  ;;  %v17989_v45 = vld [vmem:[%s24286_s1 + $0x1510] ss:$44 sps:$4 sm:$0xff]  }
 0x842   : > { %24649 = vst [vmem:[#allocation166_spill] sm:$0xff] %v22450_v32  ;;  %v8934_v0 = vadd.f32 %v15568_v48, %v21837_v61  ;;  %v15570_v20 = vadd.f32 %v15569_v8, %v24651_v37  ;;  %8058 = vmatmul.mubr.bf16.gmra.mrb[240].mxu0 %v17984_v60  ;;  %v17990_v61 = vld [vmem:[%s24286_s1 + $0x156c] ss:$44 sps:$4 sm:$0xff]   ;;  %v24653_v60 = vld [vmem:[#allocation50_spill] sm:$0xff] }
 0x843   : > { %8065 = vmatprep.mubr.bf16.mxu0 %v17987_v31  ;;  %v24663_v32 = vld [vmem:[#allocation177_spill] sm:$0xff] }
 0x844   : > { %v8937_v49 = vadd.f32 %v15570_v20, %v21848_v4  ;;  %v9246_v39 = vmax.f32 %v8934_v0, 0.0  ;;  %v24656_v20 = vld [vmem:[#allocation174_spill] sm:$0xff] }
 0x845   : > { %v7851_v62 = vpop.f32.mrb[136].mxu0 }
 0x846   : > { %v9247_v19 = vmax.f32 %v8937_v49, 0.0  ;;  %v15571_v18 = vadd.f32 %v7851_v62, %v21501_v55  ;;  %v7853_v42 = vpop.f32.mrb[137].mxu0  ;;  %v22468_v5 = vpop.f32.mrb[88].mxu1  ;;  %v24654_v62 = vld [vmem:[#allocation51_spill] sm:$0xff] }
 0x847   : > { %v7854_v54 = vpop.f32.mrb[138].mxu0  ;;  %v22470_v55 = vpop.f32.mrb[89].mxu1 }
 0x848   : > { %v22464_v12 = vpack.c.bf16 %v9247_v19, %v9246_v39  ;;  %v15572_v38 = vadd.f32 %v15571_v18, %v24653_v60  ;;  %v15573_v4 = vadd.f32 %v7854_v54, %v21514_v52  ;;  %v7856_v31 = vpop.f32.mrb[139].mxu0  ;;  %v22474_v22 = vpop.f32.mrb[90].mxu1  ;;  %v24655_v19 = vld [vmem:[#allocation15_spill] sm:$0xff] }
 0x849   : > { %v22476_v0 = vpop.f32.mrb[91].mxu1  ;;  %v17992_v54 = vld [vmem:[%s24286_s1 + $0x1568] ss:$44 sps:$4 sm:$0xff]  }
 0x84a   : > { %24652 = vst [vmem:[#allocation35_spill] sm:$0xff] %v22464_v12  ;;  %v15574_v48 = vadd.f32 %v15573_v4, %v24654_v62  ;;  %v8942_v8 = vadd.f32 %v15572_v38, %v21919_v43  ;;  %8066 = vmatmul.mubr.bf16.gmra.mrb[244].mxu0 %v17989_v45  ;;  %v17995_v43 = vld [vmem:[%s24286_s1 + $0x15c4] ss:$44 sps:$4 sm:$0xff]   ;;  %v24659_v4 = vld [vmem:[#allocation175_spill] sm:$0xff] }
 0x84b   : > { %8073 = vmatprep.mubr.bf16.mxu0 %v17990_v61  ;;  %v24658_v61 = vld [vmem:[#allocation52_spill] sm:$0xff] }
 0x84c   : > { %v8945_v39 = vadd.f32 %v15574_v48, %v24655_v19  ;;  %v9248_v37 = vmax.f32 %v8942_v8, 0.0  ;;  %v24660_v48 = vld [vmem:[#allocation137_spill] sm:$0xff] }
 0x84d   : > { %v7859_v18 = vpop.f32.mrb[140].mxu0  ;;  %v24661_v19 = vld [vmem:[#allocation53_spill] sm:$0xff] }
 0x84e   : > { %v9249_v52 = vmax.f32 %v8945_v39, 0.0  ;;  %v15575_v49 = vadd.f32 %v7859_v18, %v24656_v20  ;;  %v7861_v42 = vpop.f32.mrb[141].mxu0  ;;  %v24662_v18 = vld [vmem:[#allocation14_spill] sm:$0xff] }
 0x84f   : > { %v7862_v60 = vpop.f32.mrb[142].mxu0 }
 0x850   : > { %v22486_v45 = vpack.c.bf16 %v9249_v52, %v9248_v37  ;;  %v15576_v38 = vadd.f32 %v15575_v49, %v24658_v61  ;;  %v15577_v31 = vadd.f32 %v7862_v60, %v24659_v4  ;;  %v7864_v62 = vpop.f32.mrb[143].mxu0  ;;  %v17997_v52 = vld [vmem:[%s24286_s1 + $0x15c0] ss:$44 sps:$4 sm:$0xff]   ;;  %v18000_v60 = vld [vmem:[%s24286_s1 + $0x24] ss:$44 sps:$4 sm:$0xff]  }
 0x852   : > { %24657 = vst [vmem:[#allocation167_spill] sm:$0xff] %v22486_v45  ;;  %v8950_v8 = vadd.f32 %v15576_v38, %v24660_v48  ;;  %v15578_v39 = vadd.f32 %v15577_v31, %v24661_v19  ;;  %8074 = vmatmul.mubr.bf16.gmra.mrb[248].mxu0 %v17992_v54  ;;  %v24665_v54 = vld [vmem:[#allocation54_spill] sm:$0xff]  ;;  %v24667_v48 = vld [vmem:[#allocation55_spill] sm:$0xff] }
 0x853   : > { %8081 = vmatprep.mubr.bf16.mxu0 %v17995_v43  ;;  %v24666_v38 = vld [vmem:[#allocation178_spill] sm:$0xff] }
 0x854   : > { %v8953_v20 = vadd.f32 %v15578_v39, %v24662_v18  ;;  %v9250_v58 = vmax.f32 %v8950_v8, 0.0  ;;  %v24674_v45 = vld [vmem:[#allocation182_spill] sm:$0xff] }
 0x855   : > { %v7867_v42 = vpop.f32.mrb[144].mxu0 }
 0x856   : > { %v9251_v12 = vmax.f32 %v8953_v20, 0.0  ;;  %v15579_v14 = vadd.f32 %v7867_v42, %v24663_v32  ;;  %v7869_v37 = vpop.f32.mrb[145].mxu0  ;;  %v22504_v62 = vpop.f32.mrb[92].mxu1  ;;  %v24668_v42 = vld [vmem:[#allocation179_spill] sm:$0xff] }
 0x857   : > { %v7870_v49 = vpop.f32.mrb[146].mxu0  ;;  %v22506_v32 = vpop.f32.mrb[93].mxu1 }
 0x858   : > { %v22500_v61 = vpack.c.bf16 %v9251_v12, %v9250_v58  ;;  %v15580_v43 = vadd.f32 %v15579_v14, %v24665_v54  ;;  %v15581_v4 = vadd.f32 %v7870_v49, %v24666_v38  ;;  %v7872_v31 = vpop.f32.mrb[147].mxu0  ;;  %v22510_v39 = vpop.f32.mrb[94].mxu1  ;;  %v17998_v54 = vld [vmem:[%s24286_s1 + $0x20] ss:$44 sps:$4 sm:$0xff]  }
 0x859   : > { %v22512_v18 = vpop.f32.mrb[95].mxu1 }
 0x85a   : > { %24664 = vst [vmem:[#allocation36_spill] sm:$0xff] %v22500_v61  ;;  %v15582_v8 = vadd.f32 %v15581_v4, %v24667_v48  ;;  %v8958_v19 = vadd.f32 %v15580_v43, %v21997_v46  ;;  %8082 = vmatmul.mubr.bf16.gmra.mrb[252].mxu0 %v17997_v52  ;;  %v18001_v46 = vld [vmem:[%s24286_s1 + $0x7c] ss:$44 sps:$4 sm:$0xff]  }
 0x85b   : > { %8122 = vmatprep.mubr.bf16.mxu0 %v18000_v60  ;;  %v24670_v60 = vld [vmem:[#allocation56_spill] sm:$0xff] }
 0x85c   : > { %v8961_v58 = vadd.f32 %v15582_v8, %v22008_v56  ;;  %v9252_v12 = vmax.f32 %v8958_v19, 0.0  ;;  %v24671_v56 = vld [vmem:[#allocation181_spill] sm:$0xff] }
 0x85d   : > { %v7875_v14 = vpop.f32.mrb[148].mxu0  ;;  %v24672_v8 = vld [vmem:[#allocation57_spill] sm:$0xff] }
 0x85e   : > { %v9253_v20 = vmax.f32 %v8961_v58, 0.0  ;;  %v15583_v37 = vadd.f32 %v7875_v14, %v24668_v42  ;;  %v7877_v49 = vpop.f32.mrb[149].mxu0  ;;  %v24673_v58 = vld [vmem:[#allocation17_spill] sm:$0xff] }
 0x85f   : > { %v7878_v38 = vpop.f32.mrb[150].mxu0 }
 0x860   : > { %v22522_v52 = vpack.c.bf16 %v9253_v20, %v9252_v12  ;;  %v15584_v43 = vadd.f32 %v15583_v37, %v24670_v60  ;;  %v15585_v4 = vadd.f32 %v7878_v38, %v24671_v56  ;;  %v7880_v31 = vpop.f32.mrb[151].mxu0  ;;  %v18003_v20 = vld [vmem:[%s24286_s1 + $0x78] ss:$44 sps:$4 sm:$0xff]   ;;  %v24677_v60 = vld [vmem:[#allocation183_spill] sm:$0xff] }
 0x861   : > { %v24678_v31 = vld [vmem:[#allocation59_spill] sm:$0xff] }
 0x862   : > { %24669 = vst [vmem:[#allocation37_spill] sm:$0xff] %v22522_v52  ;;  %v8966_v48 = vadd.f32 %v15584_v43, %v21995_v11  ;;  %v15586_v19 = vadd.f32 %v15585_v4, %v24672_v8  ;;  %8123 = vmatmul.mubr.bf16.vlgmr.msra.gmra.mrb[0].mxu0 %v17998_v54  ;;  %v18004_v11 = vld [vmem:[%s24286_s1 + $0xd4] ss:$44 sps:$4 sm:$0xff]  }
 0x863   : > { %8130 = vmatprep.mubr.bf16.mxu0 %v18001_v46  ;;  %v24676_v54 = vld [vmem:[#allocation58_spill] sm:$0xff] }
 0x864   : > { %v8969_v14 = vadd.f32 %v15586_v19, %v24673_v58  ;;  %v9254_v49 = vmax.f32 %v8966_v48, 0.0 }
 0x865   : > { %v7883_v42 = vpop.f32.mrb[152].mxu0 }
 0x866   : > { %v9255_v61 = vmax.f32 %v8969_v14, 0.0  ;;  %v15587_v47 = vadd.f32 %v7883_v42, %v24674_v45  ;;  %v7885_v12 = vpop.f32.mrb[153].mxu0  ;;  %v22540_v4 = vpop.f32.mrb[96].mxu1 }
 0x867   : > { %v7886_v37 = vpop.f32.mrb[154].mxu0  ;;  %v22542_v45 = vpop.f32.mrb[97].mxu1 }
 0x868   : > { %v22536_v38 = vpack.c.bf16 %v9255_v61, %v9254_v49  ;;  %v15588_v46 = vadd.f32 %v15587_v47, %v24676_v54  ;;  %v15589_v43 = vadd.f32 %v7886_v37, %v24677_v60  ;;  %v7888_v56 = vpop.f32.mrb[155].mxu0  ;;  %v22546_v19 = vpop.f32.mrb[98].mxu1  ;;  %v24679_v49 = vld [vmem:[#allocation185_spill] sm:$0xff] }
 0x869   : > { %v22548_v58 = vpop.f32.mrb[99].mxu1  ;;  %v18006_v54 = vld [vmem:[%s24286_s1 + $0xd0] ss:$44 sps:$4 sm:$0xff]  }
 0x86a   : > { %24675 = vst [vmem:[#allocation38_spill] sm:$0xff] %v22536_v38  ;;  %v15590_v48 = vadd.f32 %v15589_v43, %v24678_v31  ;;  %v8974_v8 = vadd.f32 %v15588_v46, %v22069_v13  ;;  %8131 = vmatmul.mubr.bf16.gmra.mrb[4].mxu0 %v18003_v20  ;;  %v24681_v20 = vld [vmem:[#allocation60_spill] sm:$0xff]  ;;  %v24683_v31 = vld [vmem:[#allocation61_spill] sm:$0xff] }
 0x86b   : > { %8138 = vmatprep.mubr.bf16.mxu0 %v18004_v11  ;;  %v24682_v11 = vld [vmem:[#allocation122_spill] sm:$0xff] }
 0x86c   : > { %v8977_v61 = vadd.f32 %v15590_v48, %v22078_v29  ;;  %v9256_v14 = vmax.f32 %v8974_v8, 0.0 }
 0x86d   : > { %v7891_v47 = vpop.f32.mrb[156].mxu0 }
 0x86e   : > { %v9257_v42 = vmax.f32 %v8977_v61, 0.0  ;;  %v15591_v12 = vadd.f32 %v7891_v47, %v24679_v49  ;;  %v7893_v37 = vpop.f32.mrb[157].mxu0 }
 0x86f   : > { %v7894_v60 = vpop.f32.mrb[158].mxu0  ;;  %v24684_v37 = vld [vmem:[#allocation6_spill] sm:$0xff] }
 0x870   : > { %v22555_v13 = vpack.c.bf16 %v9257_v42, %v9256_v14  ;;  %v15592_v46 = vadd.f32 %v15591_v12, %v24681_v20  ;;  %v15593_v43 = vadd.f32 %v7894_v60, %v24682_v11  ;;  %v7896_v56 = vpop.f32.mrb[159].mxu0  ;;  %v24686_v12 = vld [vmem:[#allocation62_spill] sm:$0xff]  ;;  %v24687_v60 = vld [vmem:[#allocation128_spill] sm:$0xff] }
 0x872   : > { %24680 = vst [vmem:[#allocation39_spill] sm:$0xff] %v22555_v13  ;;  %v8982_v29 = vadd.f32 %v15592_v46, %v22065_v34  ;;  %v15594_v48 = vadd.f32 %v15593_v43, %v24683_v31  ;;  %8139 = vmatmul.mubr.bf16.gmra.mrb[8].mxu0 %v18006_v54  ;;  %v24688_v54 = vld [vmem:[#allocation63_spill] sm:$0xff]  ;;  %v24694_v13 = vld [vmem:[#allocation129_spill] sm:$0xff] }
 0x874   : > { %v8985_v8 = vadd.f32 %v15594_v48, %v22076_v9  ;;  %v9258_v47 = vmax.f32 %v8982_v29, 0.0 }
 0x875   : > { %v7899_v61 = vpop.f32.mrb[160].mxu0 }
 0x876   : > { %v9259_v49 = vmax.f32 %v8985_v8, 0.0  ;;  %v15595_v38 = vadd.f32 %v7899_v61, %v24684_v37  ;;  %v7901_v52 = vpop.f32.mrb[161].mxu0  ;;  %v22567_v34 = vpop.f32.mrb[100].mxu1  ;;  %v24689_v61 = vld [vmem:[#allocation7_spill] sm:$0xff] }
 0x877   : > { %v7902_v14 = vpop.f32.mrb[162].mxu0  ;;  %v22569_v46 = vpop.f32.mrb[101].mxu1 }
 0x878   : > { %v22563_v42 = vpack.c.bf16 %v9259_v49, %v9258_v47  ;;  %v15596_v20 = vadd.f32 %v15595_v38, %v24686_v12  ;;  %v15597_v11 = vadd.f32 %v7902_v14, %v24687_v60  ;;  %v7904_v56 = vpop.f32.mrb[163].mxu0  ;;  %v22573_v29 = vpop.f32.mrb[102].mxu1  ;;  %v24691_v12 = vld [vmem:[#allocation64_spill] sm:$0xff] }
 0x879   : > { %v22575_v31 = vpop.f32.mrb[103].mxu1 }
 0x87a   : > { %24685 = vst [vmem:[#allocation169_spill] sm:$0xff] %v22563_v42  ;;  %v15598_v9 = vadd.f32 %v15597_v11, %v24688_v54  ;;  %v8990_v43 = vadd.f32 %v15596_v20, %v22139_v53  ;;  %v24692_v11 = vld [vmem:[#allocation127_spill] sm:$0xff]  ;;  %v24693_v54 = vld [vmem:[#allocation65_spill] sm:$0xff] }
 0x87c   : > { %v8993_v52 = vadd.f32 %v15598_v9, %v22150_v21  ;;  %v9260_v8 = vmax.f32 %v8990_v43, 0.0 }
 0x87d   : > { %v7907_v48 = vpop.f32.mrb[164].mxu0 }
 0x87e   : > { %v9261_v38 = vmax.f32 %v8993_v52, 0.0  ;;  %v15599_v47 = vadd.f32 %v7907_v48, %v24689_v61  ;;  %v7909_v49 = vpop.f32.mrb[165].mxu0 }
 0x87f   : > { %v7910_v37 = vpop.f32.mrb[166].mxu0 }
 0x880   : > { %v22579_v14 = vpack.c.bf16 %v9261_v38, %v9260_v8  ;;  %v15600_v60 = vadd.f32 %v15599_v47, %v24691_v12  ;;  %v15601_v56 = vadd.f32 %v7910_v37, %v24692_v11  ;;  %v7912_v53 = vpop.f32.mrb[167].mxu0  ;;  %v24696_v38 = vld [vmem:[#allocation66_spill] sm:$0xff]  ;;  %v24697_v12 = vld [vmem:[#allocation8_spill] sm:$0xff] }
 0x882   : > { %24690 = vst [vmem:[#allocation40_spill] sm:$0xff] %v22579_v14  ;;  %v8998_v20 = vadd.f32 %v15600_v60, %v22135_v36  ;;  %v15602_v42 = vadd.f32 %v15601_v56, %v24693_v54  ;;  %v24698_v60 = vld [vmem:[#allocation67_spill] sm:$0xff] }
 0x883   : > { %v24704_v14 = vld [vmem:[#allocation131_spill] sm:$0xff] }
 0x884   : > { %v9001_v21 = vadd.f32 %v15602_v42, %v22146_v50  ;;  %v9262_v43 = vmax.f32 %v8998_v20, 0.0 }
 0x885   : > { %v7915_v9 = vpop.f32.mrb[168].mxu0 }
 0x886   : > { %v9263_v52 = vmax.f32 %v9001_v21, 0.0  ;;  %v15603_v48 = vadd.f32 %v7915_v9, %v24694_v13  ;;  %v7917_v61 = vpop.f32.mrb[169].mxu0  ;;  %v22591_v53 = vpop.f32.mrb[104].mxu1 }
 0x887   : > { %v7918_v49 = vpop.f32.mrb[170].mxu0  ;;  %v22593_v36 = vpop.f32.mrb[105].mxu1 }
 0x888   : > { %v22587_v8 = vpack.c.bf16 %v9263_v52, %v9262_v43  ;;  %v15604_v47 = vadd.f32 %v15603_v48, %v24696_v38  ;;  %v15605_v37 = vadd.f32 %v7918_v49, %v24697_v12  ;;  %v7920_v11 = vpop.f32.mrb[171].mxu0  ;;  %v22597_v56 = vpop.f32.mrb[106].mxu1  ;;  %v24699_v43 = vld [vmem:[#allocation123_spill] sm:$0xff]  ;;  %v24701_v38 = vld [vmem:[#allocation68_spill] sm:$0xff] }
 0x889   : > { %v22599_v13 = vpop.f32.mrb[107].mxu1 }
 0x88a   : > { %24695 = vst [vmem:[#allocation41_spill] sm:$0xff] %v22587_v8  ;;  %v15606_v50 = vadd.f32 %v15605_v37, %v24698_v60  ;;  %v9006_v42 = vadd.f32 %v15604_v47, %v22209_v26  ;;  %v24702_v37 = vld [vmem:[#allocation9_spill] sm:$0xff] }
 0x88b   : > { %v24703_v60 = vld [vmem:[#allocation69_spill] sm:$0xff] }
 0x88c   : > { %v9009_v20 = vadd.f32 %v15606_v50, %v22220_v27  ;;  %v9264_v21 = vmax.f32 %v9006_v42, 0.0 }
 0x88d   : > { %v7923_v54 = vpop.f32.mrb[172].mxu0 }
 0x88e   : > { %v9265_v9 = vmax.f32 %v9009_v20, 0.0  ;;  %v15607_v52 = vadd.f32 %v7923_v54, %v24699_v43  ;;  %v7925_v48 = vpop.f32.mrb[173].mxu0 }
 0x88f   : > { %v7926_v61 = vpop.f32.mrb[174].mxu0 }
 0x890   : > { %v22603_v49 = vpack.c.bf16 %v9265_v9, %v9264_v21  ;;  %v15608_v12 = vadd.f32 %v15607_v52, %v24701_v38  ;;  %v15609_v11 = vadd.f32 %v7926_v61, %v24702_v37  ;;  %v7928_v26 = vpop.f32.mrb[175].mxu0  ;;  %v24706_v9 = vld [vmem:[#allocation70_spill] sm:$0xff] }
 0x891   : > { %v24707_v38 = vld [vmem:[#allocation10_spill] sm:$0xff] }
 0x892   : > { %24700 = vst [vmem:[#allocation42_spill] sm:$0xff] %v22603_v49  ;;  %v9014_v47 = vadd.f32 %v15608_v12, %v22207_v1  ;;  %v15610_v8 = vadd.f32 %v15609_v11, %v24703_v60  ;;  %v24708_v12 = vld [vmem:[#allocation71_spill] sm:$0xff] }
 0x893   : > { %v24714_v49 = vld [vmem:[#allocation139_spill] sm:$0xff] }
 0x894   : > { %v9017_v27 = vadd.f32 %v15610_v8, %v22216_v17  ;;  %v9266_v42 = vmax.f32 %v9014_v47, 0.0 }
 0x895   : > { %v7931_v50 = vpop.f32.mrb[176].mxu0 }
 0x896   : > { %v9267_v20 = vmax.f32 %v9017_v27, 0.0  ;;  %v15611_v54 = vadd.f32 %v7931_v50, %v24704_v14  ;;  %v7933_v43 = vpop.f32.mrb[177].mxu0  ;;  %v22615_v26 = vpop.f32.mrb[108].mxu1 }
 0x897   : > { %v7934_v48 = vpop.f32.mrb[178].mxu0  ;;  %v22617_v1 = vpop.f32.mrb[109].mxu1 }
 0x898   : > { %v22611_v21 = vpack.c.bf16 %v9267_v20, %v9266_v42  ;;  %v15612_v52 = vadd.f32 %v15611_v54, %v24706_v9  ;;  %v15613_v61 = vadd.f32 %v7934_v48, %v24707_v38  ;;  %v7936_v37 = vpop.f32.mrb[179].mxu0  ;;  %v22621_v11 = vpop.f32.mrb[110].mxu1  ;;  %v24709_v42 = vld [vmem:[#allocation132_spill] sm:$0xff] }
 0x899   : > { %v22623_v14 = vpop.f32.mrb[111].mxu1  ;;  %v24711_v9 = vld [vmem:[#allocation72_spill] sm:$0xff] }
 0x89a   : > { %24705 = vst [vmem:[#allocation43_spill] sm:$0xff] %v22611_v21  ;;  %v15614_v17 = vadd.f32 %v15613_v61, %v24708_v12  ;;  %v9022_v8 = vadd.f32 %v15612_v52, %v22281_v25  ;;  %v24712_v61 = vld [vmem:[#allocation136_spill] sm:$0xff]  ;;  %v24713_v12 = vld [vmem:[#allocation73_spill] sm:$0xff] }
 0x89c   : > { %v9025_v47 = vadd.f32 %v15614_v17, %v22290_v63  ;;  %v9268_v27 = vmax.f32 %v9022_v8, 0.0 }
 0x89d   : > { %v7939_v60 = vpop.f32.mrb[180].mxu0 }
 0x89e   : > { %v9269_v50 = vmax.f32 %v9025_v47, 0.0  ;;  %v15615_v20 = vadd.f32 %v7939_v60, %v24709_v42  ;;  %v7941_v54 = vpop.f32.mrb[181].mxu0 }
 0x89f   : > { %v7942_v43 = vpop.f32.mrb[182].mxu0 }
 0x8a0   : > { %v22627_v48 = vpack.c.bf16 %v9269_v50, %v9268_v27  ;;  %v15616_v38 = vadd.f32 %v15615_v20, %v24711_v9  ;;  %v15617_v37 = vadd.f32 %v7942_v43, %v24712_v61  ;;  %v7944_v25 = vpop.f32.mrb[183].mxu0  ;;  %v24716_v50 = vld [vmem:[#allocation74_spill] sm:$0xff]  ;;  %v24717_v9 = vld [vmem:[#allocation133_spill] sm:$0xff] }
 0x8a2   : > { %24710 = vst [vmem:[#allocation44_spill] sm:$0xff] %v22627_v48  ;;  %v9030_v52 = vadd.f32 %v15616_v38, %v22277_v23  ;;  %v15618_v21 = vadd.f32 %v15617_v37, %v24713_v12  ;;  %v24718_v38 = vld [vmem:[#allocation75_spill] sm:$0xff]  ;;  %v24723_v48 = vld [vmem:[#allocation138_spill] sm:$0xff] }
 0x8a4   : > { %v9033_v63 = vadd.f32 %v15618_v21, %v22288_v2  ;;  %v9270_v8 = vmax.f32 %v9030_v52, 0.0 }
 0x8a5   : > { %v7947_v17 = vpop.f32.mrb[184].mxu0 }
 0x8a6   : > { %v9271_v47 = vmax.f32 %v9033_v63, 0.0  ;;  %v15619_v60 = vadd.f32 %v7947_v17, %v24714_v49  ;;  %v7949_v42 = vpop.f32.mrb[185].mxu0  ;;  %v22639_v25 = vpop.f32.mrb[112].mxu1 }
 0x8a7   : > { %v7950_v54 = vpop.f32.mrb[186].mxu0  ;;  %v22641_v23 = vpop.f32.mrb[113].mxu1 }
 0x8a8   : > { %v22635_v27 = vpack.c.bf16 %v9271_v47, %v9270_v8  ;;  %v15620_v20 = vadd.f32 %v15619_v60, %v24716_v50  ;;  %v15621_v43 = vadd.f32 %v7950_v54, %v24717_v9  ;;  %v7952_v61 = vpop.f32.mrb[187].mxu0  ;;  %v22645_v37 = vpop.f32.mrb[114].mxu1  ;;  %v24719_v8 = vld [vmem:[#allocation135_spill] sm:$0xff]  ;;  %v24720_v50 = vld [vmem:[#allocation76_spill] sm:$0xff] }
 0x8a9   : > { %v22647_v49 = vpop.f32.mrb[115].mxu1 }
 0x8aa   : > { %24715 = vst [vmem:[#allocation45_spill] sm:$0xff] %v22635_v27  ;;  %v15622_v2 = vadd.f32 %v15621_v43, %v24718_v38  ;;  %v9038_v21 = vadd.f32 %v15620_v20, %v22349_v24  ;;  %v24721_v43 = vld [vmem:[#allocation134_spill] sm:$0xff]  ;;  %v24722_v38 = vld [vmem:[#allocation77_spill] sm:$0xff] }
 0x8ac   : > { %v9041_v52 = vadd.f32 %v15622_v2, %v22362_v3  ;;  %v9272_v63 = vmax.f32 %v9038_v21, 0.0 }
 0x8ad   : > { %v7955_v12 = vpop.f32.mrb[188].mxu0 }
 0x8ae   : > { %v9273_v17 = vmax.f32 %v9041_v52, 0.0  ;;  %v15623_v47 = vadd.f32 %v7955_v12, %v24719_v8  ;;  %v7957_v60 = vpop.f32.mrb[189].mxu0 }
 0x8af   : > { %v7958_v42 = vpop.f32.mrb[190].mxu0 }
 0x8b0   : > { %v22651_v54 = vpack.c.bf16 %v9273_v17, %v9272_v63  ;;  %v15624_v9 = vadd.f32 %v15623_v47, %v24720_v50  ;;  %v15625_v61 = vadd.f32 %v7958_v42, %v24721_v43  ;;  %v7960_v24 = vpop.f32.mrb[191].mxu0  ;;  %v24724_v17 = vld [vmem:[#allocation78_spill] sm:$0xff]  ;;  %v24725_v50 = vld [vmem:[#allocation140_spill] sm:$0xff] }
 0x8b1   : > { %v24726_v24 = vld [vmem:[#allocation79_spill] sm:$0xff] }
 0x8b2   : > { %v9046_v20 = vadd.f32 %v15624_v9, %v22347_v41  ;;  %v15626_v27 = vadd.f32 %v15625_v61, %v24722_v38  ;;  %v24727_v38 = vld [vmem:[#allocation148_spill] sm:$0xff] }
 0x8b4   : > { %v9049_v3 = vadd.f32 %v15626_v27, %v22358_v57  ;;  %v9274_v21 = vmax.f32 %v9046_v20, 0.0 }
 0x8b5   : > { %v7963_v2 = vpop.f32.mrb[192].mxu0 }
 0x8b6   : > { %v9275_v52 = vmax.f32 %v9049_v3, 0.0  ;;  %v15627_v12 = vadd.f32 %v7963_v2, %v24723_v48  ;;  %v7965_v8 = vpop.f32.mrb[193].mxu0 }
 0x8b7   : > { %v7966_v60 = vpop.f32.mrb[194].mxu0  ;;  %v24729_v8 = vld [vmem:[#allocation141_spill] sm:$0xff] }
 0x8b8   : > { %v22659_v63 = vpack.c.bf16 %v9275_v52, %v9274_v21  ;;  %v15628_v47 = vadd.f32 %v15627_v12, %v24724_v17  ;;  %v15629_v42 = vadd.f32 %v7966_v60, %v24725_v50  ;;  %v7968_v43 = vpop.f32.mrb[195].mxu0  ;;  %v24728_v52 = vld [vmem:[#allocation80_spill] sm:$0xff] }
 0x8ba   : > { %v15630_v41 = vadd.f32 %v15629_v42, %v24726_v24  ;;  %v9054_v9 = vadd.f32 %v15628_v47, %v22421_v16  ;;  %v24730_v42 = vld [vmem:[#allocation81_spill] sm:$0xff] }
 0x8bc   : > { %v9057_v57 = vadd.f32 %v15630_v41, %v22430_v15  ;;  %v9276_v61 = vmax.f32 %v9054_v9, 0.0  ;;  %v24731_v41 = vld [vmem:[#allocation16_spill] sm:$0xff] }
 0x8bd   : > { %v7971_v27 = vpop.f32.mrb[196].mxu0 }
 0x8be   : > { %v9277_v20 = vmax.f32 %v9057_v57, 0.0  ;;  %v15631_v48 = vadd.f32 %v7971_v27, %v24727_v38  ;;  %v7973_v3 = vpop.f32.mrb[197].mxu0 }
 0x8bf   : > { %v7974_v2 = vpop.f32.mrb[198].mxu0 }
 0x8c0   : > { %v22667_v21 = vpack.c.bf16 %v9277_v20, %v9276_v61  ;;  %v15632_v12 = vadd.f32 %v15631_v48, %v24728_v52  ;;  %v15633_v60 = vadd.f32 %v7974_v2, %v24729_v8  ;;  %v7976_v17 = vpop.f32.mrb[199].mxu0  ;;  %v24732_v20 = vld [vmem:[#allocation82_spill] sm:$0xff]  ;;  %v24734_v52 = vld [vmem:[#allocation83_spill] sm:$0xff] }
 0x8c1   : > { %v24733_v48 = vld [vmem:[#allocation142_spill] sm:$0xff] }
 0x8c2   : > { %v9062_v50 = vadd.f32 %v15632_v12, %v22419_v33  ;;  %v15634_v16 = vadd.f32 %v15633_v60, %v24730_v42 }
 0x8c4   : > { %v9065_v15 = vadd.f32 %v15634_v16, %v22428_v6  ;;  %v9278_v43 = vmax.f32 %v9062_v50, 0.0  ;;  %v24735_v50 = vld [vmem:[#allocation149_spill] sm:$0xff] }
 0x8c5   : > { %v7979_v47 = vpop.f32.mrb[200].mxu0 }
 0x8c6   : > { %v9279_v24 = vmax.f32 %v9065_v15, 0.0  ;;  %v15635_v9 = vadd.f32 %v7979_v47, %v24731_v41  ;;  %v7981_v57 = vpop.f32.mrb[201].mxu0  ;;  %v24737_v41 = vld [vmem:[#allocation143_spill] sm:$0xff] }
 0x8c7   : > { %v7982_v27 = vpop.f32.mrb[202].mxu0 }
 0x8c8   : > { %v22675_v61 = vpack.c.bf16 %v9279_v24, %v9278_v43  ;;  %v15636_v38 = vadd.f32 %v15635_v9, %v24732_v20  ;;  %v15637_v3 = vadd.f32 %v7982_v27, %v24733_v48  ;;  %v7984_v2 = vpop.f32.mrb[203].mxu0  ;;  %v24736_v43 = vld [vmem:[#allocation84_spill] sm:$0xff]  ;;  %v24738_v20 = vld [vmem:[#allocation85_spill] sm:$0xff] }
 0x8c9   : > { %v24739_v2 = vld [vmem:[#allocation144_spill] sm:$0xff] }
 0x8ca   : > { %v15638_v33 = vadd.f32 %v15637_v3, %v24734_v52  ;;  %v9070_v12 = vadd.f32 %v15636_v38, %v22470_v55 }
 0x8cc   : > { %v9073_v6 = vadd.f32 %v15638_v33, %v22476_v0  ;;  %v9280_v60 = vmax.f32 %v9070_v12, 0.0 }
 0x8cd   : > { %v7987_v8 = vpop.f32.mrb[204].mxu0 }
 0x8ce   : > { %v9281_v17 = vmax.f32 %v9073_v6, 0.0  ;;  %v15639_v42 = vadd.f32 %v7987_v8, %v24735_v50  ;;  %v7989_v16 = vpop.f32.mrb[205].mxu0  ;;  %v24740_v8 = vld [vmem:[#allocation86_spill] sm:$0xff] }
 0x8cf   : > { %v7990_v15 = vpop.f32.mrb[206].mxu0  ;;  %v24742_v16 = vld [vmem:[#allocation87_spill] sm:$0xff] }
 0x8d0   : > { %v22683_v47 = vpack.c.bf16 %v9281_v17, %v9280_v60  ;;  %v15640_v24 = vadd.f32 %v15639_v42, %v24736_v43  ;;  %v15641_v9 = vadd.f32 %v7990_v15, %v24737_v41  ;;  %v7992_v57 = vpop.f32.mrb[207].mxu0  ;;  %v24741_v17 = vld [vmem:[#allocation19_spill] sm:$0xff] }
 0x8d2   : > { %v9078_v27 = vadd.f32 %v15640_v24, %v22468_v5  ;;  %v15642_v55 = vadd.f32 %v15641_v9, %v24738_v20  ;;  %v24743_v9 = vld [vmem:[#allocation160_spill] sm:$0xff] }
 0x8d4   : > { %v9081_v0 = vadd.f32 %v15642_v55, %v22474_v22  ;;  %v9282_v48 = vmax.f32 %v9078_v27, 0.0 }
 0x8d5   : > { %v7995_v38 = vpop.f32.mrb[208].mxu0 }
 0x8d6   : > { %v9283_v3 = vmax.f32 %v9081_v0, 0.0  ;;  %v15643_v52 = vadd.f32 %v7995_v38, %v24739_v2  ;;  %v7997_v33 = vpop.f32.mrb[209].mxu0  ;;  %v24744_v0 = vld [vmem:[#allocation88_spill] sm:$0xff] }
 0x8d7   : > { %v7998_v12 = vpop.f32.mrb[210].mxu0  ;;  %v24746_v33 = vld [vmem:[#allocation89_spill] sm:$0xff] }
 0x8d8   : > { %v22691_v6 = vpack.c.bf16 %v9283_v3, %v9282_v48  ;;  %v15644_v60 = vadd.f32 %v15643_v52, %v24740_v8  ;;  %v15645_v50 = vadd.f32 %v7998_v12, %v24741_v17  ;;  %v8000_v42 = vpop.f32.mrb[211].mxu0  ;;  %v24745_v48 = vld [vmem:[#allocation145_spill] sm:$0xff]  ;;  %v24747_v17 = vld [vmem:[#allocation20_spill] sm:$0xff] }
 0x8da   : > { %v15646_v5 = vadd.f32 %v15645_v50, %v24742_v16  ;;  %v9086_v15 = vadd.f32 %v15644_v60, %v22506_v32 }
 0x8dc   : > { %v9089_v22 = vadd.f32 %v15646_v5, %v22512_v18  ;;  %v9284_v24 = vmax.f32 %v9086_v15, 0.0  ;;  %v24748_v15 = vld [vmem:[#allocation90_spill] sm:$0xff] }
 0x8dd   : > { %v8003_v43 = vpop.f32.mrb[212].mxu0 }
 0x8de   : > { %v9285_v41 = vmax.f32 %v9089_v22, 0.0  ;;  %v15647_v57 = vadd.f32 %v8003_v43, %v24743_v9  ;;  %v8005_v27 = vpop.f32.mrb[213].mxu0  ;;  %v24749_v43 = vld [vmem:[#allocation147_spill] sm:$0xff] }
 0x8df   : > { %v8006_v20 = vpop.f32.mrb[214].mxu0  ;;  %v24750_v9 = vld [vmem:[#allocation91_spill] sm:$0xff] }
 0x8e0   : > { %v22699_v55 = vpack.c.bf16 %v9285_v41, %v9284_v24  ;;  %v15648_v38 = vadd.f32 %v15647_v57, %v24744_v0  ;;  %v15649_v3 = vadd.f32 %v8006_v20, %v24745_v48  ;;  %v8008_v2 = vpop.f32.mrb[215].mxu0 }
 0x8e2   : > { %v9094_v52 = vadd.f32 %v15648_v38, %v22504_v62  ;;  %v15650_v32 = vadd.f32 %v15649_v3, %v24746_v33 }
 0x8e4   : > { %v9097_v18 = vadd.f32 %v15650_v32, %v22510_v39  ;;  %v9286_v8 = vmax.f32 %v9094_v52, 0.0  ;;  %v24751_v52 = vld [vmem:[#allocation92_spill] sm:$0xff]  ;;  %v24752_v32 = vld [vmem:[#allocation21_spill] sm:$0xff] }
 0x8e5   : > { %v8011_v12 = vpop.f32.mrb[216].mxu0 }
 0x8e6   : > { %v9287_v60 = vmax.f32 %v9097_v18, 0.0  ;;  %v15651_v50 = vadd.f32 %v8011_v12, %v24747_v17  ;;  %v8013_v42 = vpop.f32.mrb[217].mxu0 }
 0x8e7   : > { %v8014_v16 = vpop.f32.mrb[218].mxu0 }
 0x8e8   : > { %v22707_v5 = vpack.c.bf16 %v9287_v60, %v9286_v8  ;;  %v15652_v22 = vadd.f32 %v15651_v50, %v24748_v15  ;;  %v15653_v24 = vadd.f32 %v8014_v16, %v24749_v43  ;;  %v8016_v41 = vpop.f32.mrb[219].mxu0  ;;  %v24753_v60 = vld [vmem:[#allocation93_spill] sm:$0xff]  ;;  %v24754_v16 = vld [vmem:[#allocation150_spill] sm:$0xff] }
 0x8ea   : > { %v15654_v62 = vadd.f32 %v15653_v24, %v24750_v9  ;;  %v9102_v57 = vadd.f32 %v15652_v22, %v22542_v45  ;;  %v24755_v24 = vld [vmem:[#allocation94_spill] sm:$0xff] }
 0x8eb   : > { %v24756_v9 = vld [vmem:[#allocation22_spill] sm:$0xff] }
 0x8ec   : > { %v9105_v39 = vadd.f32 %v15654_v62, %v22548_v58  ;;  %v9288_v20 = vmax.f32 %v9102_v57, 0.0 }
 0x8ed   : > { %v8019_v27 = vpop.f32.mrb[220].mxu0 }
 0x8ee   : > { %v9289_v0 = vmax.f32 %v9105_v39, 0.0  ;;  %v15655_v38 = vadd.f32 %v8019_v27, %v22110_v51  ;;  %v8021_v48 = vpop.f32.mrb[221].mxu0  ;;  %v24757_v39 = vld [vmem:[#allocation95_spill] sm:$0xff] }
 0x8ef   : > { %v8022_v3 = vpop.f32.mrb[222].mxu0  ;;  %v24758_v48 = vld [vmem:[#allocation152_spill] sm:$0xff] }
 0x8f0   : > { %v22715_v2 = vpack.c.bf16 %v9289_v0, %v9288_v20  ;;  %v15656_v33 = vadd.f32 %v15655_v38, %v24751_v52  ;;  %v15657_v18 = vadd.f32 %v8022_v3, %v24752_v32  ;;  %v8024_v12 = vpop.f32.mrb[223].mxu0 }
 0x8f2   : > { %v9110_v8 = vadd.f32 %v15656_v33, %v22540_v4  ;;  %v15658_v45 = vadd.f32 %v15657_v18, %v24753_v60  ;;  %v24759_v18 = vld [vmem:[#allocation96_spill] sm:$0xff] }
 0x8f4   : > { %v9113_v58 = vadd.f32 %v15658_v45, %v22546_v19  ;;  %v9290_v50 = vmax.f32 %v9110_v8, 0.0 }
 0x8f5   : > { %v8027_v17 = vpop.f32.mrb[224].mxu0 }
 0x8f6   : > { %v9291_v42 = vmax.f32 %v9113_v58, 0.0  ;;  %v15659_v51 = vadd.f32 %v8027_v17, %v24754_v16  ;;  %v8029_v15 = vpop.f32.mrb[225].mxu0  ;;  %v24760_v58 = vld [vmem:[#allocation97_spill] sm:$0xff]  ;;  %v22745_v17 = vld [vmem:[%s24288_s3 + $0x20] sm:$0xff] }
 0x8f7   : > { %v8030_v22 = vpop.f32.mrb[226].mxu0 }
 0x8f8   : > { %v22723_v43 = vpack.c.bf16 %v9291_v42, %v9290_v50  ;;  %v15660_v41 = vadd.f32 %v15659_v51, %v24755_v24  ;;  %v15661_v62 = vadd.f32 %v8030_v22, %v24756_v9  ;;  %v8032_v57 = vpop.f32.mrb[227].mxu0  ;;  %v24761_v9 = vld [vmem:[#allocation98_spill] sm:$0xff] }
 0x8f9   : > { %v24762_v57 = vld [vmem:[#allocation153_spill] sm:$0xff] }
 0x8fa   : > { %v15662_v4 = vadd.f32 %v15661_v62, %v24757_v39  ;;  %v9118_v27 = vadd.f32 %v15660_v41, %v22569_v46 }
 0x8fc   : > { %v9121_v19 = vadd.f32 %v15662_v4, %v22575_v31  ;;  %v9292_v0 = vmax.f32 %v9118_v27, 0.0  ;;  %v22740_v31 = vld [vmem:[%s24288_s3] sm:$0xff]  ;;  %v24763_v4 = vld [vmem:[#allocation99_spill] sm:$0xff] }
 0x8fd   : > { %v8035_v20 = vpop.f32.mrb[228].mxu0 }
 0x8fe   : > { %v9293_v38 = vmax.f32 %v9121_v19, 0.0  ;;  %v15663_v3 = vadd.f32 %v8035_v20, %v24758_v48  ;;  %v8037_v52 = vpop.f32.mrb[229].mxu0 }
 0x8ff   : > { %v8038_v33 = vpop.f32.mrb[230].mxu0 }
 0x900   : > { %v22731_v32 = vpack.c.bf16 %v9293_v38, %v9292_v0  ;;  %v15664_v12 = vadd.f32 %v15663_v3, %v24759_v18  ;;  %v15665_v8 = vadd.f32 %v8038_v33, %v22175_v44  ;;  %v8040_v60 = vpop.f32.mrb[231].mxu0  ;;  %v14597_v44 = vcombine.low %v22740_v31, %v22745_v17 }
 0x901   : > { %v24766_v60 = vld [vmem:[#allocation25_spill] sm:$0xff] }
 0x902   : > { %v9126_v45 = vadd.f32 %v15664_v12, %v22567_v34  ;;  %v15666_v46 = vadd.f32 %v15665_v8, %v24760_v58  ;;  %v14598_v34 = vcombine.high %v22740_v31, %v22745_v17  ;;  %v24765_v12 = vld [vmem:[#allocation100_spill] sm:$0xff]  ;;  %v24806_v31 = vld [vmem:[#allocation151_spill] sm:$0xff]  ;;  %v9396_v17 = vld [vmem:[%s24288_s3 + $0xc0] sm:$0xff] }
 0x904   : > { %v9129_v50 = vadd.f32 %v15666_v46, %v22573_v29  ;;  %v9294_v16 = vmax.f32 %v9126_v45, 0.0  ;;  %11324 = vmatprep.mubr.bf16.mxu1 %v14598_v34 }
 0x905   : > { %v8043_v42 = vpop.f32.mrb[232].mxu0 }
 0x906   : > { %v9295_v51 = vmax.f32 %v9129_v50, 0.0  ;;  %v15667_v15 = vadd.f32 %v8043_v42, %v22186_v10  ;;  %v8045_v22 = vpop.f32.mrb[233].mxu0  ;;  %v24764_v10 = vld [vmem:[#allocation154_spill] sm:$0xff]  ;;  %v24767_v50 = vld [vmem:[#allocation101_spill] sm:$0xff] }
 0x907   : > { %v8046_v24 = vpop.f32.mrb[234].mxu0 }
 0x908   : > { %v22753_v41 = vpack.c.bf16 %v9295_v51, %v9294_v16  ;;  %v15668_v62 = vadd.f32 %v15667_v15, %v24761_v9  ;;  %v15669_v29 = vadd.f32 %v8046_v24, %v24762_v57  ;;  %v8048_v39 = vpop.f32.mrb[235].mxu0  ;;  %v24768_v9 = vld [vmem:[#allocation102_spill] sm:$0xff] }
 0x909   : > { %v24769_v39 = vld [vmem:[#allocation103_spill] sm:$0xff] }
 0x90a   : > { %v15670_v27 = vadd.f32 %v15669_v29, %v24763_v4  ;;  %v9134_v19 = vadd.f32 %v15668_v62, %v22593_v36 }
 0x90c   : > { %v9137_v20 = vadd.f32 %v15670_v27, %v22599_v13  ;;  %v9296_v38 = vmax.f32 %v9134_v19, 0.0 }
 0x90d   : > { %v8051_v0 = vpop.f32.mrb[236].mxu0 }
 0x90e   : > { %v9297_v48 = vmax.f32 %v9137_v20, 0.0  ;;  %v15671_v3 = vadd.f32 %v8051_v0, %v24764_v10  ;;  %v8053_v52 = vpop.f32.mrb[237].mxu0  ;;  %v24770_v10 = vld [vmem:[#allocation104_spill] sm:$0xff] }
 0x90f   : > { %v8054_v33 = vpop.f32.mrb[238].mxu0 }
 0x910   : > { %v22761_v18 = vpack.c.bf16 %v9297_v48, %v9296_v38  ;;  %v15672_v8 = vadd.f32 %v15671_v3, %v24765_v12  ;;  %v15673_v45 = vadd.f32 %v8054_v33, %v24766_v60  ;;  %v8056_v58 = vpop.f32.mrb[239].mxu0  ;;  %v24771_v12 = vld [vmem:[#allocation105_spill] sm:$0xff] }
 0x911   : > { %v24772_v58 = vld [vmem:[#allocation156_spill] sm:$0xff] }
 0x912   : > { %v9142_v46 = vadd.f32 %v15672_v8, %v22591_v53  ;;  %v15674_v36 = vadd.f32 %v15673_v45, %v24767_v50 }
 0x914   : > { %v9145_v13 = vadd.f32 %v15674_v36, %v22597_v56  ;;  %v9298_v42 = vmax.f32 %v9142_v46, 0.0 }
 0x915   : > { %v8059_v34 = vpop.f32.mrb[240].mxu0 }
 0x916   : > { %v9299_v16 = vmax.f32 %v9145_v13, 0.0  ;;  %v15675_v51 = vadd.f32 %v8059_v34, %v22245_v7  ;;  %v8061_v15 = vpop.f32.mrb[241].mxu0  ;;  %v24773_v13 = vld [vmem:[#allocation106_spill] sm:$0xff] }
 0x917   : > { %v8062_v22 = vpop.f32.mrb[242].mxu0 }
 0x918   : > { %v22769_v24 = vpack.c.bf16 %v9299_v16, %v9298_v42  ;;  %v15676_v62 = vadd.f32 %v15675_v51, %v24768_v9  ;;  %v15677_v57 = vadd.f32 %v8062_v22, %v22252_v28  ;;  %v8064_v29 = vpop.f32.mrb[243].mxu0  ;;  %v24774_v42 = vld [vmem:[#allocation27_spill] sm:$0xff] }
 0x919   : > { %v24775_v51 = vld [vmem:[#allocation107_spill] sm:$0xff] }
 0x91a   : > { %v15678_v53 = vadd.f32 %v15677_v57, %v24769_v39  ;;  %v9150_v4 = vadd.f32 %v15676_v62, %v22617_v1 }
 0x91c   : > { %v9153_v56 = vadd.f32 %v15678_v53, %v22623_v14  ;;  %v9300_v19 = vmax.f32 %v9150_v4, 0.0  ;;  %v24776_v4 = vld [vmem:[#allocation108_spill] sm:$0xff] }
 0x91d   : > { %v8067_v27 = vpop.f32.mrb[244].mxu0 }
 0x91e   : > { %v9301_v20 = vmax.f32 %v9153_v56, 0.0  ;;  %v15679_v7 = vadd.f32 %v8067_v27, %v22268_v40  ;;  %v8069_v0 = vpop.f32.mrb[245].mxu0 }
 0x91f   : > { %v8070_v38 = vpop.f32.mrb[246].mxu0 }
 0x920   : > { %v22777_v48 = vpack.c.bf16 %v9301_v20, %v9300_v19  ;;  %v15680_v3 = vadd.f32 %v15679_v7, %v24770_v10  ;;  %v15681_v28 = vadd.f32 %v8070_v38, %v22279_v59  ;;  %v8072_v52 = vpop.f32.mrb[247].mxu0  ;;  %v24777_v7 = vld [vmem:[#allocation109_spill] sm:$0xff] }
 0x922   : > { %v9158_v33 = vadd.f32 %v15680_v3, %v22615_v26  ;;  %v15682_v1 = vadd.f32 %v15681_v28, %v24771_v12  ;;  %v24778_v3 = vld [vmem:[#allocation116_spill] sm:$0xff]  ;;  %v24779_v12 = vld [vmem:[#allocation111_spill] sm:$0xff] }
 0x924   : > { %v9161_v14 = vadd.f32 %v15682_v1, %v22621_v11  ;;  %v9302_v60 = vmax.f32 %v9158_v33, 0.0 }
 0x925   : > { %v8075_v8 = vpop.f32.mrb[248].mxu0 }
 0x926   : > { %v9303_v45 = vmax.f32 %v9161_v14, 0.0  ;;  %v15683_v40 = vadd.f32 %v8075_v8, %v24772_v58  ;;  %v8077_v46 = vpop.f32.mrb[249].mxu0  ;;  %v24780_v14 = vld [vmem:[#allocation118_spill] sm:$0xff] }
 0x927   : > { %v8078_v50 = vpop.f32.mrb[250].mxu0  ;;  %v24782_v46 = vld [vmem:[#allocation117_spill] sm:$0xff] }
 0x928   : > { %v22785_v36 = vpack.c.bf16 %v9303_v45, %v9302_v60  ;;  %v15684_v34 = vadd.f32 %v15683_v40, %v24773_v13  ;;  %v15685_v59 = vadd.f32 %v8078_v50, %v24774_v42  ;;  %v8080_v16 = vpop.f32.mrb[251].mxu0  ;;  %v24781_v60 = vld [vmem:[#allocation113_spill] sm:$0xff]  ;;  %v24783_v42 = vld [vmem:[#allocation110_spill] sm:$0xff] }
 0x929   : > { %v24784_v16 = vld [vmem:[#allocation119_spill] sm:$0xff] }
 0x92a   : > { %v15686_v26 = vadd.f32 %v15685_v59, %v24775_v51  ;;  %v9166_v15 = vadd.f32 %v15684_v34, %v22641_v23 }
 0x92c   : > { %v9169_v11 = vadd.f32 %v15686_v26, %v22647_v49  ;;  %v9304_v9 = vmax.f32 %v9166_v15, 0.0  ;;  %v24785_v15 = vmov 0  }
 0x92d   : > { %v8083_v22 = vpop.f32.mrb[252].mxu0 }
 0x92e   : > { %v9305_v62 = vmax.f32 %v9169_v11, 0.0  ;;  %v15687_v57 = vadd.f32 %v8083_v22, %v22326_v30  ;;  %v8085_v29 = vpop.f32.mrb[253].mxu0  ;;  %v24786_v11 = vld [vmem:[#allocation112_spill] sm:$0xff] }
 0x92f   : > { %v8086_v39 = vpop.f32.mrb[254].mxu0 }
 0x930   : > { %v22793_v53 = vpack.c.bf16 %v9305_v62, %v9304_v9  ;;  %v15688_v56 = vadd.f32 %v15687_v57, %v24776_v4  ;;  %v15689_v27 = vadd.f32 %v8086_v39, %v22328_v35  ;;  %v8088_v19 = vpop.f32.mrb[255].mxu0  ;;  %v24787_v39 = vld [vmem:[#allocation120_spill] sm:$0xff] }
 0x931   : > { %v24788_v19 = vld [vmem:[#allocation114_spill] sm:$0xff] }
 0x932   : > { %v9174_v20 = vadd.f32 %v15688_v56, %v22639_v25  ;;  %v15690_v23 = vadd.f32 %v15689_v27, %v24777_v7  ;;  %v24789_v7 = vld [vmem:[#allocation121_spill] sm:$0xff] }
 0x934   : > { %v9177_v49 = vadd.f32 %v15690_v23, %v22645_v37  ;;  %v9306_v38 = vmax.f32 %v9174_v20, 0.0 }
 0x935   : > { %v8124_v0 = vpop.f32.mrb[0].mxu0 }
 0x936   : > { %v9307_v10 = vmax.f32 %v9177_v49, 0.0  ;;  %v15441_v30 = vadd.f32 %v8124_v0, %v24778_v3  ;;  %v8126_v28 = vpop.f32.mrb[1].mxu0  ;;  %v24790_v0 = vld [vmem:[#allocation115_spill] sm:$0xff] }
 0x937   : > { %v8127_v52 = vpop.f32.mrb[2].mxu0  ;;  %v24791_v28 = vld [vmem:[#allocation168_spill] sm:$0xff] }
 0x938   : > { %v22801_v33 = vpack.c.bf16 %v9307_v10, %v9306_v38  ;;  %v8670_v1 = vadd.f32 %v15441_v30, %v24779_v12  ;;  %v15442_v35 = vadd.f32 %v8127_v52, %v24780_v14  ;;  %v8129_v8 = vpop.f32.mrb[3].mxu0  ;;  %v24792_v52 = vld [vmem:[#allocation170_spill] sm:$0xff]  ;;  %v24793_v12 = vld [vmem:[#allocation171_spill] sm:$0xff]  ;;  %v24795_v14 = vld [vmem:[#allocation173_spill] sm:$0xff] }
 0x939   : > { %v24797_v8 = vld [vmem:[#allocation180_spill] sm:$0xff] }
 0x93a   : > { %v8673_v25 = vadd.f32 %v15442_v35, %v24781_v60  ;;  %v9180_v45 = vmax.f32 %v8670_v1, 0.0  ;;  %v24794_v1 = vld [vmem:[#allocation172_spill] sm:$0xff] }
 0x93b   : > { %v24796_v35 = vld [vmem:[#allocation176_spill] sm:$0xff] }
 0x93c   : > { %v9181_v58 = vmax.f32 %v8673_v25, 0.0  ;;  %v24798_v60 = vld [vmem:[#allocation184_spill] sm:$0xff]  ;;  %v24799_v25 = vld [vmem:[#allocation126_spill] sm:$0xff] }
 0x93d   : > { %v8132_v40 = vpop.f32.mrb[4].mxu0 }
 0x93e   : > { %v9308_v37 = vpack.c.bf16 %v9181_v58, %v9180_v45  ;;  %v15443_v50 = vadd.f32 %v8132_v40, %v24782_v46  ;;  %v8134_v13 = vpop.f32.mrb[5].mxu0  ;;  %v24800_v45 = vld [vmem:[#allocation124_spill] sm:$0xff]  ;;  %v24801_v58 = vld [vmem:[#allocation130_spill] sm:$0xff]  ;;  %v24802_v40 = vld [vmem:[#allocation125_spill] sm:$0xff] }
 0x93f   : > { %v8135_v34 = vpop.f32.mrb[6].mxu0  ;;  %v9384_v46 = vld [vmem:[%s24288_s3 + $0x60] sm:$0xff] }
 0x940   : > { %v8678_v59 = vadd.f32 %v15443_v50, %v24783_v42  ;;  %v15444_v51 = vadd.f32 %v8135_v34, %v24784_v16  ;;  %v8137_v26 = vpop.f32.mrb[7].mxu0  ;;  %11293 = vmatpush1.bf16.msra.mxu1 %v9308_v37  ;;  %v9380_v37 = vld [vmem:[%s24288_s3 + $0x40] sm:$0xff]  ;;  %v24803_v50 = vld [vmem:[#allocation11_spill] sm:$0xff]  ;;  %v24804_v34 = vld [vmem:[#allocation12_spill] sm:$0xff] }
 0x941   : > { %11294 = vmatprep.subr.bf16.mxu1 %v24785_v15  ;;  %v14606_v13 = vcombine.high %v9380_v37, %v9384_v46  ;;  %v9388_v42 = vld [vmem:[%s24288_s3 + $0x80] sm:$0xff]  ;;  %v14605_v16 = vcombine.low %v9380_v37, %v9384_v46 }
 0x942   : > { %v8681_v22 = vadd.f32 %v15444_v51, %v24786_v11  ;;  %v9182_v9 = vmax.f32 %v8678_v59, 0.0  ;;  %v9392_v59 = vld [vmem:[%s24288_s3 + $0xa0] sm:$0xff]  ;;  %v24805_v51 = vld [vmem:[#allocation13_spill] sm:$0xff] }
 0x943   : > { %v14614_v26 = vcombine.high %v9388_v42, %v9392_v59  ;;  %v14613_v11 = vcombine.low %v9388_v42, %v9392_v59  ;;  %v24818_v46 = vld [vmem:[#allocation162_spill] sm:$0xff]  ;;  %v24819_v42 = vld [vmem:[#allocation32_spill] sm:$0xff] }
 0x944   : > { %v9183_v62 = vmax.f32 %v8681_v22, 0.0  ;;  %v24807_v22 = vld [vmem:[#allocation146_spill] sm:$0xff] }
 0x945   : > { %v8140_v57 = vpop.f32.mrb[8].mxu0 }
 0x946   : > { %v9309_v29 = vpack.c.bf16 %v9183_v62, %v9182_v9  ;;  %v15445_v4 = vadd.f32 %v8140_v57, %v24787_v39  ;;  %v8142_v56 = vpop.f32.mrb[9].mxu0  ;;  %v24808_v62 = vld [vmem:[#allocation18_spill] sm:$0xff] }
 0x947   : > { %v8143_v27 = vpop.f32.mrb[10].mxu0  ;;  %v9404_v57 = vld [vmem:[%s24288_s3 + $0x100] sm:$0xff] }
 0x948   : > { %v8686_v20 = vadd.f32 %v15445_v4, %v24788_v19  ;;  %v15446_v23 = vadd.f32 %v8143_v27, %v24789_v7  ;;  %v8145_v49 = vpop.f32.mrb[11].mxu0  ;;  %11295 = vmatpush1.bf16.msra.mxu1 %v9309_v29  ;;  %v9408_v29 = vld [vmem:[%s24288_s3 + $0x120] sm:$0xff]  ;;  %v24809_v4 = vld [vmem:[#allocation163_spill] sm:$0xff] }
 0x949   : > { %11296 = vmatprep.subr.bf16.mxu1 %v24785_v15  ;;  %v14630_v56 = vcombine.high %v9404_v57, %v9408_v29  ;;  %v24810_v27 = vld [vmem:[#allocation158_spill] sm:$0xff]  ;;  %v14629_v7 = vcombine.low %v9404_v57, %v9408_v29 }
 0x94a   : > { %v8689_v38 = vadd.f32 %v15446_v23, %v24790_v0  ;;  %v9184_v10 = vmax.f32 %v8686_v20, 0.0  ;;  %v9412_v19 = vld [vmem:[%s24288_s3 + $0x140] sm:$0xff]  ;;  %v24811_v23 = vld [vmem:[#allocation161_spill] sm:$0xff]  ;;  %v24812_v0 = vld [vmem:[#allocation23_spill] sm:$0xff] }
 0x94b   : > { %v9416_v20 = vld [vmem:[%s24288_s3 + $0x160] sm:$0xff] }
 0x94c   : > { %v9185_v3 = vmax.f32 %v8689_v38, 0.0  ;;  %v14638_v49 = vcombine.high %v9412_v19, %v9416_v20  ;;  %v9420_v38 = vld [vmem:[%s24288_s3 + $0x180] sm:$0xff] }
 0x94e   : > { %v9310_v30 = vpack.c.bf16 %v9185_v3, %v9184_v10  ;;  %v9424_v10 = vld [vmem:[%s24288_s3 + $0x1a0] sm:$0xff]  ;;  %v14637_v3 = vcombine.low %v9412_v19, %v9416_v20 }
 0x94f   : > { %v9484_v19 = vld [vmem:[%s24288_s3 + $0x380] sm:$0xff] }
 0x950   : > { %11297 = vmatpush1.bf16.msra.mxu1 %v9310_v30  ;;  %v24813_v30 = vld [vmem:[#allocation24_spill] sm:$0xff]  ;;  %v9488_v20 = vld [vmem:[%s24288_s3 + $0x3a0] sm:$0xff] }
 0x951   : > { %11298 = vmatprep.subr.bf16.mxu1 %v24785_v15 }
 0x954   : > { %11299 = vmatpush1.bf16.msra.mxu1 %v24791_v28  ;;  %v14646_v28 = vcombine.high %v9420_v38, %v9424_v10 }
 0x955   : > { %11300 = vmatprep.subr.bf16.mxu1 %v24785_v15 }
 0x958   : > { %11301 = vmatpush1.bf16.msra.mxu1 %v24792_v52  ;;  %v24814_v52 = vld [vmem:[#allocation155_spill] sm:$0xff] }
 0x959   : > { %11302 = vmatprep.subr.bf16.mxu1 %v24785_v15 }
 0x95c   : > { %11303 = vmatpush1.bf16.msra.mxu1 %v24793_v12  ;;  %v9428_v12 = vld [vmem:[%s24288_s3 + $0x1c0] sm:$0xff] }
 0x95d   : > { %11304 = vmatprep.subr.bf16.mxu1 %v24785_v15 }
 0x960   : > { %11305 = vmatpush1.bf16.msra.mxu1 %v24794_v1  ;;  %v9432_v1 = vld [vmem:[%s24288_s3 + $0x1e0] sm:$0xff] }
 0x961   : > { %11306 = vmatprep.subr.bf16.mxu1 %v24785_v15 }
 0x964   : > { %11307 = vmatpush1.bf16.msra.mxu1 %v24795_v14  ;;  %v14645_v14 = vcombine.low %v9420_v38, %v9424_v10  ;;  %v14709_v38 = vcombine.low %v9484_v19, %v9488_v20 }
 0x965   : > { %11308 = vmatprep.subr.bf16.mxu1 %v24785_v15 }
 0x968   : > { %11309 = vmatpush1.bf16.msra.mxu1 %v24796_v35  ;;  %v24815_v35 = vld [vmem:[#allocation26_spill] sm:$0xff] }
 0x969   : > { %11310 = vmatprep.subr.bf16.mxu1 %v24785_v15 }
 0x96c   : > { %11311 = vmatpush1.bf16.msra.mxu1 %v24797_v8  ;;  %v14654_v8 = vcombine.high %v9428_v12, %v9432_v1 }
 0x96d   : > { %11312 = vmatprep.subr.bf16.mxu1 %v24785_v15 }
 0x970   : > { %11313 = vmatpush1.bf16.msra.mxu1 %v24798_v60  ;;  %v24816_v60 = vld [vmem:[#allocation157_spill] sm:$0xff] }
 0x971   : > { %11314 = vmatprep.subr.bf16.mxu1 %v24785_v15 }
 0x974   : > { %11315 = vmatpush1.bf16.msra.mxu1 %v24799_v25  ;;  %v9436_v25 = vld [vmem:[%s24288_s3 + $0x200] sm:$0xff] }
 0x975   : > { %11316 = vmatprep.subr.bf16.mxu1 %v24785_v15 }
 0x978   : > { %11317 = vmatpush1.bf16.msra.mxu1 %v24800_v45  ;;  %v9440_v45 = vld [vmem:[%s24288_s3 + $0x220] sm:$0xff] }
 0x979   : > { %11318 = vmatprep.subr.bf16.mxu1 %v24785_v15  ;;  %v14662_v37 = vcombine.high %v9436_v25, %v9440_v45 }
 0x97c   : > { %11319 = vmatpush1.bf16.msra.mxu1 %v24801_v58  ;;  %v14653_v58 = vcombine.low %v9428_v12, %v9432_v1  ;;  %v9508_v12 = vld [vmem:[%s24288_s3 + $0x440] sm:$0xff] }
 0x97d   : > { %11320 = vmatprep.subr.bf16.mxu1 %v24785_v15  ;;  %v9512_v1 = vld [vmem:[%s24288_s3 + $0x460] sm:$0xff] }
 0x980   : > { %11321 = vmatpush1.bf16.msra.mxu1 %v24802_v40  ;;  %v24817_v40 = vld [vmem:[#allocation28_spill] sm:$0xff] }
 0x981   : > { %11322 = vmatprep.subr.bf16.mxu1 %v24785_v15 }
 0x984   : > { %11323 = vmatpush1.bf16.msra.mxu1 %v24803_v50  ;;  %v9444_v50 = vld [vmem:[%s24288_s3 + $0x240] sm:$0xff] }
 0x985   : > { %11581 = vmatprep.subr.bf16.mxu1 %v24785_v15 }
 0x987   : > { %11325 = vmatmul.mubr.bf16.vlgmr.msra.gmra.mrb[116].mxu1 %v14597_v44  ;;  %v9400_v44 = vld [vmem:[%s24288_s3 + $0xe0] sm:$0xff] }
 0x988   : > { %11582 = vmatpush1.bf16.msra.mxu1 %v24804_v34  ;;  %11332 = vmatprep.mubr.bf16.mxu1 %v14606_v13  ;;  %v14622_v9 = vcombine.high %v9396_v17, %v9400_v44  ;;  %v14621_v39 = vcombine.low %v9396_v17, %v9400_v44  ;;  %v9448_v13 = vld [vmem:[%s24288_s3 + $0x260] sm:$0xff]  ;;  %v14661_v34 = vcombine.low %v9436_v25, %v9440_v45 }
 0x989   : > { %11583 = vmatprep.subr.bf16.mxu1 %v24785_v15  ;;  %v14670_v59 = vcombine.high %v9444_v50, %v9448_v13  ;;  %v9460_v17 = vld [vmem:[%s24288_s3 + $0x2c0] sm:$0xff]  ;;  %v14733_v25 = vcombine.low %v9508_v12, %v9512_v1 }
 0x98a   : > { %v9464_v44 = vld [vmem:[%s24288_s3 + $0x2e0] sm:$0xff] }
 0x98b   : > { %v14685_v57 = vcombine.low %v9460_v17, %v9464_v44 }
 0x98c   : > { %11584 = vmatpush1.bf16.msra.mxu1 %v24805_v51  ;;  %v9456_v51 = vld [vmem:[%s24288_s3 + $0x2a0] sm:$0xff] }
 0x98d   : > { %11585 = vmatprep.subr.bf16.mxu1 %v24785_v15 }
 0x98f   : > { %11333 = vmatmul.mubr.bf16.gmra.mrb[120].mxu1 %v14605_v16  ;;  %v9452_v16 = vld [vmem:[%s24288_s3 + $0x280] sm:$0xff] }
 0x990   : > { %11586 = vmatpush1.bf16.msra.mxu1 %v24806_v31  ;;  %11340 = vmatprep.mubr.bf16.mxu1 %v14614_v26  ;;  %v14669_v26 = vcombine.low %v9444_v50, %v9448_v13  ;;  %v14678_v31 = vcombine.high %v9452_v16, %v9456_v51  ;;  %v9532_v50 = vld [vmem:[%s24288_s3 + $0x500] sm:$0xff] }
 0x991   : > { %11587 = vmatprep.subr.bf16.mxu1 %v24785_v15  ;;  %v9536_v13 = vld [vmem:[%s24288_s3 + $0x520] sm:$0xff] }
 0x994   : > { %11588 = vmatpush1.bf16.msra.mxu1 %v24807_v22  ;;  %v14686_v22 = vcombine.high %v9460_v17, %v9464_v44  ;;  %v9552_v17 = vld [vmem:[%s24288_s3 + $0x5a0] sm:$0xff] }
 0x995   : > { %11589 = vmatprep.subr.bf16.mxu1 %v24785_v15 }
 0x997   : > { %11341 = vmatmul.mubr.bf16.gmra.mrb[124].mxu1 %v14613_v11  ;;  %v14677_v11 = vcombine.low %v9452_v16, %v9456_v51  ;;  %v9544_v16 = vld [vmem:[%s24288_s3 + $0x560] sm:$0xff]  ;;  %v14757_v51 = vcombine.low %v9532_v50, %v9536_v13 }
 0x998   : > { %11590 = vmatpush1.bf16.msra.mxu1 %v24808_v62  ;;  %11348 = vmatprep.mubr.bf16.mxu1 %v14622_v9  ;;  %v9468_v9 = vld [vmem:[%s24288_s3 + $0x300] sm:$0xff] }
 0x999   : > { %11591 = vmatprep.subr.bf16.mxu1 %v24785_v15  ;;  %v9472_v62 = vld [vmem:[%s24288_s3 + $0x320] sm:$0xff] }
 0x99a   : > { %v14694_v29 = vcombine.high %v9468_v9, %v9472_v62 }
 0x99c   : > { %11592 = vmatpush1.bf16.msra.mxu1 %v24809_v4  ;;  %v9480_v4 = vld [vmem:[%s24288_s3 + $0x360] sm:$0xff] }
 0x99d   : > { %11593 = vmatprep.subr.bf16.mxu1 %v24785_v15 }
 0x99f   : > { %11349 = vmatmul.mubr.bf16.gmra.mrb[128].mxu1 %v14621_v39  ;;  %v9476_v39 = vld [vmem:[%s24288_s3 + $0x340] sm:$0xff] }
 0x9a0   : > { %11594 = vmatpush1.bf16.msra.mxu1 %v24810_v27  ;;  %11356 = vmatprep.mubr.bf16.mxu1 %v14630_v56  ;;  %v14693_v56 = vcombine.low %v9468_v9, %v9472_v62  ;;  %v14702_v27 = vcombine.high %v9476_v39, %v9480_v4  ;;  %v9560_v9 = vld [vmem:[%s24288_s3 + $0x5e0] sm:$0xff] }
 0x9a1   : > { %11595 = vmatprep.subr.bf16.mxu1 %v24785_v15 }
 0x9a4   : > { %11596 = vmatpush1.bf16.msra.mxu1 %v24811_v23  ;;  %v14710_v23 = vcombine.high %v9484_v19, %v9488_v20  ;;  %v9576_v19 = vld [vmem:[%s24288_s3 + $0x660] sm:$0xff] }
 0x9a5   : > { %11597 = vmatprep.subr.bf16.mxu1 %v24785_v15 }
 0x9a7   : > { %11357 = vmatmul.mubr.bf16.gmra.mrb[132].mxu1 %v14629_v7  ;;  %v14701_v7 = vcombine.low %v9476_v39, %v9480_v4  ;;  %v9568_v39 = vld [vmem:[%s24288_s3 + $0x620] sm:$0xff] }
 0x9a8   : > { %11598 = vmatpush1.bf16.msra.mxu1 %v24812_v0  ;;  %11364 = vmatprep.mubr.bf16.mxu1 %v14638_v49  ;;  %v9492_v49 = vld [vmem:[%s24288_s3 + $0x3c0] sm:$0xff] }
 0x9a9   : > { %11599 = vmatprep.subr.bf16.mxu1 %v24785_v15  ;;  %v9496_v0 = vld [vmem:[%s24288_s3 + $0x3e0] sm:$0xff] }
 0x9aa   : > { %v14718_v10 = vcombine.high %v9492_v49, %v9496_v0 }
 0x9ac   : > { %11600 = vmatpush1.bf16.msra.mxu1 %v24813_v30  ;;  %v9504_v30 = vld [vmem:[%s24288_s3 + $0x420] sm:$0xff] }
 0x9ad   : > { %11601 = vmatprep.subr.bf16.mxu1 %v24785_v15 }
 0x9af   : > { %11365 = vmatmul.mubr.bf16.gmra.mrb[136].mxu1 %v14637_v3  ;;  %v9500_v3 = vld [vmem:[%s24288_s3 + $0x400] sm:$0xff] }
 0x9b0   : > { %11602 = vmatpush1.bf16.msra.mxu1 %v24814_v52  ;;  %11372 = vmatprep.mubr.bf16.mxu1 %v14646_v28  ;;  %v14717_v28 = vcombine.low %v9492_v49, %v9496_v0  ;;  %v14726_v52 = vcombine.high %v9500_v3, %v9504_v30  ;;  %v9584_v49 = vld [vmem:[%s24288_s3 + $0x6a0] sm:$0xff] }
 0x9b1   : > { %11603 = vmatprep.subr.bf16.mxu1 %v24785_v15 }
 0x9b4   : > { %11604 = vmatpush1.bf16.msra.mxu1 %v24815_v35  ;;  %v14734_v35 = vcombine.high %v9508_v12, %v9512_v1  ;;  %v9600_v12 = vld [vmem:[%s24288_s3 + $0x720] sm:$0xff] }
 0x9b5   : > { %11605 = vmatprep.subr.bf16.mxu1 %v24785_v15 }
 0x9b7   : > { %11373 = vmatmul.mubr.bf16.gmra.mrb[140].mxu1 %v14645_v14  ;;  %v14725_v14 = vcombine.low %v9500_v3, %v9504_v30  ;;  %v9592_v3 = vld [vmem:[%s24288_s3 + $0x6e0] sm:$0xff] }
 0x9b8   : > { %11606 = vmatpush1.bf16.msra.mxu1 %v24816_v60  ;;  %11380 = vmatprep.mubr.bf16.mxu1 %v14654_v8  ;;  %v9516_v8 = vld [vmem:[%s24288_s3 + $0x480] sm:$0xff] }
 0x9b9   : > { %11607 = vmatprep.subr.bf16.mxu1 %v24785_v15  ;;  %v9520_v60 = vld [vmem:[%s24288_s3 + $0x4a0] sm:$0xff] }
 0x9ba   : > { %v14742_v45 = vcombine.high %v9516_v8, %v9520_v60 }
 0x9bc   : > { %11608 = vmatpush1.bf16.msra.mxu1 %v24817_v40  ;;  %v9528_v40 = vld [vmem:[%s24288_s3 + $0x4e0] sm:$0xff] }
 0x9bd   : > { %11609 = vmatprep.subr.bf16.mxu1 %v24785_v15 }
 0x9bf   : > { %11381 = vmatmul.mubr.bf16.gmra.mrb[144].mxu1 %v14653_v58  ;;  %v9524_v58 = vld [vmem:[%s24288_s3 + $0x4c0] sm:$0xff] }
 0x9c0   : > { %11610 = vmatpush1.bf16.msra.mxu1 %v24818_v46  ;;  %11388 = vmatprep.mubr.bf16.mxu1 %v14662_v37  ;;  %v14741_v37 = vcombine.low %v9516_v8, %v9520_v60  ;;  %v14750_v46 = vcombine.high %v9524_v58, %v9528_v40  ;;  %v9608_v8 = vld [vmem:[%s24288_s3 + $0x760] sm:$0xff] }
 0x9c1   : > { %11611 = vmatprep.subr.bf16.mxu1 %v24785_v15 }
 0x9c4   : > { %11612 = vmatpush1.bf16.msra.mxu1 %v24819_v42  ;;  %v14758_v42 = vcombine.high %v9532_v50, %v9536_v13  ;;  %v9624_v50 = vld [vmem:[%s24288_s3 + $0x7e0] sm:$0xff] }
 0x9c5   : > { %11870 = vmatprep.subr.bf16.mxu1 %v24785_v15 }
 0x9c7   : > { %11389 = vmatmul.mubr.bf16.gmra.mrb[148].mxu1 %v14661_v34  ;;  %v14749_v34 = vcombine.low %v9524_v58, %v9528_v40  ;;  %v9616_v58 = vld [vmem:[%s24288_s3 + $0x7a0] sm:$0xff] }
 0x9c8   : > { %11396 = vmatprep.mubr.bf16.mxu1 %v14670_v59  ;;  %v9540_v59 = vld [vmem:[%s24288_s3 + $0x540] sm:$0xff] }
 0x9c9   : > { %v14765_v44 = vcombine.low %v9540_v59, %v9544_v16 }
 0x9cf   : > { %11397 = vmatmul.mubr.bf16.gmra.mrb[152].mxu1 %v14669_v26  ;;  %v14766_v26 = vcombine.high %v9540_v59, %v9544_v16  ;;  %v9377_v59 = vld [vmem:[%s24288_s3 + $0x28] sm:$0xff] }
 0x9d0   : > { %11404 = vmatprep.mubr.bf16.mxu1 %v14678_v31  ;;  %v9548_v31 = vld [vmem:[%s24288_s3 + $0x580] sm:$0xff] }
 0x9d1   : > { %v14773_v62 = vcombine.low %v9548_v31, %v9552_v17 }
 0x9d7   : > { %11405 = vmatmul.mubr.bf16.gmra.mrb[156].mxu1 %v14677_v11  ;;  %v14774_v11 = vcombine.high %v9548_v31, %v9552_v17  ;;  %v9385_v31 = vld [vmem:[%s24288_s3 + $0x68] sm:$0xff] }
 0x9d8   : > { %11412 = vmatprep.mubr.bf16.mxu1 %v14686_v22  ;;  %v9556_v22 = vld [vmem:[%s24288_s3 + $0x5c0] sm:$0xff] }
 0x9d9   : > { %v14781_v4 = vcombine.low %v9556_v22, %v9560_v9 }
 0x9df   : > { %11413 = vmatmul.mubr.bf16.gmra.mrb[160].mxu1 %v14685_v57  ;;  %v14782_v57 = vcombine.high %v9556_v22, %v9560_v9  ;;  %v9389_v22 = vld [vmem:[%s24288_s3 + $0x88] sm:$0xff] }
 0x9e0   : > { %11420 = vmatprep.mubr.bf16.mxu1 %v14694_v29  ;;  %v9564_v29 = vld [vmem:[%s24288_s3 + $0x600] sm:$0xff]  ;;  %v9393_v9 = vld [vmem:[%s24288_s3 + $0xa8] sm:$0xff] }
 0x9e1   : > { %v14789_v20 = vcombine.low %v9564_v29, %v9568_v39 }
 0x9e7   : > { %11421 = vmatmul.mubr.bf16.gmra.mrb[164].mxu1 %v14693_v56  ;;  %v14790_v56 = vcombine.high %v9564_v29, %v9568_v39  ;;  %v14616_v29 = vcombine.high %v9389_v22, %v9393_v9  ;;  %v24822_v39 = vld [vmem:[#allocation167_spill] sm:$0xff] }
 0x9e8   : > { %11428 = vmatprep.mubr.bf16.mxu1 %v14702_v27  ;;  %v9572_v27 = vld [vmem:[%s24288_s3 + $0x640] sm:$0xff] }
 0x9e9   : > { %v14797_v0 = vcombine.low %v9572_v27, %v9576_v19 }
 0x9ef   : > { %11429 = vmatmul.mubr.bf16.gmra.mrb[168].mxu1 %v14701_v7  ;;  %v14798_v7 = vcombine.high %v9572_v27, %v9576_v19  ;;  %v14615_v27 = vcombine.low %v9389_v22, %v9393_v9  ;;  %v24823_v19 = vld [vmem:[#allocation36_spill] sm:$0xff]  ;;  %v9457_v22 = vld [vmem:[%s24288_s3 + $0x2a8] sm:$0xff] }
 0x9f0   : > { %11436 = vmatprep.mubr.bf16.mxu1 %v14710_v23  ;;  %v9580_v23 = vld [vmem:[%s24288_s3 + $0x680] sm:$0xff] }
 0x9f1   : > { %v14805_v30 = vcombine.low %v9580_v23, %v9584_v49 }
 0x9f7   : > { %11437 = vmatmul.mubr.bf16.gmra.mrb[172].mxu1 %v14709_v38  ;;  %v14806_v38 = vcombine.high %v9580_v23, %v9584_v49  ;;  %v9405_v23 = vld [vmem:[%s24288_s3 + $0x108] sm:$0xff] }
 0x9f8   : > { %11444 = vmatprep.mubr.bf16.mxu1 %v14718_v10  ;;  %v9588_v10 = vld [vmem:[%s24288_s3 + $0x6c0] sm:$0xff]  ;;  %v9409_v49 = vld [vmem:[%s24288_s3 + $0x128] sm:$0xff] }
 0x9f9   : > { %v14813_v1 = vcombine.low %v9588_v10, %v9592_v3 }
 0x9ff   : > { %11445 = vmatmul.mubr.bf16.gmra.mrb[176].mxu1 %v14717_v28  ;;  %v14814_v28 = vcombine.high %v9588_v10, %v9592_v3  ;;  %v14632_v10 = vcombine.high %v9405_v23, %v9409_v49  ;;  %v24826_v3 = vld [vmem:[#allocation39_spill] sm:$0xff] }
 0xa00   : > { %11452 = vmatprep.mubr.bf16.mxu1 %v14726_v52  ;;  %v9596_v52 = vld [vmem:[%s24288_s3 + $0x700] sm:$0xff] }
 0xa01   : > { %v14821_v60 = vcombine.low %v9596_v52, %v9600_v12 }
 0xa07   : > { %11453 = vmatmul.mubr.bf16.gmra.mrb[180].mxu1 %v14725_v14  ;;  %v14822_v14 = vcombine.high %v9596_v52, %v9600_v12  ;;  %v14631_v52 = vcombine.low %v9405_v23, %v9409_v49  ;;  %v24827_v12 = vld [vmem:[#allocation169_spill] sm:$0xff] }
 0xa08   : > { %11460 = vmatprep.mubr.bf16.mxu1 %v14734_v35  ;;  %v9604_v35 = vld [vmem:[%s24288_s3 + $0x740] sm:$0xff] }
 0xa09   : > { %v14829_v40 = vcombine.low %v9604_v35, %v9608_v8 }
 0xa0f   : > { %11461 = vmatmul.mubr.bf16.gmra.mrb[184].mxu1 %v14733_v25  ;;  %v14830_v25 = vcombine.high %v9604_v35, %v9608_v8  ;;  %v9421_v35 = vld [vmem:[%s24288_s3 + $0x188] sm:$0xff] }
 0xa10   : > { %11468 = vmatprep.mubr.bf16.mxu1 %v14742_v45  ;;  %v9612_v45 = vld [vmem:[%s24288_s3 + $0x780] sm:$0xff]  ;;  %v9425_v8 = vld [vmem:[%s24288_s3 + $0x1a8] sm:$0xff] }
 0xa11   : > { %v14837_v13 = vcombine.low %v9612_v45, %v9616_v58 }
 0xa17   : > { %11469 = vmatmul.mubr.bf16.gmra.mrb[188].mxu1 %v14741_v37  ;;  %v14838_v37 = vcombine.high %v9612_v45, %v9616_v58  ;;  %v14648_v45 = vcombine.high %v9421_v35, %v9425_v8  ;;  %v24830_v58 = vld [vmem:[#allocation42_spill] sm:$0xff] }
 0xa18   : > { %11476 = vmatprep.mubr.bf16.mxu1 %v14750_v46  ;;  %v9620_v46 = vld [vmem:[%s24288_s3 + $0x7c0] sm:$0xff] }
 0xa19   : > { %v14845_v16 = vcombine.low %v9620_v46, %v9624_v50 }
 0xa1f   : > { %11477 = vmatmul.mubr.bf16.gmra.mrb[192].mxu1 %v14749_v34  ;;  %v14846_v34 = vcombine.high %v9620_v46, %v9624_v50  ;;  %v14647_v46 = vcombine.low %v9421_v35, %v9425_v8  ;;  %v24831_v50 = vld [vmem:[#allocation43_spill] sm:$0xff] }
 0xa20   : > { %11484 = vmatprep.mubr.bf16.mxu1 %v14758_v42  ;;  %v9373_v42 = vld [vmem:[%s24288_s3 + $0x8] sm:$0xff] }
 0xa21   : > { %v14599_v17 = vcombine.low %v9373_v42, %v9377_v59 }
 0xa27   : > { %11485 = vmatmul.mubr.bf16.gmra.mrb[196].mxu1 %v14757_v51  ;;  %v14600_v51 = vcombine.high %v9373_v42, %v9377_v59  ;;  %v9437_v42 = vld [vmem:[%s24288_s3 + $0x208] sm:$0xff] }
 0xa28   : > { %11492 = vmatprep.mubr.bf16.mxu1 %v14766_v26  ;;  %v9381_v26 = vld [vmem:[%s24288_s3 + $0x48] sm:$0xff] }
 0xa29   : > { %v9441_v59 = vld [vmem:[%s24288_s3 + $0x228] sm:$0xff] }
 0xa2f   : > { %11493 = vmatmul.mubr.bf16.gmra.mrb[200].mxu1 %v14765_v44  ;;  %v14608_v44 = vcombine.high %v9381_v26, %v9385_v31 }
 0xa30   : > { %11500 = vmatprep.mubr.bf16.mxu1 %v14774_v11  ;;  %v24820_v11 = vld [vmem:[#allocation166_spill] sm:$0xff] }
 0xa37   : > { %11501 = vmatmul.mubr.bf16.gmra.mrb[204].mxu1 %v14773_v62  ;;  %v14607_v62 = vcombine.low %v9381_v26, %v9385_v31  ;;  %v14664_v26 = vcombine.high %v9437_v42, %v9441_v59  ;;  %v9445_v31 = vld [vmem:[%s24288_s3 + $0x248] sm:$0xff] }
 0xa38   : > { %11508 = vmatprep.mubr.bf16.mxu1 %v14782_v57  ;;  %v24821_v57 = vld [vmem:[#allocation35_spill] sm:$0xff] }
 0xa3f   : > { %11509 = vmatmul.mubr.bf16.gmra.mrb[208].mxu1 %v14781_v4  ;;  %v9397_v4 = vld [vmem:[%s24288_s3 + $0xc8] sm:$0xff] }
 0xa40   : > { %11516 = vmatprep.mubr.bf16.mxu1 %v14790_v56  ;;  %v9401_v56 = vld [vmem:[%s24288_s3 + $0xe8] sm:$0xff] }
 0xa47   : > { %11517 = vmatmul.mubr.bf16.gmra.mrb[212].mxu1 %v14789_v20  ;;  %v14624_v20 = vcombine.high %v9397_v4, %v9401_v56 }
 0xa48   : > { %11524 = vmatprep.mubr.bf16.mxu1 %v14798_v7  ;;  %v24824_v7 = vld [vmem:[#allocation37_spill] sm:$0xff] }
 0xa4f   : > { %11525 = vmatmul.mubr.bf16.gmra.mrb[216].mxu1 %v14797_v0  ;;  %v14623_v0 = vcombine.low %v9397_v4, %v9401_v56  ;;  %v9469_v4 = vld [vmem:[%s24288_s3 + $0x308] sm:$0xff] }
 0xa50   : > { %11532 = vmatprep.mubr.bf16.mxu1 %v14806_v38  ;;  %v24825_v38 = vld [vmem:[#allocation38_spill] sm:$0xff]  ;;  %v9473_v56 = vld [vmem:[%s24288_s3 + $0x328] sm:$0xff] }
 0xa51   : > { %v14695_v23 = vcombine.low %v9469_v4, %v9473_v56 }
 0xa57   : > { %11533 = vmatmul.mubr.bf16.gmra.mrb[220].mxu1 %v14805_v30  ;;  %v9413_v30 = vld [vmem:[%s24288_s3 + $0x148] sm:$0xff] }
 0xa58   : > { %11540 = vmatprep.mubr.bf16.mxu1 %v14814_v28  ;;  %v9417_v28 = vld [vmem:[%s24288_s3 + $0x168] sm:$0xff] }
 0xa5f   : > { %11541 = vmatmul.mubr.bf16.gmra.mrb[224].mxu1 %v14813_v1  ;;  %v14640_v1 = vcombine.high %v9413_v30, %v9417_v28 }
 0xa60   : > { %11548 = vmatprep.mubr.bf16.mxu1 %v14822_v14  ;;  %v24828_v14 = vld [vmem:[#allocation40_spill] sm:$0xff] }
 0xa67   : > { %11549 = vmatmul.mubr.bf16.gmra.mrb[228].mxu1 %v14821_v60  ;;  %v14639_v60 = vcombine.low %v9413_v30, %v9417_v28  ;;  %v9493_v30 = vld [vmem:[%s24288_s3 + $0x3c8] sm:$0xff] }
 0xa68   : > { %11556 = vmatprep.mubr.bf16.mxu1 %v14830_v25  ;;  %v24829_v25 = vld [vmem:[#allocation41_spill] sm:$0xff]  ;;  %v9497_v28 = vld [vmem:[%s24288_s3 + $0x3e8] sm:$0xff] }
 0xa69   : > { %v14719_v35 = vcombine.low %v9493_v30, %v9497_v28 }
 0xa6f   : > { %11557 = vmatmul.mubr.bf16.gmra.mrb[232].mxu1 %v14829_v40  ;;  %v9429_v40 = vld [vmem:[%s24288_s3 + $0x1c8] sm:$0xff] }
 0xa70   : > { %11564 = vmatprep.mubr.bf16.mxu1 %v14838_v37  ;;  %v9433_v37 = vld [vmem:[%s24288_s3 + $0x1e8] sm:$0xff] }
 0xa77   : > { %11565 = vmatmul.mubr.bf16.gmra.mrb[236].mxu1 %v14837_v13  ;;  %v14656_v13 = vcombine.high %v9429_v40, %v9433_v37 }
 0xa78   : > { %11572 = vmatprep.mubr.bf16.mxu1 %v14846_v34  ;;  %v24832_v34 = vld [vmem:[#allocation44_spill] sm:$0xff] }
 0xa7f   : > { %11573 = vmatmul.mubr.bf16.gmra.mrb[240].mxu1 %v14845_v16  ;;  %v14655_v16 = vcombine.low %v9429_v40, %v9433_v37  ;;  %v9517_v40 = vld [vmem:[%s24288_s3 + $0x488] sm:$0xff] }
 0xa80   : > { %11613 = vmatprep.mubr.bf16.mxu1 %v14600_v51  ;;  %v24833_v51 = vld [vmem:[#allocation45_spill] sm:$0xff]  ;;  %v9521_v37 = vld [vmem:[%s24288_s3 + $0x4a8] sm:$0xff] }
 0xa87   : > { %11614 = vmatmul.mubr.bf16.vlgmr.msra.gmra.mrb[116].mxu1 %v14599_v17  ;;  %v9449_v17 = vld [vmem:[%s24288_s3 + $0x268] sm:$0xff] }
 0xa88   : > { %11871 = vmatpush1.bf16.msra.mxu1 %v24820_v11  ;;  %11621 = vmatprep.mubr.bf16.mxu1 %v14608_v44  ;;  %v14663_v44 = vcombine.low %v9437_v42, %v9441_v59  ;;  %v14672_v11 = vcombine.high %v9445_v31, %v9449_v17  ;;  %v14671_v9 = vcombine.low %v9445_v31, %v9449_v17  ;;  %v9541_v17 = vld [vmem:[%s24288_s3 + $0x548] sm:$0xff] }
 0xa89   : > { %11872 = vmatprep.subr.bf16.mxu1 %v24785_v15  ;;  %v14743_v42 = vcombine.low %v9517_v40, %v9521_v37 }
 0xa8c   : > { %11873 = vmatpush1.bf16.msra.mxu1 %v24821_v57  ;;  %v9465_v57 = vld [vmem:[%s24288_s3 + $0x2e8] sm:$0xff] }
 0xa8d   : > { %11874 = vmatprep.subr.bf16.mxu1 %v24785_v15 }
 0xa8f   : > { %11622 = vmatmul.mubr.bf16.gmra.mrb[120].mxu1 %v14607_v62 }
 0xa90   : > { %11875 = vmatpush1.bf16.msra.mxu1 %v24822_v39  ;;  %11629 = vmatprep.mubr.bf16.mxu1 %v14616_v29 }
 0xa91   : > { %11876 = vmatprep.subr.bf16.mxu1 %v24785_v15 }
 0xa94   : > { %11877 = vmatpush1.bf16.msra.mxu1 %v24823_v19  ;;  %v14696_v19 = vcombine.high %v9469_v4, %v9473_v56  ;;  %v9565_v56 = vld [vmem:[%s24288_s3 + $0x608] sm:$0xff] }
 0xa95   : > { %11878 = vmatprep.subr.bf16.mxu1 %v24785_v15 }
 0xa97   : > { %11630 = vmatmul.mubr.bf16.gmra.mrb[124].mxu1 %v14615_v27 }
 0xa98   : > { %11879 = vmatpush1.bf16.msra.mxu1 %v24824_v7  ;;  %11637 = vmatprep.mubr.bf16.mxu1 %v14624_v20  ;;  %v9477_v20 = vld [vmem:[%s24288_s3 + $0x348] sm:$0xff] }
 0xa99   : > { %11880 = vmatprep.subr.bf16.mxu1 %v24785_v15  ;;  %v9481_v7 = vld [vmem:[%s24288_s3 + $0x368] sm:$0xff] }
 0xa9a   : > { %v14704_v49 = vcombine.high %v9477_v20, %v9481_v7 }
 0xa9c   : > { %11881 = vmatpush1.bf16.msra.mxu1 %v24825_v38  ;;  %v9489_v38 = vld [vmem:[%s24288_s3 + $0x3a8] sm:$0xff] }
 0xa9d   : > { %11882 = vmatprep.subr.bf16.mxu1 %v24785_v15 }
 0xa9f   : > { %11638 = vmatmul.mubr.bf16.gmra.mrb[128].mxu1 %v14623_v0  ;;  %v9485_v0 = vld [vmem:[%s24288_s3 + $0x388] sm:$0xff] }
 0xaa0   : > { %11883 = vmatpush1.bf16.msra.mxu1 %v24826_v3  ;;  %11645 = vmatprep.mubr.bf16.mxu1 %v14632_v10  ;;  %v14703_v10 = vcombine.low %v9477_v20, %v9481_v7  ;;  %v14712_v3 = vcombine.high %v9485_v0, %v9489_v38  ;;  %v9573_v7 = vld [vmem:[%s24288_s3 + $0x648] sm:$0xff] }
 0xaa1   : > { %11884 = vmatprep.subr.bf16.mxu1 %v24785_v15 }
 0xaa4   : > { %11885 = vmatpush1.bf16.msra.mxu1 %v24827_v12  ;;  %v14720_v12 = vcombine.high %v9493_v30, %v9497_v28  ;;  %v9589_v28 = vld [vmem:[%s24288_s3 + $0x6c8] sm:$0xff] }
 0xaa5   : > { %11886 = vmatprep.subr.bf16.mxu1 %v24785_v15 }
 0xaa7   : > { %11646 = vmatmul.mubr.bf16.gmra.mrb[132].mxu1 %v14631_v52  ;;  %v14711_v52 = vcombine.low %v9485_v0, %v9489_v38  ;;  %v9581_v38 = vld [vmem:[%s24288_s3 + $0x688] sm:$0xff] }
 0xaa8   : > { %11887 = vmatpush1.bf16.msra.mxu1 %v24828_v14  ;;  %11653 = vmatprep.mubr.bf16.mxu1 %v14640_v1  ;;  %v9501_v1 = vld [vmem:[%s24288_s3 + $0x408] sm:$0xff] }
 0xaa9   : > { %11888 = vmatprep.subr.bf16.mxu1 %v24785_v15  ;;  %v9505_v14 = vld [vmem:[%s24288_s3 + $0x428] sm:$0xff] }
 0xaaa   : > { %v14728_v8 = vcombine.high %v9501_v1, %v9505_v14 }
 0xaac   : > { %11889 = vmatpush1.bf16.msra.mxu1 %v24829_v25  ;;  %v9513_v25 = vld [vmem:[%s24288_s3 + $0x468] sm:$0xff] }
 0xaad   : > { %11890 = vmatprep.subr.bf16.mxu1 %v24785_v15 }
 0xaaf   : > { %11654 = vmatmul.mubr.bf16.gmra.mrb[136].mxu1 %v14639_v60  ;;  %v9509_v60 = vld [vmem:[%s24288_s3 + $0x448] sm:$0xff] }
 0xab0   : > { %11891 = vmatpush1.bf16.msra.mxu1 %v24830_v58  ;;  %11661 = vmatprep.mubr.bf16.mxu1 %v14648_v45  ;;  %v14727_v45 = vcombine.low %v9501_v1, %v9505_v14  ;;  %v14736_v58 = vcombine.high %v9509_v60, %v9513_v25  ;;  %v9597_v14 = vld [vmem:[%s24288_s3 + $0x708] sm:$0xff] }
 0xab1   : > { %11892 = vmatprep.subr.bf16.mxu1 %v24785_v15 }
 0xab4   : > { %11893 = vmatpush1.bf16.msra.mxu1 %v24831_v50  ;;  %v14744_v50 = vcombine.high %v9517_v40, %v9521_v37  ;;  %v9613_v37 = vld [vmem:[%s24288_s3 + $0x788] sm:$0xff] }
 0xab5   : > { %11894 = vmatprep.subr.bf16.mxu1 %v24785_v15 }
 0xab7   : > { %11662 = vmatmul.mubr.bf16.gmra.mrb[140].mxu1 %v14647_v46  ;;  %v14735_v46 = vcombine.low %v9509_v60, %v9513_v25  ;;  %v9605_v25 = vld [vmem:[%s24288_s3 + $0x748] sm:$0xff] }
 0xab8   : > { %11895 = vmatpush1.bf16.msra.mxu1 %v24832_v34  ;;  %11669 = vmatprep.mubr.bf16.mxu1 %v14656_v13  ;;  %v9525_v13 = vld [vmem:[%s24288_s3 + $0x4c8] sm:$0xff] }
 0xab9   : > { %11896 = vmatprep.subr.bf16.mxu1 %v24785_v15  ;;  %v9529_v34 = vld [vmem:[%s24288_s3 + $0x4e8] sm:$0xff] }
 0xaba   : > { %v14752_v59 = vcombine.high %v9525_v13, %v9529_v34 }
 0xabc   : > { %11897 = vmatpush1.bf16.msra.mxu1 %v24833_v51  ;;  %v9537_v51 = vld [vmem:[%s24288_s3 + $0x528] sm:$0xff] }
 0xabd   : > { %11898 = vmatprep.subr.bf16.mxu1 %v24785_v15 }
 0xabf   : > { %11670 = vmatmul.mubr.bf16.gmra.mrb[144].mxu1 %v14655_v16  ;;  %v9533_v16 = vld [vmem:[%s24288_s3 + $0x508] sm:$0xff] }
 0xac0   : > { %11899 = vmatpush1.bf16.msra.mxu1 %v22651_v54  ;;  %11677 = vmatprep.mubr.bf16.mxu1 %v14664_v26  ;;  %v9453_v54 = vld [vmem:[%s24288_s3 + $0x288] sm:$0xff]  ;;  %v14751_v26 = vcombine.low %v9525_v13, %v9529_v34  ;;  %v14760_v31 = vcombine.high %v9533_v16, %v9537_v51 }
 0xac1   : > { %11900 = vmatprep.subr.bf16.mxu1 %v24785_v15  ;;  %v14680_v62 = vcombine.high %v9453_v54, %v9457_v22  ;;  %v14679_v29 = vcombine.low %v9453_v54, %v9457_v22  ;;  %v9549_v22 = vld [vmem:[%s24288_s3 + $0x588] sm:$0xff] }
 0xac2   : > { %v9621_v34 = vld [vmem:[%s24288_s3 + $0x7c8] sm:$0xff] }
 0xac4   : > { %11901 = vmatpush1.bf16.msra.mxu1 %v22659_v63  ;;  %v9461_v63 = vld [vmem:[%s24288_s3 + $0x2c8] sm:$0xff] }
 0xac5   : > { %12159 = vmatprep.subr.bf16.mxu1 %v24785_v15  ;;  %v14688_v39 = vcombine.high %v9461_v63, %v9465_v57  ;;  %v14687_v27 = vcombine.low %v9461_v63, %v9465_v57  ;;  %v9557_v57 = vld [vmem:[%s24288_s3 + $0x5c8] sm:$0xff] }
 0xac7   : > { %11678 = vmatmul.mubr.bf16.gmra.mrb[148].mxu1 %v14663_v44  ;;  %v9545_v44 = vld [vmem:[%s24288_s3 + $0x568] sm:$0xff] }
 0xac8   : > { %11685 = vmatprep.mubr.bf16.mxu1 %v14672_v11  ;;  %v14759_v11 = vcombine.low %v9533_v16, %v9537_v51  ;;  %v14768_v54 = vcombine.high %v9541_v17, %v9545_v44  ;;  %v9374_v51 = vld [vmem:[%s24288_s3 + $0x10] sm:$0xff] }
 0xacf   : > { %11686 = vmatmul.mubr.bf16.gmra.mrb[152].mxu1 %v14671_v9  ;;  %v9553_v9 = vld [vmem:[%s24288_s3 + $0x5a8] sm:$0xff] }
 0xad0   : > { %11693 = vmatprep.mubr.bf16.mxu1 %v14680_v62  ;;  %v14767_v62 = vcombine.low %v9541_v17, %v9545_v44  ;;  %v14776_v63 = vcombine.high %v9549_v22, %v9553_v9  ;;  %v9382_v44 = vld [vmem:[%s24288_s3 + $0x50] sm:$0xff] }
 0xad7   : > { %11694 = vmatmul.mubr.bf16.gmra.mrb[156].mxu1 %v14679_v29  ;;  %v9561_v29 = vld [vmem:[%s24288_s3 + $0x5e8] sm:$0xff] }
 0xad8   : > { %11701 = vmatprep.mubr.bf16.mxu1 %v14688_v39  ;;  %v14775_v39 = vcombine.low %v9549_v22, %v9553_v9  ;;  %v14784_v4 = vcombine.high %v9557_v57, %v9561_v29  ;;  %v9390_v9 = vld [vmem:[%s24288_s3 + $0x90] sm:$0xff] }
 0xadf   : > { %11702 = vmatmul.mubr.bf16.gmra.mrb[160].mxu1 %v14687_v27  ;;  %v9569_v27 = vld [vmem:[%s24288_s3 + $0x628] sm:$0xff] }
 0xae0   : > { %11709 = vmatprep.mubr.bf16.mxu1 %v14696_v19  ;;  %v14783_v19 = vcombine.low %v9557_v57, %v9561_v29  ;;  %v14792_v20 = vcombine.high %v9565_v56, %v9569_v27  ;;  %v9402_v29 = vld [vmem:[%s24288_s3 + $0xf0] sm:$0xff] }
 0xae7   : > { %11710 = vmatmul.mubr.bf16.gmra.mrb[164].mxu1 %v14695_v23  ;;  %v9577_v23 = vld [vmem:[%s24288_s3 + $0x668] sm:$0xff] }
 0xae8   : > { %11717 = vmatprep.mubr.bf16.mxu1 %v14704_v49  ;;  %v14791_v49 = vcombine.low %v9565_v56, %v9569_v27  ;;  %v14800_v0 = vcombine.high %v9573_v7, %v9577_v23  ;;  %v9418_v27 = vld [vmem:[%s24288_s3 + $0x170] sm:$0xff] }
 0xaef   : > { %11718 = vmatmul.mubr.bf16.gmra.mrb[168].mxu1 %v14703_v10  ;;  %v9585_v10 = vld [vmem:[%s24288_s3 + $0x6a8] sm:$0xff] }
 0xaf0   : > { %11725 = vmatprep.mubr.bf16.mxu1 %v14712_v3  ;;  %v14799_v3 = vcombine.low %v9573_v7, %v9577_v23  ;;  %v14808_v30 = vcombine.high %v9581_v38, %v9585_v10  ;;  %v9434_v23 = vld [vmem:[%s24288_s3 + $0x1f0] sm:$0xff] }
 0xaf7   : > { %11726 = vmatmul.mubr.bf16.gmra.mrb[172].mxu1 %v14711_v52  ;;  %v9593_v52 = vld [vmem:[%s24288_s3 + $0x6e8] sm:$0xff] }
 0xaf8   : > { %11733 = vmatprep.mubr.bf16.mxu1 %v14720_v12  ;;  %v14807_v12 = vcombine.low %v9581_v38, %v9585_v10  ;;  %v14816_v1 = vcombine.high %v9589_v28, %v9593_v52  ;;  %v9450_v10 = vld [vmem:[%s24288_s3 + $0x270] sm:$0xff] }
 0xaff   : > { %11734 = vmatmul.mubr.bf16.gmra.mrb[176].mxu1 %v14719_v35  ;;  %v9601_v35 = vld [vmem:[%s24288_s3 + $0x728] sm:$0xff] }
 0xb00   : > { %11741 = vmatprep.mubr.bf16.mxu1 %v14728_v8  ;;  %v14815_v8 = vcombine.low %v9589_v28, %v9593_v52  ;;  %v14824_v60 = vcombine.high %v9597_v14, %v9601_v35  ;;  %v9462_v52 = vld [vmem:[%s24288_s3 + $0x2d0] sm:$0xff] }
 0xb07   : > { %11742 = vmatmul.mubr.bf16.gmra.mrb[180].mxu1 %v14727_v45  ;;  %v9609_v45 = vld [vmem:[%s24288_s3 + $0x768] sm:$0xff] }
 0xb08   : > { %11749 = vmatprep.mubr.bf16.mxu1 %v14736_v58  ;;  %v14823_v58 = vcombine.low %v9597_v14, %v9601_v35  ;;  %v14832_v40 = vcombine.high %v9605_v25, %v9609_v45  ;;  %v9470_v14 = vld [vmem:[%s24288_s3 + $0x310] sm:$0xff] }
 0xb09   : > { %v9474_v35 = vld [vmem:[%s24288_s3 + $0x330] sm:$0xff] }
 0xb0f   : > { %11750 = vmatmul.mubr.bf16.gmra.mrb[184].mxu1 %v14735_v46  ;;  %v9617_v46 = vld [vmem:[%s24288_s3 + $0x7a8] sm:$0xff] }
 0xb10   : > { %11757 = vmatprep.mubr.bf16.mxu1 %v14744_v50  ;;  %v14831_v50 = vcombine.low %v9605_v25, %v9609_v45  ;;  %v14840_v13 = vcombine.high %v9613_v37, %v9617_v46  ;;  %v9478_v25 = vld [vmem:[%s24288_s3 + $0x350] sm:$0xff] }
 0xb11   : > { %v9482_v45 = vld [vmem:[%s24288_s3 + $0x370] sm:$0xff] }
 0xb17   : > { %11758 = vmatmul.mubr.bf16.gmra.mrb[188].mxu1 %v14743_v42  ;;  %v9625_v42 = vld [vmem:[%s24288_s3 + $0x7e8] sm:$0xff] }
 0xb18   : > { %11765 = vmatprep.mubr.bf16.mxu1 %v14752_v59  ;;  %v14839_v59 = vcombine.low %v9613_v37, %v9617_v46  ;;  %v14848_v16 = vcombine.high %v9621_v34, %v9625_v42  ;;  %v9486_v37 = vld [vmem:[%s24288_s3 + $0x390] sm:$0xff] }
 0xb19   : > { %v9490_v46 = vld [vmem:[%s24288_s3 + $0x3b0] sm:$0xff] }
 0xb1f   : > { %11766 = vmatmul.mubr.bf16.gmra.mrb[192].mxu1 %v14751_v26  ;;  %v9378_v26 = vld [vmem:[%s24288_s3 + $0x30] sm:$0xff] }
 0xb20   : > { %11773 = vmatprep.mubr.bf16.mxu1 %v14760_v31  ;;  %v14847_v31 = vcombine.low %v9621_v34, %v9625_v42  ;;  %v14602_v17 = vcombine.high %v9374_v51, %v9378_v26  ;;  %v9494_v34 = vld [vmem:[%s24288_s3 + $0x3d0] sm:$0xff] }
 0xb21   : > { %v9498_v42 = vld [vmem:[%s24288_s3 + $0x3f0] sm:$0xff] }
 0xb27   : > { %11774 = vmatmul.mubr.bf16.gmra.mrb[196].mxu1 %v14759_v11  ;;  %v9386_v11 = vld [vmem:[%s24288_s3 + $0x70] sm:$0xff] }
 0xb28   : > { %11781 = vmatprep.mubr.bf16.mxu1 %v14768_v54  ;;  %v14601_v54 = vcombine.low %v9374_v51, %v9378_v26  ;;  %v14610_v22 = vcombine.high %v9382_v44, %v9386_v11  ;;  %v9502_v51 = vld [vmem:[%s24288_s3 + $0x410] sm:$0xff] }
 0xb29   : > { %v9506_v26 = vld [vmem:[%s24288_s3 + $0x430] sm:$0xff] }
 0xb2f   : > { %11782 = vmatmul.mubr.bf16.gmra.mrb[200].mxu1 %v14767_v62  ;;  %v9394_v62 = vld [vmem:[%s24288_s3 + $0xb0] sm:$0xff] }
 0xb30   : > { %11789 = vmatprep.mubr.bf16.mxu1 %v14776_v63  ;;  %v14609_v63 = vcombine.low %v9382_v44, %v9386_v11  ;;  %v14618_v57 = vcombine.high %v9390_v9, %v9394_v62  ;;  %v9510_v44 = vld [vmem:[%s24288_s3 + $0x450] sm:$0xff] }
 0xb31   : > { %v9514_v11 = vld [vmem:[%s24288_s3 + $0x470] sm:$0xff] }
 0xb37   : > { %11790 = vmatmul.mubr.bf16.gmra.mrb[204].mxu1 %v14775_v39  ;;  %v14617_v39 = vcombine.low %v9390_v9, %v9394_v62  ;;  %v9518_v9 = vld [vmem:[%s24288_s3 + $0x490] sm:$0xff] }
 0xb38   : > { %11797 = vmatprep.mubr.bf16.mxu1 %v14784_v4  ;;  %v9410_v4 = vld [vmem:[%s24288_s3 + $0x130] sm:$0xff] }
 0xb39   : > { %v9522_v62 = vld [vmem:[%s24288_s3 + $0x4b0] sm:$0xff] }
 0xb3f   : > { %11798 = vmatmul.mubr.bf16.gmra.mrb[208].mxu1 %v14783_v19 }
 0xb40   : > { %11805 = vmatprep.mubr.bf16.mxu1 %v14792_v20  ;;  %v9426_v20 = vld [vmem:[%s24288_s3 + $0x1b0] sm:$0xff] }
 0xb47   : > { %11806 = vmatmul.mubr.bf16.gmra.mrb[212].mxu1 %v14791_v49 }
 0xb48   : > { %11813 = vmatprep.mubr.bf16.mxu1 %v14800_v0  ;;  %v9442_v0 = vld [vmem:[%s24288_s3 + $0x230] sm:$0xff] }
 0xb4f   : > { %11814 = vmatmul.mubr.bf16.gmra.mrb[216].mxu1 %v14799_v3 }
 0xb50   : > { %11821 = vmatprep.mubr.bf16.mxu1 %v14808_v30 }
 0xb57   : > { %11822 = vmatmul.mubr.bf16.gmra.mrb[220].mxu1 %v14807_v12 }
 0xb58   : > { %11829 = vmatprep.mubr.bf16.mxu1 %v14816_v1 }
 0xb5f   : > { %11830 = vmatmul.mubr.bf16.gmra.mrb[224].mxu1 %v14815_v8 }
 0xb60   : > { %11837 = vmatprep.mubr.bf16.mxu1 %v14824_v60  ;;  %v14698_v60 = vcombine.high %v9470_v14, %v9474_v35 }
 0xb67   : > { %11838 = vmatmul.mubr.bf16.gmra.mrb[228].mxu1 %v14823_v58  ;;  %v14697_v58 = vcombine.low %v9470_v14, %v9474_v35  ;;  %v9598_v14 = vld [vmem:[%s24288_s3 + $0x710] sm:$0xff] }
 0xb68   : > { %11845 = vmatprep.mubr.bf16.mxu1 %v14832_v40  ;;  %v14706_v40 = vcombine.high %v9478_v25, %v9482_v45  ;;  %v9602_v35 = vld [vmem:[%s24288_s3 + $0x730] sm:$0xff] }
 0xb6f   : > { %11846 = vmatmul.mubr.bf16.gmra.mrb[232].mxu1 %v14831_v50  ;;  %v14705_v50 = vcombine.low %v9478_v25, %v9482_v45  ;;  %v9606_v25 = vld [vmem:[%s24288_s3 + $0x750] sm:$0xff] }
 0xb70   : > { %11853 = vmatprep.mubr.bf16.mxu1 %v14840_v13  ;;  %v14714_v13 = vcombine.high %v9486_v37, %v9490_v46  ;;  %v9610_v45 = vld [vmem:[%s24288_s3 + $0x770] sm:$0xff] }
 0xb77   : > { %11854 = vmatmul.mubr.bf16.gmra.mrb[236].mxu1 %v14839_v59  ;;  %v14713_v59 = vcombine.low %v9486_v37, %v9490_v46  ;;  %v9614_v37 = vld [vmem:[%s24288_s3 + $0x790] sm:$0xff] }
 0xb78   : > { %11861 = vmatprep.mubr.bf16.mxu1 %v14848_v16  ;;  %v14722_v16 = vcombine.high %v9494_v34, %v9498_v42  ;;  %v9618_v46 = vld [vmem:[%s24288_s3 + $0x7b0] sm:$0xff] }
 0xb7f   : > { %11862 = vmatmul.mubr.bf16.gmra.mrb[240].mxu1 %v14847_v31  ;;  %v14721_v31 = vcombine.low %v9494_v34, %v9498_v42  ;;  %v9622_v34 = vld [vmem:[%s24288_s3 + $0x7d0] sm:$0xff] }
 0xb80   : > { %11902 = vmatprep.mubr.bf16.mxu1 %v14602_v17  ;;  %v14730_v17 = vcombine.high %v9502_v51, %v9506_v26  ;;  %v9626_v42 = vld [vmem:[%s24288_s3 + $0x7f0] sm:$0xff] }
 0xb87   : > { %11903 = vmatmul.mubr.bf16.vlgmr.msra.gmra.mrb[116].mxu1 %v14601_v54  ;;  %v14729_v54 = vcombine.low %v9502_v51, %v9506_v26  ;;  %v9375_v51 = vld [vmem:[%s24288_s3 + $0x18] sm:$0xff] }
 0xb88   : > { %12160 = vmatpush1.bf16.msra.mxu1 %v22667_v21  ;;  %11910 = vmatprep.mubr.bf16.mxu1 %v14610_v22  ;;  %v9398_v21 = vld [vmem:[%s24288_s3 + $0xd0] sm:$0xff]  ;;  %v14738_v22 = vcombine.high %v9510_v44, %v9514_v11  ;;  %v9379_v26 = vld [vmem:[%s24288_s3 + $0x38] sm:$0xff] }
 0xb89   : > { %12161 = vmatprep.subr.bf16.mxu1 %v24785_v15  ;;  %v14625_v56 = vcombine.low %v9398_v21, %v9402_v29 }
 0xb8c   : > { %12162 = vmatpush1.bf16.msra.mxu1 %v22675_v61  ;;  %v14626_v61 = vcombine.high %v9398_v21, %v9402_v29  ;;  %v9526_v21 = vld [vmem:[%s24288_s3 + $0x4d0] sm:$0xff] }
 0xb8d   : > { %12163 = vmatprep.subr.bf16.mxu1 %v24785_v15  ;;  %v9530_v29 = vld [vmem:[%s24288_s3 + $0x4f0] sm:$0xff] }
 0xb8f   : > { %11911 = vmatmul.mubr.bf16.gmra.mrb[120].mxu1 %v14609_v63  ;;  %v14737_v63 = vcombine.low %v9510_v44, %v9514_v11  ;;  %v9383_v44 = vld [vmem:[%s24288_s3 + $0x58] sm:$0xff] }
 0xb90   : > { %12164 = vmatpush1.bf16.msra.mxu1 %v22683_v47  ;;  %11918 = vmatprep.mubr.bf16.mxu1 %v14618_v57  ;;  %v9406_v47 = vld [vmem:[%s24288_s3 + $0x110] sm:$0xff]  ;;  %v14746_v57 = vcombine.high %v9518_v9, %v9522_v62  ;;  %v9387_v11 = vld [vmem:[%s24288_s3 + $0x78] sm:$0xff] }
 0xb91   : > { %12165 = vmatprep.subr.bf16.mxu1 %v24785_v15  ;;  %v14633_v19 = vcombine.low %v9406_v47, %v9410_v4 }
 0xb94   : > { %12166 = vmatpush1.bf16.msra.mxu1 %v22691_v6  ;;  %v14634_v6 = vcombine.high %v9406_v47, %v9410_v4  ;;  %v9534_v47 = vld [vmem:[%s24288_s3 + $0x510] sm:$0xff] }
 0xb95   : > { %12167 = vmatprep.subr.bf16.mxu1 %v24785_v15  ;;  %v9538_v4 = vld [vmem:[%s24288_s3 + $0x530] sm:$0xff] }
 0xb97   : > { %11919 = vmatmul.mubr.bf16.gmra.mrb[124].mxu1 %v14617_v39  ;;  %v14745_v39 = vcombine.low %v9518_v9, %v9522_v62  ;;  %v9391_v9 = vld [vmem:[%s24288_s3 + $0x98] sm:$0xff] }
 0xb98   : > { %12168 = vmatpush1.bf16.msra.mxu1 %v22699_v55  ;;  %11926 = vmatprep.mubr.bf16.mxu1 %v14626_v61  ;;  %v9414_v55 = vld [vmem:[%s24288_s3 + $0x150] sm:$0xff]  ;;  %v14754_v61 = vcombine.high %v9526_v21, %v9530_v29  ;;  %v9395_v62 = vld [vmem:[%s24288_s3 + $0xb8] sm:$0xff] }
 0xb99   : > { %12169 = vmatprep.subr.bf16.mxu1 %v24785_v15  ;;  %v14641_v7 = vcombine.low %v9414_v55, %v9418_v27 }
 0xb9c   : > { %12170 = vmatpush1.bf16.msra.mxu1 %v22707_v5  ;;  %v14642_v5 = vcombine.high %v9414_v55, %v9418_v27  ;;  %v9542_v55 = vld [vmem:[%s24288_s3 + $0x550] sm:$0xff] }
 0xb9d   : > { %12171 = vmatprep.subr.bf16.mxu1 %v24785_v15  ;;  %v9546_v27 = vld [vmem:[%s24288_s3 + $0x570] sm:$0xff] }
 0xb9f   : > { %11927 = vmatmul.mubr.bf16.gmra.mrb[128].mxu1 %v14625_v56  ;;  %v14753_v56 = vcombine.low %v9526_v21, %v9530_v29  ;;  %v9399_v21 = vld [vmem:[%s24288_s3 + $0xd8] sm:$0xff] }
 0xba0   : > { %12172 = vmatpush1.bf16.msra.mxu1 %v22715_v2  ;;  %11934 = vmatprep.mubr.bf16.mxu1 %v14634_v6  ;;  %v9422_v2 = vld [vmem:[%s24288_s3 + $0x190] sm:$0xff]  ;;  %v14762_v6 = vcombine.high %v9534_v47, %v9538_v4  ;;  %v9403_v29 = vld [vmem:[%s24288_s3 + $0xf8] sm:$0xff] }
 0xba1   : > { %12173 = vmatprep.subr.bf16.mxu1 %v24785_v15  ;;  %v14649_v49 = vcombine.low %v9422_v2, %v9426_v20 }
 0xba4   : > { %12174 = vmatpush1.bf16.msra.mxu1 %v22723_v43  ;;  %v14650_v43 = vcombine.high %v9422_v2, %v9426_v20  ;;  %v9550_v2 = vld [vmem:[%s24288_s3 + $0x590] sm:$0xff] }
 0xba5   : > { %12175 = vmatprep.subr.bf16.mxu1 %v24785_v15  ;;  %v9554_v20 = vld [vmem:[%s24288_s3 + $0x5b0] sm:$0xff] }
 0xba7   : > { %11935 = vmatmul.mubr.bf16.gmra.mrb[132].mxu1 %v14633_v19  ;;  %v14761_v19 = vcombine.low %v9534_v47, %v9538_v4  ;;  %v9407_v47 = vld [vmem:[%s24288_s3 + $0x118] sm:$0xff] }
 0xba8   : > { %12176 = vmatpush1.bf16.msra.mxu1 %v22731_v32  ;;  %11942 = vmatprep.mubr.bf16.mxu1 %v14642_v5  ;;  %v9430_v32 = vld [vmem:[%s24288_s3 + $0x1d0] sm:$0xff]  ;;  %v14770_v5 = vcombine.high %v9542_v55, %v9546_v27  ;;  %v9411_v4 = vld [vmem:[%s24288_s3 + $0x138] sm:$0xff] }
 0xba9   : > { %12177 = vmatprep.subr.bf16.mxu1 %v24785_v15  ;;  %v14657_v38 = vcombine.low %v9430_v32, %v9434_v23 }
 0xbac   : > { %12178 = vmatpush1.bf16.msra.mxu1 %v22753_v41  ;;  %v14658_v41 = vcombine.high %v9430_v32, %v9434_v23  ;;  %v9558_v32 = vld [vmem:[%s24288_s3 + $0x5d0] sm:$0xff] }
 0xbad   : > { %12179 = vmatprep.subr.bf16.mxu1 %v24785_v15  ;;  %v9562_v23 = vld [vmem:[%s24288_s3 + $0x5f0] sm:$0xff] }
 0xbaf   : > { %11943 = vmatmul.mubr.bf16.gmra.mrb[136].mxu1 %v14641_v7  ;;  %v14769_v7 = vcombine.low %v9542_v55, %v9546_v27  ;;  %v9415_v55 = vld [vmem:[%s24288_s3 + $0x158] sm:$0xff] }
 0xbb0   : > { %12180 = vmatpush1.bf16.msra.mxu1 %v22761_v18  ;;  %11950 = vmatprep.mubr.bf16.mxu1 %v14650_v43  ;;  %v9438_v18 = vld [vmem:[%s24288_s3 + $0x210] sm:$0xff]  ;;  %v14778_v43 = vcombine.high %v9550_v2, %v9554_v20  ;;  %v9419_v27 = vld [vmem:[%s24288_s3 + $0x178] sm:$0xff] }
 0xbb1   : > { %12181 = vmatprep.subr.bf16.mxu1 %v24785_v15  ;;  %v14665_v3 = vcombine.low %v9438_v18, %v9442_v0 }
 0xbb4   : > { %12182 = vmatpush1.bf16.msra.mxu1 %v22769_v24  ;;  %v14666_v24 = vcombine.high %v9438_v18, %v9442_v0  ;;  %v9566_v18 = vld [vmem:[%s24288_s3 + $0x610] sm:$0xff] }
 0xbb5   : > { %12183 = vmatprep.subr.bf16.mxu1 %v24785_v15  ;;  %v9570_v0 = vld [vmem:[%s24288_s3 + $0x630] sm:$0xff] }
 0xbb7   : > { %11951 = vmatmul.mubr.bf16.gmra.mrb[140].mxu1 %v14649_v49  ;;  %v14777_v49 = vcombine.low %v9550_v2, %v9554_v20  ;;  %v9423_v2 = vld [vmem:[%s24288_s3 + $0x198] sm:$0xff] }
 0xbb8   : > { %12184 = vmatpush1.bf16.msra.mxu1 %v22777_v48  ;;  %11958 = vmatprep.mubr.bf16.mxu1 %v14658_v41  ;;  %v9446_v48 = vld [vmem:[%s24288_s3 + $0x250] sm:$0xff]  ;;  %v14786_v41 = vcombine.high %v9558_v32, %v9562_v23  ;;  %v9427_v20 = vld [vmem:[%s24288_s3 + $0x1b8] sm:$0xff] }
 0xbb9   : > { %12185 = vmatprep.subr.bf16.mxu1 %v24785_v15  ;;  %v14673_v30 = vcombine.low %v9446_v48, %v9450_v10 }
 0xbbc   : > { %12186 = vmatpush1.bf16.msra.mxu1 %v22785_v36  ;;  %v14674_v36 = vcombine.high %v9446_v48, %v9450_v10  ;;  %v9574_v48 = vld [vmem:[%s24288_s3 + $0x650] sm:$0xff] }
 0xbbd   : > { %12187 = vmatprep.subr.bf16.mxu1 %v24785_v15  ;;  %v9578_v10 = vld [vmem:[%s24288_s3 + $0x670] sm:$0xff] }
 0xbbf   : > { %11959 = vmatmul.mubr.bf16.gmra.mrb[144].mxu1 %v14657_v38  ;;  %v14785_v38 = vcombine.low %v9558_v32, %v9562_v23  ;;  %v9431_v32 = vld [vmem:[%s24288_s3 + $0x1d8] sm:$0xff] }
 0xbc0   : > { %12188 = vmatpush1.bf16.msra.mxu1 %v22793_v53  ;;  %11966 = vmatprep.mubr.bf16.mxu1 %v14666_v24  ;;  %v9454_v53 = vld [vmem:[%s24288_s3 + $0x290] sm:$0xff]  ;;  %v14794_v24 = vcombine.high %v9566_v18, %v9570_v0  ;;  %v9435_v23 = vld [vmem:[%s24288_s3 + $0x1f8] sm:$0xff] }
 0xbc1   : > { %12189 = vmatprep.subr.bf16.mxu1 %v24785_v15  ;;  %v9458_v15 = vld [vmem:[%s24288_s3 + $0x2b0] sm:$0xff] }
 0xbc2   : > { %v14682_v28 = vcombine.high %v9454_v53, %v9458_v15  ;;  %v14681_v12 = vcombine.low %v9454_v53, %v9458_v15  ;;  %v9582_v53 = vld [vmem:[%s24288_s3 + $0x690] sm:$0xff] }
 0xbc3   : > { %v9586_v15 = vld [vmem:[%s24288_s3 + $0x6b0] sm:$0xff] }
 0xbc4   : > { %12190 = vmatpush1.bf16.msra.mxu1 %v22801_v33  ;;  %v9466_v33 = vld [vmem:[%s24288_s3 + $0x2f0] sm:$0xff] }
 0xbc5   : > { %v14690_v1 = vcombine.high %v9462_v52, %v9466_v33  ;;  %v14689_v8 = vcombine.low %v9462_v52, %v9466_v33  ;;  %v9590_v52 = vld [vmem:[%s24288_s3 + $0x6d0] sm:$0xff] }
 0xbc6   : > { %v9594_v33 = vld [vmem:[%s24288_s3 + $0x6f0] sm:$0xff] }
 0xbc7   : > { %11967 = vmatmul.mubr.bf16.gmra.mrb[148].mxu1 %v14665_v3  ;;  %v14793_v3 = vcombine.low %v9566_v18, %v9570_v0  ;;  %v9439_v18 = vld [vmem:[%s24288_s3 + $0x218] sm:$0xff] }
 0xbc8   : > { %11974 = vmatprep.mubr.bf16.mxu1 %v14674_v36  ;;  %v14802_v36 = vcombine.high %v9574_v48, %v9578_v10  ;;  %v9443_v0 = vld [vmem:[%s24288_s3 + $0x238] sm:$0xff] }
 0xbcf   : > { %11975 = vmatmul.mubr.bf16.gmra.mrb[152].mxu1 %v14673_v30  ;;  %v14801_v30 = vcombine.low %v9574_v48, %v9578_v10  ;;  %v9447_v48 = vld [vmem:[%s24288_s3 + $0x258] sm:$0xff] }
 0xbd0   : > { %11982 = vmatprep.mubr.bf16.mxu1 %v14682_v28  ;;  %v14810_v28 = vcombine.high %v9582_v53, %v9586_v15  ;;  %v9451_v10 = vld [vmem:[%s24288_s3 + $0x278] sm:$0xff] }
 0xbd7   : > { %11983 = vmatmul.mubr.bf16.gmra.mrb[156].mxu1 %v14681_v12  ;;  %v14809_v12 = vcombine.low %v9582_v53, %v9586_v15  ;;  %v9455_v53 = vld [vmem:[%s24288_s3 + $0x298] sm:$0xff] }
 0xbd8   : > { %11990 = vmatprep.mubr.bf16.mxu1 %v14690_v1  ;;  %v14818_v1 = vcombine.high %v9590_v52, %v9594_v33  ;;  %v9459_v15 = vld [vmem:[%s24288_s3 + $0x2b8] sm:$0xff] }
 0xbdf   : > { %11991 = vmatmul.mubr.bf16.gmra.mrb[160].mxu1 %v14689_v8  ;;  %v14817_v8 = vcombine.low %v9590_v52, %v9594_v33  ;;  %v9463_v52 = vld [vmem:[%s24288_s3 + $0x2d8] sm:$0xff] }
 0xbe0   : > { %11998 = vmatprep.mubr.bf16.mxu1 %v14698_v60  ;;  %v14826_v60 = vcombine.high %v9598_v14, %v9602_v35  ;;  %v9467_v33 = vld [vmem:[%s24288_s3 + $0x2f8] sm:$0xff] }
 0xbe7   : > { %11999 = vmatmul.mubr.bf16.gmra.mrb[164].mxu1 %v14697_v58  ;;  %v14825_v58 = vcombine.low %v9598_v14, %v9602_v35  ;;  %v9471_v14 = vld [vmem:[%s24288_s3 + $0x318] sm:$0xff] }
 0xbe8   : > { %12006 = vmatprep.mubr.bf16.mxu1 %v14706_v40  ;;  %v14834_v40 = vcombine.high %v9606_v25, %v9610_v45  ;;  %v9475_v35 = vld [vmem:[%s24288_s3 + $0x338] sm:$0xff] }
 0xbef   : > { %12007 = vmatmul.mubr.bf16.gmra.mrb[168].mxu1 %v14705_v50  ;;  %v14833_v50 = vcombine.low %v9606_v25, %v9610_v45  ;;  %v9479_v25 = vld [vmem:[%s24288_s3 + $0x358] sm:$0xff] }
 0xbf0   : > { %12014 = vmatprep.mubr.bf16.mxu1 %v14714_v13  ;;  %v14842_v13 = vcombine.high %v9614_v37, %v9618_v46  ;;  %v9483_v45 = vld [vmem:[%s24288_s3 + $0x378] sm:$0xff] }
 0xbf7   : > { %12015 = vmatmul.mubr.bf16.gmra.mrb[172].mxu1 %v14713_v59  ;;  %v14841_v59 = vcombine.low %v9614_v37, %v9618_v46  ;;  %v9487_v37 = vld [vmem:[%s24288_s3 + $0x398] sm:$0xff] }
 0xbf8   : > { %12022 = vmatprep.mubr.bf16.mxu1 %v14722_v16  ;;  %v14850_v16 = vcombine.high %v9622_v34, %v9626_v42  ;;  %v9491_v46 = vld [vmem:[%s24288_s3 + $0x3b8] sm:$0xff] }
 0xbff   : > { %12023 = vmatmul.mubr.bf16.gmra.mrb[176].mxu1 %v14721_v31  ;;  %v14849_v31 = vcombine.low %v9622_v34, %v9626_v42  ;;  %v9495_v34 = vld [vmem:[%s24288_s3 + $0x3d8] sm:$0xff] }
 0xc00   : > { %12030 = vmatprep.mubr.bf16.mxu1 %v14730_v17  ;;  %v14604_v17 = vcombine.high %v9375_v51, %v9379_v26  ;;  %v9499_v42 = vld [vmem:[%s24288_s3 + $0x3f8] sm:$0xff] }
 0xc07   : > { %12031 = vmatmul.mubr.bf16.gmra.mrb[180].mxu1 %v14729_v54  ;;  %v14603_v54 = vcombine.low %v9375_v51, %v9379_v26  ;;  %v9503_v51 = vld [vmem:[%s24288_s3 + $0x418] sm:$0xff] }
 0xc08   : > { %12038 = vmatprep.mubr.bf16.mxu1 %v14738_v22  ;;  %v14612_v22 = vcombine.high %v9383_v44, %v9387_v11  ;;  %v9507_v26 = vld [vmem:[%s24288_s3 + $0x438] sm:$0xff] }
 0xc0f   : > { %12039 = vmatmul.mubr.bf16.gmra.mrb[184].mxu1 %v14737_v63  ;;  %v14611_v63 = vcombine.low %v9383_v44, %v9387_v11  ;;  %v9511_v44 = vld [vmem:[%s24288_s3 + $0x458] sm:$0xff] }
 0xc10   : > { %12046 = vmatprep.mubr.bf16.mxu1 %v14746_v57  ;;  %v14620_v57 = vcombine.high %v9391_v9, %v9395_v62  ;;  %v9515_v11 = vld [vmem:[%s24288_s3 + $0x478] sm:$0xff] }
 0xc17   : > { %12047 = vmatmul.mubr.bf16.gmra.mrb[188].mxu1 %v14745_v39  ;;  %v14619_v39 = vcombine.low %v9391_v9, %v9395_v62  ;;  %v9519_v9 = vld [vmem:[%s24288_s3 + $0x498] sm:$0xff] }
 0xc18   : > { %12054 = vmatprep.mubr.bf16.mxu1 %v14754_v61  ;;  %v14628_v61 = vcombine.high %v9399_v21, %v9403_v29  ;;  %v9523_v62 = vld [vmem:[%s24288_s3 + $0x4b8] sm:$0xff] }
 0xc1f   : > { %12055 = vmatmul.mubr.bf16.gmra.mrb[192].mxu1 %v14753_v56  ;;  %v14627_v56 = vcombine.low %v9399_v21, %v9403_v29  ;;  %v9527_v21 = vld [vmem:[%s24288_s3 + $0x4d8] sm:$0xff] }
 0xc20   : > { %12062 = vmatprep.mubr.bf16.mxu1 %v14762_v6  ;;  %v14636_v6 = vcombine.high %v9407_v47, %v9411_v4  ;;  %v9531_v29 = vld [vmem:[%s24288_s3 + $0x4f8] sm:$0xff] }
 0xc27   : > { %12063 = vmatmul.mubr.bf16.gmra.mrb[196].mxu1 %v14761_v19  ;;  %v14635_v19 = vcombine.low %v9407_v47, %v9411_v4  ;;  %v9535_v47 = vld [vmem:[%s24288_s3 + $0x518] sm:$0xff] }
 0xc28   : > { %12070 = vmatprep.mubr.bf16.mxu1 %v14770_v5  ;;  %v14644_v5 = vcombine.high %v9415_v55, %v9419_v27  ;;  %v9539_v4 = vld [vmem:[%s24288_s3 + $0x538] sm:$0xff] }
 0xc2f   : > { %12071 = vmatmul.mubr.bf16.gmra.mrb[200].mxu1 %v14769_v7  ;;  %v14643_v7 = vcombine.low %v9415_v55, %v9419_v27  ;;  %v9543_v55 = vld [vmem:[%s24288_s3 + $0x558] sm:$0xff] }
 0xc30   : > { %12078 = vmatprep.mubr.bf16.mxu1 %v14778_v43  ;;  %v14652_v43 = vcombine.high %v9423_v2, %v9427_v20  ;;  %v9547_v27 = vld [vmem:[%s24288_s3 + $0x578] sm:$0xff] }
 0xc37   : > { %12079 = vmatmul.mubr.bf16.gmra.mrb[204].mxu1 %v14777_v49  ;;  %v14651_v49 = vcombine.low %v9423_v2, %v9427_v20  ;;  %v9551_v2 = vld [vmem:[%s24288_s3 + $0x598] sm:$0xff] }
 0xc38   : > { %12086 = vmatprep.mubr.bf16.mxu1 %v14786_v41  ;;  %v14660_v41 = vcombine.high %v9431_v32, %v9435_v23  ;;  %v9555_v20 = vld [vmem:[%s24288_s3 + $0x5b8] sm:$0xff] }
 0xc3f   : > { %12087 = vmatmul.mubr.bf16.gmra.mrb[208].mxu1 %v14785_v38  ;;  %v14659_v38 = vcombine.low %v9431_v32, %v9435_v23  ;;  %v9559_v32 = vld [vmem:[%s24288_s3 + $0x5d8] sm:$0xff] }
 0xc40   : > { %12094 = vmatprep.mubr.bf16.mxu1 %v14794_v24  ;;  %v14668_v24 = vcombine.high %v9439_v18, %v9443_v0  ;;  %v9563_v23 = vld [vmem:[%s24288_s3 + $0x5f8] sm:$0xff] }
 0xc47   : > { %12095 = vmatmul.mubr.bf16.gmra.mrb[212].mxu1 %v14793_v3  ;;  %v14667_v3 = vcombine.low %v9439_v18, %v9443_v0  ;;  %v9567_v18 = vld [vmem:[%s24288_s3 + $0x618] sm:$0xff] }
 0xc48   : > { %12102 = vmatprep.mubr.bf16.mxu1 %v14802_v36  ;;  %v14676_v36 = vcombine.high %v9447_v48, %v9451_v10  ;;  %v9571_v0 = vld [vmem:[%s24288_s3 + $0x638] sm:$0xff] }
 0xc4f   : > { %12103 = vmatmul.mubr.bf16.gmra.mrb[216].mxu1 %v14801_v30  ;;  %v14675_v30 = vcombine.low %v9447_v48, %v9451_v10  ;;  %v9575_v48 = vld [vmem:[%s24288_s3 + $0x658] sm:$0xff] }
 0xc50   : > { %12110 = vmatprep.mubr.bf16.mxu1 %v14810_v28  ;;  %v14684_v28 = vcombine.high %v9455_v53, %v9459_v15  ;;  %v9579_v10 = vld [vmem:[%s24288_s3 + $0x678] sm:$0xff] }
 0xc57   : > { %12111 = vmatmul.mubr.bf16.gmra.mrb[220].mxu1 %v14809_v12  ;;  %v14683_v12 = vcombine.low %v9455_v53, %v9459_v15  ;;  %v9583_v53 = vld [vmem:[%s24288_s3 + $0x698] sm:$0xff] }
 0xc58   : > { %12118 = vmatprep.mubr.bf16.mxu1 %v14818_v1  ;;  %v14692_v1 = vcombine.high %v9463_v52, %v9467_v33  ;;  %v9587_v15 = vld [vmem:[%s24288_s3 + $0x6b8] sm:$0xff] }
 0xc5f   : > { %12119 = vmatmul.mubr.bf16.gmra.mrb[224].mxu1 %v14817_v8  ;;  %v14691_v8 = vcombine.low %v9463_v52, %v9467_v33  ;;  %v23673_v52 = vpop.permute.xlu0 %9794  ;;  %v9591_v33 = vld [vmem:[%s24288_s3 + $0x6d8] sm:$0xff] }
 0xc60   : > { %12126 = vmatprep.mubr.bf16.mxu1 %v14826_v60  ;;  %v14700_v60 = vcombine.high %v9471_v14, %v9475_v35 }
 0xc67   : > { %12127 = vmatmul.mubr.bf16.gmra.mrb[228].mxu1 %v14825_v58  ;;  %v14699_v58 = vcombine.low %v9471_v14, %v9475_v35  ;;  %v14811_v14 = vcombine.low %v9583_v53, %v9587_v15 }
 0xc68   : > { %12134 = vmatprep.mubr.bf16.mxu1 %v14834_v40  ;;  %v14708_v40 = vcombine.high %v9479_v25, %v9483_v45 }
 0xc6f   : > { %12135 = vmatmul.mubr.bf16.gmra.mrb[232].mxu1 %v14833_v50  ;;  %v14707_v50 = vcombine.low %v9479_v25, %v9483_v45  ;;  %v9599_v25 = vld [vmem:[%s24288_s3 + $0x718] sm:$0xff] }
 0xc70   : > { %12142 = vmatprep.mubr.bf16.mxu1 %v14842_v13  ;;  %v14716_v13 = vcombine.high %v9487_v37, %v9491_v46  ;;  %v9603_v45 = vld [vmem:[%s24288_s3 + $0x738] sm:$0xff] }
 0xc77   : > { %12143 = vmatmul.mubr.bf16.gmra.mrb[236].mxu1 %v14841_v59  ;;  %v14715_v59 = vcombine.low %v9487_v37, %v9491_v46 }
 0xc78   : > { %12150 = vmatprep.mubr.bf16.mxu1 %v14850_v16  ;;  %v14724_v16 = vcombine.high %v9495_v34, %v9499_v42 }
 0xc7f   : > { %12151 = vmatmul.mubr.bf16.gmra.mrb[240].mxu1 %v14849_v31  ;;  %v14723_v31 = vcombine.low %v9495_v34, %v9499_v42  ;;  %v14828_v42 = vcombine.high %v9599_v25, %v9603_v45 }
 0xc80   : > { %12191 = vmatprep.mubr.bf16.mxu1 %v14604_v17  ;;  %v14732_v17 = vcombine.high %v9503_v51, %v9507_v26 }
 0xc87   : > { %12192 = vmatmul.mubr.bf16.vlgmr.msra.gmra.mrb[116].mxu1 %v14603_v54  ;;  %v14731_v54 = vcombine.low %v9503_v51, %v9507_v26 }
 0xc88   : > { %12199 = vmatprep.mubr.bf16.mxu1 %v14612_v22  ;;  %v14740_v22 = vcombine.high %v9511_v44, %v9515_v11 }
 0xc8f   : > { %12200 = vmatmul.mubr.bf16.gmra.mrb[120].mxu1 %v14611_v63  ;;  %v14739_v63 = vcombine.low %v9511_v44, %v9515_v11  ;;  %v9607_v11 = vld [vmem:[%s24288_s3 + $0x758] sm:$0xff] }
 0xc90   : > { %12207 = vmatprep.mubr.bf16.mxu1 %v14620_v57  ;;  %v14748_v57 = vcombine.high %v9519_v9, %v9523_v62 }
 0xc97   : > { %12208 = vmatmul.mubr.bf16.gmra.mrb[124].mxu1 %v14619_v39  ;;  %v14747_v39 = vcombine.low %v9519_v9, %v9523_v62  ;;  %v24836_v62 = vld [vmem:[#allocation33_spill] sm:$0xff] }
 0xc98   : > { %12215 = vmatprep.mubr.bf16.mxu1 %v14628_v61  ;;  %v14756_v61 = vcombine.high %v9527_v21, %v9531_v29 }
 0xc9f   : > { %12216 = vmatmul.mubr.bf16.gmra.mrb[128].mxu1 %v14627_v56  ;;  %v14755_v56 = vcombine.low %v9527_v21, %v9531_v29  ;;  %v14827_v21 = vcombine.low %v9599_v25, %v9603_v45 }
 0xca0   : > { %12223 = vmatprep.mubr.bf16.mxu1 %v14636_v6  ;;  %v14764_v6 = vcombine.high %v9535_v47, %v9539_v4 }
 0xca7   : > { %12224 = vmatmul.mubr.bf16.gmra.mrb[132].mxu1 %v14635_v19  ;;  %v14763_v19 = vcombine.low %v9535_v47, %v9539_v4  ;;  %v24837_v47 = vld [vmem:[#allocation34_spill] sm:$0xff] }
 0xca8   : > { %12231 = vmatprep.mubr.bf16.mxu1 %v14644_v5  ;;  %v14772_v5 = vcombine.high %v9543_v55, %v9547_v27 }
 0xcaf   : > { %12232 = vmatmul.mubr.bf16.gmra.mrb[136].mxu1 %v14643_v7  ;;  %v14771_v7 = vcombine.low %v9543_v55, %v9547_v27 }
 0xcb0   : > { %12239 = vmatprep.mubr.bf16.mxu1 %v14652_v43  ;;  %v14780_v43 = vcombine.high %v9551_v2, %v9555_v20 }
 0xcb7   : > { %12240 = vmatmul.mubr.bf16.gmra.mrb[140].mxu1 %v14651_v49  ;;  %v14779_v49 = vcombine.low %v9551_v2, %v9555_v20  ;;  %v9619_v2 = vld [vmem:[%s24288_s3 + $0x7b8] sm:$0xff] }
 0xcb8   : > { %12247 = vmatprep.mubr.bf16.mxu1 %v14660_v41  ;;  %v14788_v41 = vcombine.high %v9559_v32, %v9563_v23 }
 0xcbf   : > { %12248 = vmatmul.mubr.bf16.gmra.mrb[144].mxu1 %v14659_v38  ;;  %v14787_v38 = vcombine.low %v9559_v32, %v9563_v23 }
 0xcc0   : > { %12255 = vmatprep.mubr.bf16.mxu1 %v14668_v24  ;;  %v14796_v24 = vcombine.high %v9567_v18, %v9571_v0 }
 0xcc7   : > { %12256 = vmatmul.mubr.bf16.gmra.mrb[148].mxu1 %v14667_v3  ;;  %v14795_v3 = vcombine.low %v9567_v18, %v9571_v0 }
 0xcc8   : > { %12263 = vmatprep.mubr.bf16.mxu1 %v14676_v36  ;;  %v14804_v36 = vcombine.high %v9575_v48, %v9579_v10 }
 0xccf   : > { %12264 = vmatmul.mubr.bf16.gmra.mrb[152].mxu1 %v14675_v30  ;;  %v14803_v30 = vcombine.low %v9575_v48, %v9579_v10 }
 0xcd0   : > { %12271 = vmatprep.mubr.bf16.mxu1 %v14684_v28  ;;  %v14812_v28 = vcombine.high %v9583_v53, %v9587_v15  ;;  %v9627_v53 = vld [vmem:[%s24288_s3 + $0x7f8] sm:$0xff] }
 0xcd7   : > { %12272 = vmatmul.mubr.bf16.gmra.mrb[156].mxu1 %v14683_v12  ;;  %v9595_v12 = vld [vmem:[%s24288_s3 + $0x6f8] sm:$0xff] }
 0xcd8   : > { %12279 = vmatprep.mubr.bf16.mxu1 %v14692_v1  ;;  %v23681_v1 = vpop.permute.xlu1 %9799  ;;  %v14820_v35 = vcombine.high %v9591_v33, %v9595_v12 }
 0xcdf   : > { %12280 = vmatmul.mubr.bf16.gmra.mrb[160].mxu1 %v14691_v8  ;;  %v9715_v8 = vpop.permute.xlu0 %9714 }
 0xce0   : > { %12287 = vmatprep.mubr.bf16.mxu1 %v14700_v60  ;;  %v9720_v60 = vpop.permute.xlu1 %9719 }
 0xce4   : > { %v23693_v26 = vpop.permute.xlu1 %9809 }
 0xce7   : > { %12288 = vmatmul.mubr.bf16.gmra.mrb[164].mxu1 %v14699_v58 }
 0xce8   : > { %12295 = vmatprep.mubr.bf16.mxu1 %v14708_v40  ;;  %v24834_v40 = vld [vmem:[#allocation30_spill] sm:$0xff]  ;;  %v9730_v29 = vpop.permute.xlu1 %9729 }
 0xcec   : > { %v23715_v20 = vpop.permute.xlu1 %9819 }
 0xcef   : > { %12296 = vmatmul.mubr.bf16.gmra.mrb[168].mxu1 %v14707_v50  ;;  %v14819_v50 = vcombine.low %v9591_v33, %v9595_v12 }
 0xcf0   : > { %12303 = vmatprep.mubr.bf16.mxu1 %v14716_v13  ;;  %v23690_v13 = vpop.permute.xlu0 %9804  ;;  %v9740_v10 = vpop.permute.xlu1 %9739 }
 0xcf4   : > { %v23727_v25 = vpop.permute.xlu1 %9829 }
 0xcf7   : > { %12304 = vmatmul.mubr.bf16.gmra.mrb[172].mxu1 %v14715_v59  ;;  %v24835_v59 = vld [vmem:[#allocation164_spill] sm:$0xff] }
 0xcf8   : > { %12311 = vmatprep.mubr.bf16.mxu1 %v14724_v16 }
 0xcff   : > { %12312 = vmatmul.mubr.bf16.gmra.mrb[176].mxu1 %v14723_v31 }
 0xd00   : > { %12319 = vmatprep.mubr.bf16.mxu1 %v14732_v17 }
 0xd07   : > { %12320 = vmatmul.mubr.bf16.gmra.mrb[180].mxu1 %v14731_v54  ;;  %v9611_v54 = vld [vmem:[%s24288_s3 + $0x778] sm:$0xff] }
 0xd08   : > { %12327 = vmatprep.mubr.bf16.mxu1 %v14740_v22  ;;  %v9725_v22 = vpop.permute.xlu0 %9724  ;;  %v14835_v23 = vcombine.low %v9607_v11, %v9611_v54 }
 0xd0c   : > { %v23705_v27 = vpop.permute.xlu0 %9814 }
 0xd0f   : > { %12328 = vmatmul.mubr.bf16.gmra.mrb[184].mxu1 %v14739_v63 }
 0xd10   : > { %12335 = vmatprep.mubr.bf16.mxu1 %v14748_v57 }
 0xd17   : > { %12336 = vmatmul.mubr.bf16.gmra.mrb[188].mxu1 %v14747_v39 }
 0xd18   : > { %12343 = vmatprep.mubr.bf16.mxu1 %v14756_v61  ;;  %v14836_v61 = vcombine.high %v9607_v11, %v9611_v54 }
 0xd1f   : > { %12344 = vmatmul.mubr.bf16.gmra.mrb[192].mxu1 %v14755_v56 }
 0xd20   : > { %12351 = vmatprep.mubr.bf16.mxu1 %v14764_v6 }
 0xd27   : > { %12352 = vmatmul.mubr.bf16.gmra.mrb[196].mxu1 %v14763_v19 }
 0xd28   : > { %12359 = vmatprep.mubr.bf16.mxu1 %v14772_v5  ;;  %v9615_v5 = vld [vmem:[%s24288_s3 + $0x798] sm:$0xff] }
 0xd29   : > { %v14843_v33 = vcombine.low %v9615_v5, %v9619_v2 }
 0xd2f   : > { %12360 = vmatmul.mubr.bf16.gmra.mrb[200].mxu1 %v14771_v7 }
 0xd30   : > { %12367 = vmatprep.mubr.bf16.mxu1 %v14780_v43 }
 0xd37   : > { %12368 = vmatmul.mubr.bf16.gmra.mrb[204].mxu1 %v14779_v49 }
 0xd38   : > { %12375 = vmatprep.mubr.bf16.mxu1 %v14788_v41  ;;  %v14844_v41 = vcombine.high %v9615_v5, %v9619_v2 }
 0xd3f   : > { %12376 = vmatmul.mubr.bf16.gmra.mrb[208].mxu1 %v14787_v38  ;;  %v9735_v38 = vpop.permute.xlu0 %9734 }
 0xd40   : > { %12383 = vmatprep.mubr.bf16.mxu1 %v14796_v24 }
 0xd43   : > { %v23725_v12 = vpop.permute.xlu0 %9824 }
 0xd47   : > { %12384 = vmatmul.mubr.bf16.gmra.mrb[212].mxu1 %v14795_v3 }
 0xd48   : > { %12391 = vmatprep.mubr.bf16.mxu1 %v14804_v36  ;;  %v9623_v36 = vld [vmem:[%s24288_s3 + $0x7d8] sm:$0xff] }
 0xd4f   : > { %12392 = vmatmul.mubr.bf16.gmra.mrb[216].mxu1 %v14803_v30 }
 0xd50   : > { %12399 = vmatprep.mubr.bf16.mxu1 %v14812_v28 }
 0xd57   : > { %12400 = vmatmul.mubr.bf16.gmra.mrb[220].mxu1 %v14811_v14 }
 0xd58   : > { %12407 = vmatprep.mubr.bf16.mxu1 %v14820_v35  ;;  %v14852_v35 = vcombine.high %v9623_v36, %v9627_v53 }
 0xd5a   : > { %v12193_v58 = vpop.f32.mrb[116].mxu1 }
 0xd5b   : > { %v15691_v37 = vadd.f32 %v12193_v58, %v24834_v40  ;;  %v12195_v46 = vpop.f32.mrb[117].mxu1 }
 0xd5c   : > { %v12196_v34 = vpop.f32.mrb[118].mxu1 }
 0xd5d   : > { %v15692_v16 = vadd.f32 %v12196_v34, %v24835_v59  ;;  %v12198_v51 = vpop.f32.mrb[119].mxu1  ;;  %v12448_v31 = vmax.f32 %v15691_v37, 0.0  ;;  %v9745_v37 = vpop.permute.xlu0 %9744 }
 0xd5e   : > { %v9750_v59 = vpop.permute.xlu1 %9749  ;;  %v18009_v51 = vld [vmem:[%s24290_s5 + $0x4] ss:$16 sps:$4 sm:$0xff]  }
 0xd5f   : > { %v12449_v17 = vmax.f32 %v15692_v16, 0.0  ;;  %12408 = vmatmul.mubr.bf16.gmra.mrb[224].mxu1 %v14819_v50 }
 0xd60   : > { %12415 = vmatprep.mubr.bf16.mxu1 %v14828_v42  ;;  %v14851_v42 = vcombine.low %v9623_v36, %v9627_v53 }
 0xd61   : > { %v23695_v44 = vpack.c.bf16 %v12449_v17, %v12448_v31 }
 0xd62   : > { %v12201_v9 = vpop.f32.mrb[120].mxu1 }
 0xd63   : > { %v15693_v63 = vadd.f32 %v12201_v9, %v24836_v62  ;;  %v12203_v57 = vpop.f32.mrb[121].mxu1  ;;  %v23738_v62 = vpop.permute.xlu1 %9839 }
 0xd64   : > { %v12204_v39 = vpop.f32.mrb[122].mxu1 }
 0xd65   : > { %v15694_v4 = vadd.f32 %v12204_v39, %v24837_v47  ;;  %v12206_v56 = vpop.f32.mrb[123].mxu1  ;;  %v12450_v6 = vmax.f32 %v15693_v63, 0.0 }
 0xd67   : > { %v12451_v55 = vmax.f32 %v15694_v4, 0.0  ;;  %12416 = vmatmul.mubr.bf16.gmra.mrb[228].mxu1 %v14827_v21 }
 0xd68   : > { %12423 = vmatprep.mubr.bf16.mxu1 %v14836_v61 }
 0xd69   : > { %v23707_v19 = vpack.c.bf16 %v12451_v55, %v12450_v6  ;;  %v9760_v6 = vpop.permute.xlu1 %9759 }
 0xd6a   : > { %v12209_v7 = vpop.f32.mrb[124].mxu1 }
 0xd6b   : > { %v15695_v43 = vadd.f32 %v12209_v7, %v9715_v8  ;;  %v12211_v32 = vpop.f32.mrb[125].mxu1 }
 0xd6c   : > { %v12212_v49 = vpop.f32.mrb[126].mxu1 }
 0xd6d   : > { %v15696_v18 = vadd.f32 %v12212_v49, %v9720_v60  ;;  %v12214_v0 = vpop.f32.mrb[127].mxu1  ;;  %v12452_v24 = vmax.f32 %v15695_v43, 0.0 }
 0xd6f   : > { %v12453_v48 = vmax.f32 %v15696_v18, 0.0  ;;  %12424 = vmatmul.mubr.bf16.gmra.mrb[232].mxu1 %v14835_v23 }
 0xd70   : > { %12431 = vmatprep.mubr.bf16.mxu1 %v14844_v41  ;;  %v23744_v41 = vpop.permute.xlu1 %9849 }
 0xd71   : > { %v23717_v3 = vpack.c.bf16 %v12453_v48, %v12452_v24 }
 0xd72   : > { %v12217_v15 = vpop.f32.mrb[128].mxu1 }
 0xd73   : > { %v15697_v30 = vadd.f32 %v12217_v15, %v9725_v22  ;;  %v12219_v28 = vpop.f32.mrb[129].mxu1  ;;  %v23734_v22 = vpop.permute.xlu0 %9834 }
 0xd74   : > { %v12220_v14 = vpop.f32.mrb[130].mxu1  ;;  %v9770_v53 = vpop.permute.xlu1 %9769 }
 0xd75   : > { %v15698_v8 = vadd.f32 %v12220_v14, %v9730_v29  ;;  %v12222_v60 = vpop.f32.mrb[131].mxu1  ;;  %v12454_v45 = vmax.f32 %v15697_v30, 0.0 }
 0xd76   : > { %v24838_v60 = vld [vmem:[#allocation159_spill] sm:$0xff] }
 0xd77   : > { %v12455_v58 = vmax.f32 %v15698_v8, 0.0  ;;  %12432 = vmatmul.mubr.bf16.gmra.mrb[236].mxu1 %v14843_v33  ;;  %v9755_v47 = vpop.permute.xlu0 %9754 }
 0xd78   : > { %12439 = vmatprep.mubr.bf16.mxu1 %v14852_v35 }
 0xd79   : > { %v23729_v40 = vpack.c.bf16 %v12455_v58, %v12454_v45 }
 0xd7a   : > { %v12225_v46 = vpop.f32.mrb[132].mxu1 }
 0xd7b   : > { %v15699_v50 = vadd.f32 %v12225_v46, %v9735_v38  ;;  %v12227_v34 = vpop.f32.mrb[133].mxu1  ;;  %v23742_v43 = vpop.permute.xlu0 %9844  ;;  %v24839_v46 = vld [vmem:[#allocation29_spill] sm:$0xff] }
 0xd7c   : > { %v12228_v16 = vpop.f32.mrb[134].mxu1 }
 0xd7d   : > { %v15700_v31 = vadd.f32 %v12228_v16, %v9740_v10  ;;  %v12230_v17 = vpop.f32.mrb[135].mxu1  ;;  %v12456_v11 = vmax.f32 %v15699_v50, 0.0 }
 0xd7f   : > { %v12457_v54 = vmax.f32 %v15700_v31, 0.0  ;;  %12440 = vmatmul.mubr.bf16.gmra.mrb[240].mxu1 %v14851_v42  ;;  %v9765_v24 = vpop.permute.xlu0 %9764  ;;  %v24840_v31 = vld [vmem:[#allocation31_spill] sm:$0xff] }
 0xd80   : > { %13152 = vmatprep.mubr.bf16.mxu1 %v18009_v51 }
 0xd81   : > { %v23736_v9 = vpack.c.bf16 %v12457_v54, %v12456_v11 }
 0xd82   : > { %v12233_v63 = vpop.f32.mrb[136].mxu1 }
 0xd83   : > { %v15701_v57 = vadd.f32 %v12233_v63, %v9745_v37  ;;  %v12235_v21 = vpop.f32.mrb[137].mxu1  ;;  %v24841_v63 = vld [vmem:[#allocation165_spill] sm:$0xff] }
 0xd84   : > { %v12236_v29 = vpop.f32.mrb[138].mxu1 }
 0xd85   : > { %v15702_v39 = vadd.f32 %v12236_v29, %v9750_v59  ;;  %v12238_v61 = vpop.f32.mrb[139].mxu1  ;;  %v12458_v4 = vmax.f32 %v15701_v57, 0.0 }
 0xd87   : > { %v12459_v56 = vmax.f32 %v15702_v39, 0.0 }
 0xd89   : > { %v23740_v55 = vpack.c.bf16 %v12459_v56, %v12458_v4 }
 0xd8a   : > { %v12241_v5 = vpop.f32.mrb[140].mxu1 }
 0xd8b   : > { %v15703_v2 = vadd.f32 %v12241_v5, %v9755_v47  ;;  %v12243_v7 = vpop.f32.mrb[141].mxu1 }
 0xd8c   : > { %v12244_v32 = vpop.f32.mrb[142].mxu1 }
 0xd8d   : > { %v15704_v23 = vadd.f32 %v12244_v32, %v9760_v6  ;;  %v12246_v49 = vpop.f32.mrb[143].mxu1  ;;  %v12460_v18 = vmax.f32 %v15703_v2, 0.0 }
 0xd8f   : > { %v12461_v0 = vmax.f32 %v15704_v23, 0.0 }
 0xd91   : > { %v23746_v38 = vpack.c.bf16 %v12461_v0, %v12460_v18 }
 0xd92   : > { %v12249_v48 = vpop.f32.mrb[144].mxu1 }
 0xd93   : > { %v15705_v10 = vadd.f32 %v12249_v48, %v9765_v24  ;;  %v12251_v36 = vpop.f32.mrb[145].mxu1 }
 0xd94   : > { %v12252_v15 = vpop.f32.mrb[146].mxu1  ;;  %v23763_v36 = vpop.permute.xlu1 %9939 }
 0xd95   : > { %v15706_v30 = vadd.f32 %v12252_v15, %v9770_v53  ;;  %v12254_v28 = vpop.f32.mrb[147].mxu1  ;;  %v12462_v33 = vmax.f32 %v15705_v10, 0.0 }
 0xd97   : > { %v12463_v14 = vmax.f32 %v15706_v30, 0.0 }
 0xd99   : > { %v23748_v35 = vpack.c.bf16 %v12463_v14, %v12462_v33 }
 0xd9a   : > { %v12257_v8 = vpop.f32.mrb[148].mxu1 }
 0xd9b   : > { %v15707_v45 = vadd.f32 %v12257_v8, %v24838_v60  ;;  %v12259_v58 = vpop.f32.mrb[149].mxu1  ;;  %v9860_v8 = vpop.permute.xlu1 %9859 }
 0xd9c   : > { %v12260_v37 = vpop.f32.mrb[150].mxu1 }
 0xd9d   : > { %v15708_v50 = vadd.f32 %v12260_v37, %v24839_v46  ;;  %v12262_v34 = vpop.f32.mrb[151].mxu1  ;;  %v12464_v42 = vmax.f32 %v15707_v45, 0.0 }
 0xd9f   : > { %v12465_v59 = vmax.f32 %v15708_v50, 0.0 }
 0xda1   : > { %v12520_v16 = vpack.c.bf16 %v12465_v59, %v12464_v42 }
 0xda2   : > { %v12265_v51 = vpop.f32.mrb[152].mxu1 }
 0xda3   : > { %v15709_v17 = vadd.f32 %v12265_v51, %v24840_v31  ;;  %v12267_v11 = vpop.f32.mrb[153].mxu1  ;;  %14998 = vmatprep.subr.bf16.mxu1 %v12520_v16 }
 0xda4   : > { %v12268_v54 = vpop.f32.mrb[154].mxu1  ;;  %14999 = vmatpush3.bf16.msra.mxu1 %v23695_v44 }
 0xda5   : > { %v15710_v57 = vadd.f32 %v12268_v54, %v24841_v63  ;;  %v12270_v21 = vpop.f32.mrb[155].mxu1  ;;  %v12466_v29 = vmax.f32 %v15709_v17, 0.0 }
 0xda7   : > { %v12467_v39 = vmax.f32 %v15710_v57, 0.0 }
 0xda9   : > { %v12521_v61 = vpack.c.bf16 %v12467_v39, %v12466_v29 }
 0xdaa   : > { %v12273_v47 = vpop.f32.mrb[156].mxu1 }
 0xdab   : > { %v15711_v4 = vadd.f32 %v12273_v47, %v23673_v52  ;;  %v12275_v56 = vpop.f32.mrb[157].mxu1  ;;  %15000 = vmatprep.subr.bf16.mxu1 %v12521_v61 }
 0xdac   : > { %v12276_v6 = vpop.f32.mrb[158].mxu1  ;;  %15001 = vmatpush3.bf16.msra.mxu1 %v23707_v19  ;;  %v23761_v19 = vpop.permute.xlu0 %9934 }
 0xdad   : > { %v15712_v5 = vadd.f32 %v12276_v6, %v23681_v1  ;;  %v12278_v2 = vpop.f32.mrb[159].mxu1  ;;  %v12468_v7 = vmax.f32 %v15711_v4, 0.0 }
 0xdaf   : > { %v12469_v32 = vmax.f32 %v15712_v5, 0.0 }
 0xdb1   : > { %v12522_v44 = vpack.c.bf16 %v12469_v32, %v12468_v7 }
 0xdb2   : > { %v12281_v23 = vpop.f32.mrb[160].mxu1 }
 0xdb3   : > { %v15713_v49 = vadd.f32 %v12281_v23, %v23690_v13  ;;  %v12283_v18 = vpop.f32.mrb[161].mxu1  ;;  %15002 = vmatprep.subr.bf16.mxu1 %v12522_v44 }
 0xdb4   : > { %v12284_v0 = vpop.f32.mrb[162].mxu1  ;;  %15003 = vmatpush3.bf16.msra.mxu1 %v23717_v3 }
 0xdb5   : > { %v15714_v52 = vadd.f32 %v12284_v0, %v23693_v26  ;;  %v12286_v24 = vpop.f32.mrb[163].mxu1  ;;  %v12470_v48 = vmax.f32 %v15713_v49, 0.0  ;;  %v9855_v26 = vpop.permute.xlu0 %9854 }
 0xdb7   : > { %v12471_v10 = vmax.f32 %v15714_v52, 0.0 }
 0xdb9   : > { %v12523_v1 = vpack.c.bf16 %v12471_v10, %v12470_v48  ;;  %v23769_v46 = vpop.permute.xlu0 %9944 }
 0xdba   : > { %v12289_v53 = vpop.f32.mrb[164].mxu1 }
 0xdbb   : > { %v15715_v15 = vadd.f32 %v12289_v53, %v23705_v27  ;;  %v12291_v30 = vpop.f32.mrb[165].mxu1  ;;  %15004 = vmatprep.subr.bf16.mxu1 %v12523_v1 }
 0xdbc   : > { %v12292_v13 = vpop.f32.mrb[166].mxu1  ;;  %15005 = vmatpush3.bf16.msra.mxu1 %v23729_v40 }
 0xdbd   : > { %v15716_v3 = vadd.f32 %v12292_v13, %v23715_v20  ;;  %v12294_v28 = vpop.f32.mrb[167].mxu1  ;;  %v12472_v33 = vmax.f32 %v15715_v15, 0.0  ;;  %v23773_v20 = vpop.permute.xlu1 %9949 }
 0xdbe   : > { %v9865_v16 = vpop.permute.xlu0 %9864 }
 0xdbf   : > { %v12473_v14 = vmax.f32 %v15716_v3, 0.0  ;;  %v18015_v3 = vld [vmem:[%s24290_s5 + $0x44] ss:$16 sps:$4 sm:$0xff]  }
 0xdc1   : > { %v12524_v60 = vpack.c.bf16 %v12473_v14, %v12472_v33  ;;  %v9870_v17 = vpop.permute.xlu1 %9869 }
 0xdc2   : > { %v12297_v45 = vpop.f32.mrb[168].mxu1  ;;  %v23778_v57 = vpop.permute.xlu0 %9954 }
 0xdc3   : > { %v15717_v58 = vadd.f32 %v12297_v45, %v23725_v12  ;;  %v12299_v37 = vpop.f32.mrb[169].mxu1  ;;  %15006 = vmatprep.subr.bf16.mxu1 %v12524_v60 }
 0xdc4   : > { %v12300_v27 = vpop.f32.mrb[170].mxu1  ;;  %15007 = vmatpush3.bf16.msra.mxu1 %v23736_v9 }
 0xdc5   : > { %v15718_v40 = vadd.f32 %v12300_v27, %v23727_v25  ;;  %v12302_v50 = vpop.f32.mrb[171].mxu1  ;;  %v12474_v34 = vmax.f32 %v15717_v58, 0.0  ;;  %v23780_v29 = vpop.permute.xlu1 %9959 }
 0xdc7   : > { %v12475_v42 = vmax.f32 %v15718_v40, 0.0  ;;  %v18013_v40 = vld [vmem:[%s24290_s5 + $0x40] ss:$16 sps:$4 sm:$0xff]  }
 0xdc9   : > { %v12525_v59 = vpack.c.bf16 %v12475_v42, %v12474_v34  ;;  %v9880_v5 = vpop.permute.xlu1 %9879  ;;  %v18018_v34 = vld [vmem:[%s24290_s5 + $0x64] ss:$16 sps:$4 sm:$0xff]  }
 0xdca   : > { %v12305_v51 = vpop.f32.mrb[172].mxu1 }
 0xdcb   : > { %v15719_v31 = vadd.f32 %v12305_v51, %v23734_v22  ;;  %v12307_v12 = vpop.f32.mrb[173].mxu1  ;;  %15008 = vmatprep.subr.bf16.mxu1 %v12525_v59 }
 0xdcc   : > { %v12308_v11 = vpop.f32.mrb[174].mxu1  ;;  %15009 = vmatpush3.bf16.msra.mxu1 %v23740_v55 }
 0xdcd   : > { %v15720_v9 = vadd.f32 %v12308_v11, %v23738_v62  ;;  %v12310_v54 = vpop.f32.mrb[175].mxu1  ;;  %v12476_v25 = vmax.f32 %v15719_v31, 0.0  ;;  %v9875_v62 = vpop.permute.xlu0 %9874 }
 0xdce   : > { %v23794_v0 = vpop.permute.xlu1 %9969 }
 0xdcf   : > { %v12477_v63 = vmax.f32 %v15720_v9, 0.0 }
 0xdd1   : > { %v12526_v21 = vpack.c.bf16 %v12477_v63, %v12476_v25  ;;  %v23788_v23 = vpop.permute.xlu0 %9964  ;;  %v18016_v25 = vld [vmem:[%s24290_s5 + $0x60] ss:$16 sps:$4 sm:$0xff]  }
 0xdd2   : > { %v12313_v39 = vpop.f32.mrb[176].mxu1  ;;  %v9890_v30 = vpop.permute.xlu1 %9889 }
 0xdd3   : > { %v15721_v61 = vadd.f32 %v12313_v39, %v23742_v43  ;;  %v12315_v22 = vpop.f32.mrb[177].mxu1  ;;  %15010 = vmatprep.subr.bf16.mxu1 %v12526_v21  ;;  %v18007_v43 = vld [vmem:[%s24290_s5] ss:$16 sps:$4 sm:$0xff]   ;;  %v18021_v39 = vld [vmem:[%s24290_s5 + $0x84] ss:$16 sps:$4 sm:$0xff]  }
 0xdd4   : > { %v12316_v47 = vpop.f32.mrb[178].mxu1  ;;  %15011 = vmatpush3.bf16.msra.mxu1 %v23746_v38 }
 0xdd5   : > { %v15722_v55 = vadd.f32 %v12316_v47, %v23744_v41  ;;  %v12318_v4 = vpop.f32.mrb[179].mxu1  ;;  %v12478_v56 = vmax.f32 %v15721_v61, 0.0  ;;  %v18012_v41 = vld [vmem:[%s24290_s5 + $0x24] ss:$16 sps:$4 sm:$0xff]   ;;  %v9885_v10 = vpop.permute.xlu0 %9884 }
 0xdd6   : > { %v23808_v45 = vpop.permute.xlu1 %9979 }
 0xdd7   : > { %v12479_v6 = vmax.f32 %v15722_v55, 0.0 }
 0xdd9   : > { %v12527_v2 = vpack.c.bf16 %v12479_v6, %v12478_v56 }
 0xdda   : > { %v12321_v7 = vpop.f32.mrb[180].mxu1  ;;  %v9900_v12 = vpop.permute.xlu1 %9899 }
 0xddb   : > { %v15723_v32 = vadd.f32 %v12321_v7, %v9855_v26  ;;  %v12323_v44 = vpop.f32.mrb[181].mxu1  ;;  %15012 = vmatprep.subr.bf16.mxu1 %v12527_v2  ;;  %v18019_v7 = vld [vmem:[%s24290_s5 + $0x80] ss:$16 sps:$4 sm:$0xff]  }
 0xddc   : > { %v12324_v49 = vpop.f32.mrb[182].mxu1  ;;  %15013 = vmatpush3.bf16.msra.mxu1 %v23748_v35  ;;  %v18010_v35 = vld [vmem:[%s24290_s5 + $0x20] ss:$16 sps:$4 sm:$0xff]  }
 0xddd   : > { %v15724_v38 = vadd.f32 %v12324_v49, %v9860_v8  ;;  %v12326_v18 = vpop.f32.mrb[183].mxu1  ;;  %v12480_v52 = vmax.f32 %v15723_v32, 0.0  ;;  %v23804_v8 = vpop.permute.xlu0 %9974 }
 0xdde   : > { %v23826_v47 = vpop.permute.xlu1 %9989 }
 0xddf   : > { %v12481_v24 = vmax.f32 %v15724_v38, 0.0  ;;  %13153 = vmatmul.mubr.bf16.vlgmr.msra.gmra.mrb[244].mxu1 %v18007_v43  ;;  %v18024_v43 = vld [vmem:[%s24290_s5 + $0xa4] ss:$16 sps:$4 sm:$0xff]  }
 0xde0   : > { %13160 = vmatprep.mubr.bf16.mxu1 %v18012_v41 }
 0xde1   : > { %v23796_v48 = vpack.c.bf16 %v12481_v24, %v12480_v52 }
 0xde2   : > { %v12329_v1 = vpop.f32.mrb[184].mxu1  ;;  %v9910_v32 = vpop.permute.xlu1 %9909 }
 0xde3   : > { %v15725_v53 = vadd.f32 %v12329_v1, %v9865_v16  ;;  %v12331_v15 = vpop.f32.mrb[185].mxu1  ;;  %v9895_v16 = vpop.permute.xlu0 %9894 }
 0xde4   : > { %v12332_v13 = vpop.f32.mrb[186].mxu1 }
 0xde5   : > { %v15726_v28 = vadd.f32 %v12332_v13, %v9870_v17  ;;  %v12334_v26 = vpop.f32.mrb[187].mxu1  ;;  %v12482_v33 = vmax.f32 %v15725_v53, 0.0  ;;  %v18027_v13 = vld [vmem:[%s24290_s5 + $0xc4] ss:$16 sps:$4 sm:$0xff]  }
 0xde7   : > { %v12483_v14 = vmax.f32 %v15726_v28, 0.0  ;;  %13161 = vmatmul.mubr.bf16.gmra.mrb[248].mxu1 %v18010_v35  ;;  %v23821_v63 = vpop.permute.xlu0 %9984  ;;  %v18022_v35 = vld [vmem:[%s24290_s5 + $0xa0] ss:$16 sps:$4 sm:$0xff]  }
 0xde8   : > { %13168 = vmatprep.mubr.bf16.mxu1 %v18015_v3 }
 0xde9   : > { %v23806_v60 = vpack.c.bf16 %v12483_v14, %v12482_v33 }
 0xdea   : > { %v12337_v58 = vpop.f32.mrb[188].mxu1 }
 0xdeb   : > { %v15727_v37 = vadd.f32 %v12337_v58, %v9875_v62  ;;  %v12339_v27 = vpop.f32.mrb[189].mxu1  ;;  %v9905_v56 = vpop.permute.xlu0 %9904 }
 0xdec   : > { %v12340_v50 = vpop.f32.mrb[190].mxu1 }
 0xded   : > { %v15728_v42 = vadd.f32 %v12340_v50, %v9880_v5  ;;  %v12342_v59 = vpop.f32.mrb[191].mxu1  ;;  %v12484_v51 = vmax.f32 %v15727_v37, 0.0 }
 0xdef   : > { %v12485_v31 = vmax.f32 %v15728_v42, 0.0  ;;  %13169 = vmatmul.mubr.bf16.gmra.mrb[252].mxu1 %v18013_v40  ;;  %v23836_v52 = vpop.permute.xlu0 %9994 }
 0xdf0   : > { %13176 = vmatprep.mubr.bf16.mxu1 %v18018_v34  ;;  %v18025_v34 = vld [vmem:[%s24290_s5 + $0xc0] ss:$16 sps:$4 sm:$0xff]  }
 0xdf1   : > { %v23816_v17 = vpack.c.bf16 %v12485_v31, %v12484_v51 }
 0xdf2   : > { %v12345_v11 = vpop.f32.mrb[192].mxu1 }
 0xdf3   : > { %v15729_v9 = vadd.f32 %v12345_v11, %v9885_v10  ;;  %v12347_v54 = vpop.f32.mrb[193].mxu1  ;;  %v23840_v10 = vpop.permute.xlu1 %9999 }
 0xdf4   : > { %v12348_v21 = vpop.f32.mrb[194].mxu1  ;;  %v9915_v26 = vpop.permute.xlu0 %9914 }
 0xdf5   : > { %v15730_v61 = vadd.f32 %v12348_v21, %v9890_v30  ;;  %v12350_v22 = vpop.f32.mrb[195].mxu1  ;;  %v12486_v55 = vmax.f32 %v15729_v9, 0.0 }
 0xdf6   : > { %v18028_v22 = vld [vmem:[%s24290_s5 + $0xe0] ss:$16 sps:$4 sm:$0xff]  }
 0xdf7   : > { %v12487_v4 = vmax.f32 %v15730_v61, 0.0  ;;  %13177 = vmatmul.mubr.bf16.gmra.mrb[0].mxu1 %v18016_v25  ;;  %v9920_v58 = vpop.permute.xlu1 %9919 }
 0xdf8   : > { %13184 = vmatprep.mubr.bf16.mxu1 %v18021_v39  ;;  %v23853_v42 = vpop.permute.xlu0 %10004 }
 0xdf9   : > { %v23828_v62 = vpack.c.bf16 %v12487_v4, %v12486_v55 }
 0xdfa   : > { %v12353_v6 = vpop.f32.mrb[196].mxu1 }
 0xdfb   : > { %v15731_v5 = vadd.f32 %v12353_v6, %v9895_v16  ;;  %v12355_v2 = vpop.f32.mrb[197].mxu1  ;;  %v18030_v16 = vld [vmem:[%s24290_s5 + $0xe4] ss:$16 sps:$4 sm:$0xff]  }
 0xdfc   : > { %v12356_v44 = vpop.f32.mrb[198].mxu1  ;;  %v9925_v25 = vpop.permute.xlu0 %9924 }
 0xdfd   : > { %v15732_v49 = vadd.f32 %v12356_v44, %v9900_v12  ;;  %v12358_v41 = vpop.f32.mrb[199].mxu1  ;;  %v12488_v38 = vmax.f32 %v15731_v5, 0.0  ;;  %v23858_v12 = vpop.permute.xlu1 %10009 }
 0xdfe   : > { %v18031_v41 = vld [vmem:[%s24290_s5 + $0x100] ss:$16 sps:$4 sm:$0xff]  }
 0xdff   : > { %v12489_v18 = vmax.f32 %v15732_v49, 0.0  ;;  %13185 = vmatmul.mubr.bf16.gmra.mrb[4].mxu1 %v18019_v7 }
 0xe00   : > { %13192 = vmatprep.mubr.bf16.mxu1 %v18024_v43 }
 0xe01   : > { %v23838_v24 = vpack.c.bf16 %v12489_v18, %v12488_v38  ;;  %v9930_v55 = vpop.permute.xlu1 %9929  ;;  %v18036_v18 = vld [vmem:[%s24290_s5 + $0x124] ss:$16 sps:$4 sm:$0xff]  }
 0xe02   : > { %v12361_v1 = vpop.f32.mrb[200].mxu1 }
 0xe03   : > { %v15733_v53 = vadd.f32 %v12361_v1, %v9905_v56  ;;  %v12363_v15 = vpop.f32.mrb[201].mxu1  ;;  %v18033_v56 = vld [vmem:[%s24290_s5 + $0x104] ss:$16 sps:$4 sm:$0xff]  }
 0xe04   : > { %v12364_v30 = vpop.f32.mrb[202].mxu1 }
 0xe05   : > { %v15734_v3 = vadd.f32 %v12364_v30, %v9910_v32  ;;  %v12366_v28 = vpop.f32.mrb[203].mxu1  ;;  %v12490_v33 = vmax.f32 %v15733_v53, 0.0 }
 0xe06   : > { %v18034_v28 = vld [vmem:[%s24290_s5 + $0x120] ss:$16 sps:$4 sm:$0xff]  }
 0xe07   : > { %v12491_v14 = vmax.f32 %v15734_v3, 0.0  ;;  %13193 = vmatmul.mubr.bf16.gmra.mrb[8].mxu1 %v18022_v35 }
 0xe08   : > { %13200 = vmatprep.mubr.bf16.mxu1 %v18027_v13 }
 0xe09   : > { %v23848_v37 = vpack.c.bf16 %v12491_v14, %v12490_v33 }
 0xe0a   : > { %v12369_v27 = vpop.f32.mrb[204].mxu1 }
 0xe0b   : > { %v15735_v40 = vadd.f32 %v12369_v27, %v9915_v26  ;;  %v12371_v50 = vpop.f32.mrb[205].mxu1 }
 0xe0c   : > { %v12372_v59 = vpop.f32.mrb[206].mxu1 }
 0xe0d   : > { %v15736_v51 = vadd.f32 %v12372_v59, %v9920_v58  ;;  %v12374_v31 = vpop.f32.mrb[207].mxu1  ;;  %v12492_v11 = vmax.f32 %v15735_v40, 0.0 }
 0xe0f   : > { %v12493_v9 = vmax.f32 %v15736_v51, 0.0  ;;  %13201 = vmatmul.mubr.bf16.gmra.mrb[12].mxu1 %v18025_v34 }
 0xe10   : > { %13208 = vmatprep.mubr.bf16.mxu1 %v18030_v16 }
 0xe11   : > { %v23860_v54 = vpack.c.bf16 %v12493_v9, %v12492_v11 }
 0xe12   : > { %v12377_v21 = vpop.f32.mrb[208].mxu1 }
 0xe13   : > { %v15737_v39 = vadd.f32 %v12377_v21, %v9925_v25  ;;  %v12379_v61 = vpop.f32.mrb[209].mxu1 }
 0xe14   : > { %v12380_v4 = vpop.f32.mrb[210].mxu1 }
 0xe15   : > { %v15738_v6 = vadd.f32 %v12380_v4, %v9930_v55  ;;  %v12382_v5 = vpop.f32.mrb[211].mxu1  ;;  %v12494_v2 = vmax.f32 %v15737_v39, 0.0 }
 0xe17   : > { %v12495_v7 = vmax.f32 %v15738_v6, 0.0  ;;  %13209 = vmatmul.mubr.bf16.gmra.mrb[16].mxu1 %v18028_v22 }
 0xe18   : > { %13216 = vmatprep.mubr.bf16.mxu1 %v18033_v56 }
 0xe19   : > { %v23868_v32 = vpack.c.bf16 %v12495_v7, %v12494_v2 }
 0xe1a   : > { %v12385_v44 = vpop.f32.mrb[212].mxu1 }
 0xe1b   : > { %v15739_v43 = vadd.f32 %v12385_v44, %v23761_v19  ;;  %v12387_v49 = vpop.f32.mrb[213].mxu1 }
 0xe1c   : > { %v12388_v38 = vpop.f32.mrb[214].mxu1 }
 0xe1d   : > { %v15740_v1 = vadd.f32 %v12388_v38, %v23763_v36  ;;  %v12390_v53 = vpop.f32.mrb[215].mxu1  ;;  %v12496_v15 = vmax.f32 %v15739_v43, 0.0  ;;  %v18039_v36 = vld [vmem:[%s24290_s5 + $0x144] ss:$16 sps:$4 sm:$0xff]  }
 0xe1f   : > { %v12497_v35 = vmax.f32 %v15740_v1, 0.0  ;;  %13217 = vmatmul.mubr.bf16.gmra.mrb[20].mxu1 %v18031_v41 }
 0xe20   : > { %13224 = vmatprep.mubr.bf16.mxu1 %v18036_v18 }
 0xe21   : > { %v12536_v30 = vpack.c.bf16 %v12497_v35, %v12496_v15 }
 0xe22   : > { %v12393_v13 = vpop.f32.mrb[216].mxu1 }
 0xe23   : > { %v15741_v19 = vadd.f32 %v12393_v13, %v23769_v46  ;;  %v12395_v3 = vpop.f32.mrb[217].mxu1  ;;  %15110 = vmatprep.subr.bf16.mxu1 %v12536_v30 }
 0xe24   : > { %v12396_v26 = vpop.f32.mrb[218].mxu1  ;;  %15111 = vmatpush3.bf16.msra.mxu1 %v23796_v48  ;;  %v18037_v48 = vld [vmem:[%s24290_s5 + $0x140] ss:$16 sps:$4 sm:$0xff]  }
 0xe25   : > { %v15742_v33 = vadd.f32 %v12396_v26, %v23773_v20  ;;  %v12398_v14 = vpop.f32.mrb[219].mxu1  ;;  %v12498_v58 = vmax.f32 %v15741_v19, 0.0  ;;  %v18042_v20 = vld [vmem:[%s24290_s5 + $0x164] ss:$16 sps:$4 sm:$0xff]  }
 0xe27   : > { %v12499_v27 = vmax.f32 %v15742_v33, 0.0  ;;  %13225 = vmatmul.mubr.bf16.gmra.mrb[24].mxu1 %v18034_v28 }
 0xe28   : > { %13232 = vmatprep.mubr.bf16.mxu1 %v18039_v36 }
 0xe29   : > { %v12537_v46 = vpack.c.bf16 %v12499_v27, %v12498_v58 }
 0xe2a   : > { %v12401_v40 = vpop.f32.mrb[220].mxu1 }
 0xe2b   : > { %v15743_v50 = vadd.f32 %v12401_v40, %v23778_v57  ;;  %v12403_v34 = vpop.f32.mrb[221].mxu1  ;;  %15112 = vmatprep.subr.bf16.mxu1 %v12537_v46 }
 0xe2c   : > { %v12404_v59 = vpop.f32.mrb[222].mxu1  ;;  %15113 = vmatpush3.bf16.msra.mxu1 %v23806_v60  ;;  %v18040_v60 = vld [vmem:[%s24290_s5 + $0x160] ss:$16 sps:$4 sm:$0xff]  }
 0xe2d   : > { %v15744_v16 = vadd.f32 %v12404_v59, %v23780_v29  ;;  %v12406_v51 = vpop.f32.mrb[223].mxu1  ;;  %v12500_v31 = vmax.f32 %v15743_v50, 0.0  ;;  %v18045_v29 = vld [vmem:[%s24290_s5 + $0x184] ss:$16 sps:$4 sm:$0xff]  }
 0xe2e   : > { %v18066_v51 = vld [vmem:[%s24290_s5 + $0x6c] ss:$16 sps:$4 sm:$0xff]  }
 0xe2f   : > { %v12501_v11 = vmax.f32 %v15744_v16, 0.0  ;;  %13233 = vmatmul.mubr.bf16.gmra.mrb[28].mxu1 %v18037_v48  ;;  %v18063_v16 = vld [vmem:[%s24290_s5 + $0x4c] ss:$16 sps:$4 sm:$0xff]  }
 0xe30   : > { %13240 = vmatprep.mubr.bf16.mxu1 %v18042_v20  ;;  %v18055_v20 = vld [vmem:[%s24290_s5 + $0x8] ss:$16 sps:$4 sm:$0xff]  }
 0xe31   : > { %v12538_v57 = vpack.c.bf16 %v12501_v11, %v12500_v31  ;;  %v18064_v31 = vld [vmem:[%s24290_s5 + $0x68] ss:$16 sps:$4 sm:$0xff]   ;;  %v18069_v11 = vld [vmem:[%s24290_s5 + $0x8c] ss:$16 sps:$4 sm:$0xff]  }
 0xe32   : > { %v12409_v9 = vpop.f32.mrb[224].mxu1 }
 0xe33   : > { %v15745_v25 = vadd.f32 %v12409_v9, %v23788_v23  ;;  %v12411_v21 = vpop.f32.mrb[225].mxu1  ;;  %15114 = vmatprep.subr.bf16.mxu1 %v12538_v57  ;;  %v18067_v57 = vld [vmem:[%s24290_s5 + $0x88] ss:$16 sps:$4 sm:$0xff]   ;;  %v18072_v9 = vld [vmem:[%s24290_s5 + $0xac] ss:$16 sps:$4 sm:$0xff]  }
 0xe34   : > { %v12412_v39 = vpop.f32.mrb[226].mxu1  ;;  %15115 = vmatpush3.bf16.msra.mxu1 %v23816_v17  ;;  %v18043_v17 = vld [vmem:[%s24290_s5 + $0x180] ss:$16 sps:$4 sm:$0xff]   ;;  %v18075_v21 = vld [vmem:[%s24290_s5 + $0xcc] ss:$16 sps:$4 sm:$0xff]  }
 0xe35   : > { %v15746_v61 = vadd.f32 %v12412_v39, %v23794_v0  ;;  %v12414_v22 = vpop.f32.mrb[227].mxu1  ;;  %v12502_v55 = vmax.f32 %v15745_v25, 0.0  ;;  %v18048_v0 = vld [vmem:[%s24290_s5 + $0x1a4] ss:$16 sps:$4 sm:$0xff]   ;;  %v18070_v25 = vld [vmem:[%s24290_s5 + $0xa8] ss:$16 sps:$4 sm:$0xff]  }
 0xe36   : > { %v18078_v39 = vld [vmem:[%s24290_s5 + $0xec] ss:$16 sps:$4 sm:$0xff]   ;;  %v18079_v22 = vld [vmem:[%s24290_s5 + $0x108] ss:$16 sps:$4 sm:$0xff]  }
 0xe37   : > { %v12503_v4 = vmax.f32 %v15746_v61, 0.0  ;;  %13241 = vmatmul.mubr.bf16.gmra.mrb[32].mxu1 %v18040_v60  ;;  %v18073_v60 = vld [vmem:[%s24290_s5 + $0xc8] ss:$16 sps:$4 sm:$0xff]   ;;  %v18081_v61 = vld [vmem:[%s24290_s5 + $0x10c] ss:$16 sps:$4 sm:$0xff]  }
 0xe38   : > { %13248 = vmatprep.mubr.bf16.mxu1 %v18045_v29  ;;  %v18076_v29 = vld [vmem:[%s24290_s5 + $0xe8] ss:$16 sps:$4 sm:$0xff]  }
 0xe39   : > { %v12539_v23 = vpack.c.bf16 %v12503_v4, %v12502_v55  ;;  %v18084_v55 = vld [vmem:[%s24290_s5 + $0x12c] ss:$16 sps:$4 sm:$0xff]   ;;  %v18082_v4 = vld [vmem:[%s24290_s5 + $0x128] ss:$16 sps:$4 sm:$0xff]  }
 0xe3a   : > { %v12417_v56 = vpop.f32.mrb[228].mxu1 }
 0xe3b   : > { %v15747_v6 = vadd.f32 %v12417_v56, %v23804_v8  ;;  %v12419_v5 = vpop.f32.mrb[229].mxu1  ;;  %15116 = vmatprep.subr.bf16.mxu1 %v12539_v23  ;;  %v18087_v23 = vld [vmem:[%s24290_s5 + $0x14c] ss:$16 sps:$4 sm:$0xff]   ;;  %v18085_v56 = vld [vmem:[%s24290_s5 + $0x148] ss:$16 sps:$4 sm:$0xff]  }
 0xe3c   : > { %v12420_v2 = vpop.f32.mrb[230].mxu1  ;;  %15117 = vmatpush3.bf16.msra.mxu1 %v23828_v62  ;;  %v18046_v62 = vld [vmem:[%s24290_s5 + $0x1a0] ss:$16 sps:$4 sm:$0xff]  }
 0xe3d   : > { %v15748_v7 = vadd.f32 %v12420_v2, %v23808_v45  ;;  %v12422_v44 = vpop.f32.mrb[231].mxu1  ;;  %v12504_v43 = vmax.f32 %v15747_v6, 0.0  ;;  %v18051_v45 = vld [vmem:[%s24290_s5 + $0x1c4] ss:$16 sps:$4 sm:$0xff]   ;;  %v18090_v6 = vld [vmem:[%s24290_s5 + $0x16c] ss:$16 sps:$4 sm:$0xff]  }
 0xe3e   : > { %v18088_v2 = vld [vmem:[%s24290_s5 + $0x168] ss:$16 sps:$4 sm:$0xff]   ;;  %v18093_v44 = vld [vmem:[%s24290_s5 + $0x18c] ss:$16 sps:$4 sm:$0xff]  }
 0xe3f   : > { %v12505_v49 = vmax.f32 %v15748_v7, 0.0  ;;  %13249 = vmatmul.mubr.bf16.gmra.mrb[36].mxu1 %v18043_v17 }
 0xe40   : > { %13256 = vmatprep.mubr.bf16.mxu1 %v18048_v0 }
 0xe41   : > { %v12540_v8 = vpack.c.bf16 %v12505_v49, %v12504_v43 }
 0xe42   : > { %v12425_v41 = vpop.f32.mrb[232].mxu1 }
 0xe43   : > { %v15749_v38 = vadd.f32 %v12425_v41, %v23821_v63  ;;  %v12427_v18 = vpop.f32.mrb[233].mxu1  ;;  %15118 = vmatprep.subr.bf16.mxu1 %v12540_v8 }
 0xe44   : > { %v12428_v1 = vpop.f32.mrb[234].mxu1  ;;  %15119 = vmatpush3.bf16.msra.mxu1 %v23838_v24  ;;  %v18049_v24 = vld [vmem:[%s24290_s5 + $0x1c0] ss:$16 sps:$4 sm:$0xff]  }
 0xe45   : > { %v15750_v53 = vadd.f32 %v12428_v1, %v23826_v47  ;;  %v12430_v15 = vpop.f32.mrb[235].mxu1  ;;  %v12506_v35 = vmax.f32 %v15749_v38, 0.0  ;;  %v18054_v47 = vld [vmem:[%s24290_s5 + $0x1e4] ss:$16 sps:$4 sm:$0xff]   ;;  %v18091_v38 = vld [vmem:[%s24290_s5 + $0x188] ss:$16 sps:$4 sm:$0xff]  }
 0xe46   : > { %v18096_v1 = vld [vmem:[%s24290_s5 + $0x1ac] ss:$16 sps:$4 sm:$0xff]  }
 0xe47   : > { %v12507_v30 = vmax.f32 %v15750_v53, 0.0  ;;  %13257 = vmatmul.mubr.bf16.gmra.mrb[40].mxu1 %v18046_v62 }
 0xe48   : > { %13264 = vmatprep.mubr.bf16.mxu1 %v18051_v45 }
 0xe49   : > { %v12541_v63 = vpack.c.bf16 %v12507_v30, %v12506_v35  ;;  %v18094_v30 = vld [vmem:[%s24290_s5 + $0x1a8] ss:$16 sps:$4 sm:$0xff]  }
 0xe4a   : > { %v12433_v13 = vpop.f32.mrb[236].mxu1 }
 0xe4b   : > { %v15751_v19 = vadd.f32 %v12433_v13, %v23836_v52  ;;  %v12435_v3 = vpop.f32.mrb[237].mxu1  ;;  %15120 = vmatprep.subr.bf16.mxu1 %v12541_v63 }
 0xe4c   : > { %v12436_v28 = vpop.f32.mrb[238].mxu1  ;;  %15121 = vmatpush3.bf16.msra.mxu1 %v23848_v37  ;;  %v18052_v37 = vld [vmem:[%s24290_s5 + $0x1e0] ss:$16 sps:$4 sm:$0xff]  }
 0xe4d   : > { %v15752_v26 = vadd.f32 %v12436_v28, %v23840_v10  ;;  %v12438_v36 = vpop.f32.mrb[239].mxu1  ;;  %v12508_v33 = vmax.f32 %v15751_v19, 0.0  ;;  %v18057_v10 = vld [vmem:[%s24290_s5 + $0xc] ss:$16 sps:$4 sm:$0xff]  }
 0xe4e   : > { %v18099_v19 = vld [vmem:[%s24290_s5 + $0x1cc] ss:$16 sps:$4 sm:$0xff]  }
 0xe4f   : > { %v12509_v14 = vmax.f32 %v15752_v26, 0.0  ;;  %13265 = vmatmul.mubr.bf16.gmra.mrb[44].mxu1 %v18049_v24  ;;  %v18097_v26 = vld [vmem:[%s24290_s5 + $0x1c8] ss:$16 sps:$4 sm:$0xff]  }
 0xe50   : > { %13272 = vmatprep.mubr.bf16.mxu1 %v18054_v47 }
 0xe51   : > { %v12542_v52 = vpack.c.bf16 %v12509_v14, %v12508_v33  ;;  %v18102_v14 = vld [vmem:[%s24290_s5 + $0x1ec] ss:$16 sps:$4 sm:$0xff]  }
 0xe52   : > { %v12441_v58 = vpop.f32.mrb[240].mxu1 }
 0xe53   : > { %v15753_v27 = vadd.f32 %v12441_v58, %v23853_v42  ;;  %v12443_v46 = vpop.f32.mrb[241].mxu1  ;;  %15122 = vmatprep.subr.bf16.mxu1 %v12542_v52 }
 0xe54   : > { %v12444_v40 = vpop.f32.mrb[242].mxu1  ;;  %15123 = vmatpush3.bf16.msra.mxu1 %v23860_v54  ;;  %v18060_v54 = vld [vmem:[%s24290_s5 + $0x2c] ss:$16 sps:$4 sm:$0xff]  }
 0xe55   : > { %v15754_v50 = vadd.f32 %v12444_v40, %v23858_v12  ;;  %v12446_v34 = vpop.f32.mrb[243].mxu1  ;;  %v12510_v48 = vmax.f32 %v15753_v27, 0.0  ;;  %v18058_v12 = vld [vmem:[%s24290_s5 + $0x28] ss:$16 sps:$4 sm:$0xff]  }
 0xe57   : > { %v12511_v59 = vmax.f32 %v15754_v50, 0.0  ;;  %13273 = vmatmul.mubr.bf16.gmra.mrb[48].mxu1 %v18052_v37  ;;  %v18100_v37 = vld [vmem:[%s24290_s5 + $0x1e8] ss:$16 sps:$4 sm:$0xff]  }
 0xe58   : > { %13313 = vmatprep.mubr.bf16.mxu1 %v18057_v10 }
 0xe59   : > { %v12543_v42 = vpack.c.bf16 %v12511_v59, %v12510_v48 }
 0xe5b   : > { %15124 = vmatprep.subr.bf16.mxu1 %v12543_v42 }
 0xe5c   : > { %15125 = vmatpush3.bf16.msra.mxu1 %v23868_v32  ;;  %v18061_v32 = vld [vmem:[%s24290_s5 + $0x48] ss:$16 sps:$4 sm:$0xff]  }
 0xe5f   : > { %13314 = vmatmul.mubr.bf16.vlgmr.msra.gmra.mrb[52].mxu1 %v18055_v20 }
 0xe60   : > { %13321 = vmatprep.mubr.bf16.mxu1 %v18060_v54 }
 0xe67   : > { %13322 = vmatmul.mubr.bf16.gmra.mrb[56].mxu1 %v18058_v12 }
 0xe68   : > { %13329 = vmatprep.mubr.bf16.mxu1 %v18063_v16 }
 0xe6f   : > { %13330 = vmatmul.mubr.bf16.gmra.mrb[60].mxu1 %v18061_v32 }
 0xe70   : > { %13337 = vmatprep.mubr.bf16.mxu1 %v18066_v51 }
 0xe77   : > { %13338 = vmatmul.mubr.bf16.gmra.mrb[64].mxu1 %v18064_v31 }
 0xe78   : > { %13345 = vmatprep.mubr.bf16.mxu1 %v18069_v11 }
 0xe7f   : > { %13346 = vmatmul.mubr.bf16.gmra.mrb[68].mxu1 %v18067_v57 }
 0xe80   : > { %13353 = vmatprep.mubr.bf16.mxu1 %v18072_v9 }
 0xe87   : > { %13354 = vmatmul.mubr.bf16.gmra.mrb[72].mxu1 %v18070_v25 }
 0xe88   : > { %13361 = vmatprep.mubr.bf16.mxu1 %v18075_v21 }
 0xe8f   : > { %13362 = vmatmul.mubr.bf16.gmra.mrb[76].mxu1 %v18073_v60 }
 0xe90   : > { %13369 = vmatprep.mubr.bf16.mxu1 %v18078_v39 }
 0xe97   : > { %13370 = vmatmul.mubr.bf16.gmra.mrb[80].mxu1 %v18076_v29 }
 0xe98   : > { %13377 = vmatprep.mubr.bf16.mxu1 %v18081_v61 }
 0xe9f   : > { %13378 = vmatmul.mubr.bf16.gmra.mrb[84].mxu1 %v18079_v22 }
 0xea0   : > { %13385 = vmatprep.mubr.bf16.mxu1 %v18084_v55 }
 0xea7   : > { %13386 = vmatmul.mubr.bf16.gmra.mrb[88].mxu1 %v18082_v4 }
 0xea8   : > { %13393 = vmatprep.mubr.bf16.mxu1 %v18087_v23 }
 0xeaf   : > { %13394 = vmatmul.mubr.bf16.gmra.mrb[92].mxu1 %v18085_v56 }
 0xeb0   : > { %13401 = vmatprep.mubr.bf16.mxu1 %v18090_v6 }
 0xeb2   : > { %v15014_v5 = vpop.f32.mrb[244].mxu1 }
 0xeb3   : > { %v15015_v17 = vpop.f32.mrb[245].mxu1 }
 0xeb4   : > { %v24011_v0 = vadd.f32 %v15015_v17, %v15014_v5  ;;  %v15017_v7 = vpop.f32.mrb[246].mxu1 }
 0xeb5   : > { %v15018_v43 = vpop.f32.mrb[247].mxu1 }
 0xeb6   : > { %v24016_v49 = vadd.f32 %v15018_v43, %v15017_v7 }
 0xeb7   : > { %13402 = vmatmul.mubr.bf16.gmra.mrb[96].mxu1 %v18088_v2 }
 0xeb8   : > { %13409 = vmatprep.mubr.bf16.mxu1 %v18093_v44 }
 0xeba   : > { %v15020_v8 = vpop.f32.mrb[248].mxu1 }
 0xebb   : > { %v15021_v41 = vpop.f32.mrb[249].mxu1 }
 0xebc   : > { %v24021_v18 = vadd.f32 %v15021_v41, %v15020_v8  ;;  %v15023_v62 = vpop.f32.mrb[250].mxu1 }
 0xebd   : > { %v15024_v45 = vpop.f32.mrb[251].mxu1 }
 0xebe   : > { %v24026_v53 = vadd.f32 %v15024_v45, %v15023_v62 }
 0xebf   : > { %13410 = vmatmul.mubr.bf16.gmra.mrb[100].mxu1 %v18091_v38 }
 0xec0   : > { %13417 = vmatprep.mubr.bf16.mxu1 %v18096_v1 }
 0xec2   : > { %v15026_v15 = vpop.f32.mrb[252].mxu1 }
 0xec3   : > { %v15027_v35 = vpop.f32.mrb[253].mxu1 }
 0xec4   : > { %v24031_v63 = vadd.f32 %v15027_v35, %v15026_v15  ;;  %v15029_v13 = vpop.f32.mrb[254].mxu1 }
 0xec5   : > { %v15030_v3 = vpop.f32.mrb[255].mxu1 }
 0xec6   : > { %v24036_v24 = vadd.f32 %v15030_v3, %v15029_v13  ;;  %v24083_v3 = vpop.permute.xlu0 %12722 }
 0xec7   : > { %13418 = vmatmul.mubr.bf16.gmra.mrb[104].mxu1 %v18094_v30 }
 0xec8   : > { %13425 = vmatprep.mubr.bf16.mxu1 %v18099_v19 }
 0xeca   : > { %v15032_v28 = vpop.f32.mrb[0].mxu1 }
 0xecb   : > { %v15033_v47 = vpop.f32.mrb[1].mxu1 }
 0xecc   : > { %v24041_v36 = vadd.f32 %v15033_v47, %v15032_v28  ;;  %v15035_v33 = vpop.f32.mrb[2].mxu1  ;;  %v24085_v47 = vpop.permute.xlu1 %12727 }
 0xecd   : > { %v15036_v52 = vpop.f32.mrb[3].mxu1 }
 0xece   : > { %v24046_v58 = vadd.f32 %v15036_v52, %v15035_v33 }
 0xecf   : > { %13426 = vmatmul.mubr.bf16.gmra.mrb[108].mxu1 %v18097_v26 }
 0xed0   : > { %13433 = vmatprep.mubr.bf16.mxu1 %v18102_v14 }
 0xed2   : > { %v15038_v27 = vpop.f32.mrb[4].mxu1 }
 0xed3   : > { %v15039_v46 = vpop.f32.mrb[5].mxu1 }
 0xed4   : > { %v24051_v40 = vadd.f32 %v15039_v46, %v15038_v27  ;;  %v15041_v10 = vpop.f32.mrb[6].mxu1  ;;  %v12643_v46 = vpop.permute.xlu0 %12642 }
 0xed5   : > { %v15042_v50 = vpop.f32.mrb[7].mxu1 }
 0xed6   : > { %v24053_v34 = vadd.f32 %v15042_v50, %v15041_v10 }
 0xed7   : > { %13434 = vmatmul.mubr.bf16.gmra.mrb[112].mxu1 %v18100_v37  ;;  %v12648_v37 = vpop.permute.xlu1 %12647 }
 0xeda   : > { %v15044_v48 = vpop.f32.mrb[8].mxu1 }
 0xedb   : > { %v15045_v59 = vpop.f32.mrb[9].mxu1 }
 0xedc   : > { %v24055_v42 = vadd.f32 %v15045_v59, %v15044_v48  ;;  %v15047_v20 = vpop.f32.mrb[10].mxu1 }
 0xedd   : > { %v15048_v54 = vpop.f32.mrb[11].mxu1 }
 0xede   : > { %v24057_v12 = vadd.f32 %v15048_v54, %v15047_v20  ;;  %v24093_v20 = vpop.permute.xlu0 %12732 }
 0xee2   : > { %v15050_v16 = vpop.f32.mrb[12].mxu1 }
 0xee3   : > { %v15051_v32 = vpop.f32.mrb[13].mxu1 }
 0xee4   : > { %v24059_v51 = vadd.f32 %v15051_v32, %v15050_v16  ;;  %v15053_v31 = vpop.f32.mrb[14].mxu1  ;;  %v24097_v32 = vpop.permute.xlu1 %12737 }
 0xee5   : > { %v15054_v11 = vpop.f32.mrb[15].mxu1 }
 0xee6   : > { %v24061_v57 = vadd.f32 %v15054_v11, %v15053_v31  ;;  %v12653_v11 = vpop.permute.xlu0 %12652 }
 0xeea   : > { %v15056_v9 = vpop.f32.mrb[16].mxu1 }
 0xeeb   : > { %v15057_v25 = vpop.f32.mrb[17].mxu1 }
 0xeec   : > { %v24063_v21 = vadd.f32 %v15057_v25, %v15056_v9  ;;  %v15059_v60 = vpop.f32.mrb[18].mxu1 }
 0xeed   : > { %v15060_v39 = vpop.f32.mrb[19].mxu1 }
 0xeee   : > { %v24065_v29 = vadd.f32 %v15060_v39, %v15059_v60  ;;  %v12658_v39 = vpop.permute.xlu1 %12657 }
 0xef2   : > { %v15062_v61 = vpop.f32.mrb[20].mxu1 }
 0xef3   : > { %v15063_v22 = vpop.f32.mrb[21].mxu1 }
 0xef4   : > { %v24067_v55 = vadd.f32 %v15063_v22, %v15062_v61  ;;  %v15065_v4 = vpop.f32.mrb[22].mxu1 }
 0xef5   : > { %v15066_v23 = vpop.f32.mrb[23].mxu1 }
 0xef6   : > { %v24069_v56 = vadd.f32 %v15066_v23, %v15065_v4  ;;  %v24103_v4 = vpop.permute.xlu0 %12742 }
 0xefa   : > { %v15068_v6 = vpop.f32.mrb[24].mxu1 }
 0xefb   : > { %v15069_v5 = vpop.f32.mrb[25].mxu1 }
 0xefc   : > { %v24071_v17 = vadd.f32 %v15069_v5, %v15068_v6  ;;  %v15071_v2 = vpop.f32.mrb[26].mxu1  ;;  %v24105_v6 = vpop.permute.xlu1 %12747 }
 0xefd   : > { %v15072_v7 = vpop.f32.mrb[27].mxu1 }
 0xefe   : > { %v24073_v44 = vadd.f32 %v15072_v7, %v15071_v2 }
 0xf02   : > { %v15074_v43 = vpop.f32.mrb[28].mxu1 }
 0xf03   : > { %v15075_v8 = vpop.f32.mrb[29].mxu1 }
 0xf04   : > { %v24075_v41 = vadd.f32 %v15075_v8, %v15074_v43  ;;  %v15077_v38 = vpop.f32.mrb[30].mxu1 }
 0xf05   : > { %v15078_v62 = vpop.f32.mrb[31].mxu1 }
 0xf06   : > { %v24077_v1 = vadd.f32 %v15078_v62, %v15077_v38  ;;  %v12663_v38 = vpop.permute.xlu0 %12662  ;;  %v12668_v62 = vpop.permute.xlu1 %12667 }
 0xf0a   : > { %v15080_v45 = vpop.f32.mrb[32].mxu1 }
 0xf0b   : > { %v15081_v15 = vpop.f32.mrb[33].mxu1 }
 0xf0c   : > { %v24079_v35 = vadd.f32 %v15081_v15, %v15080_v45  ;;  %v15083_v30 = vpop.f32.mrb[34].mxu1 }
 0xf0d   : > { %v15084_v13 = vpop.f32.mrb[35].mxu1 }
 0xf0e   : > { %v24081_v19 = vadd.f32 %v15084_v13, %v15083_v30  ;;  %v13155_v30 = vadd.f32 %v24011_v0, %v12643_v46 }
 0xf12   : > { %v15086_v28 = vpop.f32.mrb[36].mxu1 }
 0xf13   : > { %v15087_v26 = vpop.f32.mrb[37].mxu1 }
 0xf14   : > { %v24087_v33 = vadd.f32 %v15087_v26, %v15086_v28  ;;  %v15089_v14 = vpop.f32.mrb[38].mxu1  ;;  %v24112_v26 = vpop.permute.xlu0 %12752 }
 0xf15   : > { %v15090_v52 = vpop.f32.mrb[39].mxu1 }
 0xf16   : > { %v24089_v27 = vadd.f32 %v15090_v52, %v15089_v14  ;;  %v13158_v52 = vadd.f32 %v24016_v49, %v12648_v37 }
 0xf18   : > { %v12673_v46 = vpop.permute.xlu0 %12672 }
 0xf1a   : > { %v15092_v10 = vpop.f32.mrb[40].mxu1 }
 0xf1b   : > { %v15093_v50 = vpop.f32.mrb[41].mxu1 }
 0xf1c   : > { %v24091_v48 = vadd.f32 %v15093_v50, %v15092_v10  ;;  %v15095_v59 = vpop.f32.mrb[42].mxu1 }
 0xf1d   : > { %v15096_v54 = vpop.f32.mrb[43].mxu1 }
 0xf1e   : > { %v24095_v16 = vadd.f32 %v15096_v54, %v15095_v59  ;;  %v24115_v59 = vpop.permute.xlu1 %12757  ;;  %v18105_v54 = vld [vmem:[%s24292_s7 + $0x4] ss:$8 sps:$4 sm:$0xff]  }
 0xf1f   : > { %13618 = vmatprep.mubr.bf16.mxu1 %v18105_v54 }
 0xf22   : > { %v15098_v31 = vpop.f32.mrb[44].mxu1 }
 0xf23   : > { %v15099_v9 = vpop.f32.mrb[45].mxu1 }
 0xf24   : > { %v24099_v25 = vadd.f32 %v15099_v9, %v15098_v31  ;;  %v15101_v60 = vpop.f32.mrb[46].mxu1 }
 0xf25   : > { %v15102_v61 = vpop.f32.mrb[47].mxu1 }
 0xf26   : > { %v24101_v22 = vadd.f32 %v15102_v61, %v15101_v60 }
 0xf2a   : > { %v15104_v23 = vpop.f32.mrb[48].mxu1 }
 0xf2b   : > { %v15105_v5 = vpop.f32.mrb[49].mxu1 }
 0xf2c   : > { %v24107_v2 = vadd.f32 %v15105_v5, %v15104_v23  ;;  %v15107_v7 = vpop.f32.mrb[50].mxu1  ;;  %v13163_v23 = vadd.f32 %v24021_v18, %v12653_v11  ;;  %v13171_v18 = vadd.f32 %v24031_v63, %v12663_v38 }
 0xf2d   : > { %v15108_v43 = vpop.f32.mrb[51].mxu1 }
 0xf2e   : > { %v24109_v8 = vadd.f32 %v15108_v43, %v15107_v7  ;;  %v12678_v7 = vpop.permute.xlu1 %12677 }
 0xf32   : > { %v15126_v45 = vpop.f32.mrb[52].mxu1 }
 0xf33   : > { %v15127_v15 = vpop.f32.mrb[53].mxu1 }
 0xf34   : > { %v15128_v13 = vadd.f32 %v15127_v15, %v15126_v45  ;;  %v15129_v28 = vpop.f32.mrb[54].mxu1  ;;  %v13166_v45 = vadd.f32 %v24026_v53, %v12658_v39  ;;  %v13174_v53 = vadd.f32 %v24036_v24, %v12668_v62  ;;  %v13182_v24 = vadd.f32 %v24046_v58, %v12678_v7 }
 0xf35   : > { %v15130_v14 = vpop.f32.mrb[55].mxu1 }
 0xf36   : > { %v13316_v10 = vadd.f32 %v15128_v13, %v13155_v30  ;;  %v15131_v50 = vadd.f32 %v15130_v14, %v15129_v28  ;;  %v24124_v28 = vpop.permute.xlu0 %12762 }
 0xf38   : > { %v13319_v31 = vadd.f32 %v15131_v50, %v13158_v52  ;;  %v13442_v9 = vmax.f32 %v13316_v10, 0.0  ;;  %v24126_v50 = vpop.permute.xlu1 %12767 }
 0xf3a   : > { %v13443_v60 = vmax.f32 %v13319_v31, 0.0  ;;  %v15132_v0 = vpop.f32.mrb[56].mxu1 }
 0xf3b   : > { %v15133_v61 = vpop.f32.mrb[57].mxu1 }
 0xf3c   : > { %v24121_v5 = vpack.c.bf16 %v13443_v60, %v13442_v9  ;;  %v15134_v49 = vadd.f32 %v15133_v61, %v15132_v0  ;;  %v15135_v37 = vpop.f32.mrb[58].mxu1  ;;  %v12683_v61 = vpop.permute.xlu0 %12682 }
 0xf3d   : > { %v15136_v43 = vpop.f32.mrb[59].mxu1 }
 0xf3e   : > { %v13324_v15 = vadd.f32 %v15134_v49, %v13163_v23  ;;  %v15137_v30 = vadd.f32 %v15136_v43, %v15135_v37  ;;  %v12688_v49 = vpop.permute.xlu1 %12687 }
 0xf3f   : > { %v13190_v58 = vadd.f32 %v24053_v34, %v12688_v49 }
 0xf40   : > { %v13327_v13 = vadd.f32 %v15137_v30, %v13166_v45  ;;  %v13444_v14 = vmax.f32 %v13324_v15, 0.0  ;;  %v13179_v30 = vadd.f32 %v24041_v36, %v12673_v46  ;;  %v13187_v36 = vadd.f32 %v24051_v40, %v12683_v61 }
 0xf42   : > { %v13445_v52 = vmax.f32 %v13327_v13, 0.0  ;;  %v15138_v10 = vpop.f32.mrb[60].mxu1 }
 0xf43   : > { %v15139_v54 = vpop.f32.mrb[61].mxu1 }
 0xf44   : > { %v24129_v11 = vpack.c.bf16 %v13445_v52, %v13444_v14  ;;  %v15140_v31 = vadd.f32 %v15139_v54, %v15138_v10  ;;  %v15141_v9 = vpop.f32.mrb[62].mxu1  ;;  %v24135_v14 = vpop.permute.xlu0 %12772 }
 0xf45   : > { %v15142_v60 = vpop.f32.mrb[63].mxu1  ;;  %v24138_v54 = vpop.permute.xlu1 %12777 }
 0xf46   : > { %v13332_v39 = vadd.f32 %v15140_v31, %v13171_v18  ;;  %v15143_v0 = vadd.f32 %v15142_v60, %v15141_v9 }
 0xf48   : > { %v13335_v23 = vadd.f32 %v15143_v0, %v13174_v53  ;;  %v13446_v37 = vmax.f32 %v13332_v39, 0.0  ;;  %v12693_v53 = vpop.permute.xlu0 %12692 }
 0xf49   : > { %v13195_v40 = vadd.f32 %v24055_v42, %v12693_v53 }
 0xf4a   : > { %v13447_v43 = vmax.f32 %v13335_v23, 0.0  ;;  %v15144_v45 = vpop.f32.mrb[64].mxu1 }
 0xf4b   : > { %v15145_v15 = vpop.f32.mrb[65].mxu1 }
 0xf4c   : > { %v24133_v13 = vpack.c.bf16 %v13447_v43, %v13446_v37  ;;  %v15146_v63 = vadd.f32 %v15145_v15, %v15144_v45  ;;  %v15147_v38 = vpop.f32.mrb[66].mxu1  ;;  %v12698_v37 = vpop.permute.xlu1 %12697 }
 0xf4d   : > { %v15148_v52 = vpop.f32.mrb[67].mxu1  ;;  %v13198_v34 = vadd.f32 %v24057_v12, %v12698_v37 }
 0xf4e   : > { %v13340_v62 = vadd.f32 %v15146_v63, %v13179_v30  ;;  %v15149_v10 = vadd.f32 %v15148_v52, %v15147_v38  ;;  %v24144_v30 = vpop.permute.xlu0 %12782 }
 0xf50   : > { %v13343_v18 = vadd.f32 %v15149_v10, %v13182_v24  ;;  %v13448_v31 = vmax.f32 %v13340_v62, 0.0  ;;  %v24146_v24 = vpop.permute.xlu1 %12787 }
 0xf52   : > { %v13449_v9 = vmax.f32 %v13343_v18, 0.0  ;;  %v15150_v60 = vpop.f32.mrb[68].mxu1 }
 0xf53   : > { %v15151_v39 = vpop.f32.mrb[69].mxu1 }
 0xf54   : > { %v24141_v46 = vpack.c.bf16 %v13449_v9, %v13448_v31  ;;  %v15152_v0 = vadd.f32 %v15151_v39, %v15150_v60  ;;  %v15153_v23 = vpop.f32.mrb[70].mxu1  ;;  %v12703_v60 = vpop.permute.xlu0 %12702 }
 0xf55   : > { %v15154_v43 = vpop.f32.mrb[71].mxu1 }
 0xf56   : > { %v13348_v7 = vadd.f32 %v15152_v0, %v13187_v36  ;;  %v15155_v45 = vadd.f32 %v15154_v43, %v15153_v23  ;;  %v12708_v36 = vpop.permute.xlu1 %12707 }
 0xf57   : > { %v13206_v12 = vadd.f32 %v24061_v57, %v12708_v36 }
 0xf58   : > { %v13351_v15 = vadd.f32 %v15155_v45, %v13190_v58  ;;  %v13450_v63 = vmax.f32 %v13348_v7, 0.0  ;;  %v13203_v7 = vadd.f32 %v24059_v51, %v12703_v60 }
 0xf5a   : > { %v13451_v38 = vmax.f32 %v13351_v15, 0.0  ;;  %v15156_v52 = vpop.f32.mrb[72].mxu1  ;;  %v24155_v15 = vpop.permute.xlu0 %12792 }
 0xf5b   : > { %v15157_v62 = vpop.f32.mrb[73].mxu1 }
 0xf5c   : > { %v24149_v61 = vpack.c.bf16 %v13451_v38, %v13450_v63  ;;  %v15158_v10 = vadd.f32 %v15157_v62, %v15156_v52  ;;  %v15159_v18 = vpop.f32.mrb[74].mxu1  ;;  %v24158_v52 = vpop.permute.xlu1 %12797 }
 0xf5d   : > { %v15160_v31 = vpop.f32.mrb[75].mxu1 }
 0xf5e   : > { %v13356_v49 = vadd.f32 %v15158_v10, %v13195_v40  ;;  %v15161_v9 = vadd.f32 %v15160_v31, %v15159_v18  ;;  %v12713_v31 = vpop.permute.xlu0 %12712 }
 0xf5f   : > { %v13211_v51 = vadd.f32 %v24063_v21, %v12713_v31 }
 0xf60   : > { %v13359_v39 = vadd.f32 %v15161_v9, %v13198_v34  ;;  %v13452_v0 = vmax.f32 %v13356_v49, 0.0 }
 0xf62   : > { %v13453_v23 = vmax.f32 %v13359_v39, 0.0  ;;  %v15162_v43 = vpop.f32.mrb[76].mxu1  ;;  %v12718_v39 = vpop.permute.xlu1 %12717 }
 0xf63   : > { %v15163_v58 = vpop.f32.mrb[77].mxu1  ;;  %v13214_v57 = vadd.f32 %v24065_v29, %v12718_v39 }
 0xf64   : > { %v24153_v45 = vpack.c.bf16 %v13453_v23, %v13452_v0  ;;  %v15164_v42 = vadd.f32 %v15163_v58, %v15162_v43  ;;  %v15165_v53 = vpop.f32.mrb[78].mxu1 }
 0xf65   : > { %v15166_v63 = vpop.f32.mrb[79].mxu1 }
 0xf66   : > { %v13364_v37 = vadd.f32 %v15164_v42, %v13203_v7  ;;  %v15167_v38 = vadd.f32 %v15166_v63, %v15165_v53  ;;  %v13219_v63 = vadd.f32 %v24067_v55, %v24083_v3 }
 0xf68   : > { %v13367_v62 = vadd.f32 %v15167_v38, %v13206_v12  ;;  %v13454_v40 = vmax.f32 %v13364_v37, 0.0 }
 0xf6a   : > { %v13455_v10 = vmax.f32 %v13367_v62, 0.0  ;;  %v15168_v18 = vpop.f32.mrb[80].mxu1  ;;  %v13222_v62 = vadd.f32 %v24069_v56, %v24085_v47 }
 0xf6b   : > { %v15169_v34 = vpop.f32.mrb[81].mxu1 }
 0xf6c   : > { %v24161_v49 = vpack.c.bf16 %v13455_v10, %v13454_v40  ;;  %v15170_v9 = vadd.f32 %v15169_v34, %v15168_v18  ;;  %v15171_v60 = vpop.f32.mrb[82].mxu1 }
 0xf6d   : > { %v15172_v0 = vpop.f32.mrb[83].mxu1 }
 0xf6e   : > { %v13372_v36 = vadd.f32 %v15170_v9, %v13211_v51  ;;  %v15173_v23 = vadd.f32 %v15172_v0, %v15171_v60  ;;  %v13227_v9 = vadd.f32 %v24071_v17, %v24093_v20  ;;  %v13230_v0 = vadd.f32 %v24073_v44, %v24097_v32 }
 0xf6f   : > { %v13235_v17 = vadd.f32 %v24075_v41, %v24103_v4  ;;  %v13238_v44 = vadd.f32 %v24077_v1, %v24105_v6  ;;  %v13243_v41 = vadd.f32 %v24079_v35, %v24112_v26  ;;  %v13246_v1 = vadd.f32 %v24081_v19, %v24115_v59 }
 0xf70   : > { %v13375_v43 = vadd.f32 %v15173_v23, %v13214_v57  ;;  %v13456_v58 = vmax.f32 %v13372_v36, 0.0  ;;  %v13251_v35 = vadd.f32 %v24087_v33, %v24124_v28  ;;  %v13254_v19 = vadd.f32 %v24089_v27, %v24126_v50 }
 0xf71   : > { %v13259_v33 = vadd.f32 %v24091_v48, %v24135_v14  ;;  %v13262_v27 = vadd.f32 %v24095_v16, %v24138_v54  ;;  %v13267_v48 = vadd.f32 %v24099_v25, %v24144_v30  ;;  %v13270_v16 = vadd.f32 %v24101_v22, %v24146_v24 }
 0xf72   : > { %v13457_v7 = vmax.f32 %v13375_v43, 0.0  ;;  %v15174_v42 = vpop.f32.mrb[84].mxu1  ;;  %v13275_v25 = vadd.f32 %v24107_v2, %v24155_v15  ;;  %v13278_v22 = vadd.f32 %v24109_v8, %v24158_v52  ;;  %v18103_v2 = vld [vmem:[%s24292_s7] ss:$8 sps:$4 sm:$0xff]   ;;  %v18108_v8 = vld [vmem:[%s24292_s7 + $0x14] ss:$8 sps:$4 sm:$0xff]  }
 0xf73   : > { %v15175_v53 = vpop.f32.mrb[85].mxu1  ;;  %v18106_v15 = vld [vmem:[%s24292_s7 + $0x10] ss:$8 sps:$4 sm:$0xff]   ;;  %v18111_v52 = vld [vmem:[%s24292_s7 + $0x24] ss:$8 sps:$4 sm:$0xff]  }
 0xf74   : > { %v24166_v12 = vpack.c.bf16 %v13457_v7, %v13456_v58  ;;  %v15176_v21 = vadd.f32 %v15175_v53, %v15174_v42  ;;  %v15177_v37 = vpop.f32.mrb[86].mxu1 }
 0xf75   : > { %v15178_v38 = vpop.f32.mrb[87].mxu1 }
 0xf76   : > { %v13380_v40 = vadd.f32 %v15176_v21, %v13219_v63  ;;  %v15179_v29 = vadd.f32 %v15178_v38, %v15177_v37 }
 0xf78   : > { %v13383_v10 = vadd.f32 %v15179_v29, %v13222_v62  ;;  %v13458_v18 = vmax.f32 %v13380_v40, 0.0 }
 0xf7a   : > { %v13459_v31 = vmax.f32 %v13383_v10, 0.0  ;;  %v15180_v34 = vpop.f32.mrb[88].mxu1 }
 0xf7b   : > { %v15181_v51 = vpop.f32.mrb[89].mxu1 }
 0xf7c   : > { %v15182_v60 = vadd.f32 %v15181_v51, %v15180_v34  ;;  %v15183_v55 = vpop.f32.mrb[90].mxu1  ;;  %v13482_v3 = vpack.c.bf16 %v13459_v31, %v13458_v18 }
 0xf7d   : > { %v15184_v39 = vpop.f32.mrb[91].mxu1 }
 0xf7e   : > { %v13388_v57 = vadd.f32 %v15182_v60, %v13227_v9  ;;  %v15185_v36 = vadd.f32 %v15184_v39, %v15183_v55  ;;  %15222 = vmatprep.subr.bf16.mxu1 %v13482_v3 }
 0xf7f   : > { %15223 = vmatpush3.bf16.msra.mxu1 %v24121_v5 }
 0xf80   : > { %v13391_v56 = vadd.f32 %v15185_v36, %v13230_v0  ;;  %v13460_v47 = vmax.f32 %v13388_v57, 0.0 }
 0xf82   : > { %v13461_v23 = vmax.f32 %v13391_v56, 0.0  ;;  %v15186_v43 = vpop.f32.mrb[92].mxu1 }
 0xf83   : > { %v15187_v58 = vpop.f32.mrb[93].mxu1 }
 0xf84   : > { %v15188_v20 = vadd.f32 %v15187_v58, %v15186_v43  ;;  %v15189_v7 = vpop.f32.mrb[94].mxu1  ;;  %v13483_v42 = vpack.c.bf16 %v13461_v23, %v13460_v47 }
 0xf85   : > { %v15190_v53 = vpop.f32.mrb[95].mxu1 }
 0xf86   : > { %v13396_v32 = vadd.f32 %v15188_v20, %v13235_v17  ;;  %v15191_v63 = vadd.f32 %v15190_v53, %v15189_v7  ;;  %15224 = vmatprep.subr.bf16.mxu1 %v13483_v42 }
 0xf87   : > { %15225 = vmatpush3.bf16.msra.mxu1 %v24129_v11 }
 0xf88   : > { %v13399_v5 = vadd.f32 %v15191_v63, %v13238_v44  ;;  %v13462_v21 = vmax.f32 %v13396_v32, 0.0 }
 0xf8a   : > { %v13463_v37 = vmax.f32 %v13399_v5, 0.0  ;;  %v15192_v38 = vpop.f32.mrb[96].mxu1 }
 0xf8b   : > { %v15193_v62 = vpop.f32.mrb[97].mxu1 }
 0xf8c   : > { %v15194_v4 = vadd.f32 %v15193_v62, %v15192_v38  ;;  %v15195_v40 = vpop.f32.mrb[98].mxu1  ;;  %v13484_v29 = vpack.c.bf16 %v13463_v37, %v13462_v21 }
 0xf8d   : > { %v15196_v10 = vpop.f32.mrb[99].mxu1 }
 0xf8e   : > { %v13404_v6 = vadd.f32 %v15194_v4, %v13243_v41  ;;  %v15197_v18 = vadd.f32 %v15196_v10, %v15195_v40  ;;  %15226 = vmatprep.subr.bf16.mxu1 %v13484_v29 }
 0xf8f   : > { %15227 = vmatpush3.bf16.msra.mxu1 %v24133_v13 }
 0xf90   : > { %v13407_v11 = vadd.f32 %v15197_v18, %v13246_v1  ;;  %v13464_v31 = vmax.f32 %v13404_v6, 0.0  ;;  %v18112_v6 = vld [vmem:[%s24292_s7 + $0x30] ss:$8 sps:$4 sm:$0xff]   ;;  %v18198_v18 = vmov 0.0  }
 0xf92   : > { %v13465_v34 = vmax.f32 %v13407_v11, 0.0  ;;  %v15198_v51 = vpop.f32.mrb[100].mxu1 }
 0xf93   : > { %v15199_v9 = vpop.f32.mrb[101].mxu1 }
 0xf94   : > { %v15200_v26 = vadd.f32 %v15199_v9, %v15198_v51  ;;  %v15201_v60 = vpop.f32.mrb[102].mxu1  ;;  %v13485_v55 = vpack.c.bf16 %v13465_v34, %v13464_v31  ;;  %v13509_v9 = vpop.permute.xlu0 %13508 }
 0xf95   : > { %v15202_v3 = vpop.f32.mrb[103].mxu1 }
 0xf96   : > { %v13412_v59 = vadd.f32 %v15200_v26, %v13251_v35  ;;  %v15203_v39 = vadd.f32 %v15202_v3, %v15201_v60  ;;  %15228 = vmatprep.subr.bf16.mxu1 %v13485_v55  ;;  %v13514_v55 = vpop.permute.xlu1 %13513 }
 0xf97   : > { %15229 = vmatpush3.bf16.msra.mxu1 %v24141_v46 }
 0xf98   : > { %v13415_v13 = vadd.f32 %v15203_v39, %v13254_v19  ;;  %v13466_v0 = vmax.f32 %v13412_v59, 0.0 }
 0xf9a   : > { %v13467_v57 = vmax.f32 %v13415_v13, 0.0  ;;  %v15204_v36 = vpop.f32.mrb[104].mxu1 }
 0xf9b   : > { %v15205_v56 = vpop.f32.mrb[105].mxu1 }
 0xf9c   : > { %v15206_v28 = vadd.f32 %v15205_v56, %v15204_v36  ;;  %v15207_v47 = vpop.f32.mrb[106].mxu1  ;;  %v13486_v23 = vpack.c.bf16 %v13467_v57, %v13466_v0  ;;  %v13519_v56 = vpop.permute.xlu0 %13518 }
 0xf9d   : > { %v15208_v43 = vpop.f32.mrb[107].mxu1 }
 0xf9e   : > { %v13420_v50 = vadd.f32 %v15206_v28, %v13259_v33  ;;  %v15209_v58 = vadd.f32 %v15208_v43, %v15207_v47  ;;  %15230 = vmatprep.subr.bf16.mxu1 %v13486_v23  ;;  %v13524_v23 = vpop.permute.xlu1 %13523 }
 0xf9f   : > { %15231 = vmatpush3.bf16.msra.mxu1 %v24149_v61 }
 0xfa0   : > { %v13423_v46 = vadd.f32 %v15209_v58, %v13262_v27  ;;  %v13468_v17 = vmax.f32 %v13420_v50, 0.0 }
 0xfa2   : > { %v13469_v20 = vmax.f32 %v13423_v46, 0.0  ;;  %v15210_v7 = vpop.f32.mrb[108].mxu1 }
 0xfa3   : > { %v15211_v42 = vpop.f32.mrb[109].mxu1 }
 0xfa4   : > { %v15212_v14 = vadd.f32 %v15211_v42, %v15210_v7  ;;  %v15213_v53 = vpop.f32.mrb[110].mxu1  ;;  %v13487_v44 = vpack.c.bf16 %v13469_v20, %v13468_v17  ;;  %v13529_v42 = vpop.permute.xlu0 %13528 }
 0xfa5   : > { %v15214_v32 = vpop.f32.mrb[111].mxu1 }
 0xfa6   : > { %v13428_v54 = vadd.f32 %v15212_v14, %v13267_v48  ;;  %v15215_v63 = vadd.f32 %v15214_v32, %v15213_v53  ;;  %15232 = vmatprep.subr.bf16.mxu1 %v13487_v44  ;;  %v13534_v44 = vpop.permute.xlu1 %13533 }
 0xfa7   : > { %15233 = vmatpush3.bf16.msra.mxu1 %v24153_v45 }
 0xfa8   : > { %v13431_v61 = vadd.f32 %v15215_v63, %v13270_v16  ;;  %v13470_v5 = vmax.f32 %v13428_v54, 0.0 }
 0xfaa   : > { %v13471_v21 = vmax.f32 %v13431_v61, 0.0  ;;  %v15216_v37 = vpop.f32.mrb[112].mxu1 }
 0xfab   : > { %v15217_v38 = vpop.f32.mrb[113].mxu1 }
 0xfac   : > { %v15218_v30 = vadd.f32 %v15217_v38, %v15216_v37  ;;  %v15219_v62 = vpop.f32.mrb[114].mxu1  ;;  %v13488_v41 = vpack.c.bf16 %v13471_v21, %v13470_v5  ;;  %v13539_v38 = vpop.permute.xlu0 %13538 }
 0xfad   : > { %v15220_v4 = vpop.f32.mrb[115].mxu1 }
 0xfae   : > { %v13436_v24 = vadd.f32 %v15218_v30, %v13275_v25  ;;  %v15221_v40 = vadd.f32 %v15220_v4, %v15219_v62  ;;  %15234 = vmatprep.subr.bf16.mxu1 %v13488_v41  ;;  %v13544_v41 = vpop.permute.xlu1 %13543 }
 0xfaf   : > { %15235 = vmatpush3.bf16.msra.mxu1 %v24161_v49  ;;  %v18109_v49 = vld [vmem:[%s24292_s7 + $0x20] ss:$8 sps:$4 sm:$0xff]  }
 0xfb0   : > { %v13439_v45 = vadd.f32 %v15221_v40, %v13278_v22  ;;  %v13472_v29 = vmax.f32 %v13436_v24, 0.0 }
 0xfb2   : > { %v13473_v10 = vmax.f32 %v13439_v45, 0.0  ;;  %v18115_v45 = vld [vmem:[%s24294_s9] sm:$0xff]  }
 0xfb4   : > { %v13489_v1 = vpack.c.bf16 %v13473_v10, %v13472_v29  ;;  %v13670_v29 = vpop.permute.xlu0 %13669 }
 0xfb6   : > { %15236 = vmatprep.subr.bf16.mxu1 %v13489_v1 }
 0xfb7   : > { %15237 = vmatpush3.bf16.msra.mxu1 %v24166_v12  ;;  %v18114_v12 = vld [vmem:[%s24292_s7 + $0x34] ss:$8 sps:$4 sm:$0xff]  }
 0xfb8   : > { %15397 = vmatprep.subr.bf16.mxu1 %v18198_v18 }
 0xfba   : > { %13619 = vmatmul.mubr.bf16.vlgmr.msra.gmra.mrb[116].mxu1 %v18103_v2 }
 0xfbb   : > { %13626 = vmatprep.mubr.bf16.mxu1 %v18108_v8  ;;  %v13675_v8 = vpop.permute.xlu1 %13674 }
 0xfc2   : > { %13627 = vmatmul.mubr.bf16.gmra.mrb[120].mxu1 %v18106_v15 }
 0xfc3   : > { %13634 = vmatprep.mubr.bf16.mxu1 %v18111_v52 }
 0xfca   : > { %13635 = vmatmul.mubr.bf16.gmra.mrb[124].mxu1 %v18109_v49 }
 0xfcb   : > { %13642 = vmatprep.mubr.bf16.mxu1 %v18114_v12 }
 0xfd2   : > { %13643 = vmatmul.mubr.bf16.gmra.mrb[128].mxu1 %v18112_v6 }
 0xfd3   : > { %15405 = vmatprep.mubr.msk.bf16.mxu1 %vm18199_vm3, %v18198_v18 }
0x108d   : > { %v15238_v11 = vpop.f32.mrb[116].mxu1 }
0x108e   : > { %v15239_v31 = vpop.f32.mrb[117].mxu1 }
0x108f   : > { %v15240_v34 = vadd.f32 %v15239_v31, %v15238_v11  ;;  %v15241_v51 = vpop.f32.mrb[118].mxu1 }
0x1090   : > { %v15242_v35 = vpop.f32.mrb[119].mxu1 }
0x1091   : > { %v13621_v26 = vadd.f32 %v15240_v34, %v13509_v9  ;;  %v15243_v60 = vadd.f32 %v15242_v35, %v15241_v51 }
0x1093   : > { %v13624_v3 = vadd.f32 %v15243_v60, %v13514_v55  ;;  %v13651_v19 = vmax.f32 %v13621_v26, 0.0 }
0x1095   : > { %v13652_v59 = vmax.f32 %v13624_v3, 0.0  ;;  %v15244_v39 = vpop.f32.mrb[120].mxu1 }
0x1096   : > { %v15245_v13 = vpop.f32.mrb[121].mxu1 }
0x1097   : > { %v13659_v0 = vpack.c.bf16 %v13652_v59, %v13651_v19  ;;  %v15246_v57 = vadd.f32 %v15245_v13, %v15244_v39  ;;  %v15247_v36 = vpop.f32.mrb[122].mxu1 }
0x1098   : > { %v15248_v33 = vpop.f32.mrb[123].mxu1 }
0x1099   : > { %v13629_v28 = vadd.f32 %v15246_v57, %v13519_v56  ;;  %v15249_v47 = vadd.f32 %v15248_v33, %v15247_v36  ;;  %15398 = vmatpush3.bf16.msra.mxu1 %v13659_v0 }
0x109a   : > { %15399 = vmatprep.subr.bf16.mxu1 %v18198_v18 }
0x109b   : > { %v13632_v43 = vadd.f32 %v15249_v47, %v13524_v23  ;;  %v13653_v27 = vmax.f32 %v13629_v28, 0.0 }
0x109d   : > { %v13654_v50 = vmax.f32 %v13632_v43, 0.0  ;;  %v15250_v58 = vpop.f32.mrb[124].mxu1 }
0x109e   : > { %v15251_v46 = vpop.f32.mrb[125].mxu1 }
0x109f   : > { %v13660_v17 = vpack.c.bf16 %v13654_v50, %v13653_v27  ;;  %v15252_v20 = vadd.f32 %v15251_v46, %v15250_v58  ;;  %v15253_v7 = vpop.f32.mrb[126].mxu1 }
0x10a0   : > { %v15254_v48 = vpop.f32.mrb[127].mxu1 }
0x10a1   : > { %v13637_v14 = vadd.f32 %v15252_v20, %v13529_v42  ;;  %v15255_v53 = vadd.f32 %v15254_v48, %v15253_v7  ;;  %15400 = vmatpush3.bf16.msra.mxu1 %v13660_v17 }
0x10a2   : > { %15401 = vmatprep.subr.bf16.mxu1 %v18198_v18 }
0x10a3   : > { %v13640_v32 = vadd.f32 %v15255_v53, %v13534_v44  ;;  %v13655_v16 = vmax.f32 %v13637_v14, 0.0 }
0x10a5   : > { %v13656_v54 = vmax.f32 %v13640_v32, 0.0  ;;  %v15256_v63 = vpop.f32.mrb[128].mxu1 }
0x10a6   : > { %v15257_v61 = vpop.f32.mrb[129].mxu1 }
0x10a7   : > { %v13661_v5 = vpack.c.bf16 %v13656_v54, %v13655_v16  ;;  %v15258_v21 = vadd.f32 %v15257_v61, %v15256_v63  ;;  %v15259_v37 = vpop.f32.mrb[130].mxu1 }
0x10a8   : > { %v15260_v25 = vpop.f32.mrb[131].mxu1 }
0x10a9   : > { %v13645_v30 = vadd.f32 %v15258_v21, %v13539_v38  ;;  %v15261_v62 = vadd.f32 %v15260_v25, %v15259_v37  ;;  %15402 = vmatpush3.bf16.msra.mxu1 %v13661_v5 }
0x10aa   : > { %15403 = vmatprep.subr.bf16.mxu1 %v18198_v18 }
0x10ab   : > { %v13648_v4 = vadd.f32 %v15261_v62, %v13544_v41  ;;  %v13657_v22 = vmax.f32 %v13645_v30, 0.0 }
0x10ad   : > { %v13658_v24 = vmax.f32 %v13648_v4, 0.0 }
0x10af   : > { %v13662_v40 = vpack.c.bf16 %v13658_v24, %v13657_v22 }
0x10b1   : > { %15404 = vmatpush3.bf16.msra.mxu1 %v13662_v40 }
0x10b4   : > { %15406 = vmatmul.mubr.msk.bf16.vlgmr.msra.gmra.mrb[132].mxu1 %vm13682_vm4, %v18115_v45 }
0x1187   : > { %v13720_v10 = vpop.f32.mrb[132].mxu1 }
0x1188   : > { %v13721_v1 = vadd.f32 %v13720_v10, %v13670_v29  ;;  %v15407_v2 = vpop.f32.mrb[133].mxu1 }
0x1189   : > { %v13723_v15 = vpop.f32.mrb[134].mxu1 }
0x118a   : > { %13727 = vst [vmem:[%s401_s12] sm:$0xff] %v13721_v1  ;;  %v13724_v52 = vadd.f32 %v13723_v15, %v13675_v8  ;;  %v15408_v49 = vpop.f32.mrb[135].mxu1 }
0x118c   : > { %13728 = vst [vmem:[%s401_s12 + $0x8] sm:$0xff] %v13724_v52 }
0x118d   : > { %18129 = shalt.err (!%p18126_p5)
}
0x118e   : > { %s18130_s28 = scalar_lea.hbm %s24237_s15, 256  ;;  %s18134_s25 = scalar_lea.hbm %s24296_s11, 512 }
0x118f   : > { %p18131_p6 = scmp.ne.s32.totalorder %s24237_s15, %s18130_s28  ;;  %p18135_p10 = scmp.lt.u32.totalorder %s24237_s15, %s24296_s11 }
0x1190   : > { %p18136_p11 = scmp.lt.u32.totalorder %s18134_s25, %s18130_s28  ;;  %p18138_p13 = scmp.lt.u32.totalorder %s18130_s28, %s24237_s15 }
0x1191   : > { %p18132_p7 = pnand %p18131_p6, %p18303_p4 }
0x1192   : > { %p18137_p12 = por %p18136_p11, %p18135_p10 }
0x1193   : > { %p18133_p9 = pneg %p18132_p7 }
0x1194   : > { %p18139_p0 = por %p18138_p13, %p18137_p12 }
0x1196   : > { %p18140_p1 = pnand %p18139_p0, %p18133_p9 }
0x1198   : > { %18143 = shalt.err (!%p18140_p1)
}
0x1199   : > { %s18201_s20 = smov 128   ;;  %s18202_s26 = smov 8  }
0x119a   : > { %16920 = dma.vmem_to_hbm [thread:$0]  (%p18303_p4), %s24232_s13, 256, %s24237_s15, %s24239_s16, %s18201_s20, %s18201_s20, %s18202_s26  }
0x119b PF: > { %p16926_p2 = scmp.ge.s32.totalorder %s18194_s22, 2  ;;  %s13759_s24 = sand.u32 1, %s18174_s17  }
0x119c   : > { %s13760_s28 = scalar_lea.sflag [#allocation3], %s13759_s24 }
0x119d   : > { %p16923_p3 = pnand %p16926_p2, %p18310_p8 }
0x119f   : > { %18169 = dma.done.wait (!%p16923_p3), %s13760_s28, 256  }
0x11a0   : > { %18171 = vsyncadd (!%p16923_p3), %s13760_s28, 4294967040  ;;  %s24_s22 = sadd.s32 1, %s18194_s22   ;;  %s24842_s27 = sld [smem:[#allocation5_spill]] }
0x11a1   : > { %p21_p5 = scmp.ge.s32.totalorder %s24_s22, 4   ;;  %s24843_s17 = smov %s18178_s18 }
0x11a2   : > { %s24844_s18 = smov %s18182_s19  ;;  %s24845_s19 = smov %s18316_s30 }
0x11a3   : > { %s24846_s20 = smov %s18190_s21  ;;  %23 = sbr.rel (!%p21_p5) target bundleno = 6 (0x6), region = 99 }
0x11a6   : > { %s24847_s21 = smov %s24842_s27 }
0x11aa   :  { %13765 = vsyncpa [#allocation3], 1 }
0x11ab   :  { %13767 = vsyncpa [#allocation3 + $0x1], 1 }

</bundles_post_ra>
